<compile_context>
chip_gen: v7x
topology: tpu7x:2x2x1
jax: 0.10.0
libtpu: 0.0.40
codegen_flags: <defaults>
</compile_context>

<pallas_src>
import jax
import jax.numpy as jnp
from jax.experimental import pallas as pl
from jax.experimental.pallas import tpu as pltpu


# -----------------------------------------------------------------------------
# Pallas kernels
# -----------------------------------------------------------------------------

def _trunk_kernel(x_ref, w1_ref, b1_ref, w2_ref, b2_ref, w3_ref, b3_ref,
                  feat_ref, p1_ref, p2_ref):
    """Fused CNN trunk for one siamese branch (B images).

    x_ref   : (B, Hin, Win, 1)   input images, NHWC
    w1_ref  : (3, 3, 1, C1)      conv1 weights (HWIO);          b1_ref: (1, C1)
    w2_ref  : (2*2*C1, C2)       conv2 weights, im2col-flat;    b2_ref: (1, C2)
    w3_ref  : (2*2*C2, C3)       conv3 weights, im2col-flat;    b3_ref: (1, C3)
    feat_ref: (B, W3, C3)        conv3 output (H3 == 1) == CNN features
    p1_ref  : (B, P1h, P1w, C1)  VMEM scratch: pool1 output
    p2_ref  : (B, P2h, P2w, C2)  VMEM scratch: pool2 output
    """
    f32 = jnp.float32
    B, Hin, Win, _ = x_ref.shape
    KH1, KW1, _, C1 = w1_ref.shape
    H1, W1 = Hin - KH1 + 1, Win - KW1 + 1          # conv1 output spatial (10, 26)
    _, P1h, P1w, _ = p1_ref.shape                  # pool1 output spatial (5, 13)
    _, P2h, P2w, C2 = p2_ref.shape                 # pool2 output spatial (2, 6)
    _, W3, C3 = feat_ref.shape                     # conv3 output width (5); H3 == 1
    H2, W2 = P1h - 1, P1w - 1                      # conv2 output spatial (4, 12)

    # ---- conv1 (Cin=1 -> C1, k=3) + ReLU: 9 VPU broadcast madds, no K=1 MXU matmuls.
    x = x_ref[...]                                                    # (B, Hin, Win, 1)
    acc1 = jnp.zeros((B, H1, W1, C1), f32)
    for kh in range(KH1):
        for kw in range(KW1):
            acc1 = acc1 + x[:, kh:kh + H1, kw:kw + W1, :] * w1_ref[kh, kw]
    a1 = jnp.maximum(acc1 + b1_ref[...], 0.0)                         # (B, H1, W1, C1)

    # ---- maxpool 2x2 / stride 2 -> p1_ref.  H pooled via a leading-dim reshape;
    #      W pooled per output column, vectorized over (B, P1h): one (B,P1h,1,C1)
    #      slab store per column instead of per-pixel stores.
    a1 = a1[:, :2 * P1h]                              # floor mode (even H here)
    a1r = a1.reshape(B, P1h, 2, W1, C1)               # leading-dim split only
    hmax = jnp.maximum(a1r[:, :, 0], a1r[:, :, 1])    # (B, P1h, W1, C1)
    for j in range(P1w):
        p1_ref[:, :, j:j + 1, :] = jnp.maximum(hmax[:, :, 2 * j:2 * j + 1, :],
                                               hmax[:, :, 2 * j + 1:2 * j + 2, :])

    # ---- conv2 (C1 -> C2, k=2) + ReLU + maxpool 2x2 -> p2_ref.
    #      im2col over (kh, kw) via lane-dim concat => one (W2, 4*C1) @ (4*C1, C2)
    #      matmul per (image, output row) with K = 256.
    for b in range(B):
        a2_rows = []
        for h in range(H2):
            patch = jnp.concatenate(
                [p1_ref[b, h + kh, kw:kw + W2, :] for kh in range(2) for kw in range(2)],
                axis=-1)                                              # (W2, 4*C1)
            a2_rows.append(jnp.maximum(
                jnp.dot(patch, w2_ref[...], preferred_element_type=f32) + b2_ref[...],
                0.0))                                                 # (W2, C2)
        for i in range(P2h):
            hm = jnp.maximum(a2_rows[2 * i], a2_rows[2 * i + 1])      # (W2, C2)
            for j in range(P2w):
                p2_ref[b, i, j:j + 1, :] = jnp.maximum(hm[2 * j:2 * j + 1, :],
                                                       hm[2 * j + 1:2 * j + 2, :])

    # ---- conv3 (C2 -> C3, k=2) + ReLU -> feat_ref (H3 == 1), K = 512 im2col matmul.
    for b in range(B):
        patch = jnp.concatenate(
            [p2_ref[b, kh, kw:kw + W3, :] for kh in range(2) for kw in range(2)],
            axis=-1)                                                  # (W3, 4*C2)
        feat_ref[b] = jnp.maximum(
            jnp.dot(patch, w3_ref[...], preferred_element_type=f32) + b3_ref[...], 0.0)


def _heads_kernel(feat_ref,
                  wc1_ref, bc1_ref, wc2_ref, bc2_ref, wc3_ref, bc3_ref,
                  ws1_ref, bs1_ref, ws2_ref, bs2_ref, ws3_ref, bs3_ref,
                  sim_ref, cls_ref):
    """All three FC heads fused in one call.

    feat_ref: (2B, F) flattened features; rows [0,B) = branch 1, rows [B,2B) = branch 2.
    fc_classif runs on all 2B rows at once; fc1 (similarity) runs on feat1*feat2.
    Dropout layers are identity (eval semantics).
    """
    f32 = jnp.float32
    f = feat_ref[...]                                                 # (2B, F)
    B = f.shape[0] // 2

    # fc_classif: Linear(F,256) -> ReLU -> Linear(256,128) -> ReLU -> Linear(128,10)
    hc = jnp.maximum(jnp.dot(f, wc1_ref[...], preferred_element_type=f32)
                     + bc1_ref[...], 0.0)
    hc = jnp.maximum(jnp.dot(hc, wc2_ref[...], preferred_element_type=f32)
                     + bc2_ref[...], 0.0)
    cls_ref[...] = jnp.dot(hc, wc3_ref[...], preferred_element_type=f32) + bc3_ref[...]

    # fc1: combined = feat1 * feat2; Linear(F,256)->ReLU->Linear(256,128)->ReLU->Linear(128,1)->Sigmoid
    comb = f[:B, :] * f[B:, :]
    hs = jnp.maximum(jnp.dot(comb, ws1_ref[...], preferred_element_type=f32)
                     + bs1_ref[...], 0.0)
    hs = jnp.maximum(jnp.dot(hs, ws2_ref[...], preferred_element_type=f32)
                     + bs2_ref[...], 0.0)
    z = jnp.dot(hs, ws3_ref[...], preferred_element_type=f32) + bs3_ref[...]
    sim_ref[...] = 0.5 * (jnp.tanh(0.5 * z) + 1.0)     # numerically stable sigmoid


# -----------------------------------------------------------------------------
# Wrappers
# -----------------------------------------------------------------------------

def _trunk_geometry(hin, win):
    h1, w1 = hin - 2, win - 2            # conv1 k=3
    p1h, p1w = h1 // 2, w1 // 2          # pool 2x2
    h2, w2 = p1h - 1, p1w - 1            # conv2 k=2
    p2h, p2w = h2 // 2, w2 // 2          # pool 2x2
    h3, w3 = p2h - 1, p2w - 1            # conv3 k=2
    return (h1, w1), (p1h, p1w), (h2, w2), (p2h, p2w), (h3, w3)


def cnn_trunk(x, kp):
    """x: (2B, Hin, Win, 1) NHWC, both branches concatenated on batch -> (2B, W3, C3)."""
    n, hin, win, cin = x.shape
    assert n % 2 == 0 and cin == 1
    b = n // 2
    _, (p1h, p1w), _, (p2h, p2w), (h3, w3) = _trunk_geometry(hin, win)
    assert h3 == 1, "fc layers expect conv3 output height == 1 (e.g. 12x28 inputs)"
    c1 = kp["c1_w"].shape[-1]
    c2 = kp["c2_w"].shape[-1]
    c3 = kp["c3_w"].shape[-1]
    return pl.pallas_call(
        _trunk_kernel,
        out_shape=jax.ShapeDtypeStruct((n, w3, c3), jnp.float32),
        grid=(2,),                                   # one grid step per siamese branch
        in_specs=[
            pl.BlockSpec((b, hin, win, 1), lambda i: (i, 0, 0, 0)),
            pl.BlockSpec(kp["c1_w"].shape, lambda i: (0, 0, 0, 0)),
            pl.BlockSpec((1, c1), lambda i: (0, 0)),
            pl.BlockSpec(kp["c2_w"].shape, lambda i: (0, 0)),
            pl.BlockSpec((1, c2), lambda i: (0, 0)),
            pl.BlockSpec(kp["c3_w"].shape, lambda i: (0, 0)),
            pl.BlockSpec((1, c3), lambda i: (0, 0)),
        ],
        out_specs=pl.BlockSpec((b, w3, c3), lambda i: (i, 0, 0)),
        scratch_shapes=[
            pltpu.VMEM((b, p1h, p1w, c1), jnp.float32),
            pltpu.VMEM((b, p2h, p2w, c2), jnp.float32),
        ],
        compiler_params=pltpu.CompilerParams(dimension_semantics=("parallel",)),
    )(x, kp["c1_w"], kp["c1_b"], kp["c2_w"], kp["c2_b"], kp["c3_w"], kp["c3_b"])


def fc_heads(feats_flat, kp):
    n = feats_flat.shape[0]
    b = n // 2
    return pl.pallas_call(
        _heads_kernel,
        out_shape=(jax.ShapeDtypeStruct((b, 1), jnp.float32),
                   jax.ShapeDtypeStruct((n, 10), jnp.float32)),
    )(feats_flat,
      kp["fcc_w1"], kp["fcc_b1"], kp["fcc_w2"], kp["fcc_b2"], kp["fcc_w3"], kp["fcc_b3"],
      kp["fc1_w1"], kp["fc1_b1"], kp["fc1_w2"], kp["fc1_b2"], kp["fc1_w3"], kp["fc1_b3"])


def siamese_forward(img1, img2, kp):
    """img1, img2: (B, 1, H, W) NCHW (PyTorch layout).  Returns (similarity, logits1, logits2)."""
    b = img1.shape[0]
    x = jnp.concatenate([img1, img2], axis=0).astype(jnp.float32)     # (2B, 1, H, W)
    x = jnp.transpose(x, (0, 2, 3, 1))                                # NHWC (Cin=1 -> free)
    feats = cnn_trunk(x, kp)                                          # (2B, W3, C3)
    feats_flat = feats.reshape(2 * b, -1)                             # NHWC flatten (weights pre-permuted)
    sim, cls = fc_heads(feats_flat, kp)
    return sim, cls[:b], cls[b:]


# -----------------------------------------------------------------------------
# Parameters: PyTorch-native layouts + one-time conversion to kernel layouts
# -----------------------------------------------------------------------------

def init_params(key):
    """Synthetic params in PyTorch layouts (Conv2d: (Cout,Cin,KH,KW), Linear: (out,in))."""
    def w_init(k, shape, fan_in):
        return jax.random.normal(k, shape, jnp.float32) / jnp.sqrt(float(fan_in))

    def b_init(k, shape):
        return 0.01 * jax.random.normal(k, shape, jnp.float32)

    ks = jax.random.split(key, 18)
    return {
        "c1_w": w_init(ks[0], (64, 1, 3, 3), 9),      "c1_b": b_init(ks[1], (64,)),
        "c2_w": w_init(ks[2], (128, 64, 2, 2), 256),  "c2_b": b_init(ks[3], (128,)),
        "c3_w": w_init(ks[4], (256, 128, 2, 2), 512), "c3_b": b_init(ks[5], (256,)),
        "fc1_w1": w_init(ks[6], (256, 1280), 1280),   "fc1_b1": b_init(ks[7], (256,)),
        "fc1_w2": w_init(ks[8], (128, 256), 256),     "fc1_b2": b_init(ks[9], (128,)),
        "fc1_w3": w_init(ks[10], (1, 128), 128),      "fc1_b3": b_init(ks[11], (1,)),
        "fcc_w1": w_init(ks[12], (256, 1280), 1280),  "fcc_b1": b_init(ks[13], (256,)),
        "fcc_w2": w_init(ks[14], (128, 256), 256),    "fcc_b2": b_init(ks[15], (128,)),
        "fcc_w3": w_init(ks[16], (10, 128), 128),     "fcc_b3": b_init(ks[17], (10,)),
    }


def prepare_params(p, conv3_w):
    """One-time layout conversion from PyTorch layouts to kernel layouts (no runtime cost)."""
    def conv_hwio(w):                 # (Cout,Cin,KH,KW) -> (KH,KW,Cin,Cout)
        return jnp.transpose(w, (2, 3, 1, 0))

    def conv_im2col(w):               # -> (KH*KW*Cin, Cout), row index = (kh*KW+kw)*Cin + cin
        return jnp.transpose(w, (2, 3, 1, 0)).reshape(-1, w.shape[0])

    def fc_in_nhwc(w, c, wsp):        # (out, C*1*Wsp) CHW-ordered in -> (Wsp*C, out) NHWC-ordered in
        out = w.shape[0]
        return jnp.transpose(w.reshape(out, c, wsp), (2, 1, 0)).reshape(wsp * c, out)

    def fc(w):                        # (out, in) -> (in, out)
        return jnp.transpose(w)

    def row(v):                       # (n,) -> (1, n)
        return v.reshape(1, -1)

    c3 = p["c3_w"].shape[0]
    return {
        "c1_w": conv_hwio(p["c1_w"]),   "c1_b": row(p["c1_b"]),
        "c2_w": conv_im2col(p["c2_w"]), "c2_b": row(p["c2_b"]),
        "c3_w": conv_im2col(p["c3_w"]), "c3_b": row(p["c3_b"]),
        "fc1_w1": fc_in_nhwc(p["fc1_w1"], c3, conv3_w), "fc1_b1": row(p["fc1_b1"]),
        "fc1_w2": fc(p["fc1_w2"]), "fc1_b2": row(p["fc1_b2"]),
        "fc1_w3": fc(p["fc1_w3"]), "fc1_b3": row(p["fc1_b3"]),
        "fcc_w1": fc_in_nhwc(p["fcc_w1"], c3, conv3_w), "fcc_b1": row(p["fcc_b1"]),
        "fcc_w2": fc(p["fcc_w2"]), "fcc_b2": row(p["fcc_b2"]),
        "fcc_w3": fc(p["fcc_w3"]), "fcc_b3": row(p["fcc_b3"]),
    }


# -----------------------------------------------------------------------------
# Pure-JAX reference (matches the PyTorch module) for validation
# -----------------------------------------------------------------------------

def reference_forward(img1, img2, p):
    prec = jax.lax.Precision.HIGHEST

    def conv(x, w, bias):
        y = jax.lax.conv_general_dilated(
            x, w, window_strides=(1, 1), padding="VALID",
            dimension_numbers=("NCHW", "OIHW", "NCHW"), precision=prec)
        return jax.nn.relu(y + bias[None, :, None, None])

    def pool(x):
        return jax.lax.reduce_window(x, -jnp.inf, jax.lax.max,
                                     (1, 1, 2, 2), (1, 1, 2, 2), "VALID")

    def cnn(x):
        x = pool(conv(x, p["c1_w"], p["c1_b"]))
        x = pool(conv(x, p["c2_w"], p["c2_b"]))
        x = conv(x, p["c3_w"], p["c3_b"])
        return x.reshape(x.shape[0], -1)          # PyTorch (C,H,W) flatten order

    def head(x, w1, b1, w2, b2, w3, b3):
        h = jax.nn.relu(jnp.dot(x, w1.T, precision=prec) + b1)
        h = jax.nn.relu(jnp.dot(h, w2.T, precision=prec) + b2)
        return jnp.dot(h, w3.T, precision=prec) + b3

    f1 = cnn(img1.astype(jnp.float32))
    f2 = cnn(img2.astype(jnp.float32))
    cls1 = head(f1, p["fcc_w1"], p["fcc_b1"], p["fcc_w2"], p["fcc_b2"], p["fcc_w3"], p["fcc_b3"])
    cls2 = head(f2, p["fcc_w1"], p["fcc_b1"], p["fcc_w2"], p["fcc_b2"], p["fcc_w3"], p["fcc_b3"])
    sim = jax.nn.sigmoid(head(f1 * f2, p["fc1_w1"], p["fc1_b1"], p["fc1_w2"], p["fc1_b2"],
                              p["fc1_w3"], p["fc1_b3"]))
    return sim, cls1, cls2


# -----------------------------------------------------------------------------
# Main
# -----------------------------------------------------------------------------

if __name__ == "__main__":
    key = jax.random.PRNGKey(0)
    pkey, k1, k2 = jax.random.split(key, 3)
    params = init_params(pkey)

    # 12x28 inputs -> conv trunk output (256, 1, 5) -> 1280 features, matching nn.Linear(1280, ...):
    # 12x28 -> conv3 -> 10x26 -> pool -> 5x13 -> conv2 -> 4x12 -> pool -> 2x6 -> conv2 -> 1x5
    img1 = jax.random.normal(k1, (2, 1, 12, 28), jnp.float32)
    img2 = jax.random.normal(k2, (2, 1, 12, 28), jnp.float32)

    _, _, _, _, (_, conv3_w) = _trunk_geometry(12, 28)
    kparams = prepare_params(params, conv3_w=conv3_w)

    fwd = jax.jit(lambda a, b: siamese_forward(a, b, kparams))
    output, out_classif1, out_classif2 = fwd(img1, img2)
    jax.block_until_ready((output, out_classif1, out_classif2))

    assert output.shape == (2, 1)
    assert out_classif1.shape == (2, 10)
    assert out_classif2.shape == (2, 10)
    assert bool(jnp.all(output >= 0.0) & jnp.all(output <= 1.0))

    # Validate against the pure-JAX reference of the PyTorch module.
    ref_sim, ref_c1, ref_c2 = jax.jit(lambda a, b: reference_forward(a, b, params))(img1, img2)
    assert bool(jnp.allclose(output, ref_sim, rtol=2e-2, atol=2e-2))
    assert bool(jnp.allclose(out_classif1, ref_c1, rtol=2e-2, atol=2e-2))
    assert bool(jnp.allclose(out_classif2, ref_c2, rtol=2e-2, atol=2e-2))

    print("KERNEL_OK")
</pallas_src>

<mosaic_0001>
module attributes {stable_mosaic.version = 11 : i64} {
  func.func @_trunk_kernel(%arg0: i32, %arg1: memref<2x12x28x1xf32, #tpu.memory_space<vmem>>, %arg2: memref<3x3x1x64xf32, #tpu.memory_space<vmem>>, %arg3: memref<1x64xf32, #tpu.memory_space<vmem>>, %arg4: memref<256x128xf32, #tpu.memory_space<vmem>>, %arg5: memref<1x128xf32, #tpu.memory_space<vmem>>, %arg6: memref<512x256xf32, #tpu.memory_space<vmem>>, %arg7: memref<1x256xf32, #tpu.memory_space<vmem>>, %arg8: memref<2x5x256xf32, #tpu.memory_space<vmem>>, %arg9: memref<2x5x13x64xf32, #tpu.memory_space<vmem>>, %arg10: memref<2x2x6x128xf32, #tpu.memory_space<vmem>>) attributes {dimension_semantics = [#tpu.dimension_semantics<parallel>], iteration_bounds = array<i64: 2>, scalar_prefetch = 0 : i64, scratch_operands = 2 : i64, tpu.core_type = #tpu.core_type<tc>, window_params = [{transform_indices = @transform_0, window_bounds = array<i64: 2, 12, 28, 1>}, {pipeline_mode = #tpu.pipeline_mode<synchronous>, transform_indices = @transform_1, window_bounds = array<i64: 3, 3, 1, 64>}, {pipeline_mode = #tpu.pipeline_mode<synchronous>, transform_indices = @transform_2, window_bounds = array<i64: 1, 64>}, {pipeline_mode = #tpu.pipeline_mode<synchronous>, transform_indices = @transform_3, window_bounds = array<i64: 256, 128>}, {pipeline_mode = #tpu.pipeline_mode<synchronous>, transform_indices = @transform_4, window_bounds = array<i64: 1, 128>}, {pipeline_mode = #tpu.pipeline_mode<synchronous>, transform_indices = @transform_5, window_bounds = array<i64: 512, 256>}, {pipeline_mode = #tpu.pipeline_mode<synchronous>, transform_indices = @transform_6, window_bounds = array<i64: 1, 256>}, {transform_indices = @transform_7, window_bounds = array<i64: 2, 5, 256>}]} {
    %c0 = arith.constant 0 : index
    %c0_0 = arith.constant 0 : index
    %c0_1 = arith.constant 0 : index
    %c0_2 = arith.constant 0 : index
    %0 = vector.load %arg1[%c0, %c0_0, %c0_1, %c0_2] : memref<2x12x28x1xf32, #tpu.memory_space<vmem>>, vector<2x12x28x1xf32>
    %cst = arith.constant 0.000000e+00 : f32
    %1 = vector.broadcast %cst : f32 to vector<2x10x26x64xf32>
    %2 = vector.extract_strided_slice %0 {offsets = [0, 0, 0, 0], sizes = [2, 10, 26, 1], strides = [1, 1, 1, 1]} : vector<2x12x28x1xf32> to vector<2x10x26x1xf32>
    %c0_3 = arith.constant 0 : index
    %c0_4 = arith.constant 0 : index
    %c0_5 = arith.constant 0 : index
    %c0_6 = arith.constant 0 : index
    %3 = vector.load %arg2[%c0_3, %c0_4, %c0_5, %c0_6] : memref<3x3x1x64xf32, #tpu.memory_space<vmem>>, vector<1x1x1x64xf32>
    %4 = vector.shape_cast %3 : vector<1x1x1x64xf32> to vector<1x64xf32>
    %5 = vector.shape_cast %4 : vector<1x64xf32> to vector<1x1x1x64xf32>
    %6 = vector.broadcast %2 : vector<2x10x26x1xf32> to vector<2x10x26x64xf32>
    %7 = vector.broadcast %5 : vector<1x1x1x64xf32> to vector<2x10x26x64xf32>
    %8 = arith.mulf %6, %7 : vector<2x10x26x64xf32>
    %9 = arith.addf %1, %8 : vector<2x10x26x64xf32>
    %10 = vector.extract_strided_slice %0 {offsets = [0, 0, 1, 0], sizes = [2, 10, 26, 1], strides = [1, 1, 1, 1]} : vector<2x12x28x1xf32> to vector<2x10x26x1xf32>
    %c0_7 = arith.constant 0 : index
    %c1 = arith.constant 1 : index
    %c0_8 = arith.constant 0 : index
    %c0_9 = arith.constant 0 : index
    %11 = vector.load %arg2[%c0_7, %c1, %c0_8, %c0_9] : memref<3x3x1x64xf32, #tpu.memory_space<vmem>>, vector<1x1x1x64xf32>
    %12 = vector.shape_cast %11 : vector<1x1x1x64xf32> to vector<1x64xf32>
    %13 = vector.shape_cast %12 : vector<1x64xf32> to vector<1x1x1x64xf32>
    %14 = vector.broadcast %10 : vector<2x10x26x1xf32> to vector<2x10x26x64xf32>
    %15 = vector.broadcast %13 : vector<1x1x1x64xf32> to vector<2x10x26x64xf32>
    %16 = arith.mulf %14, %15 : vector<2x10x26x64xf32>
    %17 = arith.addf %9, %16 : vector<2x10x26x64xf32>
    %18 = vector.extract_strided_slice %0 {offsets = [0, 0, 2, 0], sizes = [2, 10, 26, 1], strides = [1, 1, 1, 1]} : vector<2x12x28x1xf32> to vector<2x10x26x1xf32>
    %c0_10 = arith.constant 0 : index
    %c2 = arith.constant 2 : index
    %c0_11 = arith.constant 0 : index
    %c0_12 = arith.constant 0 : index
    %19 = vector.load %arg2[%c0_10, %c2, %c0_11, %c0_12] : memref<3x3x1x64xf32, #tpu.memory_space<vmem>>, vector<1x1x1x64xf32>
    %20 = vector.shape_cast %19 : vector<1x1x1x64xf32> to vector<1x64xf32>
    %21 = vector.shape_cast %20 : vector<1x64xf32> to vector<1x1x1x64xf32>
    %22 = vector.broadcast %18 : vector<2x10x26x1xf32> to vector<2x10x26x64xf32>
    %23 = vector.broadcast %21 : vector<1x1x1x64xf32> to vector<2x10x26x64xf32>
    %24 = arith.mulf %22, %23 : vector<2x10x26x64xf32>
    %25 = arith.addf %17, %24 : vector<2x10x26x64xf32>
    %26 = vector.extract_strided_slice %0 {offsets = [0, 1, 0, 0], sizes = [2, 10, 26, 1], strides = [1, 1, 1, 1]} : vector<2x12x28x1xf32> to vector<2x10x26x1xf32>
    %c1_13 = arith.constant 1 : index
    %c0_14 = arith.constant 0 : index
    %c0_15 = arith.constant 0 : index
    %c0_16 = arith.constant 0 : index
    %27 = vector.load %arg2[%c1_13, %c0_14, %c0_15, %c0_16] : memref<3x3x1x64xf32, #tpu.memory_space<vmem>>, vector<1x1x1x64xf32>
    %28 = vector.shape_cast %27 : vector<1x1x1x64xf32> to vector<1x64xf32>
    %29 = vector.shape_cast %28 : vector<1x64xf32> to vector<1x1x1x64xf32>
    %30 = vector.broadcast %26 : vector<2x10x26x1xf32> to vector<2x10x26x64xf32>
    %31 = vector.broadcast %29 : vector<1x1x1x64xf32> to vector<2x10x26x64xf32>
    %32 = arith.mulf %30, %31 : vector<2x10x26x64xf32>
    %33 = arith.addf %25, %32 : vector<2x10x26x64xf32>
    %34 = vector.extract_strided_slice %0 {offsets = [0, 1, 1, 0], sizes = [2, 10, 26, 1], strides = [1, 1, 1, 1]} : vector<2x12x28x1xf32> to vector<2x10x26x1xf32>
    %c1_17 = arith.constant 1 : index
    %c1_18 = arith.constant 1 : index
    %c0_19 = arith.constant 0 : index
    %c0_20 = arith.constant 0 : index
    %35 = vector.load %arg2[%c1_17, %c1_18, %c0_19, %c0_20] : memref<3x3x1x64xf32, #tpu.memory_space<vmem>>, vector<1x1x1x64xf32>
    %36 = vector.shape_cast %35 : vector<1x1x1x64xf32> to vector<1x64xf32>
    %37 = vector.shape_cast %36 : vector<1x64xf32> to vector<1x1x1x64xf32>
    %38 = vector.broadcast %34 : vector<2x10x26x1xf32> to vector<2x10x26x64xf32>
    %39 = vector.broadcast %37 : vector<1x1x1x64xf32> to vector<2x10x26x64xf32>
    %40 = arith.mulf %38, %39 : vector<2x10x26x64xf32>
    %41 = arith.addf %33, %40 : vector<2x10x26x64xf32>
    %42 = vector.extract_strided_slice %0 {offsets = [0, 1, 2, 0], sizes = [2, 10, 26, 1], strides = [1, 1, 1, 1]} : vector<2x12x28x1xf32> to vector<2x10x26x1xf32>
    %c1_21 = arith.constant 1 : index
    %c2_22 = arith.constant 2 : index
    %c0_23 = arith.constant 0 : index
    %c0_24 = arith.constant 0 : index
    %43 = vector.load %arg2[%c1_21, %c2_22, %c0_23, %c0_24] : memref<3x3x1x64xf32, #tpu.memory_space<vmem>>, vector<1x1x1x64xf32>
    %44 = vector.shape_cast %43 : vector<1x1x1x64xf32> to vector<1x64xf32>
    %45 = vector.shape_cast %44 : vector<1x64xf32> to vector<1x1x1x64xf32>
    %46 = vector.broadcast %42 : vector<2x10x26x1xf32> to vector<2x10x26x64xf32>
    %47 = vector.broadcast %45 : vector<1x1x1x64xf32> to vector<2x10x26x64xf32>
    %48 = arith.mulf %46, %47 : vector<2x10x26x64xf32>
    %49 = arith.addf %41, %48 : vector<2x10x26x64xf32>
    %50 = vector.extract_strided_slice %0 {offsets = [0, 2, 0, 0], sizes = [2, 10, 26, 1], strides = [1, 1, 1, 1]} : vector<2x12x28x1xf32> to vector<2x10x26x1xf32>
    %c2_25 = arith.constant 2 : index
    %c0_26 = arith.constant 0 : index
    %c0_27 = arith.constant 0 : index
    %c0_28 = arith.constant 0 : index
    %51 = vector.load %arg2[%c2_25, %c0_26, %c0_27, %c0_28] : memref<3x3x1x64xf32, #tpu.memory_space<vmem>>, vector<1x1x1x64xf32>
    %52 = vector.shape_cast %51 : vector<1x1x1x64xf32> to vector<1x64xf32>
    %53 = vector.shape_cast %52 : vector<1x64xf32> to vector<1x1x1x64xf32>
    %54 = vector.broadcast %50 : vector<2x10x26x1xf32> to vector<2x10x26x64xf32>
    %55 = vector.broadcast %53 : vector<1x1x1x64xf32> to vector<2x10x26x64xf32>
    %56 = arith.mulf %54, %55 : vector<2x10x26x64xf32>
    %57 = arith.addf %49, %56 : vector<2x10x26x64xf32>
    %58 = vector.extract_strided_slice %0 {offsets = [0, 2, 1, 0], sizes = [2, 10, 26, 1], strides = [1, 1, 1, 1]} : vector<2x12x28x1xf32> to vector<2x10x26x1xf32>
    %c2_29 = arith.constant 2 : index
    %c1_30 = arith.constant 1 : index
    %c0_31 = arith.constant 0 : index
    %c0_32 = arith.constant 0 : index
    %59 = vector.load %arg2[%c2_29, %c1_30, %c0_31, %c0_32] : memref<3x3x1x64xf32, #tpu.memory_space<vmem>>, vector<1x1x1x64xf32>
    %60 = vector.shape_cast %59 : vector<1x1x1x64xf32> to vector<1x64xf32>
    %61 = vector.shape_cast %60 : vector<1x64xf32> to vector<1x1x1x64xf32>
    %62 = vector.broadcast %58 : vector<2x10x26x1xf32> to vector<2x10x26x64xf32>
    %63 = vector.broadcast %61 : vector<1x1x1x64xf32> to vector<2x10x26x64xf32>
    %64 = arith.mulf %62, %63 : vector<2x10x26x64xf32>
    %65 = arith.addf %57, %64 : vector<2x10x26x64xf32>
    %66 = vector.extract_strided_slice %0 {offsets = [0, 2, 2, 0], sizes = [2, 10, 26, 1], strides = [1, 1, 1, 1]} : vector<2x12x28x1xf32> to vector<2x10x26x1xf32>
    %c2_33 = arith.constant 2 : index
    %c2_34 = arith.constant 2 : index
    %c0_35 = arith.constant 0 : index
    %c0_36 = arith.constant 0 : index
    %67 = vector.load %arg2[%c2_33, %c2_34, %c0_35, %c0_36] : memref<3x3x1x64xf32, #tpu.memory_space<vmem>>, vector<1x1x1x64xf32>
    %68 = vector.shape_cast %67 : vector<1x1x1x64xf32> to vector<1x64xf32>
    %69 = vector.shape_cast %68 : vector<1x64xf32> to vector<1x1x1x64xf32>
    %70 = vector.broadcast %66 : vector<2x10x26x1xf32> to vector<2x10x26x64xf32>
    %71 = vector.broadcast %69 : vector<1x1x1x64xf32> to vector<2x10x26x64xf32>
    %72 = arith.mulf %70, %71 : vector<2x10x26x64xf32>
    %73 = arith.addf %65, %72 : vector<2x10x26x64xf32>
    %c0_37 = arith.constant 0 : index
    %c0_38 = arith.constant 0 : index
    %74 = vector.load %arg3[%c0_37, %c0_38] : memref<1x64xf32, #tpu.memory_space<vmem>>, vector<1x64xf32>
    %75 = vector.shape_cast %74 : vector<1x64xf32> to vector<1x1x1x64xf32>
    %76 = vector.broadcast %75 : vector<1x1x1x64xf32> to vector<2x10x26x64xf32>
    %77 = arith.addf %73, %76 : vector<2x10x26x64xf32>
    %cst_39 = arith.constant 0.000000e+00 : f32
    %78 = vector.broadcast %cst_39 : f32 to vector<2x10x26x64xf32>
    %79 = arith.maximumf %77, %78 : vector<2x10x26x64xf32>
    %80 = vector.shape_cast %79 : vector<2x10x26x64xf32> to vector<2x5x2x26x64xf32>
    %81 = vector.extract_strided_slice %80 {offsets = [0, 0, 0, 0, 0], sizes = [2, 5, 1, 26, 64], strides = [1, 1, 1, 1, 1]} : vector<2x5x2x26x64xf32> to vector<2x5x1x26x64xf32>
    %82 = vector.shape_cast %81 : vector<2x5x1x26x64xf32> to vector<2x5x26x64xf32>
    %83 = vector.extract_strided_slice %80 {offsets = [0, 0, 1, 0, 0], sizes = [2, 5, 1, 26, 64], strides = [1, 1, 1, 1, 1]} : vector<2x5x2x26x64xf32> to vector<2x5x1x26x64xf32>
    %84 = vector.shape_cast %83 : vector<2x5x1x26x64xf32> to vector<2x5x26x64xf32>
    %85 = arith.maximumf %82, %84 : vector<2x5x26x64xf32>
    %86 = vector.extract_strided_slice %85 {offsets = [0, 0, 0, 0], sizes = [2, 5, 1, 64], strides = [1, 1, 1, 1]} : vector<2x5x26x64xf32> to vector<2x5x1x64xf32>
    %87 = vector.extract_strided_slice %85 {offsets = [0, 0, 1, 0], sizes = [2, 5, 1, 64], strides = [1, 1, 1, 1]} : vector<2x5x26x64xf32> to vector<2x5x1x64xf32>
    %88 = arith.maximumf %86, %87 : vector<2x5x1x64xf32>
    %c0_40 = arith.constant 0 : index
    %c0_41 = arith.constant 0 : index
    %c0_42 = arith.constant 0 : index
    %c0_43 = arith.constant 0 : index
    %89 = vector.load %arg9[%c0_40, %c0_41, %c0_42, %c0_43] : memref<2x5x13x64xf32, #tpu.memory_space<vmem>>, vector<2x5x1x64xf32>
    tpu.vector_store %arg9[%c0_40, %c0_41, %c0_42, %c0_43], %88 {strides = array<i32>} : memref<2x5x13x64xf32, #tpu.memory_space<vmem>>, vector<2x5x1x64xf32>,
    %90 = vector.extract_strided_slice %85 {offsets = [0, 0, 2, 0], sizes = [2, 5, 1, 64], strides = [1, 1, 1, 1]} : vector<2x5x26x64xf32> to vector<2x5x1x64xf32>
    %91 = vector.extract_strided_slice %85 {offsets = [0, 0, 3, 0], sizes = [2, 5, 1, 64], strides = [1, 1, 1, 1]} : vector<2x5x26x64xf32> to vector<2x5x1x64xf32>
    %92 = arith.maximumf %90, %91 : vector<2x5x1x64xf32>
    %c0_44 = arith.constant 0 : index
    %c0_45 = arith.constant 0 : index
    %c1_46 = arith.constant 1 : index
    %c0_47 = arith.constant 0 : index
    %93 = vector.load %arg9[%c0_44, %c0_45, %c1_46, %c0_47] : memref<2x5x13x64xf32, #tpu.memory_space<vmem>>, vector<2x5x1x64xf32>
    tpu.vector_store %arg9[%c0_44, %c0_45, %c1_46, %c0_47], %92 {strides = array<i32>} : memref<2x5x13x64xf32, #tpu.memory_space<vmem>>, vector<2x5x1x64xf32>,
    %94 = vector.extract_strided_slice %85 {offsets = [0, 0, 4, 0], sizes = [2, 5, 1, 64], strides = [1, 1, 1, 1]} : vector<2x5x26x64xf32> to vector<2x5x1x64xf32>
    %95 = vector.extract_strided_slice %85 {offsets = [0, 0, 5, 0], sizes = [2, 5, 1, 64], strides = [1, 1, 1, 1]} : vector<2x5x26x64xf32> to vector<2x5x1x64xf32>
    %96 = arith.maximumf %94, %95 : vector<2x5x1x64xf32>
    %c0_48 = arith.constant 0 : index
    %c0_49 = arith.constant 0 : index
    %c2_50 = arith.constant 2 : index
    %c0_51 = arith.constant 0 : index
    %97 = vector.load %arg9[%c0_48, %c0_49, %c2_50, %c0_51] : memref<2x5x13x64xf32, #tpu.memory_space<vmem>>, vector<2x5x1x64xf32>
    tpu.vector_store %arg9[%c0_48, %c0_49, %c2_50, %c0_51], %96 {strides = array<i32>} : memref<2x5x13x64xf32, #tpu.memory_space<vmem>>, vector<2x5x1x64xf32>,
    %98 = vector.extract_strided_slice %85 {offsets = [0, 0, 6, 0], sizes = [2, 5, 1, 64], strides = [1, 1, 1, 1]} : vector<2x5x26x64xf32> to vector<2x5x1x64xf32>
    %99 = vector.extract_strided_slice %85 {offsets = [0, 0, 7, 0], sizes = [2, 5, 1, 64], strides = [1, 1, 1, 1]} : vector<2x5x26x64xf32> to vector<2x5x1x64xf32>
    %100 = arith.maximumf %98, %99 : vector<2x5x1x64xf32>
    %c0_52 = arith.constant 0 : index
    %c0_53 = arith.constant 0 : index
    %c3 = arith.constant 3 : index
    %c0_54 = arith.constant 0 : index
    %101 = vector.load %arg9[%c0_52, %c0_53, %c3, %c0_54] : memref<2x5x13x64xf32, #tpu.memory_space<vmem>>, vector<2x5x1x64xf32>
    tpu.vector_store %arg9[%c0_52, %c0_53, %c3, %c0_54], %100 {strides = array<i32>} : memref<2x5x13x64xf32, #tpu.memory_space<vmem>>, vector<2x5x1x64xf32>,
    %102 = vector.extract_strided_slice %85 {offsets = [0, 0, 8, 0], sizes = [2, 5, 1, 64], strides = [1, 1, 1, 1]} : vector<2x5x26x64xf32> to vector<2x5x1x64xf32>
    %103 = vector.extract_strided_slice %85 {offsets = [0, 0, 9, 0], sizes = [2, 5, 1, 64], strides = [1, 1, 1, 1]} : vector<2x5x26x64xf32> to vector<2x5x1x64xf32>
    %104 = arith.maximumf %102, %103 : vector<2x5x1x64xf32>
    %c0_55 = arith.constant 0 : index
    %c0_56 = arith.constant 0 : index
    %c4 = arith.constant 4 : index
    %c0_57 = arith.constant 0 : index
    %105 = vector.load %arg9[%c0_55, %c0_56, %c4, %c0_57] : memref<2x5x13x64xf32, #tpu.memory_space<vmem>>, vector<2x5x1x64xf32>
    tpu.vector_store %arg9[%c0_55, %c0_56, %c4, %c0_57], %104 {strides = array<i32>} : memref<2x5x13x64xf32, #tpu.memory_space<vmem>>, vector<2x5x1x64xf32>,
    %106 = vector.extract_strided_slice %85 {offsets = [0, 0, 10, 0], sizes = [2, 5, 1, 64], strides = [1, 1, 1, 1]} : vector<2x5x26x64xf32> to vector<2x5x1x64xf32>
    %107 = vector.extract_strided_slice %85 {offsets = [0, 0, 11, 0], sizes = [2, 5, 1, 64], strides = [1, 1, 1, 1]} : vector<2x5x26x64xf32> to vector<2x5x1x64xf32>
    %108 = arith.maximumf %106, %107 : vector<2x5x1x64xf32>
    %c0_58 = arith.constant 0 : index
    %c0_59 = arith.constant 0 : index
    %c5 = arith.constant 5 : index
    %c0_60 = arith.constant 0 : index
    %109 = vector.load %arg9[%c0_58, %c0_59, %c5, %c0_60] : memref<2x5x13x64xf32, #tpu.memory_space<vmem>>, vector<2x5x1x64xf32>
    tpu.vector_store %arg9[%c0_58, %c0_59, %c5, %c0_60], %108 {strides = array<i32>} : memref<2x5x13x64xf32, #tpu.memory_space<vmem>>, vector<2x5x1x64xf32>,
    %110 = vector.extract_strided_slice %85 {offsets = [0, 0, 12, 0], sizes = [2, 5, 1, 64], strides = [1, 1, 1, 1]} : vector<2x5x26x64xf32> to vector<2x5x1x64xf32>
    %111 = vector.extract_strided_slice %85 {offsets = [0, 0, 13, 0], sizes = [2, 5, 1, 64], strides = [1, 1, 1, 1]} : vector<2x5x26x64xf32> to vector<2x5x1x64xf32>
    %112 = arith.maximumf %110, %111 : vector<2x5x1x64xf32>
    %c0_61 = arith.constant 0 : index
    %c0_62 = arith.constant 0 : index
    %c6 = arith.constant 6 : index
    %c0_63 = arith.constant 0 : index
    %113 = vector.load %arg9[%c0_61, %c0_62, %c6, %c0_63] : memref<2x5x13x64xf32, #tpu.memory_space<vmem>>, vector<2x5x1x64xf32>
    tpu.vector_store %arg9[%c0_61, %c0_62, %c6, %c0_63], %112 {strides = array<i32>} : memref<2x5x13x64xf32, #tpu.memory_space<vmem>>, vector<2x5x1x64xf32>,
    %114 = vector.extract_strided_slice %85 {offsets = [0, 0, 14, 0], sizes = [2, 5, 1, 64], strides = [1, 1, 1, 1]} : vector<2x5x26x64xf32> to vector<2x5x1x64xf32>
    %115 = vector.extract_strided_slice %85 {offsets = [0, 0, 15, 0], sizes = [2, 5, 1, 64], strides = [1, 1, 1, 1]} : vector<2x5x26x64xf32> to vector<2x5x1x64xf32>
    %116 = arith.maximumf %114, %115 : vector<2x5x1x64xf32>
    %c0_64 = arith.constant 0 : index
    %c0_65 = arith.constant 0 : index
    %c7 = arith.constant 7 : index
    %c0_66 = arith.constant 0 : index
    %117 = vector.load %arg9[%c0_64, %c0_65, %c7, %c0_66] : memref<2x5x13x64xf32, #tpu.memory_space<vmem>>, vector<2x5x1x64xf32>
    tpu.vector_store %arg9[%c0_64, %c0_65, %c7, %c0_66], %116 {strides = array<i32>} : memref<2x5x13x64xf32, #tpu.memory_space<vmem>>, vector<2x5x1x64xf32>,
    %118 = vector.extract_strided_slice %85 {offsets = [0, 0, 16, 0], sizes = [2, 5, 1, 64], strides = [1, 1, 1, 1]} : vector<2x5x26x64xf32> to vector<2x5x1x64xf32>
    %119 = vector.extract_strided_slice %85 {offsets = [0, 0, 17, 0], sizes = [2, 5, 1, 64], strides = [1, 1, 1, 1]} : vector<2x5x26x64xf32> to vector<2x5x1x64xf32>
    %120 = arith.maximumf %118, %119 : vector<2x5x1x64xf32>
    %c0_67 = arith.constant 0 : index
    %c0_68 = arith.constant 0 : index
    %c8 = arith.constant 8 : index
    %c0_69 = arith.constant 0 : index
    %121 = vector.load %arg9[%c0_67, %c0_68, %c8, %c0_69] : memref<2x5x13x64xf32, #tpu.memory_space<vmem>>, vector<2x5x1x64xf32>
    tpu.vector_store %arg9[%c0_67, %c0_68, %c8, %c0_69], %120 {strides = array<i32>} : memref<2x5x13x64xf32, #tpu.memory_space<vmem>>, vector<2x5x1x64xf32>,
    %122 = vector.extract_strided_slice %85 {offsets = [0, 0, 18, 0], sizes = [2, 5, 1, 64], strides = [1, 1, 1, 1]} : vector<2x5x26x64xf32> to vector<2x5x1x64xf32>
    %123 = vector.extract_strided_slice %85 {offsets = [0, 0, 19, 0], sizes = [2, 5, 1, 64], strides = [1, 1, 1, 1]} : vector<2x5x26x64xf32> to vector<2x5x1x64xf32>
    %124 = arith.maximumf %122, %123 : vector<2x5x1x64xf32>
    %c0_70 = arith.constant 0 : index
    %c0_71 = arith.constant 0 : index
    %c9 = arith.constant 9 : index
    %c0_72 = arith.constant 0 : index
    %125 = vector.load %arg9[%c0_70, %c0_71, %c9, %c0_72] : memref<2x5x13x64xf32, #tpu.memory_space<vmem>>, vector<2x5x1x64xf32>
    tpu.vector_store %arg9[%c0_70, %c0_71, %c9, %c0_72], %124 {strides = array<i32>} : memref<2x5x13x64xf32, #tpu.memory_space<vmem>>, vector<2x5x1x64xf32>,
    %126 = vector.extract_strided_slice %85 {offsets = [0, 0, 20, 0], sizes = [2, 5, 1, 64], strides = [1, 1, 1, 1]} : vector<2x5x26x64xf32> to vector<2x5x1x64xf32>
    %127 = vector.extract_strided_slice %85 {offsets = [0, 0, 21, 0], sizes = [2, 5, 1, 64], strides = [1, 1, 1, 1]} : vector<2x5x26x64xf32> to vector<2x5x1x64xf32>
    %128 = arith.maximumf %126, %127 : vector<2x5x1x64xf32>
    %c0_73 = arith.constant 0 : index
    %c0_74 = arith.constant 0 : index
    %c10 = arith.constant 10 : index
    %c0_75 = arith.constant 0 : index
    %129 = vector.load %arg9[%c0_73, %c0_74, %c10, %c0_75] : memref<2x5x13x64xf32, #tpu.memory_space<vmem>>, vector<2x5x1x64xf32>
    tpu.vector_store %arg9[%c0_73, %c0_74, %c10, %c0_75], %128 {strides = array<i32>} : memref<2x5x13x64xf32, #tpu.memory_space<vmem>>, vector<2x5x1x64xf32>,
    %130 = vector.extract_strided_slice %85 {offsets = [0, 0, 22, 0], sizes = [2, 5, 1, 64], strides = [1, 1, 1, 1]} : vector<2x5x26x64xf32> to vector<2x5x1x64xf32>
    %131 = vector.extract_strided_slice %85 {offsets = [0, 0, 23, 0], sizes = [2, 5, 1, 64], strides = [1, 1, 1, 1]} : vector<2x5x26x64xf32> to vector<2x5x1x64xf32>
    %132 = arith.maximumf %130, %131 : vector<2x5x1x64xf32>
    %c0_76 = arith.constant 0 : index
    %c0_77 = arith.constant 0 : index
    %c11 = arith.constant 11 : index
    %c0_78 = arith.constant 0 : index
    %133 = vector.load %arg9[%c0_76, %c0_77, %c11, %c0_78] : memref<2x5x13x64xf32, #tpu.memory_space<vmem>>, vector<2x5x1x64xf32>
    tpu.vector_store %arg9[%c0_76, %c0_77, %c11, %c0_78], %132 {strides = array<i32>} : memref<2x5x13x64xf32, #tpu.memory_space<vmem>>, vector<2x5x1x64xf32>,
    %134 = vector.extract_strided_slice %85 {offsets = [0, 0, 24, 0], sizes = [2, 5, 1, 64], strides = [1, 1, 1, 1]} : vector<2x5x26x64xf32> to vector<2x5x1x64xf32>
    %135 = vector.extract_strided_slice %85 {offsets = [0, 0, 25, 0], sizes = [2, 5, 1, 64], strides = [1, 1, 1, 1]} : vector<2x5x26x64xf32> to vector<2x5x1x64xf32>
    %136 = arith.maximumf %134, %135 : vector<2x5x1x64xf32>
    %c0_79 = arith.constant 0 : index
    %c0_80 = arith.constant 0 : index
    %c12 = arith.constant 12 : index
    %c0_81 = arith.constant 0 : index
    %137 = vector.load %arg9[%c0_79, %c0_80, %c12, %c0_81] : memref<2x5x13x64xf32, #tpu.memory_space<vmem>>, vector<2x5x1x64xf32>
    tpu.vector_store %arg9[%c0_79, %c0_80, %c12, %c0_81], %136 {strides = array<i32>} : memref<2x5x13x64xf32, #tpu.memory_space<vmem>>, vector<2x5x1x64xf32>,
    %c0_82 = arith.constant 0 : index
    %c0_83 = arith.constant 0 : index
    %c0_84 = arith.constant 0 : index
    %c0_85 = arith.constant 0 : index
    %138 = vector.load %arg9[%c0_82, %c0_83, %c0_84, %c0_85] : memref<2x5x13x64xf32, #tpu.memory_space<vmem>>, vector<1x1x12x64xf32>
    %139 = vector.shape_cast %138 : vector<1x1x12x64xf32> to vector<12x64xf32>
    %c0_86 = arith.constant 0 : index
    %c0_87 = arith.constant 0 : index
    %c1_88 = arith.constant 1 : index
    %c0_89 = arith.constant 0 : index
    %140 = vector.load %arg9[%c0_86, %c0_87, %c1_88, %c0_89] : memref<2x5x13x64xf32, #tpu.memory_space<vmem>>, vector<1x1x12x64xf32>
    %141 = vector.shape_cast %140 : vector<1x1x12x64xf32> to vector<12x64xf32>
    %c0_90 = arith.constant 0 : index
    %c1_91 = arith.constant 1 : index
    %c0_92 = arith.constant 0 : index
    %c0_93 = arith.constant 0 : index
    %142 = vector.load %arg9[%c0_90, %c1_91, %c0_92, %c0_93] : memref<2x5x13x64xf32, #tpu.memory_space<vmem>>, vector<1x1x12x64xf32>
    %143 = vector.shape_cast %142 : vector<1x1x12x64xf32> to vector<12x64xf32>
    %c0_94 = arith.constant 0 : index
    %c1_95 = arith.constant 1 : index
    %c1_96 = arith.constant 1 : index
    %c0_97 = arith.constant 0 : index
    %144 = vector.load %arg9[%c0_94, %c1_95, %c1_96, %c0_97] : memref<2x5x13x64xf32, #tpu.memory_space<vmem>>, vector<1x1x12x64xf32>
    %145 = vector.shape_cast %144 : vector<1x1x12x64xf32> to vector<12x64xf32>
    %146 = tpu.concatenate %139, %141, %143, %145 in 1 : vector<12x64xf32>, vector<12x64xf32>, vector<12x64xf32>, vector<12x64xf32> -> vector<12x256xf32>
    %c0_98 = arith.constant 0 : index
    %c0_99 = arith.constant 0 : index
    %147 = vector.load %arg4[%c0_98, %c0_99] : memref<256x128xf32, #tpu.memory_space<vmem>>, vector<256x128xf32>
    %cst_100 = arith.constant dense<0.000000e+00> : vector<12x128xf32>
    %148 = tpu.matmul %146, %147, %cst_100 {dimension_numbers = #tpu.dot_dimension_numbers<[1], [0], [0], [1], [0, 0, 1, 1], [], []>} : vector<12x256xf32>, vector<256x128xf32>, vector<12x128xf32> -> vector<12x128xf32>
    %c0_101 = arith.constant 0 : index
    %c0_102 = arith.constant 0 : index
    %149 = vector.load %arg5[%c0_101, %c0_102] : memref<1x128xf32, #tpu.memory_space<vmem>>, vector<1x128xf32>
    %150 = vector.broadcast %149 : vector<1x128xf32> to vector<12x128xf32>
    %151 = arith.addf %148, %150 : vector<12x128xf32>
    %cst_103 = arith.constant 0.000000e+00 : f32
    %152 = vector.broadcast %cst_103 : f32 to vector<12x128xf32>
    %153 = arith.maximumf %151, %152 : vector<12x128xf32>
    %c0_104 = arith.constant 0 : index
    %c1_105 = arith.constant 1 : index
    %c0_106 = arith.constant 0 : index
    %c0_107 = arith.constant 0 : index
    %154 = vector.load %arg9[%c0_104, %c1_105, %c0_106, %c0_107] : memref<2x5x13x64xf32, #tpu.memory_space<vmem>>, vector<1x1x12x64xf32>
    %155 = vector.shape_cast %154 : vector<1x1x12x64xf32> to vector<12x64xf32>
    %c0_108 = arith.constant 0 : index
    %c1_109 = arith.constant 1 : index
    %c1_110 = arith.constant 1 : index
    %c0_111 = arith.constant 0 : index
    %156 = vector.load %arg9[%c0_108, %c1_109, %c1_110, %c0_111] : memref<2x5x13x64xf32, #tpu.memory_space<vmem>>, vector<1x1x12x64xf32>
    %157 = vector.shape_cast %156 : vector<1x1x12x64xf32> to vector<12x64xf32>
    %c0_112 = arith.constant 0 : index
    %c2_113 = arith.constant 2 : index
    %c0_114 = arith.constant 0 : index
    %c0_115 = arith.constant 0 : index
    %158 = vector.load %arg9[%c0_112, %c2_113, %c0_114, %c0_115] : memref<2x5x13x64xf32, #tpu.memory_space<vmem>>, vector<1x1x12x64xf32>
    %159 = vector.shape_cast %158 : vector<1x1x12x64xf32> to vector<12x64xf32>
    %c0_116 = arith.constant 0 : index
    %c2_117 = arith.constant 2 : index
    %c1_118 = arith.constant 1 : index
    %c0_119 = arith.constant 0 : index
    %160 = vector.load %arg9[%c0_116, %c2_117, %c1_118, %c0_119] : memref<2x5x13x64xf32, #tpu.memory_space<vmem>>, vector<1x1x12x64xf32>
    %161 = vector.shape_cast %160 : vector<1x1x12x64xf32> to vector<12x64xf32>
    %162 = tpu.concatenate %155, %157, %159, %161 in 1 : vector<12x64xf32>, vector<12x64xf32>, vector<12x64xf32>, vector<12x64xf32> -> vector<12x256xf32>
    %c0_120 = arith.constant 0 : index
    %c0_121 = arith.constant 0 : index
    %163 = vector.load %arg4[%c0_120, %c0_121] : memref<256x128xf32, #tpu.memory_space<vmem>>, vector<256x128xf32>
    %cst_122 = arith.constant dense<0.000000e+00> : vector<12x128xf32>
    %164 = tpu.matmul %162, %163, %cst_122 {dimension_numbers = #tpu.dot_dimension_numbers<[1], [0], [0], [1], [0, 0, 1, 1], [], []>} : vector<12x256xf32>, vector<256x128xf32>, vector<12x128xf32> -> vector<12x128xf32>
    %c0_123 = arith.constant 0 : index
    %c0_124 = arith.constant 0 : index
    %165 = vector.load %arg5[%c0_123, %c0_124] : memref<1x128xf32, #tpu.memory_space<vmem>>, vector<1x128xf32>
    %166 = vector.broadcast %165 : vector<1x128xf32> to vector<12x128xf32>
    %167 = arith.addf %164, %166 : vector<12x128xf32>
    %cst_125 = arith.constant 0.000000e+00 : f32
    %168 = vector.broadcast %cst_125 : f32 to vector<12x128xf32>
    %169 = arith.maximumf %167, %168 : vector<12x128xf32>
    %c0_126 = arith.constant 0 : index
    %c2_127 = arith.constant 2 : index
    %c0_128 = arith.constant 0 : index
    %c0_129 = arith.constant 0 : index
    %170 = vector.load %arg9[%c0_126, %c2_127, %c0_128, %c0_129] : memref<2x5x13x64xf32, #tpu.memory_space<vmem>>, vector<1x1x12x64xf32>
    %171 = vector.shape_cast %170 : vector<1x1x12x64xf32> to vector<12x64xf32>
    %c0_130 = arith.constant 0 : index
    %c2_131 = arith.constant 2 : index
    %c1_132 = arith.constant 1 : index
    %c0_133 = arith.constant 0 : index
    %172 = vector.load %arg9[%c0_130, %c2_131, %c1_132, %c0_133] : memref<2x5x13x64xf32, #tpu.memory_space<vmem>>, vector<1x1x12x64xf32>
    %173 = vector.shape_cast %172 : vector<1x1x12x64xf32> to vector<12x64xf32>
    %c0_134 = arith.constant 0 : index
    %c3_135 = arith.constant 3 : index
    %c0_136 = arith.constant 0 : index
    %c0_137 = arith.constant 0 : index
    %174 = vector.load %arg9[%c0_134, %c3_135, %c0_136, %c0_137] : memref<2x5x13x64xf32, #tpu.memory_space<vmem>>, vector<1x1x12x64xf32>
    %175 = vector.shape_cast %174 : vector<1x1x12x64xf32> to vector<12x64xf32>
    %c0_138 = arith.constant 0 : index
    %c3_139 = arith.constant 3 : index
    %c1_140 = arith.constant 1 : index
    %c0_141 = arith.constant 0 : index
    %176 = vector.load %arg9[%c0_138, %c3_139, %c1_140, %c0_141] : memref<2x5x13x64xf32, #tpu.memory_space<vmem>>, vector<1x1x12x64xf32>
    %177 = vector.shape_cast %176 : vector<1x1x12x64xf32> to vector<12x64xf32>
    %178 = tpu.concatenate %171, %173, %175, %177 in 1 : vector<12x64xf32>, vector<12x64xf32>, vector<12x64xf32>, vector<12x64xf32> -> vector<12x256xf32>
    %c0_142 = arith.constant 0 : index
    %c0_143 = arith.constant 0 : index
    %179 = vector.load %arg4[%c0_142, %c0_143] : memref<256x128xf32, #tpu.memory_space<vmem>>, vector<256x128xf32>
    %cst_144 = arith.constant dense<0.000000e+00> : vector<12x128xf32>
    %180 = tpu.matmul %178, %179, %cst_144 {dimension_numbers = #tpu.dot_dimension_numbers<[1], [0], [0], [1], [0, 0, 1, 1], [], []>} : vector<12x256xf32>, vector<256x128xf32>, vector<12x128xf32> -> vector<12x128xf32>
    %c0_145 = arith.constant 0 : index
    %c0_146 = arith.constant 0 : index
    %181 = vector.load %arg5[%c0_145, %c0_146] : memref<1x128xf32, #tpu.memory_space<vmem>>, vector<1x128xf32>
    %182 = vector.broadcast %181 : vector<1x128xf32> to vector<12x128xf32>
    %183 = arith.addf %180, %182 : vector<12x128xf32>
    %cst_147 = arith.constant 0.000000e+00 : f32
    %184 = vector.broadcast %cst_147 : f32 to vector<12x128xf32>
    %185 = arith.maximumf %183, %184 : vector<12x128xf32>
    %c0_148 = arith.constant 0 : index
    %c3_149 = arith.constant 3 : index
    %c0_150 = arith.constant 0 : index
    %c0_151 = arith.constant 0 : index
    %186 = vector.load %arg9[%c0_148, %c3_149, %c0_150, %c0_151] : memref<2x5x13x64xf32, #tpu.memory_space<vmem>>, vector<1x1x12x64xf32>
    %187 = vector.shape_cast %186 : vector<1x1x12x64xf32> to vector<12x64xf32>
    %c0_152 = arith.constant 0 : index
    %c3_153 = arith.constant 3 : index
    %c1_154 = arith.constant 1 : index
    %c0_155 = arith.constant 0 : index
    %188 = vector.load %arg9[%c0_152, %c3_153, %c1_154, %c0_155] : memref<2x5x13x64xf32, #tpu.memory_space<vmem>>, vector<1x1x12x64xf32>
    %189 = vector.shape_cast %188 : vector<1x1x12x64xf32> to vector<12x64xf32>
    %c0_156 = arith.constant 0 : index
    %c4_157 = arith.constant 4 : index
    %c0_158 = arith.constant 0 : index
    %c0_159 = arith.constant 0 : index
    %190 = vector.load %arg9[%c0_156, %c4_157, %c0_158, %c0_159] : memref<2x5x13x64xf32, #tpu.memory_space<vmem>>, vector<1x1x12x64xf32>
    %191 = vector.shape_cast %190 : vector<1x1x12x64xf32> to vector<12x64xf32>
    %c0_160 = arith.constant 0 : index
    %c4_161 = arith.constant 4 : index
    %c1_162 = arith.constant 1 : index
    %c0_163 = arith.constant 0 : index
    %192 = vector.load %arg9[%c0_160, %c4_161, %c1_162, %c0_163] : memref<2x5x13x64xf32, #tpu.memory_space<vmem>>, vector<1x1x12x64xf32>
    %193 = vector.shape_cast %192 : vector<1x1x12x64xf32> to vector<12x64xf32>
    %194 = tpu.concatenate %187, %189, %191, %193 in 1 : vector<12x64xf32>, vector<12x64xf32>, vector<12x64xf32>, vector<12x64xf32> -> vector<12x256xf32>
    %c0_164 = arith.constant 0 : index
    %c0_165 = arith.constant 0 : index
    %195 = vector.load %arg4[%c0_164, %c0_165] : memref<256x128xf32, #tpu.memory_space<vmem>>, vector<256x128xf32>
    %cst_166 = arith.constant dense<0.000000e+00> : vector<12x128xf32>
    %196 = tpu.matmul %194, %195, %cst_166 {dimension_numbers = #tpu.dot_dimension_numbers<[1], [0], [0], [1], [0, 0, 1, 1], [], []>} : vector<12x256xf32>, vector<256x128xf32>, vector<12x128xf32> -> vector<12x128xf32>
    %c0_167 = arith.constant 0 : index
    %c0_168 = arith.constant 0 : index
    %197 = vector.load %arg5[%c0_167, %c0_168] : memref<1x128xf32, #tpu.memory_space<vmem>>, vector<1x128xf32>
    %198 = vector.broadcast %197 : vector<1x128xf32> to vector<12x128xf32>
    %199 = arith.addf %196, %198 : vector<12x128xf32>
    %cst_169 = arith.constant 0.000000e+00 : f32
    %200 = vector.broadcast %cst_169 : f32 to vector<12x128xf32>
    %201 = arith.maximumf %199, %200 : vector<12x128xf32>
    %202 = arith.maximumf %153, %169 : vector<12x128xf32>
    %203 = vector.extract_strided_slice %202 {offsets = [0, 0], sizes = [1, 128], strides = [1, 1]} : vector<12x128xf32> to vector<1x128xf32>
    %204 = vector.extract_strided_slice %202 {offsets = [1, 0], sizes = [1, 128], strides = [1, 1]} : vector<12x128xf32> to vector<1x128xf32>
    %205 = arith.maximumf %203, %204 : vector<1x128xf32>
    %c0_170 = arith.constant 0 : index
    %c0_171 = arith.constant 0 : index
    %c0_172 = arith.constant 0 : index
    %c0_173 = arith.constant 0 : index
    %206 = vector.load %arg10[%c0_170, %c0_171, %c0_172, %c0_173] : memref<2x2x6x128xf32, #tpu.memory_space<vmem>>, vector<1x1x1x128xf32>
    %207 = vector.shape_cast %206 : vector<1x1x1x128xf32> to vector<1x128xf32>
    %208 = vector.shape_cast %205 : vector<1x128xf32> to vector<1x1x1x128xf32>
    tpu.vector_store %arg10[%c0_170, %c0_171, %c0_172, %c0_173], %208 {strides = array<i32>} : memref<2x2x6x128xf32, #tpu.memory_space<vmem>>, vector<1x1x1x128xf32>,
    %209 = vector.extract_strided_slice %202 {offsets = [2, 0], sizes = [1, 128], strides = [1, 1]} : vector<12x128xf32> to vector<1x128xf32>
    %210 = vector.extract_strided_slice %202 {offsets = [3, 0], sizes = [1, 128], strides = [1, 1]} : vector<12x128xf32> to vector<1x128xf32>
    %211 = arith.maximumf %209, %210 : vector<1x128xf32>
    %c0_174 = arith.constant 0 : index
    %c0_175 = arith.constant 0 : index
    %c1_176 = arith.constant 1 : index
    %c0_177 = arith.constant 0 : index
    %212 = vector.load %arg10[%c0_174, %c0_175, %c1_176, %c0_177] : memref<2x2x6x128xf32, #tpu.memory_space<vmem>>, vector<1x1x1x128xf32>
    %213 = vector.shape_cast %212 : vector<1x1x1x128xf32> to vector<1x128xf32>
    %214 = vector.shape_cast %211 : vector<1x128xf32> to vector<1x1x1x128xf32>
    tpu.vector_store %arg10[%c0_174, %c0_175, %c1_176, %c0_177], %214 {strides = array<i32>} : memref<2x2x6x128xf32, #tpu.memory_space<vmem>>, vector<1x1x1x128xf32>,
    %215 = vector.extract_strided_slice %202 {offsets = [4, 0], sizes = [1, 128], strides = [1, 1]} : vector<12x128xf32> to vector<1x128xf32>
    %216 = vector.extract_strided_slice %202 {offsets = [5, 0], sizes = [1, 128], strides = [1, 1]} : vector<12x128xf32> to vector<1x128xf32>
    %217 = arith.maximumf %215, %216 : vector<1x128xf32>
    %c0_178 = arith.constant 0 : index
    %c0_179 = arith.constant 0 : index
    %c2_180 = arith.constant 2 : index
    %c0_181 = arith.constant 0 : index
    %218 = vector.load %arg10[%c0_178, %c0_179, %c2_180, %c0_181] : memref<2x2x6x128xf32, #tpu.memory_space<vmem>>, vector<1x1x1x128xf32>
    %219 = vector.shape_cast %218 : vector<1x1x1x128xf32> to vector<1x128xf32>
    %220 = vector.shape_cast %217 : vector<1x128xf32> to vector<1x1x1x128xf32>
    tpu.vector_store %arg10[%c0_178, %c0_179, %c2_180, %c0_181], %220 {strides = array<i32>} : memref<2x2x6x128xf32, #tpu.memory_space<vmem>>, vector<1x1x1x128xf32>,
    %221 = vector.extract_strided_slice %202 {offsets = [6, 0], sizes = [1, 128], strides = [1, 1]} : vector<12x128xf32> to vector<1x128xf32>
    %222 = vector.extract_strided_slice %202 {offsets = [7, 0], sizes = [1, 128], strides = [1, 1]} : vector<12x128xf32> to vector<1x128xf32>
    %223 = arith.maximumf %221, %222 : vector<1x128xf32>
    %c0_182 = arith.constant 0 : index
    %c0_183 = arith.constant 0 : index
    %c3_184 = arith.constant 3 : index
    %c0_185 = arith.constant 0 : index
    %224 = vector.load %arg10[%c0_182, %c0_183, %c3_184, %c0_185] : memref<2x2x6x128xf32, #tpu.memory_space<vmem>>, vector<1x1x1x128xf32>
    %225 = vector.shape_cast %224 : vector<1x1x1x128xf32> to vector<1x128xf32>
    %226 = vector.shape_cast %223 : vector<1x128xf32> to vector<1x1x1x128xf32>
    tpu.vector_store %arg10[%c0_182, %c0_183, %c3_184, %c0_185], %226 {strides = array<i32>} : memref<2x2x6x128xf32, #tpu.memory_space<vmem>>, vector<1x1x1x128xf32>,
    %227 = vector.extract_strided_slice %202 {offsets = [8, 0], sizes = [1, 128], strides = [1, 1]} : vector<12x128xf32> to vector<1x128xf32>
    %228 = vector.extract_strided_slice %202 {offsets = [9, 0], sizes = [1, 128], strides = [1, 1]} : vector<12x128xf32> to vector<1x128xf32>
    %229 = arith.maximumf %227, %228 : vector<1x128xf32>
    %c0_186 = arith.constant 0 : index
    %c0_187 = arith.constant 0 : index
    %c4_188 = arith.constant 4 : index
    %c0_189 = arith.constant 0 : index
    %230 = vector.load %arg10[%c0_186, %c0_187, %c4_188, %c0_189] : memref<2x2x6x128xf32, #tpu.memory_space<vmem>>, vector<1x1x1x128xf32>
    %231 = vector.shape_cast %230 : vector<1x1x1x128xf32> to vector<1x128xf32>
    %232 = vector.shape_cast %229 : vector<1x128xf32> to vector<1x1x1x128xf32>
    tpu.vector_store %arg10[%c0_186, %c0_187, %c4_188, %c0_189], %232 {strides = array<i32>} : memref<2x2x6x128xf32, #tpu.memory_space<vmem>>, vector<1x1x1x128xf32>,
    %233 = vector.extract_strided_slice %202 {offsets = [10, 0], sizes = [1, 128], strides = [1, 1]} : vector<12x128xf32> to vector<1x128xf32>
    %234 = vector.extract_strided_slice %202 {offsets = [11, 0], sizes = [1, 128], strides = [1, 1]} : vector<12x128xf32> to vector<1x128xf32>
    %235 = arith.maximumf %233, %234 : vector<1x128xf32>
    %c0_190 = arith.constant 0 : index
    %c0_191 = arith.constant 0 : index
    %c5_192 = arith.constant 5 : index
    %c0_193 = arith.constant 0 : index
    %236 = vector.load %arg10[%c0_190, %c0_191, %c5_192, %c0_193] : memref<2x2x6x128xf32, #tpu.memory_space<vmem>>, vector<1x1x1x128xf32>
    %237 = vector.shape_cast %236 : vector<1x1x1x128xf32> to vector<1x128xf32>
    %238 = vector.shape_cast %235 : vector<1x128xf32> to vector<1x1x1x128xf32>
    tpu.vector_store %arg10[%c0_190, %c0_191, %c5_192, %c0_193], %238 {strides = array<i32>} : memref<2x2x6x128xf32, #tpu.memory_space<vmem>>, vector<1x1x1x128xf32>,
    %239 = arith.maximumf %185, %201 : vector<12x128xf32>
    %240 = vector.extract_strided_slice %239 {offsets = [0, 0], sizes = [1, 128], strides = [1, 1]} : vector<12x128xf32> to vector<1x128xf32>
    %241 = vector.extract_strided_slice %239 {offsets = [1, 0], sizes = [1, 128], strides = [1, 1]} : vector<12x128xf32> to vector<1x128xf32>
    %242 = arith.maximumf %240, %241 : vector<1x128xf32>
    %c0_194 = arith.constant 0 : index
    %c1_195 = arith.constant 1 : index
    %c0_196 = arith.constant 0 : index
    %c0_197 = arith.constant 0 : index
    %243 = vector.load %arg10[%c0_194, %c1_195, %c0_196, %c0_197] : memref<2x2x6x128xf32, #tpu.memory_space<vmem>>, vector<1x1x1x128xf32>
    %244 = vector.shape_cast %243 : vector<1x1x1x128xf32> to vector<1x128xf32>
    %245 = vector.shape_cast %242 : vector<1x128xf32> to vector<1x1x1x128xf32>
    tpu.vector_store %arg10[%c0_194, %c1_195, %c0_196, %c0_197], %245 {strides = array<i32>} : memref<2x2x6x128xf32, #tpu.memory_space<vmem>>, vector<1x1x1x128xf32>,
    %246 = vector.extract_strided_slice %239 {offsets = [2, 0], sizes = [1, 128], strides = [1, 1]} : vector<12x128xf32> to vector<1x128xf32>
    %247 = vector.extract_strided_slice %239 {offsets = [3, 0], sizes = [1, 128], strides = [1, 1]} : vector<12x128xf32> to vector<1x128xf32>
    %248 = arith.maximumf %246, %247 : vector<1x128xf32>
    %c0_198 = arith.constant 0 : index
    %c1_199 = arith.constant 1 : index
    %c1_200 = arith.constant 1 : index
    %c0_201 = arith.constant 0 : index
    %249 = vector.load %arg10[%c0_198, %c1_199, %c1_200, %c0_201] : memref<2x2x6x128xf32, #tpu.memory_space<vmem>>, vector<1x1x1x128xf32>
    %250 = vector.shape_cast %249 : vector<1x1x1x128xf32> to vector<1x128xf32>
    %251 = vector.shape_cast %248 : vector<1x128xf32> to vector<1x1x1x128xf32>
    tpu.vector_store %arg10[%c0_198, %c1_199, %c1_200, %c0_201], %251 {strides = array<i32>} : memref<2x2x6x128xf32, #tpu.memory_space<vmem>>, vector<1x1x1x128xf32>,
    %252 = vector.extract_strided_slice %239 {offsets = [4, 0], sizes = [1, 128], strides = [1, 1]} : vector<12x128xf32> to vector<1x128xf32>
    %253 = vector.extract_strided_slice %239 {offsets = [5, 0], sizes = [1, 128], strides = [1, 1]} : vector<12x128xf32> to vector<1x128xf32>
    %254 = arith.maximumf %252, %253 : vector<1x128xf32>
    %c0_202 = arith.constant 0 : index
    %c1_203 = arith.constant 1 : index
    %c2_204 = arith.constant 2 : index
    %c0_205 = arith.constant 0 : index
    %255 = vector.load %arg10[%c0_202, %c1_203, %c2_204, %c0_205] : memref<2x2x6x128xf32, #tpu.memory_space<vmem>>, vector<1x1x1x128xf32>
    %256 = vector.shape_cast %255 : vector<1x1x1x128xf32> to vector<1x128xf32>
    %257 = vector.shape_cast %254 : vector<1x128xf32> to vector<1x1x1x128xf32>
    tpu.vector_store %arg10[%c0_202, %c1_203, %c2_204, %c0_205], %257 {strides = array<i32>} : memref<2x2x6x128xf32, #tpu.memory_space<vmem>>, vector<1x1x1x128xf32>,
    %258 = vector.extract_strided_slice %239 {offsets = [6, 0], sizes = [1, 128], strides = [1, 1]} : vector<12x128xf32> to vector<1x128xf32>
    %259 = vector.extract_strided_slice %239 {offsets = [7, 0], sizes = [1, 128], strides = [1, 1]} : vector<12x128xf32> to vector<1x128xf32>
    %260 = arith.maximumf %258, %259 : vector<1x128xf32>
    %c0_206 = arith.constant 0 : index
    %c1_207 = arith.constant 1 : index
    %c3_208 = arith.constant 3 : index
    %c0_209 = arith.constant 0 : index
    %261 = vector.load %arg10[%c0_206, %c1_207, %c3_208, %c0_209] : memref<2x2x6x128xf32, #tpu.memory_space<vmem>>, vector<1x1x1x128xf32>
    %262 = vector.shape_cast %261 : vector<1x1x1x128xf32> to vector<1x128xf32>
    %263 = vector.shape_cast %260 : vector<1x128xf32> to vector<1x1x1x128xf32>
    tpu.vector_store %arg10[%c0_206, %c1_207, %c3_208, %c0_209], %263 {strides = array<i32>} : memref<2x2x6x128xf32, #tpu.memory_space<vmem>>, vector<1x1x1x128xf32>,
    %264 = vector.extract_strided_slice %239 {offsets = [8, 0], sizes = [1, 128], strides = [1, 1]} : vector<12x128xf32> to vector<1x128xf32>
    %265 = vector.extract_strided_slice %239 {offsets = [9, 0], sizes = [1, 128], strides = [1, 1]} : vector<12x128xf32> to vector<1x128xf32>
    %266 = arith.maximumf %264, %265 : vector<1x128xf32>
    %c0_210 = arith.constant 0 : index
    %c1_211 = arith.constant 1 : index
    %c4_212 = arith.constant 4 : index
    %c0_213 = arith.constant 0 : index
    %267 = vector.load %arg10[%c0_210, %c1_211, %c4_212, %c0_213] : memref<2x2x6x128xf32, #tpu.memory_space<vmem>>, vector<1x1x1x128xf32>
    %268 = vector.shape_cast %267 : vector<1x1x1x128xf32> to vector<1x128xf32>
    %269 = vector.shape_cast %266 : vector<1x128xf32> to vector<1x1x1x128xf32>
    tpu.vector_store %arg10[%c0_210, %c1_211, %c4_212, %c0_213], %269 {strides = array<i32>} : memref<2x2x6x128xf32, #tpu.memory_space<vmem>>, vector<1x1x1x128xf32>,
    %270 = vector.extract_strided_slice %239 {offsets = [10, 0], sizes = [1, 128], strides = [1, 1]} : vector<12x128xf32> to vector<1x128xf32>
    %271 = vector.extract_strided_slice %239 {offsets = [11, 0], sizes = [1, 128], strides = [1, 1]} : vector<12x128xf32> to vector<1x128xf32>
    %272 = arith.maximumf %270, %271 : vector<1x128xf32>
    %c0_214 = arith.constant 0 : index
    %c1_215 = arith.constant 1 : index
    %c5_216 = arith.constant 5 : index
    %c0_217 = arith.constant 0 : index
    %273 = vector.load %arg10[%c0_214, %c1_215, %c5_216, %c0_217] : memref<2x2x6x128xf32, #tpu.memory_space<vmem>>, vector<1x1x1x128xf32>
    %274 = vector.shape_cast %273 : vector<1x1x1x128xf32> to vector<1x128xf32>
    %275 = vector.shape_cast %272 : vector<1x128xf32> to vector<1x1x1x128xf32>
    tpu.vector_store %arg10[%c0_214, %c1_215, %c5_216, %c0_217], %275 {strides = array<i32>} : memref<2x2x6x128xf32, #tpu.memory_space<vmem>>, vector<1x1x1x128xf32>,
    %c1_218 = arith.constant 1 : index
    %c0_219 = arith.constant 0 : index
    %c0_220 = arith.constant 0 : index
    %c0_221 = arith.constant 0 : index
    %276 = vector.load %arg9[%c1_218, %c0_219, %c0_220, %c0_221] : memref<2x5x13x64xf32, #tpu.memory_space<vmem>>, vector<1x1x12x64xf32>
    %277 = vector.shape_cast %276 : vector<1x1x12x64xf32> to vector<12x64xf32>
    %c1_222 = arith.constant 1 : index
    %c0_223 = arith.constant 0 : index
    %c1_224 = arith.constant 1 : index
    %c0_225 = arith.constant 0 : index
    %278 = vector.load %arg9[%c1_222, %c0_223, %c1_224, %c0_225] : memref<2x5x13x64xf32, #tpu.memory_space<vmem>>, vector<1x1x12x64xf32>
    %279 = vector.shape_cast %278 : vector<1x1x12x64xf32> to vector<12x64xf32>
    %c1_226 = arith.constant 1 : index
    %c1_227 = arith.constant 1 : index
    %c0_228 = arith.constant 0 : index
    %c0_229 = arith.constant 0 : index
    %280 = vector.load %arg9[%c1_226, %c1_227, %c0_228, %c0_229] : memref<2x5x13x64xf32, #tpu.memory_space<vmem>>, vector<1x1x12x64xf32>
    %281 = vector.shape_cast %280 : vector<1x1x12x64xf32> to vector<12x64xf32>
    %c1_230 = arith.constant 1 : index
    %c1_231 = arith.constant 1 : index
    %c1_232 = arith.constant 1 : index
    %c0_233 = arith.constant 0 : index
    %282 = vector.load %arg9[%c1_230, %c1_231, %c1_232, %c0_233] : memref<2x5x13x64xf32, #tpu.memory_space<vmem>>, vector<1x1x12x64xf32>
    %283 = vector.shape_cast %282 : vector<1x1x12x64xf32> to vector<12x64xf32>
    %284 = tpu.concatenate %277, %279, %281, %283 in 1 : vector<12x64xf32>, vector<12x64xf32>, vector<12x64xf32>, vector<12x64xf32> -> vector<12x256xf32>
    %c0_234 = arith.constant 0 : index
    %c0_235 = arith.constant 0 : index
    %285 = vector.load %arg4[%c0_234, %c0_235] : memref<256x128xf32, #tpu.memory_space<vmem>>, vector<256x128xf32>
    %cst_236 = arith.constant dense<0.000000e+00> : vector<12x128xf32>
    %286 = tpu.matmul %284, %285, %cst_236 {dimension_numbers = #tpu.dot_dimension_numbers<[1], [0], [0], [1], [0, 0, 1, 1], [], []>} : vector<12x256xf32>, vector<256x128xf32>, vector<12x128xf32> -> vector<12x128xf32>
    %c0_237 = arith.constant 0 : index
    %c0_238 = arith.constant 0 : index
    %287 = vector.load %arg5[%c0_237, %c0_238] : memref<1x128xf32, #tpu.memory_space<vmem>>, vector<1x128xf32>
    %288 = vector.broadcast %287 : vector<1x128xf32> to vector<12x128xf32>
    %289 = arith.addf %286, %288 : vector<12x128xf32>
    %cst_239 = arith.constant 0.000000e+00 : f32
    %290 = vector.broadcast %cst_239 : f32 to vector<12x128xf32>
    %291 = arith.maximumf %289, %290 : vector<12x128xf32>
    %c1_240 = arith.constant 1 : index
    %c1_241 = arith.constant 1 : index
    %c0_242 = arith.constant 0 : index
    %c0_243 = arith.constant 0 : index
    %292 = vector.load %arg9[%c1_240, %c1_241, %c0_242, %c0_243] : memref<2x5x13x64xf32, #tpu.memory_space<vmem>>, vector<1x1x12x64xf32>
    %293 = vector.shape_cast %292 : vector<1x1x12x64xf32> to vector<12x64xf32>
    %c1_244 = arith.constant 1 : index
    %c1_245 = arith.constant 1 : index
    %c1_246 = arith.constant 1 : index
    %c0_247 = arith.constant 0 : index
    %294 = vector.load %arg9[%c1_244, %c1_245, %c1_246, %c0_247] : memref<2x5x13x64xf32, #tpu.memory_space<vmem>>, vector<1x1x12x64xf32>
    %295 = vector.shape_cast %294 : vector<1x1x12x64xf32> to vector<12x64xf32>
    %c1_248 = arith.constant 1 : index
    %c2_249 = arith.constant 2 : index
    %c0_250 = arith.constant 0 : index
    %c0_251 = arith.constant 0 : index
    %296 = vector.load %arg9[%c1_248, %c2_249, %c0_250, %c0_251] : memref<2x5x13x64xf32, #tpu.memory_space<vmem>>, vector<1x1x12x64xf32>
    %297 = vector.shape_cast %296 : vector<1x1x12x64xf32> to vector<12x64xf32>
    %c1_252 = arith.constant 1 : index
    %c2_253 = arith.constant 2 : index
    %c1_254 = arith.constant 1 : index
    %c0_255 = arith.constant 0 : index
    %298 = vector.load %arg9[%c1_252, %c2_253, %c1_254, %c0_255] : memref<2x5x13x64xf32, #tpu.memory_space<vmem>>, vector<1x1x12x64xf32>
    %299 = vector.shape_cast %298 : vector<1x1x12x64xf32> to vector<12x64xf32>
    %300 = tpu.concatenate %293, %295, %297, %299 in 1 : vector<12x64xf32>, vector<12x64xf32>, vector<12x64xf32>, vector<12x64xf32> -> vector<12x256xf32>
    %c0_256 = arith.constant 0 : index
    %c0_257 = arith.constant 0 : index
    %301 = vector.load %arg4[%c0_256, %c0_257] : memref<256x128xf32, #tpu.memory_space<vmem>>, vector<256x128xf32>
    %cst_258 = arith.constant dense<0.000000e+00> : vector<12x128xf32>
    %302 = tpu.matmul %300, %301, %cst_258 {dimension_numbers = #tpu.dot_dimension_numbers<[1], [0], [0], [1], [0, 0, 1, 1], [], []>} : vector<12x256xf32>, vector<256x128xf32>, vector<12x128xf32> -> vector<12x128xf32>
    %c0_259 = arith.constant 0 : index
    %c0_260 = arith.constant 0 : index
    %303 = vector.load %arg5[%c0_259, %c0_260] : memref<1x128xf32, #tpu.memory_space<vmem>>, vector<1x128xf32>
    %304 = vector.broadcast %303 : vector<1x128xf32> to vector<12x128xf32>
    %305 = arith.addf %302, %304 : vector<12x128xf32>
    %cst_261 = arith.constant 0.000000e+00 : f32
    %306 = vector.broadcast %cst_261 : f32 to vector<12x128xf32>
    %307 = arith.maximumf %305, %306 : vector<12x128xf32>
    %c1_262 = arith.constant 1 : index
    %c2_263 = arith.constant 2 : index
    %c0_264 = arith.constant 0 : index
    %c0_265 = arith.constant 0 : index
    %308 = vector.load %arg9[%c1_262, %c2_263, %c0_264, %c0_265] : memref<2x5x13x64xf32, #tpu.memory_space<vmem>>, vector<1x1x12x64xf32>
    %309 = vector.shape_cast %308 : vector<1x1x12x64xf32> to vector<12x64xf32>
    %c1_266 = arith.constant 1 : index
    %c2_267 = arith.constant 2 : index
    %c1_268 = arith.constant 1 : index
    %c0_269 = arith.constant 0 : index
    %310 = vector.load %arg9[%c1_266, %c2_267, %c1_268, %c0_269] : memref<2x5x13x64xf32, #tpu.memory_space<vmem>>, vector<1x1x12x64xf32>
    %311 = vector.shape_cast %310 : vector<1x1x12x64xf32> to vector<12x64xf32>
    %c1_270 = arith.constant 1 : index
    %c3_271 = arith.constant 3 : index
    %c0_272 = arith.constant 0 : index
    %c0_273 = arith.constant 0 : index
    %312 = vector.load %arg9[%c1_270, %c3_271, %c0_272, %c0_273] : memref<2x5x13x64xf32, #tpu.memory_space<vmem>>, vector<1x1x12x64xf32>
    %313 = vector.shape_cast %312 : vector<1x1x12x64xf32> to vector<12x64xf32>
    %c1_274 = arith.constant 1 : index
    %c3_275 = arith.constant 3 : index
    %c1_276 = arith.constant 1 : index
    %c0_277 = arith.constant 0 : index
    %314 = vector.load %arg9[%c1_274, %c3_275, %c1_276, %c0_277] : memref<2x5x13x64xf32, #tpu.memory_space<vmem>>, vector<1x1x12x64xf32>
    %315 = vector.shape_cast %314 : vector<1x1x12x64xf32> to vector<12x64xf32>
    %316 = tpu.concatenate %309, %311, %313, %315 in 1 : vector<12x64xf32>, vector<12x64xf32>, vector<12x64xf32>, vector<12x64xf32> -> vector<12x256xf32>
    %c0_278 = arith.constant 0 : index
    %c0_279 = arith.constant 0 : index
    %317 = vector.load %arg4[%c0_278, %c0_279] : memref<256x128xf32, #tpu.memory_space<vmem>>, vector<256x128xf32>
    %cst_280 = arith.constant dense<0.000000e+00> : vector<12x128xf32>
    %318 = tpu.matmul %316, %317, %cst_280 {dimension_numbers = #tpu.dot_dimension_numbers<[1], [0], [0], [1], [0, 0, 1, 1], [], []>} : vector<12x256xf32>, vector<256x128xf32>, vector<12x128xf32> -> vector<12x128xf32>
    %c0_281 = arith.constant 0 : index
    %c0_282 = arith.constant 0 : index
    %319 = vector.load %arg5[%c0_281, %c0_282] : memref<1x128xf32, #tpu.memory_space<vmem>>, vector<1x128xf32>
    %320 = vector.broadcast %319 : vector<1x128xf32> to vector<12x128xf32>
    %321 = arith.addf %318, %320 : vector<12x128xf32>
    %cst_283 = arith.constant 0.000000e+00 : f32
    %322 = vector.broadcast %cst_283 : f32 to vector<12x128xf32>
    %323 = arith.maximumf %321, %322 : vector<12x128xf32>
    %c1_284 = arith.constant 1 : index
    %c3_285 = arith.constant 3 : index
    %c0_286 = arith.constant 0 : index
    %c0_287 = arith.constant 0 : index
    %324 = vector.load %arg9[%c1_284, %c3_285, %c0_286, %c0_287] : memref<2x5x13x64xf32, #tpu.memory_space<vmem>>, vector<1x1x12x64xf32>
    %325 = vector.shape_cast %324 : vector<1x1x12x64xf32> to vector<12x64xf32>
    %c1_288 = arith.constant 1 : index
    %c3_289 = arith.constant 3 : index
    %c1_290 = arith.constant 1 : index
    %c0_291 = arith.constant 0 : index
    %326 = vector.load %arg9[%c1_288, %c3_289, %c1_290, %c0_291] : memref<2x5x13x64xf32, #tpu.memory_space<vmem>>, vector<1x1x12x64xf32>
    %327 = vector.shape_cast %326 : vector<1x1x12x64xf32> to vector<12x64xf32>
    %c1_292 = arith.constant 1 : index
    %c4_293 = arith.constant 4 : index
    %c0_294 = arith.constant 0 : index
    %c0_295 = arith.constant 0 : index
    %328 = vector.load %arg9[%c1_292, %c4_293, %c0_294, %c0_295] : memref<2x5x13x64xf32, #tpu.memory_space<vmem>>, vector<1x1x12x64xf32>
    %329 = vector.shape_cast %328 : vector<1x1x12x64xf32> to vector<12x64xf32>
    %c1_296 = arith.constant 1 : index
    %c4_297 = arith.constant 4 : index
    %c1_298 = arith.constant 1 : index
    %c0_299 = arith.constant 0 : index
    %330 = vector.load %arg9[%c1_296, %c4_297, %c1_298, %c0_299] : memref<2x5x13x64xf32, #tpu.memory_space<vmem>>, vector<1x1x12x64xf32>
    %331 = vector.shape_cast %330 : vector<1x1x12x64xf32> to vector<12x64xf32>
    %332 = tpu.concatenate %325, %327, %329, %331 in 1 : vector<12x64xf32>, vector<12x64xf32>, vector<12x64xf32>, vector<12x64xf32> -> vector<12x256xf32>
    %c0_300 = arith.constant 0 : index
    %c0_301 = arith.constant 0 : index
    %333 = vector.load %arg4[%c0_300, %c0_301] : memref<256x128xf32, #tpu.memory_space<vmem>>, vector<256x128xf32>
    %cst_302 = arith.constant dense<0.000000e+00> : vector<12x128xf32>
    %334 = tpu.matmul %332, %333, %cst_302 {dimension_numbers = #tpu.dot_dimension_numbers<[1], [0], [0], [1], [0, 0, 1, 1], [], []>} : vector<12x256xf32>, vector<256x128xf32>, vector<12x128xf32> -> vector<12x128xf32>
    %c0_303 = arith.constant 0 : index
    %c0_304 = arith.constant 0 : index
    %335 = vector.load %arg5[%c0_303, %c0_304] : memref<1x128xf32, #tpu.memory_space<vmem>>, vector<1x128xf32>
    %336 = vector.broadcast %335 : vector<1x128xf32> to vector<12x128xf32>
    %337 = arith.addf %334, %336 : vector<12x128xf32>
    %cst_305 = arith.constant 0.000000e+00 : f32
    %338 = vector.broadcast %cst_305 : f32 to vector<12x128xf32>
    %339 = arith.maximumf %337, %338 : vector<12x128xf32>
    %340 = arith.maximumf %291, %307 : vector<12x128xf32>
    %341 = vector.extract_strided_slice %340 {offsets = [0, 0], sizes = [1, 128], strides = [1, 1]} : vector<12x128xf32> to vector<1x128xf32>
    %342 = vector.extract_strided_slice %340 {offsets = [1, 0], sizes = [1, 128], strides = [1, 1]} : vector<12x128xf32> to vector<1x128xf32>
    %343 = arith.maximumf %341, %342 : vector<1x128xf32>
    %c1_306 = arith.constant 1 : index
    %c0_307 = arith.constant 0 : index
    %c0_308 = arith.constant 0 : index
    %c0_309 = arith.constant 0 : index
    %344 = vector.load %arg10[%c1_306, %c0_307, %c0_308, %c0_309] : memref<2x2x6x128xf32, #tpu.memory_space<vmem>>, vector<1x1x1x128xf32>
    %345 = vector.shape_cast %344 : vector<1x1x1x128xf32> to vector<1x128xf32>
    %346 = vector.shape_cast %343 : vector<1x128xf32> to vector<1x1x1x128xf32>
    tpu.vector_store %arg10[%c1_306, %c0_307, %c0_308, %c0_309], %346 {strides = array<i32>} : memref<2x2x6x128xf32, #tpu.memory_space<vmem>>, vector<1x1x1x128xf32>,
    %347 = vector.extract_strided_slice %340 {offsets = [2, 0], sizes = [1, 128], strides = [1, 1]} : vector<12x128xf32> to vector<1x128xf32>
    %348 = vector.extract_strided_slice %340 {offsets = [3, 0], sizes = [1, 128], strides = [1, 1]} : vector<12x128xf32> to vector<1x128xf32>
    %349 = arith.maximumf %347, %348 : vector<1x128xf32>
    %c1_310 = arith.constant 1 : index
    %c0_311 = arith.constant 0 : index
    %c1_312 = arith.constant 1 : index
    %c0_313 = arith.constant 0 : index
    %350 = vector.load %arg10[%c1_310, %c0_311, %c1_312, %c0_313] : memref<2x2x6x128xf32, #tpu.memory_space<vmem>>, vector<1x1x1x128xf32>
    %351 = vector.shape_cast %350 : vector<1x1x1x128xf32> to vector<1x128xf32>
    %352 = vector.shape_cast %349 : vector<1x128xf32> to vector<1x1x1x128xf32>
    tpu.vector_store %arg10[%c1_310, %c0_311, %c1_312, %c0_313], %352 {strides = array<i32>} : memref<2x2x6x128xf32, #tpu.memory_space<vmem>>, vector<1x1x1x128xf32>,
    %353 = vector.extract_strided_slice %340 {offsets = [4, 0], sizes = [1, 128], strides = [1, 1]} : vector<12x128xf32> to vector<1x128xf32>
    %354 = vector.extract_strided_slice %340 {offsets = [5, 0], sizes = [1, 128], strides = [1, 1]} : vector<12x128xf32> to vector<1x128xf32>
    %355 = arith.maximumf %353, %354 : vector<1x128xf32>
    %c1_314 = arith.constant 1 : index
    %c0_315 = arith.constant 0 : index
    %c2_316 = arith.constant 2 : index
    %c0_317 = arith.constant 0 : index
    %356 = vector.load %arg10[%c1_314, %c0_315, %c2_316, %c0_317] : memref<2x2x6x128xf32, #tpu.memory_space<vmem>>, vector<1x1x1x128xf32>
    %357 = vector.shape_cast %356 : vector<1x1x1x128xf32> to vector<1x128xf32>
    %358 = vector.shape_cast %355 : vector<1x128xf32> to vector<1x1x1x128xf32>
    tpu.vector_store %arg10[%c1_314, %c0_315, %c2_316, %c0_317], %358 {strides = array<i32>} : memref<2x2x6x128xf32, #tpu.memory_space<vmem>>, vector<1x1x1x128xf32>,
    %359 = vector.extract_strided_slice %340 {offsets = [6, 0], sizes = [1, 128], strides = [1, 1]} : vector<12x128xf32> to vector<1x128xf32>
    %360 = vector.extract_strided_slice %340 {offsets = [7, 0], sizes = [1, 128], strides = [1, 1]} : vector<12x128xf32> to vector<1x128xf32>
    %361 = arith.maximumf %359, %360 : vector<1x128xf32>
    %c1_318 = arith.constant 1 : index
    %c0_319 = arith.constant 0 : index
    %c3_320 = arith.constant 3 : index
    %c0_321 = arith.constant 0 : index
    %362 = vector.load %arg10[%c1_318, %c0_319, %c3_320, %c0_321] : memref<2x2x6x128xf32, #tpu.memory_space<vmem>>, vector<1x1x1x128xf32>
    %363 = vector.shape_cast %362 : vector<1x1x1x128xf32> to vector<1x128xf32>
    %364 = vector.shape_cast %361 : vector<1x128xf32> to vector<1x1x1x128xf32>
    tpu.vector_store %arg10[%c1_318, %c0_319, %c3_320, %c0_321], %364 {strides = array<i32>} : memref<2x2x6x128xf32, #tpu.memory_space<vmem>>, vector<1x1x1x128xf32>,
    %365 = vector.extract_strided_slice %340 {offsets = [8, 0], sizes = [1, 128], strides = [1, 1]} : vector<12x128xf32> to vector<1x128xf32>
    %366 = vector.extract_strided_slice %340 {offsets = [9, 0], sizes = [1, 128], strides = [1, 1]} : vector<12x128xf32> to vector<1x128xf32>
    %367 = arith.maximumf %365, %366 : vector<1x128xf32>
    %c1_322 = arith.constant 1 : index
    %c0_323 = arith.constant 0 : index
    %c4_324 = arith.constant 4 : index
    %c0_325 = arith.constant 0 : index
    %368 = vector.load %arg10[%c1_322, %c0_323, %c4_324, %c0_325] : memref<2x2x6x128xf32, #tpu.memory_space<vmem>>, vector<1x1x1x128xf32>
    %369 = vector.shape_cast %368 : vector<1x1x1x128xf32> to vector<1x128xf32>
    %370 = vector.shape_cast %367 : vector<1x128xf32> to vector<1x1x1x128xf32>
    tpu.vector_store %arg10[%c1_322, %c0_323, %c4_324, %c0_325], %370 {strides = array<i32>} : memref<2x2x6x128xf32, #tpu.memory_space<vmem>>, vector<1x1x1x128xf32>,
    %371 = vector.extract_strided_slice %340 {offsets = [10, 0], sizes = [1, 128], strides = [1, 1]} : vector<12x128xf32> to vector<1x128xf32>
    %372 = vector.extract_strided_slice %340 {offsets = [11, 0], sizes = [1, 128], strides = [1, 1]} : vector<12x128xf32> to vector<1x128xf32>
    %373 = arith.maximumf %371, %372 : vector<1x128xf32>
    %c1_326 = arith.constant 1 : index
    %c0_327 = arith.constant 0 : index
    %c5_328 = arith.constant 5 : index
    %c0_329 = arith.constant 0 : index
    %374 = vector.load %arg10[%c1_326, %c0_327, %c5_328, %c0_329] : memref<2x2x6x128xf32, #tpu.memory_space<vmem>>, vector<1x1x1x128xf32>
    %375 = vector.shape_cast %374 : vector<1x1x1x128xf32> to vector<1x128xf32>
    %376 = vector.shape_cast %373 : vector<1x128xf32> to vector<1x1x1x128xf32>
    tpu.vector_store %arg10[%c1_326, %c0_327, %c5_328, %c0_329], %376 {strides = array<i32>} : memref<2x2x6x128xf32, #tpu.memory_space<vmem>>, vector<1x1x1x128xf32>,
    %377 = arith.maximumf %323, %339 : vector<12x128xf32>
    %378 = vector.extract_strided_slice %377 {offsets = [0, 0], sizes = [1, 128], strides = [1, 1]} : vector<12x128xf32> to vector<1x128xf32>
    %379 = vector.extract_strided_slice %377 {offsets = [1, 0], sizes = [1, 128], strides = [1, 1]} : vector<12x128xf32> to vector<1x128xf32>
    %380 = arith.maximumf %378, %379 : vector<1x128xf32>
    %c1_330 = arith.constant 1 : index
    %c1_331 = arith.constant 1 : index
    %c0_332 = arith.constant 0 : index
    %c0_333 = arith.constant 0 : index
    %381 = vector.load %arg10[%c1_330, %c1_331, %c0_332, %c0_333] : memref<2x2x6x128xf32, #tpu.memory_space<vmem>>, vector<1x1x1x128xf32>
    %382 = vector.shape_cast %381 : vector<1x1x1x128xf32> to vector<1x128xf32>
    %383 = vector.shape_cast %380 : vector<1x128xf32> to vector<1x1x1x128xf32>
    tpu.vector_store %arg10[%c1_330, %c1_331, %c0_332, %c0_333], %383 {strides = array<i32>} : memref<2x2x6x128xf32, #tpu.memory_space<vmem>>, vector<1x1x1x128xf32>,
    %384 = vector.extract_strided_slice %377 {offsets = [2, 0], sizes = [1, 128], strides = [1, 1]} : vector<12x128xf32> to vector<1x128xf32>
    %385 = vector.extract_strided_slice %377 {offsets = [3, 0], sizes = [1, 128], strides = [1, 1]} : vector<12x128xf32> to vector<1x128xf32>
    %386 = arith.maximumf %384, %385 : vector<1x128xf32>
    %c1_334 = arith.constant 1 : index
    %c1_335 = arith.constant 1 : index
    %c1_336 = arith.constant 1 : index
    %c0_337 = arith.constant 0 : index
    %387 = vector.load %arg10[%c1_334, %c1_335, %c1_336, %c0_337] : memref<2x2x6x128xf32, #tpu.memory_space<vmem>>, vector<1x1x1x128xf32>
    %388 = vector.shape_cast %387 : vector<1x1x1x128xf32> to vector<1x128xf32>
    %389 = vector.shape_cast %386 : vector<1x128xf32> to vector<1x1x1x128xf32>
    tpu.vector_store %arg10[%c1_334, %c1_335, %c1_336, %c0_337], %389 {strides = array<i32>} : memref<2x2x6x128xf32, #tpu.memory_space<vmem>>, vector<1x1x1x128xf32>,
    %390 = vector.extract_strided_slice %377 {offsets = [4, 0], sizes = [1, 128], strides = [1, 1]} : vector<12x128xf32> to vector<1x128xf32>
    %391 = vector.extract_strided_slice %377 {offsets = [5, 0], sizes = [1, 128], strides = [1, 1]} : vector<12x128xf32> to vector<1x128xf32>
    %392 = arith.maximumf %390, %391 : vector<1x128xf32>
    %c1_338 = arith.constant 1 : index
    %c1_339 = arith.constant 1 : index
    %c2_340 = arith.constant 2 : index
    %c0_341 = arith.constant 0 : index
    %393 = vector.load %arg10[%c1_338, %c1_339, %c2_340, %c0_341] : memref<2x2x6x128xf32, #tpu.memory_space<vmem>>, vector<1x1x1x128xf32>
    %394 = vector.shape_cast %393 : vector<1x1x1x128xf32> to vector<1x128xf32>
    %395 = vector.shape_cast %392 : vector<1x128xf32> to vector<1x1x1x128xf32>
    tpu.vector_store %arg10[%c1_338, %c1_339, %c2_340, %c0_341], %395 {strides = array<i32>} : memref<2x2x6x128xf32, #tpu.memory_space<vmem>>, vector<1x1x1x128xf32>,
    %396 = vector.extract_strided_slice %377 {offsets = [6, 0], sizes = [1, 128], strides = [1, 1]} : vector<12x128xf32> to vector<1x128xf32>
    %397 = vector.extract_strided_slice %377 {offsets = [7, 0], sizes = [1, 128], strides = [1, 1]} : vector<12x128xf32> to vector<1x128xf32>
    %398 = arith.maximumf %396, %397 : vector<1x128xf32>
    %c1_342 = arith.constant 1 : index
    %c1_343 = arith.constant 1 : index
    %c3_344 = arith.constant 3 : index
    %c0_345 = arith.constant 0 : index
    %399 = vector.load %arg10[%c1_342, %c1_343, %c3_344, %c0_345] : memref<2x2x6x128xf32, #tpu.memory_space<vmem>>, vector<1x1x1x128xf32>
    %400 = vector.shape_cast %399 : vector<1x1x1x128xf32> to vector<1x128xf32>
    %401 = vector.shape_cast %398 : vector<1x128xf32> to vector<1x1x1x128xf32>
    tpu.vector_store %arg10[%c1_342, %c1_343, %c3_344, %c0_345], %401 {strides = array<i32>} : memref<2x2x6x128xf32, #tpu.memory_space<vmem>>, vector<1x1x1x128xf32>,
    %402 = vector.extract_strided_slice %377 {offsets = [8, 0], sizes = [1, 128], strides = [1, 1]} : vector<12x128xf32> to vector<1x128xf32>
    %403 = vector.extract_strided_slice %377 {offsets = [9, 0], sizes = [1, 128], strides = [1, 1]} : vector<12x128xf32> to vector<1x128xf32>
    %404 = arith.maximumf %402, %403 : vector<1x128xf32>
    %c1_346 = arith.constant 1 : index
    %c1_347 = arith.constant 1 : index
    %c4_348 = arith.constant 4 : index
    %c0_349 = arith.constant 0 : index
    %405 = vector.load %arg10[%c1_346, %c1_347, %c4_348, %c0_349] : memref<2x2x6x128xf32, #tpu.memory_space<vmem>>, vector<1x1x1x128xf32>
    %406 = vector.shape_cast %405 : vector<1x1x1x128xf32> to vector<1x128xf32>
    %407 = vector.shape_cast %404 : vector<1x128xf32> to vector<1x1x1x128xf32>
    tpu.vector_store %arg10[%c1_346, %c1_347, %c4_348, %c0_349], %407 {strides = array<i32>} : memref<2x2x6x128xf32, #tpu.memory_space<vmem>>, vector<1x1x1x128xf32>,
    %408 = vector.extract_strided_slice %377 {offsets = [10, 0], sizes = [1, 128], strides = [1, 1]} : vector<12x128xf32> to vector<1x128xf32>
    %409 = vector.extract_strided_slice %377 {offsets = [11, 0], sizes = [1, 128], strides = [1, 1]} : vector<12x128xf32> to vector<1x128xf32>
    %410 = arith.maximumf %408, %409 : vector<1x128xf32>
    %c1_350 = arith.constant 1 : index
    %c1_351 = arith.constant 1 : index
    %c5_352 = arith.constant 5 : index
    %c0_353 = arith.constant 0 : index
    %411 = vector.load %arg10[%c1_350, %c1_351, %c5_352, %c0_353] : memref<2x2x6x128xf32, #tpu.memory_space<vmem>>, vector<1x1x1x128xf32>
    %412 = vector.shape_cast %411 : vector<1x1x1x128xf32> to vector<1x128xf32>
    %413 = vector.shape_cast %410 : vector<1x128xf32> to vector<1x1x1x128xf32>
    tpu.vector_store %arg10[%c1_350, %c1_351, %c5_352, %c0_353], %413 {strides = array<i32>} : memref<2x2x6x128xf32, #tpu.memory_space<vmem>>, vector<1x1x1x128xf32>,
    %c0_354 = arith.constant 0 : index
    %c0_355 = arith.constant 0 : index
    %c0_356 = arith.constant 0 : index
    %c0_357 = arith.constant 0 : index
    %414 = vector.load %arg10[%c0_354, %c0_355, %c0_356, %c0_357] : memref<2x2x6x128xf32, #tpu.memory_space<vmem>>, vector<1x1x5x128xf32>
    %415 = vector.shape_cast %414 : vector<1x1x5x128xf32> to vector<5x128xf32>
    %c0_358 = arith.constant 0 : index
    %c0_359 = arith.constant 0 : index
    %c1_360 = arith.constant 1 : index
    %c0_361 = arith.constant 0 : index
    %416 = vector.load %arg10[%c0_358, %c0_359, %c1_360, %c0_361] : memref<2x2x6x128xf32, #tpu.memory_space<vmem>>, vector<1x1x5x128xf32>
    %417 = vector.shape_cast %416 : vector<1x1x5x128xf32> to vector<5x128xf32>
    %c0_362 = arith.constant 0 : index
    %c1_363 = arith.constant 1 : index
    %c0_364 = arith.constant 0 : index
    %c0_365 = arith.constant 0 : index
    %418 = vector.load %arg10[%c0_362, %c1_363, %c0_364, %c0_365] : memref<2x2x6x128xf32, #tpu.memory_space<vmem>>, vector<1x1x5x128xf32>
    %419 = vector.shape_cast %418 : vector<1x1x5x128xf32> to vector<5x128xf32>
    %c0_366 = arith.constant 0 : index
    %c1_367 = arith.constant 1 : index
    %c1_368 = arith.constant 1 : index
    %c0_369 = arith.constant 0 : index
    %420 = vector.load %arg10[%c0_366, %c1_367, %c1_368, %c0_369] : memref<2x2x6x128xf32, #tpu.memory_space<vmem>>, vector<1x1x5x128xf32>
    %421 = vector.shape_cast %420 : vector<1x1x5x128xf32> to vector<5x128xf32>
    %422 = tpu.concatenate %415, %417, %419, %421 in 1 : vector<5x128xf32>, vector<5x128xf32>, vector<5x128xf32>, vector<5x128xf32> -> vector<5x512xf32>
    %c0_370 = arith.constant 0 : index
    %c0_371 = arith.constant 0 : index
    %423 = vector.load %arg6[%c0_370, %c0_371] : memref<512x256xf32, #tpu.memory_space<vmem>>, vector<512x256xf32>
    %cst_372 = arith.constant dense<0.000000e+00> : vector<5x256xf32>
    %424 = tpu.matmul %422, %423, %cst_372 {dimension_numbers = #tpu.dot_dimension_numbers<[1], [0], [0], [1], [0, 0, 1, 1], [], []>} : vector<5x512xf32>, vector<512x256xf32>, vector<5x256xf32> -> vector<5x256xf32>
    %c0_373 = arith.constant 0 : index
    %c0_374 = arith.constant 0 : index
    %425 = vector.load %arg7[%c0_373, %c0_374] : memref<1x256xf32, #tpu.memory_space<vmem>>, vector<1x256xf32>
    %426 = vector.broadcast %425 : vector<1x256xf32> to vector<5x256xf32>
    %427 = arith.addf %424, %426 : vector<5x256xf32>
    %cst_375 = arith.constant 0.000000e+00 : f32
    %428 = vector.broadcast %cst_375 : f32 to vector<5x256xf32>
    %429 = arith.maximumf %427, %428 : vector<5x256xf32>
    %c0_376 = arith.constant 0 : index
    %c0_377 = arith.constant 0 : index
    %c0_378 = arith.constant 0 : index
    %430 = vector.load %arg8[%c0_376, %c0_377, %c0_378] : memref<2x5x256xf32, #tpu.memory_space<vmem>>, vector<1x5x256xf32>
    %431 = vector.shape_cast %430 : vector<1x5x256xf32> to vector<5x256xf32>
    %432 = vector.shape_cast %429 : vector<5x256xf32> to vector<1x5x256xf32>
    tpu.vector_store %arg8[%c0_376, %c0_377, %c0_378], %432 {strides = array<i32>} : memref<2x5x256xf32, #tpu.memory_space<vmem>>, vector<1x5x256xf32>,
    %c1_379 = arith.constant 1 : index
    %c0_380 = arith.constant 0 : index
    %c0_381 = arith.constant 0 : index
    %c0_382 = arith.constant 0 : index
    %433 = vector.load %arg10[%c1_379, %c0_380, %c0_381, %c0_382] : memref<2x2x6x128xf32, #tpu.memory_space<vmem>>, vector<1x1x5x128xf32>
    %434 = vector.shape_cast %433 : vector<1x1x5x128xf32> to vector<5x128xf32>
    %c1_383 = arith.constant 1 : index
    %c0_384 = arith.constant 0 : index
    %c1_385 = arith.constant 1 : index
    %c0_386 = arith.constant 0 : index
    %435 = vector.load %arg10[%c1_383, %c0_384, %c1_385, %c0_386] : memref<2x2x6x128xf32, #tpu.memory_space<vmem>>, vector<1x1x5x128xf32>
    %436 = vector.shape_cast %435 : vector<1x1x5x128xf32> to vector<5x128xf32>
    %c1_387 = arith.constant 1 : index
    %c1_388 = arith.constant 1 : index
    %c0_389 = arith.constant 0 : index
    %c0_390 = arith.constant 0 : index
    %437 = vector.load %arg10[%c1_387, %c1_388, %c0_389, %c0_390] : memref<2x2x6x128xf32, #tpu.memory_space<vmem>>, vector<1x1x5x128xf32>
    %438 = vector.shape_cast %437 : vector<1x1x5x128xf32> to vector<5x128xf32>
    %c1_391 = arith.constant 1 : index
    %c1_392 = arith.constant 1 : index
    %c1_393 = arith.constant 1 : index
    %c0_394 = arith.constant 0 : index
    %439 = vector.load %arg10[%c1_391, %c1_392, %c1_393, %c0_394] : memref<2x2x6x128xf32, #tpu.memory_space<vmem>>, vector<1x1x5x128xf32>
    %440 = vector.shape_cast %439 : vector<1x1x5x128xf32> to vector<5x128xf32>
    %441 = tpu.concatenate %434, %436, %438, %440 in 1 : vector<5x128xf32>, vector<5x128xf32>, vector<5x128xf32>, vector<5x128xf32> -> vector<5x512xf32>
    %c0_395 = arith.constant 0 : index
    %c0_396 = arith.constant 0 : index
    %442 = vector.load %arg6[%c0_395, %c0_396] : memref<512x256xf32, #tpu.memory_space<vmem>>, vector<512x256xf32>
    %cst_397 = arith.constant dense<0.000000e+00> : vector<5x256xf32>
    %443 = tpu.matmul %441, %442, %cst_397 {dimension_numbers = #tpu.dot_dimension_numbers<[1], [0], [0], [1], [0, 0, 1, 1], [], []>} : vector<5x512xf32>, vector<512x256xf32>, vector<5x256xf32> -> vector<5x256xf32>
    %c0_398 = arith.constant 0 : index
    %c0_399 = arith.constant 0 : index
    %444 = vector.load %arg7[%c0_398, %c0_399] : memref<1x256xf32, #tpu.memory_space<vmem>>, vector<1x256xf32>
    %445 = vector.broadcast %444 : vector<1x256xf32> to vector<5x256xf32>
    %446 = arith.addf %443, %445 : vector<5x256xf32>
    %cst_400 = arith.constant 0.000000e+00 : f32
    %447 = vector.broadcast %cst_400 : f32 to vector<5x256xf32>
    %448 = arith.maximumf %446, %447 : vector<5x256xf32>
    %c1_401 = arith.constant 1 : index
    %c0_402 = arith.constant 0 : index
    %c0_403 = arith.constant 0 : index
    %449 = vector.load %arg8[%c1_401, %c0_402, %c0_403] : memref<2x5x256xf32, #tpu.memory_space<vmem>>, vector<1x5x256xf32>
    %450 = vector.shape_cast %449 : vector<1x5x256xf32> to vector<5x256xf32>
    %451 = vector.shape_cast %448 : vector<5x256xf32> to vector<1x5x256xf32>
    tpu.vector_store %arg8[%c1_401, %c0_402, %c0_403], %451 {strides = array<i32>} : memref<2x5x256xf32, #tpu.memory_space<vmem>>, vector<1x5x256xf32>,
    return
  }
  func.func @transform_0(%arg0: i32) -> (i32, i32, i32, i32) {
    %c0_i32 = arith.constant 0 : i32
    %c0_i32_0 = arith.constant 0 : i32
    %c0_i32_1 = arith.constant 0 : i32
    %c0_i32_2 = arith.constant 0 : i32
    return %arg0, %c0_i32, %c0_i32_0, %c0_i32_1 : i32, i32, i32, i32
  }
  func.func @transform_1(%arg0: i32) -> (i32, i32, i32, i32) {
    %c0_i32 = arith.constant 0 : i32
    %c0_i32_0 = arith.constant 0 : i32
    %c0_i32_1 = arith.constant 0 : i32
    %c0_i32_2 = arith.constant 0 : i32
    %c0_i32_3 = arith.constant 0 : i32
    return %c0_i32, %c0_i32_0, %c0_i32_1, %c0_i32_2 : i32, i32, i32, i32
  }
  func.func @transform_2(%arg0: i32) -> (i32, i32) {
    %c0_i32 = arith.constant 0 : i32
    %c0_i32_0 = arith.constant 0 : i32
    %c0_i32_1 = arith.constant 0 : i32
    return %c0_i32, %c0_i32_0 : i32, i32
  }
  func.func @transform_3(%arg0: i32) -> (i32, i32) {
    %c0_i32 = arith.constant 0 : i32
    %c0_i32_0 = arith.constant 0 : i32
    %c0_i32_1 = arith.constant 0 : i32
    return %c0_i32, %c0_i32_0 : i32, i32
  }
  func.func @transform_4(%arg0: i32) -> (i32, i32) {
    %c0_i32 = arith.constant 0 : i32
    %c0_i32_0 = arith.constant 0 : i32
    %c0_i32_1 = arith.constant 0 : i32
    return %c0_i32, %c0_i32_0 : i32, i32
  }
  func.func @transform_5(%arg0: i32) -> (i32, i32) {
    %c0_i32 = arith.constant 0 : i32
    %c0_i32_0 = arith.constant 0 : i32
    %c0_i32_1 = arith.constant 0 : i32
    return %c0_i32, %c0_i32_0 : i32, i32
  }
  func.func @transform_6(%arg0: i32) -> (i32, i32) {
    %c0_i32 = arith.constant 0 : i32
    %c0_i32_0 = arith.constant 0 : i32
    %c0_i32_1 = arith.constant 0 : i32
    return %c0_i32, %c0_i32_0 : i32, i32
  }
  func.func @transform_7(%arg0: i32) -> (i32, i32, i32) {
    %c0_i32 = arith.constant 0 : i32
    %c0_i32_0 = arith.constant 0 : i32
    %c0_i32_1 = arith.constant 0 : i32
    return %arg0, %c0_i32, %c0_i32_0 : i32, i32, i32
  }
}

module attributes {stable_mosaic.version = 11 : i64} {
  func.func @_heads_kernel(%arg0: memref<4x1280xf32, #tpu.memory_space<vmem>>, %arg1: memref<1280x256xf32, #tpu.memory_space<vmem>>, %arg2: memref<1x256xf32, #tpu.memory_space<vmem>>, %arg3: memref<256x128xf32, #tpu.memory_space<vmem>>, %arg4: memref<1x128xf32, #tpu.memory_space<vmem>>, %arg5: memref<128x10xf32, #tpu.memory_space<vmem>>, %arg6: memref<1x10xf32, #tpu.memory_space<vmem>>, %arg7: memref<1280x256xf32, #tpu.memory_space<vmem>>, %arg8: memref<1x256xf32, #tpu.memory_space<vmem>>, %arg9: memref<256x128xf32, #tpu.memory_space<vmem>>, %arg10: memref<1x128xf32, #tpu.memory_space<vmem>>, %arg11: memref<128x1xf32, #tpu.memory_space<vmem>>, %arg12: memref<1x1xf32, #tpu.memory_space<vmem>>, %arg13: memref<2x1xf32, #tpu.memory_space<vmem>>, %arg14: memref<4x10xf32, #tpu.memory_space<vmem>>) attributes {dimension_semantics = [], scalar_prefetch = 0 : i64, scratch_operands = 0 : i64, tpu.core_type = #tpu.core_type<tc>} {
    %c0 = arith.constant 0 : index
    %c0_0 = arith.constant 0 : index
    %0 = vector.load %arg0[%c0, %c0_0] : memref<4x1280xf32, #tpu.memory_space<vmem>>, vector<4x1280xf32>
    %c0_1 = arith.constant 0 : index
    %c0_2 = arith.constant 0 : index
    %1 = vector.load %arg1[%c0_1, %c0_2] : memref<1280x256xf32, #tpu.memory_space<vmem>>, vector<1280x256xf32>
    %cst = arith.constant dense<0.000000e+00> : vector<4x256xf32>
    %2 = tpu.matmul %0, %1, %cst {dimension_numbers = #tpu.dot_dimension_numbers<[1], [0], [0], [1], [0, 0, 1, 1], [], []>} : vector<4x1280xf32>, vector<1280x256xf32>, vector<4x256xf32> -> vector<4x256xf32>
    %c0_3 = arith.constant 0 : index
    %c0_4 = arith.constant 0 : index
    %3 = vector.load %arg2[%c0_3, %c0_4] : memref<1x256xf32, #tpu.memory_space<vmem>>, vector<1x256xf32>
    %4 = vector.broadcast %3 : vector<1x256xf32> to vector<4x256xf32>
    %5 = arith.addf %2, %4 : vector<4x256xf32>
    %cst_5 = arith.constant 0.000000e+00 : f32
    %6 = vector.broadcast %cst_5 : f32 to vector<4x256xf32>
    %7 = arith.maximumf %5, %6 : vector<4x256xf32>
    %c0_6 = arith.constant 0 : index
    %c0_7 = arith.constant 0 : index
    %8 = vector.load %arg3[%c0_6, %c0_7] : memref<256x128xf32, #tpu.memory_space<vmem>>, vector<256x128xf32>
    %cst_8 = arith.constant dense<0.000000e+00> : vector<4x128xf32>
    %9 = tpu.matmul %7, %8, %cst_8 {dimension_numbers = #tpu.dot_dimension_numbers<[1], [0], [0], [1], [0, 0, 1, 1], [], []>} : vector<4x256xf32>, vector<256x128xf32>, vector<4x128xf32> -> vector<4x128xf32>
    %c0_9 = arith.constant 0 : index
    %c0_10 = arith.constant 0 : index
    %10 = vector.load %arg4[%c0_9, %c0_10] : memref<1x128xf32, #tpu.memory_space<vmem>>, vector<1x128xf32>
    %11 = vector.broadcast %10 : vector<1x128xf32> to vector<4x128xf32>
    %12 = arith.addf %9, %11 : vector<4x128xf32>
    %cst_11 = arith.constant 0.000000e+00 : f32
    %13 = vector.broadcast %cst_11 : f32 to vector<4x128xf32>
    %14 = arith.maximumf %12, %13 : vector<4x128xf32>
    %c0_12 = arith.constant 0 : index
    %c0_13 = arith.constant 0 : index
    %15 = vector.load %arg5[%c0_12, %c0_13] : memref<128x10xf32, #tpu.memory_space<vmem>>, vector<128x10xf32>
    %cst_14 = arith.constant dense<0.000000e+00> : vector<4x10xf32>
    %16 = tpu.matmul %14, %15, %cst_14 {dimension_numbers = #tpu.dot_dimension_numbers<[1], [0], [0], [1], [0, 0, 1, 1], [], []>} : vector<4x128xf32>, vector<128x10xf32>, vector<4x10xf32> -> vector<4x10xf32>
    %c0_15 = arith.constant 0 : index
    %c0_16 = arith.constant 0 : index
    %17 = vector.load %arg6[%c0_15, %c0_16] : memref<1x10xf32, #tpu.memory_space<vmem>>, vector<1x10xf32>
    %18 = vector.broadcast %17 : vector<1x10xf32> to vector<4x10xf32>
    %19 = arith.addf %16, %18 : vector<4x10xf32>
    %c0_17 = arith.constant 0 : index
    %c0_18 = arith.constant 0 : index
    %20 = vector.load %arg14[%c0_17, %c0_18] : memref<4x10xf32, #tpu.memory_space<vmem>>, vector<4x10xf32>
    tpu.vector_store %arg14[%c0_17, %c0_18], %19 {strides = array<i32>} : memref<4x10xf32, #tpu.memory_space<vmem>>, vector<4x10xf32>,
    %21 = vector.extract_strided_slice %0 {offsets = [0, 0], sizes = [2, 1280], strides = [1, 1]} : vector<4x1280xf32> to vector<2x1280xf32>
    %22 = vector.extract_strided_slice %0 {offsets = [2, 0], sizes = [2, 1280], strides = [1, 1]} : vector<4x1280xf32> to vector<2x1280xf32>
    %23 = arith.mulf %21, %22 : vector<2x1280xf32>
    %c0_19 = arith.constant 0 : index
    %c0_20 = arith.constant 0 : index
    %24 = vector.load %arg7[%c0_19, %c0_20] : memref<1280x256xf32, #tpu.memory_space<vmem>>, vector<1280x256xf32>
    %cst_21 = arith.constant dense<0.000000e+00> : vector<2x256xf32>
    %25 = tpu.matmul %23, %24, %cst_21 {dimension_numbers = #tpu.dot_dimension_numbers<[1], [0], [0], [1], [0, 0, 1, 1], [], []>} : vector<2x1280xf32>, vector<1280x256xf32>, vector<2x256xf32> -> vector<2x256xf32>
    %c0_22 = arith.constant 0 : index
    %c0_23 = arith.constant 0 : index
    %26 = vector.load %arg8[%c0_22, %c0_23] : memref<1x256xf32, #tpu.memory_space<vmem>>, vector<1x256xf32>
    %27 = vector.broadcast %26 : vector<1x256xf32> to vector<2x256xf32>
    %28 = arith.addf %25, %27 : vector<2x256xf32>
    %cst_24 = arith.constant 0.000000e+00 : f32
    %29 = vector.broadcast %cst_24 : f32 to vector<2x256xf32>
    %30 = arith.maximumf %28, %29 : vector<2x256xf32>
    %c0_25 = arith.constant 0 : index
    %c0_26 = arith.constant 0 : index
    %31 = vector.load %arg9[%c0_25, %c0_26] : memref<256x128xf32, #tpu.memory_space<vmem>>, vector<256x128xf32>
    %cst_27 = arith.constant dense<0.000000e+00> : vector<2x128xf32>
    %32 = tpu.matmul %30, %31, %cst_27 {dimension_numbers = #tpu.dot_dimension_numbers<[1], [0], [0], [1], [0, 0, 1, 1], [], []>} : vector<2x256xf32>, vector<256x128xf32>, vector<2x128xf32> -> vector<2x128xf32>
    %c0_28 = arith.constant 0 : index
    %c0_29 = arith.constant 0 : index
    %33 = vector.load %arg10[%c0_28, %c0_29] : memref<1x128xf32, #tpu.memory_space<vmem>>, vector<1x128xf32>
    %34 = vector.broadcast %33 : vector<1x128xf32> to vector<2x128xf32>
    %35 = arith.addf %32, %34 : vector<2x128xf32>
    %cst_30 = arith.constant 0.000000e+00 : f32
    %36 = vector.broadcast %cst_30 : f32 to vector<2x128xf32>
    %37 = arith.maximumf %35, %36 : vector<2x128xf32>
    %c0_31 = arith.constant 0 : index
    %c0_32 = arith.constant 0 : index
    %38 = vector.load %arg11[%c0_31, %c0_32] : memref<128x1xf32, #tpu.memory_space<vmem>>, vector<128x1xf32>
    %cst_33 = arith.constant dense<0.000000e+00> : vector<2x1xf32>
    %39 = tpu.matmul %37, %38, %cst_33 {dimension_numbers = #tpu.dot_dimension_numbers<[1], [0], [0], [1], [0, 0, 1, 1], [], []>} : vector<2x128xf32>, vector<128x1xf32>, vector<2x1xf32> -> vector<2x1xf32>
    %c0_34 = arith.constant 0 : index
    %c0_35 = arith.constant 0 : index
    %40 = vector.load %arg12[%c0_34, %c0_35] : memref<1x1xf32, #tpu.memory_space<vmem>>, vector<1x1xf32>
    %41 = vector.broadcast %40 : vector<1x1xf32> to vector<2x1xf32>
    %42 = arith.addf %39, %41 : vector<2x1xf32>
    %cst_36 = arith.constant 5.000000e-01 : f32
    %43 = vector.broadcast %cst_36 : f32 to vector<2x1xf32>
    %44 = arith.mulf %43, %42 : vector<2x1xf32>
    %45 = math.tanh %44 : vector<2x1xf32>
    %cst_37 = arith.constant 1.000000e+00 : f32
    %46 = vector.broadcast %cst_37 : f32 to vector<2x1xf32>
    %47 = arith.addf %45, %46 : vector<2x1xf32>
    %cst_38 = arith.constant 5.000000e-01 : f32
    %48 = vector.broadcast %cst_38 : f32 to vector<2x1xf32>
    %49 = arith.mulf %48, %47 : vector<2x1xf32>
    %c0_39 = arith.constant 0 : index
    %c0_40 = arith.constant 0 : index
    %50 = vector.load %arg13[%c0_39, %c0_40] : memref<2x1xf32, #tpu.memory_space<vmem>>, vector<2x1xf32>
    tpu.vector_store %arg13[%c0_39, %c0_40], %49 {strides = array<i32>} : memref<2x1xf32, #tpu.memory_space<vmem>>, vector<2x1xf32>,
    return
  }
}

</mosaic_0001>

<bundles_post_ra>
// kernel: _lambda_.3
= control target key start
LH: loop header
LB: loop body
LE: loop exit
PB: predicated region body
PF: predicated region fallthrough
CT: control target
= control target key end

     0   :  { %s4392_s0 = inlined_call_operand.vmem [shape: f32[4,1280], index: 0, kind: input, shape index: {}]   ;;  %s4393_s1 = inlined_call_operand.hbm [shape: f32[1280,256], index: 1, kind: input, shape index: {}]   ;;  %s4394_s2 = inlined_call_operand.vmem [shape: f32[1,256], index: 2, kind: input, shape index: {}]   ;;  %s4395_s3 = inlined_call_operand.vmem [shape: f32[256,128], index: 3, kind: input, shape index: {}]   ;;  %s4396_s4 = inlined_call_operand.vmem [shape: f32[1,128], index: 4, kind: input, shape index: {}]   ;;  %s4397_s5 = inlined_call_operand.vmem [shape: f32[128,10], index: 5, kind: input, shape index: {}]   ;;  %s4398_s6 = inlined_call_operand.vmem [shape: f32[1,10], index: 6, kind: input, shape index: {}]   ;;  %s4399_s7 = inlined_call_operand.vmem [shape: f32[1280,256], index: 7, kind: input, shape index: {}]   ;;  %s4400_s8 = inlined_call_operand.vmem [shape: f32[1,256], index: 8, kind: input, shape index: {}]   ;;  %s4401_s9 = inlined_call_operand.vmem [shape: f32[256,128], index: 9, kind: input, shape index: {}]   ;;  %s4402_s10 = inlined_call_operand.vmem [shape: f32[1,128], index: 10, kind: input, shape index: {}]   ;;  %s4403_s11 = inlined_call_operand.vmem [shape: f32[128,1], index: 11, kind: input, shape index: {}]   ;;  %s4404_s12 = inlined_call_operand.<no memory space> [shape: f32[1,1], index: 12, kind: input, shape index: {}]   ;;  %s4405_s13 = inlined_call_operand.vmem [shape: f32[2,1], index: 13, kind: output, shape index: {0}]   ;;  %s4406_s14 = inlined_call_operand.vmem [shape: f32[4,10], index: 14, kind: output, shape index: {1}]  }
   0x1   :  { %v20_v0 = vstv %s4404_s12 }
   0x2   :  { %21 = vst [vmem:[#allocation2] sm:$0x1] %v20_v0 }
   0x3   :  { %22 = vsyncpa [#allocation4], 0  ;;  %s2915_s15 = smov [#allocation3]   ;;  %s2891_s19 = scalar_lea.hbm %s4393_s1, 40960 }
   0x4   :  { %s30_s16 = sshll.u32 %s2915_s15, 4  ;;  %p2892_p0 = scmp.ne.s32.totalorder %s4393_s1, %s2891_s19  ;;  %s31_s16 = int_to_ptr.vmem [resolvable:$true] %s30_s16 }
   0x5   :  { %p2895_p1 = scmp.lt.u32.totalorder %s2891_s19, %s4393_s1 }
   0x7   :  { %p2897_p2 = pnand %p2895_p1, %p2892_p0 }
   0x9   :  { %2900 = shalt.err (!%p2897_p2)
}
   0xa   :  { %s2901_s12 = scalar_lea.vmem %s31_s16, 40960  ;;  %p2906_p4 = scmp.lt.s32.totalorder %s31_s16, %s31_s16 }
   0xb   :  { %p2902_p3 = scmp.ne.s32.totalorder %s31_s16, %s2901_s12  ;;  %p2907_p5 = scmp.lt.s32.totalorder %s2901_s12, %s2901_s12 }
   0xd   :  { %p2908_p6 = por %p2907_p5, %p2906_p4 }
   0xf   :  { %p2909_p7 = pnand %p2908_p6, %p2902_p3 }
  0x11   :  { %2912 = shalt.err (!%p2909_p7)
}
  0x12   :  { %s2916_s24 = smov 256   ;;  %s2917_s25 = smov 16  }
  0x13   :  { %36 = dma.hbm_to_vmem [thread:$0]  %s4393_s1, 40960, %s31_s16, [#allocation4], %s2916_s24, %s2916_s24, %s2917_s25  }
  0x14   :  { %2913 = dma.done.wait [#allocation4], 40960  }
  0x15   :  { %2914 = vsyncadd [#allocation4], 4294926336  ;;  %v68_v1 = vld [vmem:[#allocation3 + $0x8] sm:$0xff]  ;;  %v70_v2 = vld [vmem:[#allocation3 + $0x18] sm:$0xff]  ;;  %vm2919_vm0 = vmmov 0   ;;  %vm974_vm1 = vcmask 76800  }
  0x16   :  { %v67_v3 = vld [vmem:[#allocation3] sm:$0xff]  ;;  %v2101_v4 = vpack.c.bf16 %v70_v2, %v68_v1  ;;  %v69_v5 = vld [vmem:[#allocation3 + $0x10] sm:$0xff]  ;;  %v72_v6 = vld [vmem:[#allocation3 + $0x28] sm:$0xff]  ;;  %vm1907_vm2 = vcmask 1024  }
  0x17   :  { %v74_v7 = vld [vmem:[#allocation3 + $0x38] sm:$0xff]  ;;  %v2103_v8 = vpack.c.bf16 %v69_v5, %v67_v3  ;;  %v71_v10 = vld [vmem:[#allocation3 + $0x20] sm:$0xff]  ;;  %v73_v11 = vld [vmem:[#allocation3 + $0x30] sm:$0xff] }
  0x18   :  { %v2105_v9 = vpack.c.bf16 %v74_v7, %v72_v6  ;;  %v76_v12 = vld [vmem:[#allocation3 + $0x48] sm:$0xff]  ;;  %2102 = vmatprep.subr.bf16.mxu0 %v2101_v4  ;;  %v78_v13 = vld [vmem:[#allocation3 + $0x58] sm:$0xff]  ;;  %v2107_v14 = vpack.c.bf16 %v73_v11, %v71_v10  ;;  %v75_v16 = vld [vmem:[#allocation3 + $0x40] sm:$0xff] }
  0x19   :  { %2104 = vmatpush1.bf16.msra.mxu0 %v2103_v8  ;;  %v2109_v15 = vpack.c.bf16 %v78_v13, %v76_v12  ;;  %v77_v17 = vld [vmem:[#allocation3 + $0x50] sm:$0xff]  ;;  %v80_v18 = vld [vmem:[#allocation3 + $0x68] sm:$0xff]  ;;  %v82_v19 = vld [vmem:[#allocation3 + $0x78] sm:$0xff] }
  0x1a   :  { %2106 = vmatprep.subr.bf16.mxu0 %v2105_v9  ;;  %v2111_v20 = vpack.c.bf16 %v77_v17, %v75_v16  ;;  %v2113_v21 = vpack.c.bf16 %v82_v19, %v80_v18  ;;  %v79_v22 = vld [vmem:[#allocation3 + $0x60] sm:$0xff]  ;;  %v81_v23 = vld [vmem:[#allocation3 + $0x70] sm:$0xff]  ;;  %v84_v24 = vld [vmem:[#allocation3 + $0x88] sm:$0xff] }
  0x1b   :  { %v86_v25 = vld [vmem:[#allocation3 + $0x98] sm:$0xff]  ;;  %v2115_v26 = vpack.c.bf16 %v81_v23, %v79_v22  ;;  %v83_v28 = vld [vmem:[#allocation3 + $0x80] sm:$0xff]  ;;  %v85_v29 = vld [vmem:[#allocation3 + $0x90] sm:$0xff] }
  0x1c   :  { %v2117_v27 = vpack.c.bf16 %v86_v25, %v84_v24  ;;  %v88_v30 = vld [vmem:[#allocation3 + $0xa8] sm:$0xff]  ;;  %v90_v31 = vld [vmem:[#allocation3 + $0xb8] sm:$0xff]  ;;  %v2119_v32 = vpack.c.bf16 %v85_v29, %v83_v28  ;;  %v87_v34 = vld [vmem:[#allocation3 + $0xa0] sm:$0xff] }
  0x1d   :  { %2108 = vmatpush1.bf16.msra.mxu0 %v2107_v14  ;;  %v2121_v33 = vpack.c.bf16 %v90_v31, %v88_v30  ;;  %v89_v35 = vld [vmem:[#allocation3 + $0xb0] sm:$0xff]  ;;  %v92_v36 = vld [vmem:[#allocation3 + $0xc8] sm:$0xff]  ;;  %v94_v37 = vld [vmem:[#allocation3 + $0xd8] sm:$0xff] }
  0x1e   :  { %2110 = vmatprep.subr.bf16.mxu0 %v2109_v15  ;;  %v2123_v38 = vpack.c.bf16 %v89_v35, %v87_v34  ;;  %v2125_v39 = vpack.c.bf16 %v94_v37, %v92_v36  ;;  %v91_v40 = vld [vmem:[#allocation3 + $0xc0] sm:$0xff]  ;;  %v93_v41 = vld [vmem:[#allocation3 + $0xd0] sm:$0xff]  ;;  %v96_v43 = vld [vmem:[#allocation3 + $0xe8] sm:$0xff] }
  0x1f   :  { %v3014_v42 = vld [vmem:[%s4392_s0] sm:$0xff]  ;;  %v2127_v46 = vpack.c.bf16 %v93_v41, %v91_v40  ;;  %v97_v49 = vld [vmem:[#allocation3 + $0xf0] sm:$0xff]  ;;  %v100_v50 = vld [vmem:[#allocation3 + $0x108] sm:$0xff] }
  0x20   :  { %v98_v44 = vld [vmem:[#allocation3 + $0xf8] sm:$0xff]  ;;  %v404_v45 = vcombine.high %v3014_v42, %v3014_v42  ;;  %v95_v48 = vld [vmem:[#allocation3 + $0xe0] sm:$0xff]  ;;  %v101_v55 = vld [vmem:[#allocation3 + $0x110] sm:$0xff] }
  0x21   :  { %2112 = vmatpush1.bf16.msra.mxu0 %v2111_v20  ;;  %v2129_v47 = vpack.c.bf16 %v98_v44, %v96_v43  ;;  %v102_v51 = vld [vmem:[#allocation3 + $0x118] sm:$0xff]  ;;  %v2131_v52 = vpack.c.bf16 %v97_v49, %v95_v48  ;;  %v99_v54 = vld [vmem:[#allocation3 + $0x100] sm:$0xff]  ;;  %v104_v56 = vld [vmem:[#allocation3 + $0x128] sm:$0xff] }
  0x22   :  { %2114 = vmatprep.subr.bf16.mxu0 %v2113_v21  ;;  %478 = vmatprep.mubr.f32.mxu0 %v404_v45  ;;  %v2133_v53 = vpack.c.bf16 %v102_v51, %v100_v50  ;;  %v106_v57 = vld [vmem:[#allocation3 + $0x138] sm:$0xff]  ;;  %v2135_v58 = vpack.c.bf16 %v101_v55, %v99_v54  ;;  %v103_v60 = vld [vmem:[#allocation3 + $0x120] sm:$0xff]  ;;  %v105_v61 = vld [vmem:[#allocation3 + $0x130] sm:$0xff] }
  0x23   :  { %v2137_v59 = vpack.c.bf16 %v106_v57, %v104_v56  ;;  %v108_v62 = vld [vmem:[#allocation3 + $0x148] sm:$0xff]  ;;  %v110_v63 = vld [vmem:[#allocation3 + $0x158] sm:$0xff]  ;;  %v2139_v0 = vpack.c.bf16 %v105_v61, %v103_v60  ;;  %v107_v2 = vld [vmem:[#allocation3 + $0x140] sm:$0xff] }
  0x24   :  { %v2141_v1 = vpack.c.bf16 %v110_v63, %v108_v62  ;;  %v109_v3 = vld [vmem:[#allocation3 + $0x150] sm:$0xff]  ;;  %v112_v4 = vld [vmem:[#allocation3 + $0x168] sm:$0xff]  ;;  %v114_v5 = vld [vmem:[#allocation3 + $0x178] sm:$0xff] }
  0x25   :  { %2116 = vmatpush1.bf16.msra.mxu0 %v2115_v26  ;;  %v2143_v6 = vpack.c.bf16 %v109_v3, %v107_v2  ;;  %v2145_v7 = vpack.c.bf16 %v114_v5, %v112_v4  ;;  %v111_v8 = vld [vmem:[#allocation3 + $0x160] sm:$0xff]  ;;  %v113_v9 = vld [vmem:[#allocation3 + $0x170] sm:$0xff]  ;;  %v116_v10 = vld [vmem:[#allocation3 + $0x188] sm:$0xff] }
  0x26   :  { %2118 = vmatprep.subr.bf16.mxu0 %v2117_v27  ;;  %v118_v11 = vld [vmem:[#allocation3 + $0x198] sm:$0xff]  ;;  %v2147_v12 = vpack.c.bf16 %v113_v9, %v111_v8  ;;  %v115_v14 = vld [vmem:[#allocation3 + $0x180] sm:$0xff]  ;;  %v117_v15 = vld [vmem:[#allocation3 + $0x190] sm:$0xff] }
  0x27   :  { %v2149_v13 = vpack.c.bf16 %v118_v11, %v116_v10  ;;  %v120_v16 = vld [vmem:[#allocation3 + $0x1a8] sm:$0xff]  ;;  %v122_v17 = vld [vmem:[#allocation3 + $0x1b8] sm:$0xff]  ;;  %v2151_v18 = vpack.c.bf16 %v117_v15, %v115_v14  ;;  %v119_v20 = vld [vmem:[#allocation3 + $0x1a0] sm:$0xff] }
  0x28   :  { %v2153_v19 = vpack.c.bf16 %v122_v17, %v120_v16  ;;  %v121_v21 = vld [vmem:[#allocation3 + $0x1b0] sm:$0xff]  ;;  %v124_v22 = vld [vmem:[#allocation3 + $0x1c8] sm:$0xff]  ;;  %v126_v23 = vld [vmem:[#allocation3 + $0x1d8] sm:$0xff] }
  0x29   :  { %2120 = vmatpush1.bf16.msra.mxu0 %v2119_v32  ;;  %v2155_v24 = vpack.c.bf16 %v121_v21, %v119_v20  ;;  %v2157_v25 = vpack.c.bf16 %v126_v23, %v124_v22  ;;  %v123_v26 = vld [vmem:[#allocation3 + $0x1c0] sm:$0xff]  ;;  %v125_v27 = vld [vmem:[#allocation3 + $0x1d0] sm:$0xff]  ;;  %v128_v28 = vld [vmem:[#allocation3 + $0x1e8] sm:$0xff] }
  0x2a   :  { %2122 = vmatprep.subr.bf16.mxu0 %v2121_v33  ;;  %v130_v29 = vld [vmem:[#allocation3 + $0x1f8] sm:$0xff]  ;;  %v2159_v30 = vpack.c.bf16 %v125_v27, %v123_v26  ;;  %v127_v32 = vld [vmem:[#allocation3 + $0x1e0] sm:$0xff]  ;;  %v129_v33 = vld [vmem:[#allocation3 + $0x1f0] sm:$0xff] }
  0x2b   :  { %v2161_v31 = vpack.c.bf16 %v130_v29, %v128_v28  ;;  %v132_v34 = vld [vmem:[#allocation3 + $0x208] sm:$0xff]  ;;  %v134_v35 = vld [vmem:[#allocation3 + $0x218] sm:$0xff]  ;;  %v2163_v36 = vpack.c.bf16 %v129_v33, %v127_v32  ;;  %v137_v48 = vld [vmem:[#allocation3 + $0x230] sm:$0xff] }
  0x2c   :  { %v2165_v37 = vpack.c.bf16 %v134_v35, %v132_v34  ;;  %v3021_v40 = vld [vmem:[%s4392_s0 + $0x8] sm:$0xff]  ;;  %v138_v43 = vld [vmem:[#allocation3 + $0x238] sm:$0xff]  ;;  %v141_v54 = vld [vmem:[#allocation3 + $0x250] sm:$0xff] }
  0x2d   :  { %2124 = vmatpush1.bf16.msra.mxu0 %v2123_v38  ;;  %v131_v38 = vld [vmem:[#allocation3 + $0x200] sm:$0xff]  ;;  %v136_v41 = vld [vmem:[#allocation3 + $0x228] sm:$0xff]  ;;  %v405_v45 = vcombine.high %v3021_v40, %v3021_v40  ;;  %v142_v50 = vld [vmem:[#allocation3 + $0x258] sm:$0xff] }
  0x2e   :  { %2126 = vmatprep.subr.bf16.mxu0 %v2125_v39  ;;  %v133_v39 = vld [vmem:[#allocation3 + $0x210] sm:$0xff]  ;;  %v140_v49 = vld [vmem:[#allocation3 + $0x248] sm:$0xff]  ;;  %v146_v56 = vld [vmem:[#allocation3 + $0x278] sm:$0xff] }
  0x2f   :  { %v2167_v44 = vpack.c.bf16 %v133_v39, %v131_v38  ;;  %v144_v55 = vld [vmem:[#allocation3 + $0x268] sm:$0xff]  ;;  %v145_v60 = vld [vmem:[#allocation3 + $0x270] sm:$0xff]  ;;  %v150_v62 = vld [vmem:[#allocation3 + $0x298] sm:$0xff] }
  0x30   :  { %v148_v61 = vld [vmem:[#allocation3 + $0x288] sm:$0xff]  ;;  %v154_v3 = vld [vmem:[#allocation3 + $0x2b8] sm:$0xff] }
  0x31   :  { %2128 = vmatpush1.bf16.msra.mxu0 %v2127_v46  ;;  %v2169_v46 = vpack.c.bf16 %v138_v43, %v136_v41  ;;  %v152_v2 = vld [vmem:[#allocation3 + $0x2a8] sm:$0xff]  ;;  %v158_v9 = vld [vmem:[#allocation3 + $0x2d8] sm:$0xff] }
  0x32   :  { %2130 = vmatprep.subr.bf16.mxu0 %v2129_v47  ;;  %v135_v47 = vld [vmem:[#allocation3 + $0x220] sm:$0xff]  ;;  %v2185_v5 = vpack.c.bf16 %v154_v3, %v152_v2  ;;  %v156_v8 = vld [vmem:[#allocation3 + $0x2c8] sm:$0xff]  ;;  %v162_v15 = vld [vmem:[#allocation3 + $0x2f8] sm:$0xff] }
  0x33   :  { %v2171_v51 = vpack.c.bf16 %v137_v48, %v135_v47  ;;  %v2189_v11 = vpack.c.bf16 %v158_v9, %v156_v8  ;;  %v160_v14 = vld [vmem:[#allocation3 + $0x2e8] sm:$0xff]  ;;  %v166_v21 = vld [vmem:[#allocation3 + $0x318] sm:$0xff]  ;;  %v191_v3 = vld [vmem:[#allocation3 + $0x3e0] sm:$0xff] }
  0x34   :  { %v2193_v17 = vpack.c.bf16 %v162_v15, %v160_v14  ;;  %v164_v20 = vld [vmem:[#allocation3 + $0x308] sm:$0xff]  ;;  %v170_v27 = vld [vmem:[#allocation3 + $0x338] sm:$0xff]  ;;  %v195_v9 = vld [vmem:[#allocation3 + $0x400] sm:$0xff] }
  0x35   :  { %2132 = vmatpush1.bf16.msra.mxu0 %v2131_v52  ;;  %v2173_v52 = vpack.c.bf16 %v142_v50, %v140_v49  ;;  %v2197_v23 = vpack.c.bf16 %v166_v21, %v164_v20  ;;  %v168_v26 = vld [vmem:[#allocation3 + $0x328] sm:$0xff]  ;;  %v174_v33 = vld [vmem:[#allocation3 + $0x358] sm:$0xff]  ;;  %v179_v50 = vld [vmem:[#allocation3 + $0x380] sm:$0xff] }
  0x36   :  { %2134 = vmatprep.subr.bf16.mxu0 %v2133_v53  ;;  %v139_v53 = vld [vmem:[#allocation3 + $0x240] sm:$0xff]  ;;  %v2201_v29 = vpack.c.bf16 %v170_v27, %v168_v26  ;;  %v172_v32 = vld [vmem:[#allocation3 + $0x348] sm:$0xff]  ;;  %v178_v39 = vld [vmem:[#allocation3 + $0x378] sm:$0xff] }
  0x37   :  { %v2175_v57 = vpack.c.bf16 %v141_v54, %v139_v53  ;;  %v2205_v35 = vpack.c.bf16 %v174_v33, %v172_v32  ;;  %v176_v38 = vld [vmem:[#allocation3 + $0x368] sm:$0xff]  ;;  %v182_v47 = vld [vmem:[#allocation3 + $0x398] sm:$0xff] }
  0x38   :  { %v2209_v43 = vpack.c.bf16 %v178_v39, %v176_v38  ;;  %v186_v53 = vld [vmem:[#allocation3 + $0x3b8] sm:$0xff] }
  0x39   :  { %2136 = vmatpush1.bf16.msra.mxu0 %v2135_v58  ;;  %v2177_v58 = vpack.c.bf16 %v146_v56, %v144_v55  ;;  %v183_v56 = vld [vmem:[#allocation3 + $0x3a0] sm:$0xff]  ;;  %v206_v20 = vld [vmem:[#allocation3 + $0x458] sm:$0xff] }
  0x3a   :  { %2138 = vmatprep.subr.bf16.mxu0 %v2137_v59  ;;  %v143_v59 = vld [vmem:[#allocation3 + $0x260] sm:$0xff]  ;;  %v210_v26 = vld [vmem:[#allocation3 + $0x478] sm:$0xff] }
  0x3b   :  { %v2179_v63 = vpack.c.bf16 %v145_v60, %v143_v59  ;;  %v190_v59 = vld [vmem:[#allocation3 + $0x3d8] sm:$0xff] }
  0x3c   :  { %v214_v32 = vld [vmem:[#allocation3 + $0x498] sm:$0xff] }
  0x3d   :  { %2140 = vmatpush1.bf16.msra.mxu0 %v2139_v0  ;;  %v147_v0 = vld [vmem:[#allocation3 + $0x280] sm:$0xff] }
  0x3e   :  { %2142 = vmatprep.subr.bf16.mxu0 %v2141_v1  ;;  %v149_v1 = vld [vmem:[#allocation3 + $0x290] sm:$0xff] }
  0x3f   :  { %v2183_v4 = vpack.c.bf16 %v149_v1, %v147_v0  ;;  %v194_v0 = vld [vmem:[#allocation3 + $0x3f8] sm:$0xff] }
  0x41   :  { %2144 = vmatpush1.bf16.msra.mxu0 %v2143_v6  ;;  %v151_v6 = vld [vmem:[#allocation3 + $0x2a0] sm:$0xff] }
  0x42   :  { %2146 = vmatprep.subr.bf16.mxu0 %v2145_v7  ;;  %v153_v7 = vld [vmem:[#allocation3 + $0x2b0] sm:$0xff] }
  0x43   :  { %v2187_v10 = vpack.c.bf16 %v153_v7, %v151_v6  ;;  %v198_v6 = vld [vmem:[#allocation3 + $0x418] sm:$0xff] }
  0x45   :  { %2148 = vmatpush1.bf16.msra.mxu0 %v2147_v12  ;;  %v155_v12 = vld [vmem:[#allocation3 + $0x2c0] sm:$0xff] }
  0x46   :  { %2150 = vmatprep.subr.bf16.mxu0 %v2149_v13  ;;  %v157_v13 = vld [vmem:[#allocation3 + $0x2d0] sm:$0xff] }
  0x47   :  { %v2191_v16 = vpack.c.bf16 %v157_v13, %v155_v12  ;;  %v200_v12 = vld [vmem:[#allocation3 + $0x428] sm:$0xff]  ;;  %v202_v13 = vld [vmem:[#allocation3 + $0x438] sm:$0xff] }
  0x49   :  { %2152 = vmatpush1.bf16.msra.mxu0 %v2151_v18  ;;  %v159_v18 = vld [vmem:[#allocation3 + $0x2e0] sm:$0xff] }
  0x4a   :  { %2154 = vmatprep.subr.bf16.mxu0 %v2153_v19  ;;  %v161_v19 = vld [vmem:[#allocation3 + $0x2f0] sm:$0xff] }
  0x4b   :  { %v2195_v22 = vpack.c.bf16 %v161_v19, %v159_v18  ;;  %v201_v18 = vld [vmem:[#allocation3 + $0x430] sm:$0xff]  ;;  %v204_v19 = vld [vmem:[#allocation3 + $0x448] sm:$0xff] }
  0x4d   :  { %2156 = vmatpush1.bf16.msra.mxu0 %v2155_v24  ;;  %v163_v24 = vld [vmem:[#allocation3 + $0x300] sm:$0xff] }
  0x4e   :  { %2158 = vmatprep.subr.bf16.mxu0 %v2157_v25  ;;  %v165_v25 = vld [vmem:[#allocation3 + $0x310] sm:$0xff] }
  0x4f   :  { %v2199_v28 = vpack.c.bf16 %v165_v25, %v163_v24  ;;  %v205_v24 = vld [vmem:[#allocation3 + $0x450] sm:$0xff]  ;;  %v208_v25 = vld [vmem:[#allocation3 + $0x468] sm:$0xff] }
  0x51   :  { %2160 = vmatpush1.bf16.msra.mxu0 %v2159_v30  ;;  %v167_v30 = vld [vmem:[#allocation3 + $0x320] sm:$0xff] }
  0x52   :  { %2162 = vmatprep.subr.bf16.mxu0 %v2161_v31  ;;  %v169_v31 = vld [vmem:[#allocation3 + $0x330] sm:$0xff] }
  0x53   :  { %v2203_v34 = vpack.c.bf16 %v169_v31, %v167_v30  ;;  %v209_v30 = vld [vmem:[#allocation3 + $0x470] sm:$0xff]  ;;  %v212_v31 = vld [vmem:[#allocation3 + $0x488] sm:$0xff] }
  0x55   :  { %2164 = vmatpush1.bf16.msra.mxu0 %v2163_v36  ;;  %v171_v36 = vld [vmem:[#allocation3 + $0x340] sm:$0xff] }
  0x56   :  { %2166 = vmatprep.subr.bf16.mxu0 %v2165_v37  ;;  %v173_v37 = vld [vmem:[#allocation3 + $0x350] sm:$0xff] }
  0x57   :  { %v2207_v41 = vpack.c.bf16 %v173_v37, %v171_v36  ;;  %v216_v36 = vld [vmem:[#allocation3 + $0x4a8] sm:$0xff]  ;;  %v218_v37 = vld [vmem:[#allocation3 + $0x4b8] sm:$0xff] }
  0x58   :  { %479 = vmatmul.mubr.f32.vlgmr.msra.gmra.mrb[0].mxu0 %v3014_v42  ;;  %v2181_v42 = vpack.c.bf16 %v150_v62, %v148_v61  ;;  %v187_v62 = vld [vmem:[#allocation3 + $0x3c0] sm:$0xff]  ;;  %v2249_v39 = vpack.c.bf16 %v218_v37, %v216_v36 }
  0x59   :  { %2168 = vmatpush1.bf16.msra.mxu0 %v2167_v44  ;;  %549 = vmatprep.mubr.f32.mxu0 %v405_v45  ;;  %v175_v44 = vld [vmem:[#allocation3 + $0x360] sm:$0xff]  ;;  %v177_v45 = vld [vmem:[#allocation3 + $0x370] sm:$0xff] }
  0x5a   :  { %2170 = vmatprep.subr.bf16.mxu0 %v2169_v46  ;;  %v180_v46 = vld [vmem:[#allocation3 + $0x388] sm:$0xff]  ;;  %v2211_v48 = vpack.c.bf16 %v177_v45, %v175_v44  ;;  %v222_v45 = vld [vmem:[#allocation3 + $0x4d8] sm:$0xff]  ;;  %v255_v37 = vld [vmem:[#allocation3 + $0x5e0] sm:$0xff] }
  0x5b   :  { %v2213_v49 = vpack.c.bf16 %v182_v47, %v180_v46  ;;  %v220_v44 = vld [vmem:[#allocation3 + $0x4c8] sm:$0xff] }
  0x5c   :  { %v2253_v47 = vpack.c.bf16 %v222_v45, %v220_v44  ;;  %v259_v45 = vld [vmem:[#allocation3 + $0x600] sm:$0xff] }
  0x5d   :  { %2172 = vmatpush1.bf16.msra.mxu0 %v2171_v51  ;;  %v181_v51 = vld [vmem:[#allocation3 + $0x390] sm:$0xff] }
  0x5e   :  { %2174 = vmatprep.subr.bf16.mxu0 %v2173_v52  ;;  %v184_v52 = vld [vmem:[#allocation3 + $0x3a8] sm:$0xff]  ;;  %v2215_v54 = vpack.c.bf16 %v181_v51, %v179_v50  ;;  %v226_v51 = vld [vmem:[#allocation3 + $0x4f8] sm:$0xff] }
  0x5f   :  { %v2217_v55 = vpack.c.bf16 %v186_v53, %v184_v52  ;;  %v224_v50 = vld [vmem:[#allocation3 + $0x4e8] sm:$0xff] }
  0x60   :  { %v2257_v53 = vpack.c.bf16 %v226_v51, %v224_v50 }
  0x61   :  { %2176 = vmatpush1.bf16.msra.mxu0 %v2175_v57  ;;  %v185_v57 = vld [vmem:[#allocation3 + $0x3b0] sm:$0xff] }
  0x62   :  { %2178 = vmatprep.subr.bf16.mxu0 %v2177_v58  ;;  %v188_v58 = vld [vmem:[#allocation3 + $0x3c8] sm:$0xff]  ;;  %v2219_v60 = vpack.c.bf16 %v185_v57, %v183_v56  ;;  %v230_v57 = vld [vmem:[#allocation3 + $0x518] sm:$0xff] }
  0x63   :  { %v2221_v61 = vpack.c.bf16 %v190_v59, %v188_v58  ;;  %v228_v56 = vld [vmem:[#allocation3 + $0x508] sm:$0xff] }
  0x64   :  { %v2261_v59 = vpack.c.bf16 %v230_v57, %v228_v56  ;;  %v270_v56 = vld [vmem:[#allocation3 + $0x658] sm:$0xff]  ;;  %v267_v57 = vld [vmem:[#allocation3 + $0x640] sm:$0xff] }
  0x65   :  { %2180 = vmatpush1.bf16.msra.mxu0 %v2179_v63  ;;  %v189_v63 = vld [vmem:[#allocation3 + $0x3d0] sm:$0xff] }
  0x66   :  { %2182 = vmatprep.subr.bf16.mxu0 %v2181_v42  ;;  %v192_v42 = vld [vmem:[#allocation3 + $0x3e8] sm:$0xff]  ;;  %v2223_v1 = vpack.c.bf16 %v189_v63, %v187_v62  ;;  %v234_v63 = vld [vmem:[#allocation3 + $0x538] sm:$0xff] }
  0x67   :  { %v2225_v2 = vpack.c.bf16 %v194_v0, %v192_v42  ;;  %v232_v62 = vld [vmem:[#allocation3 + $0x528] sm:$0xff] }
  0x68   :  { %v2265_v0 = vpack.c.bf16 %v234_v63, %v232_v62 }
  0x69   :  { %2184 = vmatpush1.bf16.msra.mxu0 %v2183_v4  ;;  %v193_v4 = vld [vmem:[#allocation3 + $0x3f0] sm:$0xff] }
  0x6a   :  { %2186 = vmatprep.subr.bf16.mxu0 %v2185_v5  ;;  %v196_v5 = vld [vmem:[#allocation3 + $0x408] sm:$0xff]  ;;  %v2227_v7 = vpack.c.bf16 %v193_v4, %v191_v3  ;;  %v238_v4 = vld [vmem:[#allocation3 + $0x558] sm:$0xff] }
  0x6b   :  { %v2229_v8 = vpack.c.bf16 %v198_v6, %v196_v5  ;;  %v236_v3 = vld [vmem:[#allocation3 + $0x548] sm:$0xff] }
  0x6c   :  { %v2269_v6 = vpack.c.bf16 %v238_v4, %v236_v3  ;;  %v773_v4 = vld [vmem:[%s4395_s3 + $0x10] sm:$0xff] }
  0x6d   :  { %2188 = vmatpush1.bf16.msra.mxu0 %v2187_v10  ;;  %v197_v10 = vld [vmem:[#allocation3 + $0x410] sm:$0xff] }
  0x6e   :  { %2190 = vmatprep.subr.bf16.mxu0 %v2189_v11  ;;  %v3029_v11 = vld [vmem:[%s4392_s0 + $0x10] sm:$0xff]  ;;  %v2231_v14 = vpack.c.bf16 %v197_v10, %v195_v9  ;;  %v242_v10 = vld [vmem:[#allocation3 + $0x578] sm:$0xff] }
  0x6f   :  { %v406_v15 = vcombine.high %v3029_v11, %v3029_v11  ;;  %v240_v9 = vld [vmem:[#allocation3 + $0x568] sm:$0xff] }
  0x71   :  { %2192 = vmatpush1.bf16.msra.mxu0 %v2191_v16  ;;  %v2233_v16 = vpack.c.bf16 %v202_v13, %v200_v12  ;;  %v2273_v13 = vpack.c.bf16 %v242_v10, %v240_v9  ;;  %v792_v9 = vld [vmem:[%s4395_s3 + $0xa8] sm:$0xff] }
  0x72   :  { %2194 = vmatprep.subr.bf16.mxu0 %v2193_v17  ;;  %v199_v17 = vld [vmem:[#allocation3 + $0x420] sm:$0xff] }
  0x73   :  { %v2235_v21 = vpack.c.bf16 %v201_v18, %v199_v17  ;;  %v246_v17 = vld [vmem:[#allocation3 + $0x598] sm:$0xff] }
  0x75   :  { %2196 = vmatpush1.bf16.msra.mxu0 %v2195_v22  ;;  %v2237_v22 = vpack.c.bf16 %v206_v20, %v204_v19  ;;  %v243_v20 = vld [vmem:[#allocation3 + $0x580] sm:$0xff] }
  0x76   :  { %2198 = vmatprep.subr.bf16.mxu0 %v2197_v23  ;;  %v203_v23 = vld [vmem:[#allocation3 + $0x440] sm:$0xff] }
  0x77   :  { %v2239_v27 = vpack.c.bf16 %v205_v24, %v203_v23  ;;  %v250_v23 = vld [vmem:[#allocation3 + $0x5b8] sm:$0xff] }
  0x79   :  { %2200 = vmatpush1.bf16.msra.mxu0 %v2199_v28  ;;  %v2241_v28 = vpack.c.bf16 %v210_v26, %v208_v25  ;;  %v247_v26 = vld [vmem:[#allocation3 + $0x5a0] sm:$0xff] }
  0x7a   :  { %2202 = vmatprep.subr.bf16.mxu0 %v2201_v29  ;;  %v207_v29 = vld [vmem:[#allocation3 + $0x460] sm:$0xff] }
  0x7b   :  { %v2243_v33 = vpack.c.bf16 %v209_v30, %v207_v29  ;;  %v254_v29 = vld [vmem:[#allocation3 + $0x5d8] sm:$0xff] }
  0x7d   :  { %2204 = vmatpush1.bf16.msra.mxu0 %v2203_v34  ;;  %v211_v34 = vld [vmem:[#allocation3 + $0x480] sm:$0xff] }
  0x7e   :  { %2206 = vmatprep.subr.bf16.mxu0 %v2205_v35  ;;  %v213_v35 = vld [vmem:[#allocation3 + $0x490] sm:$0xff] }
  0x7f   :  { %v2247_v38 = vpack.c.bf16 %v213_v35, %v211_v34  ;;  %v258_v34 = vld [vmem:[#allocation3 + $0x5f8] sm:$0xff] }
  0x81   :  { %2208 = vmatpush1.bf16.msra.mxu0 %v2207_v41  ;;  %v215_v41 = vld [vmem:[#allocation3 + $0x4a0] sm:$0xff] }
  0x82   :  { %2210 = vmatprep.subr.bf16.mxu0 %v2209_v43  ;;  %v217_v43 = vld [vmem:[#allocation3 + $0x4b0] sm:$0xff] }
  0x83   :  { %v2251_v46 = vpack.c.bf16 %v217_v43, %v215_v41  ;;  %v262_v41 = vld [vmem:[#allocation3 + $0x618] sm:$0xff] }
  0x85   :  { %2212 = vmatpush1.bf16.msra.mxu0 %v2211_v48  ;;  %v219_v48 = vld [vmem:[#allocation3 + $0x4c0] sm:$0xff] }
  0x86   :  { %2214 = vmatprep.subr.bf16.mxu0 %v2213_v49  ;;  %v221_v49 = vld [vmem:[#allocation3 + $0x4d0] sm:$0xff] }
  0x87   :  { %v2255_v52 = vpack.c.bf16 %v221_v49, %v219_v48  ;;  %v264_v48 = vld [vmem:[#allocation3 + $0x628] sm:$0xff]  ;;  %v266_v49 = vld [vmem:[#allocation3 + $0x638] sm:$0xff] }
  0x89   :  { %2216 = vmatpush1.bf16.msra.mxu0 %v2215_v54  ;;  %v223_v54 = vld [vmem:[#allocation3 + $0x4e0] sm:$0xff] }
  0x8a   :  { %2218 = vmatprep.subr.bf16.mxu0 %v2217_v55  ;;  %v225_v55 = vld [vmem:[#allocation3 + $0x4f0] sm:$0xff] }
  0x8b   :  { %v2259_v58 = vpack.c.bf16 %v225_v55, %v223_v54  ;;  %v265_v54 = vld [vmem:[#allocation3 + $0x630] sm:$0xff]  ;;  %v268_v55 = vld [vmem:[#allocation3 + $0x648] sm:$0xff] }
  0x8d   :  { %2220 = vmatpush1.bf16.msra.mxu0 %v2219_v60  ;;  %v227_v60 = vld [vmem:[#allocation3 + $0x500] sm:$0xff] }
  0x8e   :  { %2222 = vmatprep.subr.bf16.mxu0 %v2221_v61  ;;  %v229_v61 = vld [vmem:[#allocation3 + $0x510] sm:$0xff] }
  0x8f   :  { %v2263_v42 = vpack.c.bf16 %v229_v61, %v227_v60  ;;  %v788_v60 = vld [vmem:[%s4395_s3 + $0x88] sm:$0xff]  ;;  %v771_v61 = vld [vmem:[%s4395_s3] sm:$0xff] }
  0x91   :  { %2224 = vmatpush1.bf16.msra.mxu0 %v2223_v1  ;;  %v231_v1 = vld [vmem:[#allocation3 + $0x520] sm:$0xff] }
  0x92   :  { %2226 = vmatprep.subr.bf16.mxu0 %v2225_v2  ;;  %v233_v2 = vld [vmem:[#allocation3 + $0x530] sm:$0xff] }
  0x93   :  { %v2267_v5 = vpack.c.bf16 %v233_v2, %v231_v1  ;;  %v2301_v1 = vpack.c.bf16 %v270_v56, %v268_v55  ;;  %v285_v56 = vld [vmem:[#allocation3 + $0x6d0] sm:$0xff] }
  0x95   :  { %2228 = vmatpush1.bf16.msra.mxu0 %v2227_v7  ;;  %v235_v7 = vld [vmem:[#allocation3 + $0x540] sm:$0xff] }
  0x96   :  { %2230 = vmatprep.subr.bf16.mxu0 %v2229_v8  ;;  %v237_v8 = vld [vmem:[#allocation3 + $0x550] sm:$0xff] }
  0x97   :  { %v2271_v12 = vpack.c.bf16 %v237_v8, %v235_v7  ;;  %v272_v7 = vld [vmem:[#allocation3 + $0x668] sm:$0xff]  ;;  %v274_v8 = vld [vmem:[#allocation3 + $0x678] sm:$0xff] }
  0x98   :  { %550 = vmatmul.mubr.f32.vlgmr.msra.gmra.mrb[0].mxu0 %v3021_v40  ;;  %v2245_v40 = vpack.c.bf16 %v214_v32, %v212_v31  ;;  %v251_v32 = vld [vmem:[#allocation3 + $0x5c0] sm:$0xff] }
  0x99   :  { %2232 = vmatpush1.bf16.msra.mxu0 %v2231_v14  ;;  %620 = vmatprep.mubr.f32.mxu0 %v406_v15  ;;  %v239_v14 = vld [vmem:[#allocation3 + $0x560] sm:$0xff]  ;;  %v241_v15 = vld [vmem:[#allocation3 + $0x570] sm:$0xff] }
  0x9a   :  { %2234 = vmatprep.subr.bf16.mxu0 %v2233_v16  ;;  %v244_v16 = vld [vmem:[#allocation3 + $0x588] sm:$0xff]  ;;  %v2275_v18 = vpack.c.bf16 %v241_v15, %v239_v14  ;;  %v775_v15 = vld [vmem:[%s4395_s3 + $0x20] sm:$0xff] }
  0x9b   :  { %v2277_v19 = vpack.c.bf16 %v246_v17, %v244_v16  ;;  %v776_v16 = vld [vmem:[%s4395_s3 + $0x28] sm:$0xff]  ;;  %v2305_v17 = vpack.c.bf16 %v274_v8, %v272_v7  ;;  %v298_v8 = vld [vmem:[#allocation3 + $0x738] sm:$0xff] }
  0x9c   :  { %v296_v7 = vld [vmem:[#allocation3 + $0x728] sm:$0xff] }
  0x9d   :  { %2236 = vmatpush1.bf16.msra.mxu0 %v2235_v21  ;;  %v245_v21 = vld [vmem:[#allocation3 + $0x590] sm:$0xff] }
  0x9e   :  { %2238 = vmatprep.subr.bf16.mxu0 %v2237_v22  ;;  %v248_v22 = vld [vmem:[#allocation3 + $0x5a8] sm:$0xff]  ;;  %v2279_v24 = vpack.c.bf16 %v245_v21, %v243_v20  ;;  %v794_v20 = vld [vmem:[%s4395_s3 + $0xb8] sm:$0xff] }
  0x9f   :  { %v2281_v25 = vpack.c.bf16 %v250_v23, %v248_v22  ;;  %v276_v21 = vld [vmem:[#allocation3 + $0x688] sm:$0xff]  ;;  %v278_v22 = vld [vmem:[#allocation3 + $0x698] sm:$0xff]  ;;  %v2431_v23 = vpack.c.bf16 %v776_v16, %v775_v15 }
  0xa0   :  { %v302_v15 = vld [vmem:[#allocation3 + $0x758] sm:$0xff] }
  0xa1   :  { %2240 = vmatpush1.bf16.msra.mxu0 %v2239_v27  ;;  %v249_v27 = vld [vmem:[#allocation3 + $0x5b0] sm:$0xff] }
  0xa2   :  { %2242 = vmatprep.subr.bf16.mxu0 %v2241_v28  ;;  %v252_v28 = vld [vmem:[#allocation3 + $0x5c8] sm:$0xff]  ;;  %v2283_v30 = vpack.c.bf16 %v249_v27, %v247_v26 }
  0xa3   :  { %v2285_v31 = vpack.c.bf16 %v254_v29, %v252_v28  ;;  %v777_v27 = vld [vmem:[%s4395_s3 + $0x30] sm:$0xff]  ;;  %v778_v28 = vld [vmem:[%s4395_s3 + $0x38] sm:$0xff]  ;;  %v2309_v29 = vpack.c.bf16 %v278_v22, %v276_v21 }
  0xa4   :  { %v306_v21 = vld [vmem:[#allocation3 + $0x778] sm:$0xff] }
  0xa5   :  { %2244 = vmatpush1.bf16.msra.mxu0 %v2243_v33  ;;  %v253_v33 = vld [vmem:[#allocation3 + $0x5d0] sm:$0xff] }
  0xa6   :  { %2246 = vmatprep.subr.bf16.mxu0 %v2245_v40  ;;  %v256_v40 = vld [vmem:[#allocation3 + $0x5e8] sm:$0xff]  ;;  %v2287_v35 = vpack.c.bf16 %v253_v33, %v251_v32 }
  0xa7   :  { %v2289_v36 = vpack.c.bf16 %v258_v34, %v256_v40  ;;  %v796_v32 = vld [vmem:[%s4395_s3 + $0xc8] sm:$0xff]  ;;  %v282_v40 = vld [vmem:[#allocation3 + $0x6b8] sm:$0xff]  ;;  %v2435_v34 = vpack.c.bf16 %v778_v28, %v777_v27 }
  0xa8   :  { %v280_v33 = vld [vmem:[#allocation3 + $0x6a8] sm:$0xff]  ;;  %v310_v27 = vld [vmem:[#allocation3 + $0x798] sm:$0xff] }
  0xa9   :  { %2248 = vmatpush1.bf16.msra.mxu0 %v2247_v38  ;;  %v257_v38 = vld [vmem:[#allocation3 + $0x5f0] sm:$0xff] }
  0xaa   :  { %2250 = vmatprep.subr.bf16.mxu0 %v2249_v39  ;;  %v260_v39 = vld [vmem:[#allocation3 + $0x608] sm:$0xff]  ;;  %v2291_v43 = vpack.c.bf16 %v257_v38, %v255_v37  ;;  %v779_v38 = vld [vmem:[%s4395_s3 + $0x40] sm:$0xff] }
  0xab   :  { %v2293_v44 = vpack.c.bf16 %v262_v41, %v260_v39  ;;  %v780_v39 = vld [vmem:[%s4395_s3 + $0x48] sm:$0xff]  ;;  %v2313_v41 = vpack.c.bf16 %v282_v40, %v280_v33  ;;  %v314_v33 = vld [vmem:[#allocation3 + $0x7b8] sm:$0xff] }
  0xad   :  { %2252 = vmatpush1.bf16.msra.mxu0 %v2251_v46  ;;  %v261_v46 = vld [vmem:[#allocation3 + $0x610] sm:$0xff] }
  0xae   :  { %2254 = vmatprep.subr.bf16.mxu0 %v2253_v47  ;;  %v3037_v47 = vld [vmem:[%s4392_s0 + $0x18] sm:$0xff]  ;;  %v2295_v50 = vpack.c.bf16 %v261_v46, %v259_v45  ;;  %v284_v46 = vld [vmem:[#allocation3 + $0x6c8] sm:$0xff] }
  0xaf   :  { %v407_v51 = vcombine.high %v3037_v47, %v3037_v47  ;;  %v798_v45 = vld [vmem:[%s4395_s3 + $0xd8] sm:$0xff] }
  0xb1   :  { %2256 = vmatpush1.bf16.msra.mxu0 %v2255_v52  ;;  %v2297_v52 = vpack.c.bf16 %v266_v49, %v264_v48  ;;  %v286_v48 = vld [vmem:[#allocation3 + $0x6d8] sm:$0xff]  ;;  %v2439_v49 = vpack.c.bf16 %v780_v39, %v779_v38 }
  0xb2   :  { %2258 = vmatprep.subr.bf16.mxu0 %v2257_v53  ;;  %v263_v53 = vld [vmem:[#allocation3 + $0x620] sm:$0xff]  ;;  %v2317_v55 = vpack.c.bf16 %v286_v48, %v284_v46  ;;  %v318_v38 = vld [vmem:[#allocation3 + $0x7d8] sm:$0xff] }
  0xb3   :  { %v2299_v62 = vpack.c.bf16 %v265_v54, %v263_v53  ;;  %v781_v53 = vld [vmem:[%s4395_s3 + $0x50] sm:$0xff]  ;;  %v782_v54 = vld [vmem:[%s4395_s3 + $0x58] sm:$0xff] }
  0xb4   :  { %v322_v46 = vld [vmem:[#allocation3 + $0x7f8] sm:$0xff] }
  0xb5   :  { %2260 = vmatpush1.bf16.msra.mxu0 %v2259_v58  ;;  %v269_v58 = vld [vmem:[#allocation3 + $0x650] sm:$0xff] }
  0xb6   :  { %2262 = vmatprep.subr.bf16.mxu0 %v2261_v59  ;;  %v787_v59 = vld [vmem:[%s4395_s3 + $0x80] sm:$0xff] }
  0xb7   :  { %v2421_v63 = vpack.c.bf16 %v788_v60, %v787_v59  ;;  %v288_v59 = vld [vmem:[#allocation3 + $0x6e8] sm:$0xff]  ;;  %v290_v60 = vld [vmem:[#allocation3 + $0x6f8] sm:$0xff] }
  0xb9   :  { %2264 = vmatpush1.bf16.msra.mxu0 %v2263_v42  ;;  %v789_v42 = vld [vmem:[%s4395_s3 + $0x90] sm:$0xff]  ;;  %2422 = vmatprep.subr.bf16.mxu1 %v2421_v63 }
  0xba   :  { %2266 = vmatprep.subr.bf16.mxu0 %v2265_v0  ;;  %v790_v0 = vld [vmem:[%s4395_s3 + $0x98] sm:$0xff] }
  0xbb   :  { %v2425_v3 = vpack.c.bf16 %v790_v0, %v789_v42  ;;  %v287_v42 = vld [vmem:[#allocation3 + $0x6e0] sm:$0xff]  ;;  %v289_v0 = vld [vmem:[#allocation3 + $0x6f0] sm:$0xff] }
  0xbd   :  { %2268 = vmatpush1.bf16.msra.mxu0 %v2267_v5  ;;  %v774_v5 = vld [vmem:[%s4395_s3 + $0x18] sm:$0xff] }
  0xbe   :  { %2270 = vmatprep.subr.bf16.mxu0 %v2269_v6  ;;  %v791_v6 = vld [vmem:[%s4395_s3 + $0xa0] sm:$0xff]  ;;  %v2427_v10 = vpack.c.bf16 %v774_v5, %v773_v4 }
  0xbf   :  { %v2429_v14 = vpack.c.bf16 %v792_v9, %v791_v6  ;;  %v291_v5 = vld [vmem:[#allocation3 + $0x700] sm:$0xff]  ;;  %v293_v6 = vld [vmem:[#allocation3 + $0x710] sm:$0xff] }
  0xc0   :  { %v2327_v9 = vpack.c.bf16 %v293_v6, %v291_v5  ;;  %v333_v5 = vld [vmem:[#allocation3 + $0x850] sm:$0xff]  ;;  %v336_v6 = vld [vmem:[#allocation3 + $0x868] sm:$0xff] }
  0xc1   :  { %2272 = vmatpush1.bf16.msra.mxu0 %v2271_v12  ;;  %v2303_v12 = vpack.c.bf16 %v269_v58, %v267_v57  ;;  %v799_v57 = vld [vmem:[%s4395_s3 + $0xe0] sm:$0xff]  ;;  %v800_v58 = vld [vmem:[%s4395_s3 + $0xe8] sm:$0xff] }
  0xc2   :  { %2274 = vmatprep.subr.bf16.mxu0 %v2273_v13  ;;  %v271_v13 = vld [vmem:[#allocation3 + $0x660] sm:$0xff]  ;;  %v2445_v63 = vpack.c.bf16 %v800_v58, %v799_v57  ;;  %v325_v57 = vld [vmem:[#allocation3 + $0x810] sm:$0xff] }
  0xc3   :  { %v3123_v58 = vld [vmem:[%s4392_s0 + $0x20] sm:$0xff] }
  0xc5   :  { %2276 = vmatpush1.bf16.msra.mxu0 %v2275_v18  ;;  %v273_v18 = vld [vmem:[#allocation3 + $0x670] sm:$0xff] }
  0xc6   :  { %2278 = vmatprep.subr.bf16.mxu0 %v2277_v19  ;;  %v793_v19 = vld [vmem:[%s4395_s3 + $0xb0] sm:$0xff] }
  0xc7   :  { %v2433_v26 = vpack.c.bf16 %v794_v20, %v793_v19  ;;  %v301_v19 = vld [vmem:[#allocation3 + $0x750] sm:$0xff]  ;;  %v304_v20 = vld [vmem:[#allocation3 + $0x768] sm:$0xff] }
  0xc9   :  { %2280 = vmatpush1.bf16.msra.mxu0 %v2279_v24  ;;  %v2307_v24 = vpack.c.bf16 %v273_v18, %v271_v13  ;;  %v297_v13 = vld [vmem:[#allocation3 + $0x730] sm:$0xff]  ;;  %v299_v18 = vld [vmem:[#allocation3 + $0x740] sm:$0xff] }
  0xca   :  { %2282 = vmatprep.subr.bf16.mxu0 %v2281_v25  ;;  %v275_v25 = vld [vmem:[#allocation3 + $0x680] sm:$0xff]  ;;  %v2335_v22 = vpack.c.bf16 %v301_v19, %v299_v18  ;;  %v344_v18 = vld [vmem:[#allocation3 + $0x8a8] sm:$0xff]  ;;  %v346_v19 = vld [vmem:[#allocation3 + $0x8b8] sm:$0xff] }
  0xcd   :  { %2284 = vmatpush1.bf16.msra.mxu0 %v2283_v30  ;;  %v277_v30 = vld [vmem:[#allocation3 + $0x690] sm:$0xff] }
  0xce   :  { %2286 = vmatprep.subr.bf16.mxu0 %v2285_v31  ;;  %v795_v31 = vld [vmem:[%s4395_s3 + $0xc0] sm:$0xff] }
  0xcf   :  { %v2437_v37 = vpack.c.bf16 %v796_v32, %v795_v31  ;;  %v309_v31 = vld [vmem:[#allocation3 + $0x790] sm:$0xff]  ;;  %v312_v32 = vld [vmem:[#allocation3 + $0x7a8] sm:$0xff] }
  0xd1   :  { %2288 = vmatpush1.bf16.msra.mxu0 %v2287_v35  ;;  %v2311_v35 = vpack.c.bf16 %v277_v30, %v275_v25  ;;  %v305_v25 = vld [vmem:[#allocation3 + $0x770] sm:$0xff]  ;;  %v307_v30 = vld [vmem:[#allocation3 + $0x780] sm:$0xff] }
  0xd2   :  { %2290 = vmatprep.subr.bf16.mxu0 %v2289_v36  ;;  %v279_v36 = vld [vmem:[#allocation3 + $0x6a0] sm:$0xff]  ;;  %v2343_v40 = vpack.c.bf16 %v309_v31, %v307_v30  ;;  %v352_v30 = vld [vmem:[#allocation3 + $0x8e8] sm:$0xff]  ;;  %v354_v31 = vld [vmem:[#allocation3 + $0x8f8] sm:$0xff] }
  0xd5   :  { %2292 = vmatpush1.bf16.msra.mxu0 %v2291_v43  ;;  %v281_v43 = vld [vmem:[#allocation3 + $0x6b0] sm:$0xff] }
  0xd6   :  { %2294 = vmatprep.subr.bf16.mxu0 %v2293_v44  ;;  %v797_v44 = vld [vmem:[%s4395_s3 + $0xd0] sm:$0xff] }
  0xd8   :  { %621 = vmatmul.mubr.f32.vlgmr.msra.gmra.mrb[0].mxu0 %v3029_v11  ;;  %v772_v11 = vld [vmem:[%s4395_s3 + $0x8] sm:$0xff] }
  0xd9   :  { %2296 = vmatpush1.bf16.msra.mxu0 %v2295_v50  ;;  %691 = vmatprep.mubr.f32.mxu0 %v407_v51  ;;  %v2423_v2 = vpack.c.bf16 %v772_v11, %v771_v61  ;;  %v2315_v50 = vpack.c.bf16 %v281_v43, %v279_v36  ;;  %v283_v51 = vld [vmem:[#allocation3 + $0x6c0] sm:$0xff]  ;;  %v2443_v61 = vpack.c.bf16 %v782_v54, %v781_v53  ;;  %v313_v36 = vld [vmem:[#allocation3 + $0x7b0] sm:$0xff]  ;;  %v326_v53 = vld [vmem:[#allocation3 + $0x818] sm:$0xff] }
  0xda   :  { %2298 = vmatprep.subr.bf16.mxu0 %v2297_v52  ;;  %v2441_v52 = vpack.c.bf16 %v798_v45, %v797_v44  ;;  %v2321_v11 = vpack.c.bf16 %v290_v60, %v288_v59  ;;  %v315_v43 = vld [vmem:[#allocation3 + $0x7c0] sm:$0xff]  ;;  %v317_v44 = vld [vmem:[#allocation3 + $0x7d0] sm:$0xff]  ;;  %v320_v45 = vld [vmem:[#allocation3 + $0x7e8] sm:$0xff] }
  0xdb   :  { %2424 = vmatpush3.bf16.msra.mxu1 %v2423_v2  ;;  %v294_v2 = vld [vmem:[#allocation3 + $0x718] sm:$0xff]  ;;  %v2351_v48 = vpack.c.bf16 %v317_v44, %v315_v43  ;;  %v328_v59 = vld [vmem:[#allocation3 + $0x828] sm:$0xff] }
  0xdc   :  { %2426 = vmatprep.subr.bf16.mxu1 %v2425_v3  ;;  %v2323_v3 = vpack.c.bf16 %v289_v0, %v287_v42  ;;  %v330_v60 = vld [vmem:[#allocation3 + $0x838] sm:$0xff]  ;;  %v329_v42 = vld [vmem:[#allocation3 + $0x830] sm:$0xff]  ;;  %v332_v0 = vld [vmem:[#allocation3 + $0x848] sm:$0xff] }
  0xdd   :  { %2300 = vmatpush1.bf16.msra.mxu0 %v2299_v62  ;;  %v2319_v62 = vpack.c.bf16 %v285_v56, %v283_v51  ;;  %v321_v51 = vld [vmem:[#allocation3 + $0x7f0] sm:$0xff]  ;;  %v323_v56 = vld [vmem:[#allocation3 + $0x800] sm:$0xff]  ;;  %v360_v43 = vld [vmem:[#allocation3 + $0x928] sm:$0xff] }
  0xde   :  { %2302 = vmatprep.subr.bf16.mxu0 %v2301_v1  ;;  %v292_v1 = vld [vmem:[#allocation3 + $0x708] sm:$0xff]  ;;  %v362_v44 = vld [vmem:[#allocation3 + $0x938] sm:$0xff] }
  0xdf   :  { %2428 = vmatpush3.bf16.msra.mxu1 %v2427_v10  ;;  %v2325_v4 = vpack.c.bf16 %v294_v2, %v292_v1  ;;  %v2329_v10 = vpack.c.bf16 %v298_v8, %v296_v7  ;;  %v334_v1 = vld [vmem:[#allocation3 + $0x858] sm:$0xff] }
  0xe0   :  { %2430 = vmatprep.subr.bf16.mxu1 %v2429_v14  ;;  %v300_v14 = vld [vmem:[#allocation3 + $0x748] sm:$0xff]  ;;  %v338_v7 = vld [vmem:[#allocation3 + $0x878] sm:$0xff] }
  0xe1   :  { %2304 = vmatpush1.bf16.msra.mxu0 %v2303_v12  ;;  %v295_v12 = vld [vmem:[#allocation3 + $0x720] sm:$0xff] }
  0xe2   :  { %2306 = vmatprep.subr.bf16.mxu0 %v2305_v17  ;;  %v2331_v16 = vpack.c.bf16 %v297_v13, %v295_v12  ;;  %v2333_v17 = vpack.c.bf16 %v302_v15, %v300_v14  ;;  %v337_v12 = vld [vmem:[#allocation3 + $0x870] sm:$0xff]  ;;  %v340_v13 = vld [vmem:[#allocation3 + $0x888] sm:$0xff]  ;;  %v342_v14 = vld [vmem:[#allocation3 + $0x898] sm:$0xff] }
  0xe3   :  { %2432 = vmatpush3.bf16.msra.mxu1 %v2431_v23  ;;  %v2337_v23 = vpack.c.bf16 %v306_v21, %v304_v20  ;;  %v2377_v21 = vpack.c.bf16 %v346_v19, %v344_v18  ;;  %v383_v19 = vld [vmem:[#allocation3 + $0x9e0] sm:$0xff] }
  0xe4   :  { %2434 = vmatprep.subr.bf16.mxu1 %v2433_v26  ;;  %v308_v26 = vld [vmem:[#allocation3 + $0x788] sm:$0xff] }
  0xe5   :  { %2308 = vmatpush1.bf16.msra.mxu0 %v2307_v24  ;;  %v303_v24 = vld [vmem:[#allocation3 + $0x760] sm:$0xff] }
  0xe6   :  { %2310 = vmatprep.subr.bf16.mxu0 %v2309_v29  ;;  %v2339_v28 = vpack.c.bf16 %v305_v25, %v303_v24  ;;  %v2341_v29 = vpack.c.bf16 %v310_v27, %v308_v26  ;;  %v348_v24 = vld [vmem:[#allocation3 + $0x8c8] sm:$0xff]  ;;  %v350_v25 = vld [vmem:[#allocation3 + $0x8d8] sm:$0xff] }
  0xe7   :  { %2436 = vmatpush3.bf16.msra.mxu1 %v2435_v34  ;;  %v2345_v34 = vpack.c.bf16 %v314_v33, %v312_v32  ;;  %v2381_v27 = vpack.c.bf16 %v350_v25, %v348_v24  ;;  %v2385_v33 = vpack.c.bf16 %v354_v31, %v352_v30  ;;  %v801_v25 = vld [vmem:[%s4395_s3 + $0xf0] sm:$0xff]  ;;  %v2918_v30 = vmov 0.0|0.0  }
  0xe8   :  { %2438 = vmatprep.subr.bf16.mxu1 %v2437_v37  ;;  %v316_v37 = vld [vmem:[#allocation3 + $0x7c8] sm:$0xff]  ;;  %v389_v31 = vlaneseq }
  0xe9   :  { %2312 = vmatpush1.bf16.msra.mxu0 %v2311_v35  ;;  %v311_v35 = vld [vmem:[#allocation3 + $0x7a0] sm:$0xff] }
  0xea   :  { %2314 = vmatprep.subr.bf16.mxu0 %v2313_v41  ;;  %v2347_v39 = vpack.c.bf16 %v313_v36, %v311_v35  ;;  %v2349_v41 = vpack.c.bf16 %v318_v38, %v316_v37  ;;  %v356_v35 = vld [vmem:[#allocation3 + $0x908] sm:$0xff]  ;;  %v358_v36 = vld [vmem:[#allocation3 + $0x918] sm:$0xff] }
  0xeb   :  { %2440 = vmatpush3.bf16.msra.mxu1 %v2439_v49  ;;  %v2353_v49 = vpack.c.bf16 %v322_v46, %v320_v45  ;;  %v2389_v38 = vpack.c.bf16 %v358_v36, %v356_v35  ;;  %v2393_v46 = vpack.c.bf16 %v362_v44, %v360_v43  ;;  %v882_v43 = vld [vmem:[%s4397_s5 + $0x8] sm:$0xff] }
  0xec   :  { %2442 = vmatprep.subr.bf16.mxu1 %v2441_v52  ;;  %v324_v52 = vld [vmem:[#allocation3 + $0x808] sm:$0xff] }
  0xed   :  { %2316 = vmatpush1.bf16.msra.mxu0 %v2315_v50  ;;  %v319_v50 = vld [vmem:[#allocation3 + $0x7e0] sm:$0xff] }
  0xee   :  { %2318 = vmatprep.subr.bf16.mxu0 %v2317_v55  ;;  %v2355_v54 = vpack.c.bf16 %v321_v51, %v319_v50  ;;  %v2357_v55 = vpack.c.bf16 %v326_v53, %v324_v52  ;;  %v364_v50 = vld [vmem:[#allocation3 + $0x948] sm:$0xff]  ;;  %v366_v51 = vld [vmem:[#allocation3 + $0x958] sm:$0xff] }
  0xef   :  { %2444 = vmatpush3.bf16.msra.mxu1 %v2443_v61  ;;  %v2359_v61 = vpack.c.bf16 %v325_v57, %v323_v56  ;;  %v2397_v53 = vpack.c.bf16 %v366_v51, %v364_v50  ;;  %v368_v56 = vld [vmem:[#allocation3 + $0x968] sm:$0xff]  ;;  %v370_v57 = vld [vmem:[#allocation3 + $0x978] sm:$0xff] }
  0xf0   :  { %2446 = vmatprep.subr.bf16.mxu1 %v2445_v63  ;;  %v2361_v63 = vpack.c.bf16 %v330_v60, %v328_v59  ;;  %v2401_v60 = vpack.c.bf16 %v370_v57, %v368_v56  ;;  %v884_v50 = vld [vmem:[%s4397_s5 + $0x18] sm:$0xff] }
  0xf1   :  { %2320 = vmatpush1.bf16.msra.mxu0 %v2319_v62  ;;  %v408_v62 = vcombine.high %v3123_v58, %v3123_v58  ;;  %v888_v56 = vld [vmem:[%s4397_s5 + $0x38] sm:$0xff] }
  0xf2   :  { %2322 = vmatprep.subr.bf16.mxu0 %v2321_v11  ;;  %v327_v11 = vld [vmem:[#allocation3 + $0x820] sm:$0xff] }
  0xf3   :  { %v2363_v2 = vpack.c.bf16 %v329_v42, %v327_v11  ;;  %v374_v11 = vld [vmem:[#allocation3 + $0x998] sm:$0xff] }
  0xf5   :  { %2324 = vmatpush1.bf16.msra.mxu0 %v2323_v3  ;;  %v2365_v3 = vpack.c.bf16 %v334_v1, %v332_v0  ;;  %v371_v1 = vld [vmem:[#allocation3 + $0x980] sm:$0xff] }
  0xf6   :  { %2326 = vmatprep.subr.bf16.mxu0 %v2325_v4  ;;  %v331_v4 = vld [vmem:[#allocation3 + $0x840] sm:$0xff] }
  0xf7   :  { %v2367_v8 = vpack.c.bf16 %v333_v5, %v331_v4  ;;  %v378_v4 = vld [vmem:[#allocation3 + $0x9b8] sm:$0xff] }
  0xf9   :  { %2328 = vmatpush1.bf16.msra.mxu0 %v2327_v9  ;;  %v2369_v9 = vpack.c.bf16 %v338_v7, %v336_v6  ;;  %v375_v7 = vld [vmem:[#allocation3 + $0x9a0] sm:$0xff] }
  0xfa   :  { %2330 = vmatprep.subr.bf16.mxu0 %v2329_v10  ;;  %v335_v10 = vld [vmem:[#allocation3 + $0x860] sm:$0xff] }
  0xfb   :  { %v2371_v15 = vpack.c.bf16 %v337_v12, %v335_v10  ;;  %v382_v10 = vld [vmem:[#allocation3 + $0x9d8] sm:$0xff] }
  0xfd   :  { %2332 = vmatpush1.bf16.msra.mxu0 %v2331_v16  ;;  %v339_v16 = vld [vmem:[#allocation3 + $0x880] sm:$0xff] }
  0xfe   :  { %2334 = vmatprep.subr.bf16.mxu0 %v2333_v17  ;;  %v341_v17 = vld [vmem:[#allocation3 + $0x890] sm:$0xff] }
  0xff   :  { %v2375_v20 = vpack.c.bf16 %v341_v17, %v339_v16  ;;  %v386_v16 = vld [vmem:[#allocation3 + $0x9f8] sm:$0xff] }
 0x101   :  { %2336 = vmatpush1.bf16.msra.mxu0 %v2335_v22  ;;  %v343_v22 = vld [vmem:[#allocation3 + $0x8a0] sm:$0xff] }
 0x102   :  { %2338 = vmatprep.subr.bf16.mxu0 %v2337_v23  ;;  %v345_v23 = vld [vmem:[#allocation3 + $0x8b0] sm:$0xff] }
 0x103   :  { %v2379_v26 = vpack.c.bf16 %v345_v23, %v343_v22  ;;  %v783_v22 = vld [vmem:[%s4395_s3 + $0x60] sm:$0xff]  ;;  %v784_v23 = vld [vmem:[%s4395_s3 + $0x68] sm:$0xff] }
 0x104   :  { %v2447_v24 = vpack.c.bf16 %v784_v23, %v783_v22 }
 0x105   :  { %2340 = vmatpush1.bf16.msra.mxu0 %v2339_v28  ;;  %v347_v28 = vld [vmem:[#allocation3 + $0x8c0] sm:$0xff] }
 0x106   :  { %2342 = vmatprep.subr.bf16.mxu0 %v2341_v29  ;;  %v349_v29 = vld [vmem:[#allocation3 + $0x8d0] sm:$0xff]  ;;  %2448 = vmatpush3.bf16.msra.mxu1 %v2447_v24 }
 0x107   :  { %v2383_v32 = vpack.c.bf16 %v349_v29, %v347_v28  ;;  %v786_v28 = vld [vmem:[%s4395_s3 + $0x78] sm:$0xff] }
 0x109   :  { %2344 = vmatpush1.bf16.msra.mxu0 %v2343_v40  ;;  %v351_v40 = vld [vmem:[#allocation3 + $0x8e0] sm:$0xff] }
 0x10a   :  { %2346 = vmatprep.subr.bf16.mxu0 %v2345_v34  ;;  %v353_v34 = vld [vmem:[#allocation3 + $0x8f0] sm:$0xff] }
 0x10b   :  { %v2387_v37 = vpack.c.bf16 %v353_v34, %v351_v40  ;;  %v387_v40 = vld [vmem:[%s4394_s2] sm:$0x3] }
 0x10d   :  { %2348 = vmatpush1.bf16.msra.mxu0 %v2347_v39  ;;  %v355_v39 = vld [vmem:[#allocation3 + $0x900] sm:$0xff] }
 0x10e   :  { %2350 = vmatprep.subr.bf16.mxu0 %v2349_v41  ;;  %v357_v41 = vld [vmem:[#allocation3 + $0x910] sm:$0xff] }
 0x10f   :  { %v2391_v45 = vpack.c.bf16 %v357_v41, %v355_v39  ;;  %v881_v41 = vld [vmem:[%s4397_s5] sm:$0xff] }
 0x111   :  { %2352 = vmatpush1.bf16.msra.mxu0 %v2351_v48  ;;  %v359_v48 = vld [vmem:[#allocation3 + $0x920] sm:$0xff] }
 0x112   :  { %2354 = vmatprep.subr.bf16.mxu0 %v2353_v49  ;;  %v361_v49 = vld [vmem:[#allocation3 + $0x930] sm:$0xff] }
 0x113   :  { %v2395_v52 = vpack.c.bf16 %v361_v49, %v359_v48  ;;  %v883_v49 = vld [vmem:[%s4397_s5 + $0x10] sm:$0xff] }
 0x114   :  { %v2457_v51 = vpack.c.bf16 %v884_v50, %v883_v49  ;;  %v1014_v49 = vld [vmem:[%s4399_s7 + $0x90] sm:$0xff]  ;;  %v1017_v50 = vld [vmem:[%s4399_s7 + $0xa8] sm:$0xff] }
 0x115   :  { %2356 = vmatpush1.bf16.msra.mxu0 %v2355_v54  ;;  %v363_v54 = vld [vmem:[#allocation3 + $0x940] sm:$0xff] }
 0x116   :  { %2358 = vmatprep.subr.bf16.mxu0 %v2357_v55  ;;  %v365_v55 = vld [vmem:[#allocation3 + $0x950] sm:$0xff] }
 0x117   :  { %v2399_v59 = vpack.c.bf16 %v365_v55, %v363_v54  ;;  %v887_v55 = vld [vmem:[%s4397_s5 + $0x30] sm:$0xff] }
 0x118   :  { %692 = vmatmul.mubr.f32.vlgmr.msra.gmra.mrb[0].mxu0 %v3037_v47  ;;  %v2373_v47 = vpack.c.bf16 %v342_v14, %v340_v13  ;;  %v379_v14 = vld [vmem:[#allocation3 + $0x9c0] sm:$0xff]  ;;  %v2463_v57 = vpack.c.bf16 %v888_v56, %v887_v55  ;;  %v1018_v55 = vld [vmem:[%s4399_s7 + $0xb0] sm:$0xff] }
 0x119   :  { %2360 = vmatpush1.bf16.msra.mxu0 %v2359_v61  ;;  %762 = vmatprep.mubr.f32.mxu0 %v408_v62  ;;  %v367_v61 = vld [vmem:[#allocation3 + $0x960] sm:$0xff]  ;;  %v369_v62 = vld [vmem:[#allocation3 + $0x970] sm:$0xff] }
 0x11a   :  { %2362 = vmatprep.subr.bf16.mxu0 %v2361_v63  ;;  %v372_v63 = vld [vmem:[#allocation3 + $0x988] sm:$0xff]  ;;  %v2403_v42 = vpack.c.bf16 %v369_v62, %v367_v61 }
 0x11b   :  { %v2405_v0 = vpack.c.bf16 %v374_v11, %v372_v63  ;;  %v891_v62 = vld [vmem:[%s4397_s5 + $0x50] sm:$0xff]  ;;  %v892_v63 = vld [vmem:[%s4397_s5 + $0x58] sm:$0xff]  ;;  %v1021_v56 = vld [vmem:[%s4399_s7 + $0xc8] sm:$0xff] }
 0x11c   :  { %v2469_v11 = vpack.c.bf16 %v892_v63, %v891_v62  ;;  %v1022_v62 = vld [vmem:[%s4399_s7 + $0xd0] sm:$0xff]  ;;  %v1025_v63 = vld [vmem:[%s4399_s7 + $0xe8] sm:$0xff] }
 0x11d   :  { %2364 = vmatpush1.bf16.msra.mxu0 %v2363_v2  ;;  %v373_v2 = vld [vmem:[#allocation3 + $0x990] sm:$0xff] }
 0x11e   :  { %2366 = vmatprep.subr.bf16.mxu0 %v2365_v3  ;;  %v376_v3 = vld [vmem:[#allocation3 + $0x9a8] sm:$0xff]  ;;  %v2407_v5 = vpack.c.bf16 %v373_v2, %v371_v1 }
 0x11f   :  { %v2409_v6 = vpack.c.bf16 %v378_v4, %v376_v3  ;;  %v895_v2 = vld [vmem:[%s4397_s5 + $0x70] sm:$0xff]  ;;  %v896_v3 = vld [vmem:[%s4397_s5 + $0x78] sm:$0xff] }
 0x120   :  { %v2475_v4 = vpack.c.bf16 %v896_v3, %v895_v2  ;;  %v1026_v2 = vld [vmem:[%s4399_s7 + $0xf0] sm:$0xff]  ;;  %v1029_v3 = vld [vmem:[%s4399_s7 + $0x108] sm:$0xff] }
 0x121   :  { %2368 = vmatpush1.bf16.msra.mxu0 %v2367_v8  ;;  %v377_v8 = vld [vmem:[#allocation3 + $0x9b0] sm:$0xff] }
 0x122   :  { %2370 = vmatprep.subr.bf16.mxu0 %v2369_v9  ;;  %v380_v9 = vld [vmem:[#allocation3 + $0x9c8] sm:$0xff]  ;;  %v2411_v12 = vpack.c.bf16 %v377_v8, %v375_v7  ;;  %v2920_v8 = vmov 0.0  }
 0x123   :  { %v2413_v13 = vpack.c.bf16 %v382_v10, %v380_v9  ;;  %v2886_v9 = vld [vmem:[%s4392_s0] sm:$0xff] }
 0x124   :  { %v1920_v10 = vrot.slane %v2886_v9, 10 }
 0x125   :  { %2372 = vmatpush1.bf16.msra.mxu0 %v2371_v15  ;;  %v381_v15 = vld [vmem:[#allocation3 + $0x9d0] sm:$0xff] }
 0x126   :  { %2374 = vmatprep.subr.bf16.mxu0 %v2373_v47  ;;  %v384_v47 = vld [vmem:[#allocation3 + $0x9e8] sm:$0xff]  ;;  %v2415_v17 = vpack.c.bf16 %v381_v15, %v379_v14  ;;  %v3228_v15 = vmul.f32 %v2886_v9, %v1920_v10 }
 0x127   :  { %v2417_v18 = vpack.c.bf16 %v386_v16, %v384_v47  ;;  %v996_v16 = vld [vmem:[%s4399_s7] sm:$0xff]  ;;  %v1030_v9 = vld [vmem:[%s4399_s7 + $0x110] sm:$0xff]  ;;  %v1033_v10 = vld [vmem:[%s4399_s7 + $0x128] sm:$0xff] }
 0x128   :  { %v1333_v22 = vcombine.high %v3228_v15, %v3228_v15 }
 0x129   :  { %2376 = vmatpush1.bf16.msra.mxu0 %v2375_v20  ;;  %v385_v20 = vld [vmem:[#allocation3 + $0x9f0] sm:$0xff] }
 0x12a   :  { %2378 = vmatprep.subr.bf16.mxu0 %v2377_v21  ;;  %v2419_v21 = vpack.c.bf16 %v385_v20, %v383_v19  ;;  %v1003_v19 = vld [vmem:[%s4399_s7 + $0x38] sm:$0xff] }
 0x12d   :  { %2380 = vmatpush1.bf16.msra.mxu0 %v2379_v26  ;;  %v802_v26 = vld [vmem:[%s4395_s3 + $0xf8] sm:$0xff] }
 0x12e   :  { %2382 = vmatprep.subr.bf16.mxu0 %v2381_v27  ;;  %v2449_v27 = vpack.c.bf16 %v802_v26, %v801_v25  ;;  %v1000_v25 = vld [vmem:[%s4399_s7 + $0x20] sm:$0xff]  ;;  %v1002_v26 = vld [vmem:[%s4399_s7 + $0x30] sm:$0xff] }
 0x130   :  { %2450 = vmatprep.subr.bf16.mxu1 %v2449_v27  ;;  %v1005_v27 = vld [vmem:[%s4399_s7 + $0x48] sm:$0xff] }
 0x131   :  { %2384 = vmatpush1.bf16.msra.mxu0 %v2383_v32  ;;  %v3148_v32 = vshrl.u32 %v389_v31, 7  ;;  %v1004_v31 = vld [vmem:[%s4399_s7 + $0x40] sm:$0xff] }
 0x132   :  { %2386 = vmatprep.subr.bf16.mxu0 %v2385_v33 }
 0x133   :  { %v391_v33 = vsub.s32 0, %v3148_v32  ;;  %v395_v34 = vsub.s32 1, %v3148_v32  ;;  %v1812_v32 = vld [vmem:[%s4403_s11 + $0x10] sm:$0xff] }
 0x135   :  { %2388 = vmatpush1.bf16.msra.mxu0 %v2387_v37  ;;  %v392_v35 = vrot.slane %v387_v40, %v391_v33  ;;  %v396_v36 = vrot.slane %v387_v40, %v395_v34  ;;  %v1006_v40 = vld [vmem:[%s4399_s7 + $0x50] sm:$0xff] }
 0x136   :  { %2390 = vmatprep.subr.bf16.mxu0 %v2389_v38 }
 0x139   :  { %2392 = vmatpush1.bf16.msra.mxu0 %v2391_v45 }
 0x13a   :  { %2394 = vmatprep.subr.bf16.mxu0 %v2393_v46  ;;  %v2454_v46 = vpack.c.bf16 %v882_v43, %v881_v41  ;;  %v1010_v41 = vld [vmem:[%s4399_s7 + $0x70] sm:$0xff]  ;;  %v1013_v43 = vld [vmem:[%s4399_s7 + $0x88] sm:$0xff] }
 0x13d   :  { %2396 = vmatpush1.bf16.msra.mxu0 %v2395_v52  ;;  %v885_v52 = vld [vmem:[%s4397_s5 + $0x20] sm:$0xff] }
 0x13e   :  { %2398 = vmatprep.subr.bf16.mxu0 %v2397_v53  ;;  %v886_v53 = vld [vmem:[%s4397_s5 + $0x28] sm:$0xff] }
 0x13f   :  { %v2460_v54 = vpack.c.bf16 %v886_v53, %v885_v52 }
 0x141   :  { %2400 = vmatpush1.bf16.msra.mxu0 %v2399_v59  ;;  %v889_v59 = vld [vmem:[%s4397_s5 + $0x40] sm:$0xff] }
 0x142   :  { %2402 = vmatprep.subr.bf16.mxu0 %v2401_v60  ;;  %v890_v60 = vld [vmem:[%s4397_s5 + $0x48] sm:$0xff] }
 0x143   :  { %v2466_v61 = vpack.c.bf16 %v890_v60, %v889_v59 }
 0x145   :  { %2404 = vmatpush1.bf16.msra.mxu0 %v2403_v42  ;;  %v893_v42 = vld [vmem:[%s4397_s5 + $0x60] sm:$0xff] }
 0x146   :  { %2406 = vmatprep.subr.bf16.mxu0 %v2405_v0  ;;  %v894_v0 = vld [vmem:[%s4397_s5 + $0x68] sm:$0xff] }
 0x147   :  { %v2472_v1 = vpack.c.bf16 %v894_v0, %v893_v42 }
 0x149   :  { %2408 = vmatpush1.bf16.msra.mxu0 %v2407_v5  ;;  %v997_v5 = vld [vmem:[%s4399_s7 + $0x8] sm:$0xff] }
 0x14a   :  { %2410 = vmatprep.subr.bf16.mxu0 %v2409_v6  ;;  %v999_v6 = vld [vmem:[%s4399_s7 + $0x18] sm:$0xff] }
 0x14b   :  { %v2477_v7 = vpack.c.bf16 %v999_v6, %v997_v5 }
 0x14d   :  { %2412 = vmatpush1.bf16.msra.mxu0 %v2411_v12 }
 0x14e   :  { %2414 = vmatprep.subr.bf16.mxu0 %v2413_v13  ;;  %v1918_v13 = vld [vmem:[%s4396_s4] ss:$0 sm:$0xff] }
 0x151   :  { %2416 = vmatpush1.bf16.msra.mxu0 %v2415_v17  ;;  %v998_v17 = vld [vmem:[%s4399_s7 + $0x10] sm:$0xff] }
 0x152   :  { %2418 = vmatprep.subr.bf16.mxu0 %v2417_v18  ;;  %v1001_v18 = vld [vmem:[%s4399_s7 + $0x28] sm:$0xff] }
 0x153   :  { %v2481_v24 = vpack.c.bf16 %v1003_v19, %v1001_v18  ;;  %v1039_v18 = vld [vmem:[%s4399_s7 + $0x158] sm:$0xff] }
 0x155   :  { %2420 = vmatpush1.bf16.msra.mxu0 %v2419_v21  ;;  %v2479_v21 = vpack.c.bf16 %v998_v17, %v996_v16  ;;  %v1034_v16 = vld [vmem:[%s4399_s7 + $0x130] sm:$0xff]  ;;  %v1037_v17 = vld [vmem:[%s4399_s7 + $0x148] sm:$0xff] }
 0x158   :  { %763 = vmatmul.mubr.f32.vlgmr.msra.gmra.mrb[0].mxu0 %v3123_v58  ;;  %v785_v58 = vld [vmem:[%s4395_s3 + $0x70] sm:$0xff] }
 0x159   :  { %v2451_v29 = vpack.c.bf16 %v786_v28, %v785_v58  ;;  %v1007_v58 = vld [vmem:[%s4399_s7 + $0x58] sm:$0xff]  ;;  %v2483_v28 = vpack.c.bf16 %v1002_v26, %v1000_v25 }
 0x15b   :  { %2452 = vmatpush3.bf16.msra.mxu1 %v2451_v29  ;;  %v2485_v29 = vpack.c.bf16 %v1007_v58, %v1005_v27  ;;  %v1040_v27 = vld [vmem:[%s4399_s7 + $0x160] sm:$0xff]  ;;  %v1042_v58 = vld [vmem:[%s4399_s7 + $0x170] sm:$0xff] }
 0x15c   :  { %2453 = vmatprep.subr.bf16.mxu1 %v2918_v30 }
 0x22b   :  { %v764_v37 = vpop.f32.mrb[0].mxu0 }
 0x22c   :  { %v2853_v38 = vadd.f32 %v764_v37, %v392_v35  ;;  %v766_v39 = vpop.f32.mrb[1].mxu0  ;;  %v1009_v35 = vld [vmem:[%s4399_s7 + $0x68] sm:$0xff]  ;;  %v2487_v37 = vpack.c.bf16 %v1006_v40, %v1004_v31  ;;  %v2523_v31 = vpack.c.bf16 %v1042_v58, %v1040_v27  ;;  %v1078_v27 = vld [vmem:[%s4399_s7 + $0x290] sm:$0xff] }
 0x22d   :  { %v2854_v44 = vadd.f32 %v766_v39, %v396_v36  ;;  %v1011_v36 = vld [vmem:[%s4399_s7 + $0x78] sm:$0xff]  ;;  %v1008_v39 = vld [vmem:[%s4399_s7 + $0x60] sm:$0xff]  ;;  %v1081_v58 = vld [vmem:[%s4399_s7 + $0x2a8] sm:$0xff] }
 0x22e   :  { %v769_v48 = vmax.f32 %v2853_v38, 0.0  ;;  %v2489_v38 = vpack.c.bf16 %v1011_v36, %v1009_v35  ;;  %v1044_v35 = vld [vmem:[%s4399_s7 + $0x180] sm:$0xff]  ;;  %v1046_v36 = vld [vmem:[%s4399_s7 + $0x190] sm:$0xff] }
 0x22f   :  { %v770_v45 = vmax.f32 %v2854_v44, 0.0  ;;  %v1015_v44 = vld [vmem:[%s4399_s7 + $0x98] sm:$0xff] }
 0x231   :  { %874 = vmatprep.mubr.f32.mxu1 %v770_v45  ;;  %v2491_v45 = vpack.c.bf16 %v1010_v41, %v1008_v39  ;;  %v2527_v39 = vpack.c.bf16 %v1046_v36, %v1044_v35  ;;  %v1082_v35 = vld [vmem:[%s4399_s7 + $0x2b0] sm:$0xff]  ;;  %v1085_v36 = vld [vmem:[%s4399_s7 + $0x2c8] sm:$0xff] }
 0x232   :  { %875 = vmatmul.mubr.f32.vlgmr.msra.gmra.mrb[0].mxu1 %v769_v48  ;;  %v1012_v48 = vld [vmem:[%s4399_s7 + $0x80] sm:$0xff] }
 0x233   :  { %2455 = vmatpush3.bf16.msra.mxu1 %v2454_v46  ;;  %2063 = vmatprep.mubr.msk.f32.mxu1 %vm2919_vm0, %v2920_v8  ;;  %v2493_v46 = vpack.c.bf16 %v1015_v44, %v1013_v43  ;;  %v2495_v52 = vpack.c.bf16 %v1014_v49, %v1012_v48  ;;  %v1048_v43 = vld [vmem:[%s4399_s7 + $0x1a0] sm:$0xff]  ;;  %v1050_v44 = vld [vmem:[%s4399_s7 + $0x1b0] sm:$0xff] }
 0x234   :  { %2456 = vmatprep.subr.bf16.mxu1 %v2918_v30  ;;  %v2531_v48 = vpack.c.bf16 %v1050_v44, %v1048_v43  ;;  %v1086_v43 = vld [vmem:[%s4399_s7 + $0x2d0] sm:$0xff]  ;;  %v1089_v44 = vld [vmem:[%s4399_s7 + $0x2e8] sm:$0xff] }
 0x237   :  { %2458 = vmatpush3.bf16.msra.mxu1 %v2457_v51  ;;  %v1019_v51 = vld [vmem:[%s4399_s7 + $0xb8] sm:$0xff] }
 0x238   :  { %2459 = vmatprep.subr.bf16.mxu1 %v2918_v30  ;;  %v2497_v53 = vpack.c.bf16 %v1019_v51, %v1017_v50  ;;  %v1052_v50 = vld [vmem:[%s4399_s7 + $0x1c0] sm:$0xff]  ;;  %v1054_v51 = vld [vmem:[%s4399_s7 + $0x1d0] sm:$0xff] }
 0x23b   :  { %2461 = vmatpush3.bf16.msra.mxu1 %v2460_v54  ;;  %v1016_v54 = vld [vmem:[%s4399_s7 + $0xa0] sm:$0xff] }
 0x23c   :  { %2462 = vmatprep.subr.bf16.mxu1 %v2918_v30  ;;  %v2499_v59 = vpack.c.bf16 %v1018_v55, %v1016_v54  ;;  %v2535_v54 = vpack.c.bf16 %v1054_v51, %v1052_v50  ;;  %v2887_v55 = vld [vmem:[%s4392_s0 + $0x8] sm:$0xff]  ;;  %v1090_v50 = vld [vmem:[%s4399_s7 + $0x2f0] sm:$0xff] }
 0x23d   :  { %v1093_v51 = vld [vmem:[%s4399_s7 + $0x308] sm:$0xff] }
 0x23f   :  { %2464 = vmatpush3.bf16.msra.mxu1 %v2463_v57  ;;  %v1023_v57 = vld [vmem:[%s4399_s7 + $0xd8] sm:$0xff] }
 0x240   :  { %2465 = vmatprep.subr.bf16.mxu1 %v2918_v30  ;;  %v2501_v60 = vpack.c.bf16 %v1023_v57, %v1021_v56  ;;  %v1921_v56 = vrot.slane %v2887_v55, 10 }
 0x243   :  { %2467 = vmatpush3.bf16.msra.mxu1 %v2466_v61  ;;  %v1020_v61 = vld [vmem:[%s4399_s7 + $0xc0] sm:$0xff] }
 0x244   :  { %2468 = vmatprep.subr.bf16.mxu1 %v2918_v30  ;;  %v2503_v42 = vpack.c.bf16 %v1022_v62, %v1020_v61  ;;  %v1061_v61 = vld [vmem:[%s4399_s7 + $0x208] sm:$0xff]  ;;  %v1063_v62 = vld [vmem:[%s4399_s7 + $0x218] sm:$0xff] }
 0x247   :  { %2470 = vmatpush3.bf16.msra.mxu1 %v2469_v11  ;;  %v1027_v11 = vld [vmem:[%s4399_s7 + $0xf8] sm:$0xff] }
 0x248   :  { %2471 = vmatprep.subr.bf16.mxu1 %v2918_v30  ;;  %v2505_v0 = vpack.c.bf16 %v1027_v11, %v1025_v63  ;;  %v3427_v11 = vmul.f32 %v2887_v55, %v1921_v56  ;;  %v1092_v55 = vld [vmem:[%s4399_s7 + $0x300] sm:$0xff]  ;;  %v1094_v56 = vld [vmem:[%s4399_s7 + $0x310] sm:$0xff] }
 0x24b   :  { %2473 = vmatpush3.bf16.msra.mxu1 %v2472_v1  ;;  %v1024_v1 = vld [vmem:[%s4399_s7 + $0xe0] sm:$0xff] }
 0x24c   :  { %2474 = vmatprep.subr.bf16.mxu1 %v2918_v30  ;;  %v2507_v5 = vpack.c.bf16 %v1026_v2, %v1024_v1  ;;  %v1062_v1 = vld [vmem:[%s4399_s7 + $0x210] sm:$0xff]  ;;  %v1065_v2 = vld [vmem:[%s4399_s7 + $0x228] sm:$0xff] }
 0x24f   :  { %2476 = vmatpush3.bf16.msra.mxu1 %v2475_v4  ;;  %v1031_v4 = vld [vmem:[%s4399_s7 + $0x118] sm:$0xff] }
 0x250   :  { %2478 = vmatprep.subr.bf16.mxu1 %v2477_v7  ;;  %v2509_v6 = vpack.c.bf16 %v1031_v4, %v1029_v3  ;;  %v1028_v7 = vld [vmem:[%s4399_s7 + $0x100] sm:$0xff]  ;;  %v1067_v3 = vld [vmem:[%s4399_s7 + $0x238] sm:$0xff] }
 0x305   :  { %v1959_v12 = vpop.f32.mrb[0].mxu1 }
 0x306   :  { %v1960_v14 = vpop.f32.mrb[1].mxu1 }
 0x307   :  { %v1961_v47 = vadd.f32 %v1960_v14, %v1959_v12  ;;  %v1035_v12 = vld [vmem:[%s4399_s7 + $0x138] sm:$0xff] }
 0x308   :  { %v2513_v14 = vpack.c.bf16 %v1035_v12, %v1033_v10  ;;  %v1069_v10 = vld [vmem:[%s4399_s7 + $0x248] sm:$0xff]  ;;  %v1071_v12 = vld [vmem:[%s4399_s7 + $0x258] sm:$0xff] }
 0x309   :  { %v877_v20 = vadd.f32 %v1961_v47, %v1918_v13  ;;  %v2511_v13 = vpack.c.bf16 %v1030_v9, %v1028_v7  ;;  %v1032_v47 = vld [vmem:[%s4399_s7 + $0x120] sm:$0xff]  ;;  %v1066_v9 = vld [vmem:[%s4399_s7 + $0x230] sm:$0xff] }
 0x30a   :  { %v2515_v19 = vpack.c.bf16 %v1034_v16, %v1032_v47  ;;  %v1064_v7 = vld [vmem:[%s4399_s7 + $0x220] sm:$0xff]  ;;  %v1070_v16 = vld [vmem:[%s4399_s7 + $0x250] sm:$0xff] }
 0x30b   :  { %v880_v23 = vmax.f32 %v877_v20, 0.0  ;;  %v2517_v20 = vpack.c.bf16 %v1039_v18, %v1037_v17  ;;  %v1068_v47 = vld [vmem:[%s4399_s7 + $0x240] sm:$0xff]  ;;  %v1073_v17 = vld [vmem:[%s4399_s7 + $0x268] sm:$0xff] }
 0x30c   :  { %v2551_v18 = vpack.c.bf16 %v1070_v16, %v1068_v47 }
 0x30d   :  { %2064 = vmatmul.mubr.f32.vlgmr.msra.gmra.mrb[2].mxu1 %v880_v23  ;;  %v1041_v23 = vld [vmem:[%s4399_s7 + $0x168] sm:$0xff] }
 0x30e   :  { %2480 = vmatpush1.bf16.msra.mxu1 %v2479_v21  ;;  %1407 = vmatprep.mubr.f32.mxu1 %v1333_v22  ;;  %v1036_v21 = vld [vmem:[%s4399_s7 + $0x140] sm:$0xff]  ;;  %v1038_v22 = vld [vmem:[%s4399_s7 + $0x150] sm:$0xff] }
 0x30f   :  { %2482 = vmatprep.subr.bf16.mxu1 %v2481_v24  ;;  %v1043_v24 = vld [vmem:[%s4399_s7 + $0x178] sm:$0xff]  ;;  %v2519_v25 = vpack.c.bf16 %v1038_v22, %v1036_v21  ;;  %v1074_v21 = vld [vmem:[%s4399_s7 + $0x270] sm:$0xff]  ;;  %v1077_v22 = vld [vmem:[%s4399_s7 + $0x288] sm:$0xff] }
 0x310   :  { %v2521_v26 = vpack.c.bf16 %v1043_v24, %v1041_v23  ;;  %v1079_v23 = vld [vmem:[%s4399_s7 + $0x298] sm:$0xff] }
 0x312   :  { %2484 = vmatpush1.bf16.msra.mxu1 %v2483_v28  ;;  %v1045_v28 = vld [vmem:[%s4399_s7 + $0x188] sm:$0xff] }
 0x313   :  { %2486 = vmatprep.subr.bf16.mxu1 %v2485_v29  ;;  %v1047_v29 = vld [vmem:[%s4399_s7 + $0x198] sm:$0xff] }
 0x314   :  { %v2525_v40 = vpack.c.bf16 %v1047_v29, %v1045_v28  ;;  %v1083_v28 = vld [vmem:[%s4399_s7 + $0x2b8] sm:$0xff] }
 0x316   :  { %2488 = vmatpush1.bf16.msra.mxu1 %v2487_v37  ;;  %v1049_v37 = vld [vmem:[%s4399_s7 + $0x1a8] sm:$0xff] }
 0x317   :  { %2490 = vmatprep.subr.bf16.mxu1 %v2489_v38  ;;  %v1051_v38 = vld [vmem:[%s4399_s7 + $0x1b8] sm:$0xff] }
 0x318   :  { %v2529_v41 = vpack.c.bf16 %v1051_v38, %v1049_v37  ;;  %v1087_v37 = vld [vmem:[%s4399_s7 + $0x2d8] sm:$0xff] }
 0x31a   :  { %2492 = vmatpush1.bf16.msra.mxu1 %v2491_v45  ;;  %v1053_v45 = vld [vmem:[%s4399_s7 + $0x1c8] sm:$0xff] }
 0x31b   :  { %2494 = vmatprep.subr.bf16.mxu1 %v2493_v46  ;;  %v1055_v46 = vld [vmem:[%s4399_s7 + $0x1d8] sm:$0xff] }
 0x31c   :  { %v2533_v49 = vpack.c.bf16 %v1055_v46, %v1053_v45  ;;  %v1091_v45 = vld [vmem:[%s4399_s7 + $0x2f8] sm:$0xff] }
 0x31e   :  { %2496 = vmatpush1.bf16.msra.mxu1 %v2495_v52  ;;  %v1057_v52 = vld [vmem:[%s4399_s7 + $0x1e8] sm:$0xff] }
 0x31f   :  { %2498 = vmatprep.subr.bf16.mxu1 %v2497_v53  ;;  %v1059_v53 = vld [vmem:[%s4399_s7 + $0x1f8] sm:$0xff] }
 0x320   :  { %v2537_v57 = vpack.c.bf16 %v1059_v53, %v1057_v52  ;;  %v1095_v52 = vld [vmem:[%s4399_s7 + $0x318] sm:$0xff] }
 0x322   :  { %2500 = vmatpush1.bf16.msra.mxu1 %v2499_v59  ;;  %v1056_v59 = vld [vmem:[%s4399_s7 + $0x1e0] sm:$0xff] }
 0x323   :  { %2502 = vmatprep.subr.bf16.mxu1 %v2501_v60  ;;  %v1058_v60 = vld [vmem:[%s4399_s7 + $0x1f0] sm:$0xff] }
 0x324   :  { %v2539_v63 = vpack.c.bf16 %v1058_v60, %v1056_v59  ;;  %v1099_v59 = vld [vmem:[%s4399_s7 + $0x338] sm:$0xff]  ;;  %v2575_v60 = vpack.c.bf16 %v1094_v56, %v1092_v55  ;;  %v1128_v55 = vld [vmem:[%s4399_s7 + $0x420] sm:$0xff]  ;;  %v1130_v56 = vld [vmem:[%s4399_s7 + $0x430] sm:$0xff] }
 0x326   :  { %2504 = vmatpush1.bf16.msra.mxu1 %v2503_v42  ;;  %v2541_v42 = vpack.c.bf16 %v1063_v62, %v1061_v61  ;;  %v1096_v62 = vld [vmem:[%s4399_s7 + $0x320] sm:$0xff] }
 0x327   :  { %2506 = vmatprep.subr.bf16.mxu1 %v2505_v0  ;;  %v1060_v0 = vld [vmem:[%s4399_s7 + $0x200] sm:$0xff] }
 0x328   :  { %v2543_v4 = vpack.c.bf16 %v1062_v1, %v1060_v0  ;;  %v1103_v0 = vld [vmem:[%s4399_s7 + $0x358] sm:$0xff] }
 0x32a   :  { %2508 = vmatpush1.bf16.msra.mxu1 %v2507_v5  ;;  %v1334_v5 = vcombine.high %v3427_v11, %v3427_v11 }
 0x32b   :  { %2510 = vmatprep.subr.bf16.mxu1 %v2509_v6  ;;  %v2545_v6 = vpack.c.bf16 %v1067_v3, %v1065_v2  ;;  %v1100_v3 = vld [vmem:[%s4399_s7 + $0x340] sm:$0xff] }
 0x32e   :  { %2512 = vmatpush1.bf16.msra.mxu1 %v2511_v13  ;;  %v2547_v13 = vpack.c.bf16 %v1066_v9, %v1064_v7 }
 0x32f   :  { %2514 = vmatprep.subr.bf16.mxu1 %v2513_v14  ;;  %v2549_v14 = vpack.c.bf16 %v1071_v12, %v1069_v10  ;;  %v1104_v10 = vld [vmem:[%s4399_s7 + $0x360] sm:$0xff]  ;;  %v1106_v12 = vld [vmem:[%s4399_s7 + $0x370] sm:$0xff] }
 0x330   :  { %v2587_v47 = vpack.c.bf16 %v1106_v12, %v1104_v10  ;;  %v1142_v10 = vld [vmem:[%s4399_s7 + $0x490] sm:$0xff]  ;;  %v1145_v12 = vld [vmem:[%s4399_s7 + $0x4a8] sm:$0xff] }
 0x332   :  { %2516 = vmatpush1.bf16.msra.mxu1 %v2515_v19 }
 0x333   :  { %2518 = vmatprep.subr.bf16.mxu1 %v2517_v20  ;;  %v1072_v20 = vld [vmem:[%s4399_s7 + $0x260] sm:$0xff] }
 0x334   :  { %v2555_v24 = vpack.c.bf16 %v1074_v21, %v1072_v20 }
 0x336   :  { %2520 = vmatpush1.bf16.msra.mxu1 %v2519_v25  ;;  %v2557_v25 = vpack.c.bf16 %v1079_v23, %v1077_v22  ;;  %v1112_v22 = vld [vmem:[%s4399_s7 + $0x3a0] sm:$0xff]  ;;  %v1114_v23 = vld [vmem:[%s4399_s7 + $0x3b0] sm:$0xff] }
 0x337   :  { %2522 = vmatprep.subr.bf16.mxu1 %v2521_v26  ;;  %v1076_v26 = vld [vmem:[%s4399_s7 + $0x280] sm:$0xff] }
 0x338   :  { %v2559_v29 = vpack.c.bf16 %v1078_v27, %v1076_v26  ;;  %v2595_v26 = vpack.c.bf16 %v1114_v23, %v1112_v22  ;;  %v1150_v22 = vld [vmem:[%s4399_s7 + $0x4d0] sm:$0xff]  ;;  %v1153_v23 = vld [vmem:[%s4399_s7 + $0x4e8] sm:$0xff] }
 0x33a   :  { %2524 = vmatpush1.bf16.msra.mxu1 %v2523_v31  ;;  %v2561_v31 = vpack.c.bf16 %v1083_v28, %v1081_v58  ;;  %v1116_v58 = vld [vmem:[%s4399_s7 + $0x3c0] sm:$0xff]  ;;  %v1118_v28 = vld [vmem:[%s4399_s7 + $0x3d0] sm:$0xff] }
 0x33b   :  { %2526 = vmatprep.subr.bf16.mxu1 %v2525_v40  ;;  %v1080_v40 = vld [vmem:[%s4399_s7 + $0x2a0] sm:$0xff] }
 0x33c   :  { %v2563_v38 = vpack.c.bf16 %v1082_v35, %v1080_v40  ;;  %v2599_v40 = vpack.c.bf16 %v1118_v28, %v1116_v58  ;;  %v2888_v35 = vld [vmem:[%s4392_s0 + $0x10] sm:$0xff]  ;;  %v1157_v28 = vld [vmem:[%s4399_s7 + $0x508] sm:$0xff] }
 0x33d   :  { %v1154_v58 = vld [vmem:[%s4399_s7 + $0x4f0] sm:$0xff] }
 0x33e   :  { %2528 = vmatpush1.bf16.msra.mxu1 %v2527_v39  ;;  %v2565_v39 = vpack.c.bf16 %v1087_v37, %v1085_v36  ;;  %v1922_v36 = vrot.slane %v2888_v35, 10 }
 0x33f   :  { %2530 = vmatprep.subr.bf16.mxu1 %v2529_v41  ;;  %v1084_v41 = vld [vmem:[%s4399_s7 + $0x2c0] sm:$0xff] }
 0x340   :  { %v2567_v46 = vpack.c.bf16 %v1086_v43, %v1084_v41  ;;  %v1125_v41 = vld [vmem:[%s4399_s7 + $0x408] sm:$0xff]  ;;  %v1127_v43 = vld [vmem:[%s4399_s7 + $0x418] sm:$0xff] }
 0x342   :  { %2532 = vmatpush1.bf16.msra.mxu1 %v2531_v48  ;;  %v2569_v48 = vpack.c.bf16 %v1091_v45, %v1089_v44  ;;  %v3627_v45 = vmul.f32 %v2888_v35, %v1922_v36  ;;  %v1156_v35 = vld [vmem:[%s4399_s7 + $0x500] sm:$0xff]  ;;  %v1158_v36 = vld [vmem:[%s4399_s7 + $0x510] sm:$0xff] }
 0x343   :  { %2534 = vmatprep.subr.bf16.mxu1 %v2533_v49  ;;  %v1088_v49 = vld [vmem:[%s4399_s7 + $0x2e0] sm:$0xff] }
 0x344   :  { %v2571_v53 = vpack.c.bf16 %v1090_v50, %v1088_v49  ;;  %v1126_v49 = vld [vmem:[%s4399_s7 + $0x410] sm:$0xff]  ;;  %v1129_v50 = vld [vmem:[%s4399_s7 + $0x428] sm:$0xff] }
 0x346   :  { %2536 = vmatpush1.bf16.msra.mxu1 %v2535_v54  ;;  %v2573_v54 = vpack.c.bf16 %v1095_v52, %v1093_v51  ;;  %v1131_v51 = vld [vmem:[%s4399_s7 + $0x438] sm:$0xff] }
 0x347   :  { %2538 = vmatprep.subr.bf16.mxu1 %v2537_v57  ;;  %v1097_v57 = vld [vmem:[%s4399_s7 + $0x328] sm:$0xff] }
 0x348   :  { %v2577_v61 = vpack.c.bf16 %v1099_v59, %v1097_v57  ;;  %v1133_v57 = vld [vmem:[%s4399_s7 + $0x448] sm:$0xff]  ;;  %v1135_v59 = vld [vmem:[%s4399_s7 + $0x458] sm:$0xff] }
 0x34a   :  { %2540 = vmatpush1.bf16.msra.mxu1 %v2539_v63  ;;  %v1098_v63 = vld [vmem:[%s4399_s7 + $0x330] sm:$0xff] }
 0x34b   :  { %2542 = vmatprep.subr.bf16.mxu1 %v2541_v42  ;;  %v1101_v42 = vld [vmem:[%s4399_s7 + $0x348] sm:$0xff]  ;;  %v2579_v1 = vpack.c.bf16 %v1098_v63, %v1096_v62  ;;  %v1132_v62 = vld [vmem:[%s4399_s7 + $0x440] sm:$0xff]  ;;  %v1134_v63 = vld [vmem:[%s4399_s7 + $0x450] sm:$0xff] }
 0x34c   :  { %v2581_v2 = vpack.c.bf16 %v1103_v0, %v1101_v42  ;;  %v1137_v42 = vld [vmem:[%s4399_s7 + $0x468] sm:$0xff]  ;;  %v2615_v0 = vpack.c.bf16 %v1134_v63, %v1132_v62 }
 0x34d   :  { %1408 = vmatmul.mubr.f32.vlgmr.msra.gmra.mrb[4].mxu1 %v3228_v15  ;;  %v1075_v15 = vld [vmem:[%s4399_s7 + $0x278] sm:$0xff] }
 0x34e   :  { %2544 = vmatpush1.bf16.msra.mxu1 %v2543_v4  ;;  %1478 = vmatprep.mubr.f32.mxu1 %v1334_v5  ;;  %v2553_v19 = vpack.c.bf16 %v1075_v15, %v1073_v17  ;;  %v1102_v4 = vld [vmem:[%s4399_s7 + $0x350] sm:$0xff]  ;;  %v1105_v5 = vld [vmem:[%s4399_s7 + $0x368] sm:$0xff]  ;;  %v1108_v17 = vld [vmem:[%s4399_s7 + $0x380] sm:$0xff] }
 0x34f   :  { %2546 = vmatprep.subr.bf16.mxu1 %v2545_v6  ;;  %v1107_v6 = vld [vmem:[%s4399_s7 + $0x378] sm:$0xff]  ;;  %v2583_v7 = vpack.c.bf16 %v1102_v4, %v1100_v3  ;;  %v1110_v15 = vld [vmem:[%s4399_s7 + $0x390] sm:$0xff]  ;;  %v1141_v4 = vld [vmem:[%s4399_s7 + $0x488] sm:$0xff] }
 0x350   :  { %v2585_v9 = vpack.c.bf16 %v1107_v6, %v1105_v5  ;;  %v2591_v20 = vpack.c.bf16 %v1110_v15, %v1108_v17  ;;  %v1138_v3 = vld [vmem:[%s4399_s7 + $0x470] sm:$0xff]  ;;  %v1143_v5 = vld [vmem:[%s4399_s7 + $0x498] sm:$0xff]  ;;  %v1149_v15 = vld [vmem:[%s4399_s7 + $0x4c8] sm:$0xff] }
 0x351   :  { %v1146_v17 = vld [vmem:[%s4399_s7 + $0x4b0] sm:$0xff] }
 0x352   :  { %2548 = vmatpush1.bf16.msra.mxu1 %v2547_v13  ;;  %v1109_v13 = vld [vmem:[%s4399_s7 + $0x388] sm:$0xff] }
 0x353   :  { %2550 = vmatprep.subr.bf16.mxu1 %v2549_v14  ;;  %v1111_v14 = vld [vmem:[%s4399_s7 + $0x398] sm:$0xff] }
 0x354   :  { %v2589_v16 = vpack.c.bf16 %v1111_v14, %v1109_v13  ;;  %v1147_v13 = vld [vmem:[%s4399_s7 + $0x4b8] sm:$0xff] }
 0x356   :  { %2552 = vmatpush1.bf16.msra.mxu1 %v2551_v18  ;;  %v1113_v18 = vld [vmem:[%s4399_s7 + $0x3a8] sm:$0xff] }
 0x357   :  { %2554 = vmatprep.subr.bf16.mxu1 %v2553_v19  ;;  %v1115_v19 = vld [vmem:[%s4399_s7 + $0x3b8] sm:$0xff] }
 0x358   :  { %v2593_v21 = vpack.c.bf16 %v1115_v19, %v1113_v18  ;;  %v1151_v18 = vld [vmem:[%s4399_s7 + $0x4d8] sm:$0xff] }
 0x35a   :  { %2556 = vmatpush1.bf16.msra.mxu1 %v2555_v24  ;;  %v1117_v24 = vld [vmem:[%s4399_s7 + $0x3c8] sm:$0xff] }
 0x35b   :  { %2558 = vmatprep.subr.bf16.mxu1 %v2557_v25  ;;  %v1119_v25 = vld [vmem:[%s4399_s7 + $0x3d8] sm:$0xff] }
 0x35c   :  { %v2597_v27 = vpack.c.bf16 %v1119_v25, %v1117_v24  ;;  %v1155_v24 = vld [vmem:[%s4399_s7 + $0x4f8] sm:$0xff] }
 0x35e   :  { %2560 = vmatpush1.bf16.msra.mxu1 %v2559_v29  ;;  %v1121_v29 = vld [vmem:[%s4399_s7 + $0x3e8] sm:$0xff] }
 0x35f   :  { %2562 = vmatprep.subr.bf16.mxu1 %v2561_v31  ;;  %v1123_v31 = vld [vmem:[%s4399_s7 + $0x3f8] sm:$0xff] }
 0x360   :  { %v2601_v37 = vpack.c.bf16 %v1123_v31, %v1121_v29  ;;  %v1159_v29 = vld [vmem:[%s4399_s7 + $0x518] sm:$0xff] }
 0x362   :  { %2564 = vmatpush1.bf16.msra.mxu1 %v2563_v38  ;;  %v1120_v38 = vld [vmem:[%s4399_s7 + $0x3e0] sm:$0xff] }
 0x363   :  { %2566 = vmatprep.subr.bf16.mxu1 %v2565_v39  ;;  %v1122_v39 = vld [vmem:[%s4399_s7 + $0x3f0] sm:$0xff] }
 0x364   :  { %v2603_v44 = vpack.c.bf16 %v1122_v39, %v1120_v38  ;;  %v1163_v38 = vld [vmem:[%s4399_s7 + $0x538] sm:$0xff]  ;;  %v2639_v39 = vpack.c.bf16 %v1158_v36, %v1156_v35  ;;  %v1192_v35 = vld [vmem:[%s4399_s7 + $0x620] sm:$0xff]  ;;  %v1194_v36 = vld [vmem:[%s4399_s7 + $0x630] sm:$0xff] }
 0x366   :  { %2568 = vmatpush1.bf16.msra.mxu1 %v2567_v46  ;;  %v2605_v46 = vpack.c.bf16 %v1127_v43, %v1125_v41  ;;  %v1160_v43 = vld [vmem:[%s4399_s7 + $0x520] sm:$0xff] }
 0x367   :  { %2570 = vmatprep.subr.bf16.mxu1 %v2569_v48  ;;  %v1124_v48 = vld [vmem:[%s4399_s7 + $0x400] sm:$0xff] }
 0x368   :  { %v2607_v52 = vpack.c.bf16 %v1126_v49, %v1124_v48  ;;  %v1167_v48 = vld [vmem:[%s4399_s7 + $0x558] sm:$0xff] }
 0x36a   :  { %2572 = vmatpush1.bf16.msra.mxu1 %v2571_v53  ;;  %v1335_v53 = vcombine.high %v3627_v45, %v3627_v45 }
 0x36b   :  { %2574 = vmatprep.subr.bf16.mxu1 %v2573_v54  ;;  %v2609_v54 = vpack.c.bf16 %v1131_v51, %v1129_v50  ;;  %v1164_v51 = vld [vmem:[%s4399_s7 + $0x540] sm:$0xff] }
 0x36e   :  { %2576 = vmatpush1.bf16.msra.mxu1 %v2575_v60  ;;  %v2611_v60 = vpack.c.bf16 %v1130_v56, %v1128_v55 }
 0x36f   :  { %2578 = vmatprep.subr.bf16.mxu1 %v2577_v61  ;;  %v2613_v61 = vpack.c.bf16 %v1135_v59, %v1133_v57  ;;  %v1168_v57 = vld [vmem:[%s4399_s7 + $0x560] sm:$0xff]  ;;  %v1170_v59 = vld [vmem:[%s4399_s7 + $0x570] sm:$0xff] }
 0x370   :  { %v2651_v62 = vpack.c.bf16 %v1170_v59, %v1168_v57  ;;  %v1720_v57 = vld [vmem:[%s4401_s9 + $0xa0] sm:$0xff]  ;;  %v1201_v59 = vld [vmem:[%s4399_s7 + $0x668] sm:$0xff] }
 0x372   :  { %2580 = vmatpush1.bf16.msra.mxu1 %v2579_v1 }
 0x373   :  { %2582 = vmatprep.subr.bf16.mxu1 %v2581_v2  ;;  %v1136_v2 = vld [vmem:[%s4399_s7 + $0x460] sm:$0xff] }
 0x374   :  { %v2619_v6 = vpack.c.bf16 %v1138_v3, %v1136_v2 }
 0x376   :  { %2584 = vmatpush1.bf16.msra.mxu1 %v2583_v7  ;;  %v2621_v7 = vpack.c.bf16 %v1143_v5, %v1141_v4  ;;  %v1176_v4 = vld [vmem:[%s4399_s7 + $0x5a0] sm:$0xff]  ;;  %v1178_v5 = vld [vmem:[%s4399_s7 + $0x5b0] sm:$0xff] }
 0x377   :  { %2586 = vmatprep.subr.bf16.mxu1 %v2585_v9  ;;  %v1140_v9 = vld [vmem:[%s4399_s7 + $0x480] sm:$0xff] }
 0x378   :  { %v2623_v14 = vpack.c.bf16 %v1142_v10, %v1140_v9  ;;  %v2659_v9 = vpack.c.bf16 %v1178_v5, %v1176_v4  ;;  %v1722_v4 = vld [vmem:[%s4401_s9 + $0xb0] sm:$0xff]  ;;  %v1723_v5 = vld [vmem:[%s4401_s9 + $0xb8] sm:$0xff] }
 0x37a   :  { %2588 = vmatpush1.bf16.msra.mxu1 %v2587_v47  ;;  %v2625_v47 = vpack.c.bf16 %v1147_v13, %v1145_v12  ;;  %v1180_v12 = vld [vmem:[%s4399_s7 + $0x5c0] sm:$0xff]  ;;  %v1182_v13 = vld [vmem:[%s4399_s7 + $0x5d0] sm:$0xff] }
 0x37b   :  { %2590 = vmatprep.subr.bf16.mxu1 %v2589_v16  ;;  %v1144_v16 = vld [vmem:[%s4399_s7 + $0x4a0] sm:$0xff] }
 0x37c   :  { %v2627_v19 = vpack.c.bf16 %v1146_v17, %v1144_v16  ;;  %v2663_v16 = vpack.c.bf16 %v1182_v13, %v1180_v12  ;;  %v2889_v17 = vld [vmem:[%s4392_s0 + $0x18] sm:$0xff]  ;;  %v1204_v12 = vld [vmem:[%s4399_s7 + $0x680] sm:$0xff]  ;;  %v2809_v13 = vpack.c.bf16 %v1723_v5, %v1722_v4 }
 0x37e   :  { %2592 = vmatpush1.bf16.msra.mxu1 %v2591_v20  ;;  %v2629_v20 = vpack.c.bf16 %v1151_v18, %v1149_v15  ;;  %v1923_v15 = vrot.slane %v2889_v17, 10 }
 0x37f   :  { %2594 = vmatprep.subr.bf16.mxu1 %v2593_v21  ;;  %v1148_v21 = vld [vmem:[%s4399_s7 + $0x4c0] sm:$0xff] }
 0x380   :  { %v2631_v25 = vpack.c.bf16 %v1150_v22, %v1148_v21  ;;  %v1189_v21 = vld [vmem:[%s4399_s7 + $0x608] sm:$0xff]  ;;  %v1191_v22 = vld [vmem:[%s4399_s7 + $0x618] sm:$0xff] }
 0x382   :  { %2596 = vmatpush1.bf16.msra.mxu1 %v2595_v26  ;;  %v2633_v26 = vpack.c.bf16 %v1155_v24, %v1153_v23  ;;  %v3827_v24 = vmul.f32 %v2889_v17, %v1923_v15  ;;  %v1206_v17 = vld [vmem:[%s4399_s7 + $0x690] sm:$0xff]  ;;  %v1724_v15 = vld [vmem:[%s4401_s9 + $0xc0] sm:$0xff] }
 0x383   :  { %2598 = vmatprep.subr.bf16.mxu1 %v2597_v27  ;;  %v1152_v27 = vld [vmem:[%s4399_s7 + $0x4e0] sm:$0xff] }
 0x384   :  { %v2635_v31 = vpack.c.bf16 %v1154_v58, %v1152_v27  ;;  %v1190_v27 = vld [vmem:[%s4399_s7 + $0x610] sm:$0xff]  ;;  %v1193_v58 = vld [vmem:[%s4399_s7 + $0x628] sm:$0xff] }
 0x386   :  { %2600 = vmatpush1.bf16.msra.mxu1 %v2599_v40  ;;  %v2637_v40 = vpack.c.bf16 %v1159_v29, %v1157_v28  ;;  %v1195_v28 = vld [vmem:[%s4399_s7 + $0x638] sm:$0xff] }
 0x387   :  { %2602 = vmatprep.subr.bf16.mxu1 %v2601_v37  ;;  %v1161_v37 = vld [vmem:[%s4399_s7 + $0x528] sm:$0xff] }
 0x388   :  { %v2641_v41 = vpack.c.bf16 %v1163_v38, %v1161_v37  ;;  %v1197_v37 = vld [vmem:[%s4399_s7 + $0x648] sm:$0xff]  ;;  %v1199_v38 = vld [vmem:[%s4399_s7 + $0x658] sm:$0xff] }
 0x38a   :  { %2604 = vmatpush1.bf16.msra.mxu1 %v2603_v44  ;;  %v1162_v44 = vld [vmem:[%s4399_s7 + $0x530] sm:$0xff] }
 0x38b   :  { %2606 = vmatprep.subr.bf16.mxu1 %v2605_v46  ;;  %v1165_v46 = vld [vmem:[%s4399_s7 + $0x548] sm:$0xff]  ;;  %v2643_v49 = vpack.c.bf16 %v1162_v44, %v1160_v43  ;;  %v1716_v43 = vld [vmem:[%s4401_s9 + $0x80] sm:$0xff] }
 0x38c   :  { %v2645_v50 = vpack.c.bf16 %v1167_v48, %v1165_v46  ;;  %v1717_v44 = vld [vmem:[%s4401_s9 + $0x88] sm:$0xff]  ;;  %v2675_v46 = vpack.c.bf16 %v1194_v36, %v1192_v35  ;;  %v1215_v35 = vld [vmem:[%s4399_s7 + $0x6d8] sm:$0xff]  ;;  %v1919_v36 = vld [vmem:[%s4398_s6] ss:$0 sm:$0xff] }
 0x38d   :  { %1479 = vmatmul.mubr.f32.vlgmr.msra.gmra.mrb[4].mxu1 %v3427_v11  ;;  %v1139_v11 = vld [vmem:[%s4399_s7 + $0x478] sm:$0xff]  ;;  %v2797_v48 = vpack.c.bf16 %v1717_v44, %v1716_v43  ;;  %v1710_v43 = vld [vmem:[%s4401_s9 + $0x50] sm:$0xff] }
 0x38e   :  { %2608 = vmatpush1.bf16.msra.mxu1 %v2607_v52  ;;  %1549 = vmatprep.mubr.f32.mxu1 %v1335_v53  ;;  %v2617_v1 = vpack.c.bf16 %v1139_v11, %v1137_v42  ;;  %v1166_v52 = vld [vmem:[%s4399_s7 + $0x550] sm:$0xff]  ;;  %v1169_v53 = vld [vmem:[%s4399_s7 + $0x568] sm:$0xff]  ;;  %v1172_v42 = vld [vmem:[%s4399_s7 + $0x580] sm:$0xff] }
 0x38f   :  { %2610 = vmatprep.subr.bf16.mxu1 %v2609_v54  ;;  %v1171_v54 = vld [vmem:[%s4399_s7 + $0x578] sm:$0xff]  ;;  %v2647_v55 = vpack.c.bf16 %v1166_v52, %v1164_v51  ;;  %v1174_v11 = vld [vmem:[%s4399_s7 + $0x590] sm:$0xff]  ;;  %v2677_v52 = vpack.c.bf16 %v1199_v38, %v1197_v37  ;;  %2798 = vmatprep.subr.bf16.mxu0 %v2797_v48  ;;  %v1728_v48 = vld [vmem:[%s4401_s9 + $0xe0] sm:$0xff] }
 0x390   :  { %v2649_v56 = vpack.c.bf16 %v1171_v54, %v1169_v53  ;;  %v2655_v2 = vpack.c.bf16 %v1174_v11, %v1172_v42  ;;  %v1719_v51 = vld [vmem:[%s4401_s9 + $0x98] sm:$0xff]  ;;  %v1200_v42 = vld [vmem:[%s4399_s7 + $0x660] sm:$0xff] }
 0x391   :  { %v1711_v44 = vld [vmem:[%s4401_s9 + $0x58] sm:$0xff] }
 0x392   :  { %2612 = vmatpush1.bf16.msra.mxu1 %v2611_v60  ;;  %v1173_v60 = vld [vmem:[%s4399_s7 + $0x588] sm:$0xff] }
 0x393   :  { %2614 = vmatprep.subr.bf16.mxu1 %v2613_v61  ;;  %v1175_v61 = vld [vmem:[%s4399_s7 + $0x598] sm:$0xff] }
 0x394   :  { %v2653_v63 = vpack.c.bf16 %v1175_v61, %v1173_v60  ;;  %v1203_v60 = vld [vmem:[%s4399_s7 + $0x678] sm:$0xff]  ;;  %v1721_v61 = vld [vmem:[%s4401_s9 + $0xa8] sm:$0xff] }
 0x395   :  { %v2805_v11 = vpack.c.bf16 %v1721_v61, %v1720_v57  ;;  %v1218_v61 = vld [vmem:[%s4399_s7 + $0x6f0] sm:$0xff] }
 0x396   :  { %2616 = vmatpush1.bf16.msra.mxu1 %v2615_v0  ;;  %v1177_v0 = vld [vmem:[%s4399_s7 + $0x5a8] sm:$0xff] }
 0x397   :  { %2618 = vmatprep.subr.bf16.mxu1 %v2617_v1  ;;  %v1179_v1 = vld [vmem:[%s4399_s7 + $0x5b8] sm:$0xff] }
 0x398   :  { %v2657_v3 = vpack.c.bf16 %v1179_v1, %v1177_v0  ;;  %v1704_v0 = vld [vmem:[%s4401_s9 + $0x20] sm:$0xff]  ;;  %v1705_v1 = vld [vmem:[%s4401_s9 + $0x28] sm:$0xff] }
 0x39a   :  { %2620 = vmatpush1.bf16.msra.mxu1 %v2619_v6  ;;  %v1181_v6 = vld [vmem:[%s4399_s7 + $0x5c8] sm:$0xff] }
 0x39b   :  { %2622 = vmatprep.subr.bf16.mxu1 %v2621_v7  ;;  %v1183_v7 = vld [vmem:[%s4399_s7 + $0x5d8] sm:$0xff] }
 0x39c   :  { %v2661_v10 = vpack.c.bf16 %v1183_v7, %v1181_v6  ;;  %v1205_v6 = vld [vmem:[%s4399_s7 + $0x688] sm:$0xff]  ;;  %v1207_v7 = vld [vmem:[%s4399_s7 + $0x698] sm:$0xff] }
 0x39e   :  { %2624 = vmatpush1.bf16.msra.mxu1 %v2623_v14  ;;  %v1185_v14 = vld [vmem:[%s4399_s7 + $0x5e8] sm:$0xff] }
 0x39f   :  { %2626 = vmatprep.subr.bf16.mxu1 %v2625_v47  ;;  %v1187_v47 = vld [vmem:[%s4399_s7 + $0x5f8] sm:$0xff] }
 0x3a0   :  { %v2665_v18 = vpack.c.bf16 %v1187_v47, %v1185_v14  ;;  %v1706_v14 = vld [vmem:[%s4401_s9 + $0x30] sm:$0xff]  ;;  %v1707_v47 = vld [vmem:[%s4401_s9 + $0x38] sm:$0xff] }
 0x3a2   :  { %2628 = vmatpush1.bf16.msra.mxu1 %v2627_v19  ;;  %v1184_v19 = vld [vmem:[%s4399_s7 + $0x5e0] sm:$0xff] }
 0x3a3   :  { %2630 = vmatprep.subr.bf16.mxu1 %v2629_v20  ;;  %v1186_v20 = vld [vmem:[%s4399_s7 + $0x5f0] sm:$0xff] }
 0x3a4   :  { %v2667_v23 = vpack.c.bf16 %v1186_v20, %v1184_v19  ;;  %v1209_v19 = vld [vmem:[%s4399_s7 + $0x6a8] sm:$0xff]  ;;  %v1211_v20 = vld [vmem:[%s4399_s7 + $0x6b8] sm:$0xff] }
 0x3a6   :  { %2632 = vmatpush1.bf16.msra.mxu1 %v2631_v25  ;;  %v2669_v25 = vpack.c.bf16 %v1191_v22, %v1189_v21  ;;  %v2811_v21 = vpack.c.bf16 %v1707_v47, %v1706_v14  ;;  %v2687_v22 = vpack.c.bf16 %v1206_v17, %v1204_v12  ;;  %v1228_v14 = vld [vmem:[%s4399_s7 + $0x740] sm:$0xff]  ;;  %v1230_v47 = vld [vmem:[%s4399_s7 + $0x750] sm:$0xff]  ;;  %v1235_v17 = vld [vmem:[%s4399_s7 + $0x778] sm:$0xff] }
 0x3a7   :  { %2634 = vmatprep.subr.bf16.mxu1 %v2633_v26  ;;  %v1188_v26 = vld [vmem:[%s4399_s7 + $0x600] sm:$0xff] }
 0x3a8   :  { %v2671_v29 = vpack.c.bf16 %v1190_v27, %v1188_v26  ;;  %v1708_v26 = vld [vmem:[%s4401_s9 + $0x40] sm:$0xff]  ;;  %v1709_v27 = vld [vmem:[%s4401_s9 + $0x48] sm:$0xff] }
 0x3a9   :  { %v2815_v37 = vpack.c.bf16 %v1709_v27, %v1708_v26  ;;  %v1236_v26 = vld [vmem:[%s4399_s7 + $0x780] sm:$0xff]  ;;  %v1238_v27 = vld [vmem:[%s4399_s7 + $0x790] sm:$0xff] }
 0x3aa   :  { %2636 = vmatpush1.bf16.msra.mxu1 %v2635_v31  ;;  %v1336_v31 = vcombine.high %v3827_v24, %v3827_v24 }
 0x3ab   :  { %2638 = vmatprep.subr.bf16.mxu1 %v2637_v40  ;;  %v2673_v40 = vpack.c.bf16 %v1195_v28, %v1193_v58  ;;  %v2689_v58 = vpack.c.bf16 %v1211_v20, %v1209_v19  ;;  %v1210_v28 = vld [vmem:[%s4399_s7 + $0x6b0] sm:$0xff]  ;;  %v1232_v19 = vld [vmem:[%s4399_s7 + $0x760] sm:$0xff] }
 0x3ac   :  { %v1234_v20 = vld [vmem:[%s4399_s7 + $0x770] sm:$0xff] }
 0x3ae   :  { %2640 = vmatpush1.bf16.msra.mxu1 %v2639_v39  ;;  %v1196_v39 = vld [vmem:[%s4399_s7 + $0x640] sm:$0xff] }
 0x3af   :  { %2642 = vmatprep.subr.bf16.mxu1 %v2641_v41  ;;  %v1198_v41 = vld [vmem:[%s4399_s7 + $0x650] sm:$0xff] }
 0x3b2   :  { %2644 = vmatpush1.bf16.msra.mxu1 %v2643_v49  ;;  %v1701_v49 = vld [vmem:[%s4401_s9 + $0x8] sm:$0xff] }
 0x3b3   :  { %2646 = vmatprep.subr.bf16.mxu1 %v2645_v50  ;;  %v1718_v50 = vld [vmem:[%s4401_s9 + $0x90] sm:$0xff] }
 0x3b4   :  { %v2801_v54 = vpack.c.bf16 %v1719_v51, %v1718_v50  ;;  %v1217_v51 = vld [vmem:[%s4399_s7 + $0x6e8] sm:$0xff] }
 0x3b6   :  { %2648 = vmatpush1.bf16.msra.mxu1 %v2647_v55  ;;  %v1702_v55 = vld [vmem:[%s4401_s9 + $0x10] sm:$0xff] }
 0x3b7   :  { %2650 = vmatprep.subr.bf16.mxu1 %v2649_v56  ;;  %v1703_v56 = vld [vmem:[%s4401_s9 + $0x18] sm:$0xff] }
 0x3ba   :  { %2652 = vmatpush1.bf16.msra.mxu1 %v2651_v62  ;;  %v2803_v62 = vpack.c.bf16 %v1703_v56, %v1702_v55  ;;  %v2819_v55 = vpack.c.bf16 %v1711_v44, %v1710_v43  ;;  %v1246_v43 = vld [vmem:[%s4399_s7 + $0x7d0] sm:$0xff]  ;;  %v1249_v44 = vld [vmem:[%s4399_s7 + $0x7e8] sm:$0xff] }
 0x3bb   :  { %2654 = vmatprep.subr.bf16.mxu1 %v2653_v63  ;;  %v2679_v63 = vpack.c.bf16 %v1198_v41, %v1196_v39  ;;  %v1212_v39 = vld [vmem:[%s4399_s7 + $0x6c0] sm:$0xff] }
 0x3be   :  { %2656 = vmatpush1.bf16.msra.mxu1 %v2655_v2  ;;  %v2681_v2 = vpack.c.bf16 %v1203_v60, %v1201_v59  ;;  %v1216_v60 = vld [vmem:[%s4399_s7 + $0x6e0] sm:$0xff] }
 0x3bf   :  { %2658 = vmatprep.subr.bf16.mxu1 %v2657_v3  ;;  %v1202_v3 = vld [vmem:[%s4399_s7 + $0x670] sm:$0xff] }
 0x3c2   :  { %2660 = vmatpush1.bf16.msra.mxu1 %v2659_v9  ;;  %v2807_v9 = vpack.c.bf16 %v1705_v1, %v1704_v0  ;;  %v1220_v0 = vld [vmem:[%s4399_s7 + $0x700] sm:$0xff]  ;;  %v1222_v1 = vld [vmem:[%s4399_s7 + $0x710] sm:$0xff] }
 0x3c3   :  { %2662 = vmatprep.subr.bf16.mxu1 %v2661_v10  ;;  %v2683_v10 = vpack.c.bf16 %v1202_v3, %v1200_v42  ;;  %v2699_v42 = vpack.c.bf16 %v1218_v61, %v1216_v60  ;;  %v1227_v3 = vld [vmem:[%s4399_s7 + $0x738] sm:$0xff]  ;;  %v2703_v4 = vpack.c.bf16 %v1222_v1, %v1220_v0  ;;  %v1254_v60 = vld [vmem:[%s4399_s7 + $0x810] sm:$0xff]  ;;  %v1257_v61 = vld [vmem:[%s4399_s7 + $0x828] sm:$0xff] }
 0x3c4   :  { %v1256_v0 = vld [vmem:[%s4399_s7 + $0x820] sm:$0xff]  ;;  %v1258_v1 = vld [vmem:[%s4399_s7 + $0x830] sm:$0xff] }
 0x3c6   :  { %2664 = vmatpush1.bf16.msra.mxu1 %v2663_v16  ;;  %v2685_v16 = vpack.c.bf16 %v1207_v7, %v1205_v6  ;;  %v1224_v6 = vld [vmem:[%s4399_s7 + $0x720] sm:$0xff]  ;;  %v1226_v7 = vld [vmem:[%s4399_s7 + $0x730] sm:$0xff] }
 0x3c7   :  { %2666 = vmatprep.subr.bf16.mxu1 %v2665_v18  ;;  %v1725_v18 = vld [vmem:[%s4401_s9 + $0xc8] sm:$0xff]  ;;  %v2707_v12 = vpack.c.bf16 %v1226_v7, %v1224_v6  ;;  %v1260_v6 = vld [vmem:[%s4399_s7 + $0x840] sm:$0xff]  ;;  %v1262_v7 = vld [vmem:[%s4399_s7 + $0x850] sm:$0xff] }
 0x3ca   :  { %2668 = vmatpush1.bf16.msra.mxu1 %v2667_v23  ;;  %v1208_v23 = vld [vmem:[%s4399_s7 + $0x6a0] sm:$0xff] }
 0x3cb   :  { %2670 = vmatprep.subr.bf16.mxu1 %v2669_v25  ;;  %v2813_v25 = vpack.c.bf16 %v1725_v18, %v1724_v15  ;;  %v2691_v38 = vpack.c.bf16 %v1210_v28, %v1208_v23  ;;  %v2711_v15 = vpack.c.bf16 %v1230_v47, %v1228_v14  ;;  %v2715_v23 = vpack.c.bf16 %v1234_v20, %v1232_v19  ;;  %v1243_v28 = vld [vmem:[%s4399_s7 + $0x7b8] sm:$0xff]  ;;  %v1266_v14 = vld [vmem:[%s4399_s7 + $0x870] sm:$0xff]  ;;  %v1269_v47 = vld [vmem:[%s4399_s7 + $0x888] sm:$0xff] }
 0x3cc   :  { %v1270_v19 = vld [vmem:[%s4399_s7 + $0x890] sm:$0xff]  ;;  %v1273_v20 = vld [vmem:[%s4399_s7 + $0x8a8] sm:$0xff] }
 0x3cd   :  { %1550 = vmatmul.mubr.f32.vlgmr.msra.gmra.mrb[4].mxu1 %v3627_v45  ;;  %v1700_v45 = vld [vmem:[%s4401_s9] sm:$0xff] }
 0x3ce   :  { %2672 = vmatpush1.bf16.msra.mxu1 %v2671_v29  ;;  %1620 = vmatprep.mubr.f32.mxu1 %v1336_v31  ;;  %v2799_v53 = vpack.c.bf16 %v1701_v49, %v1700_v45  ;;  %v1726_v29 = vld [vmem:[%s4401_s9 + $0xd0] sm:$0xff]  ;;  %v1727_v31 = vld [vmem:[%s4401_s9 + $0xd8] sm:$0xff]  ;;  %v1729_v49 = vld [vmem:[%s4401_s9 + $0xe8] sm:$0xff] }
 0x3cf   :  { %2674 = vmatprep.subr.bf16.mxu1 %v2673_v40  ;;  %v1213_v40 = vld [vmem:[%s4399_s7 + $0x6c8] sm:$0xff]  ;;  %v2817_v41 = vpack.c.bf16 %v1727_v31, %v1726_v29  ;;  %v2821_v57 = vpack.c.bf16 %v1729_v49, %v1728_v48  ;;  %v2719_v29 = vpack.c.bf16 %v1238_v27, %v1236_v26  ;;  %v2890_v48 = vld [vmem:[%s4392_s0 + $0x20] sm:$0xff]  ;;  %v1274_v26 = vld [vmem:[%s4399_s7 + $0x8b0] sm:$0xff] }
 0x3d0   :  { %2800 = vmatpush3.bf16.msra.mxu0 %v2799_v53  ;;  %v2693_v45 = vpack.c.bf16 %v1215_v35, %v1213_v40  ;;  %v1240_v40 = vld [vmem:[%s4399_s7 + $0x7a0] sm:$0xff]  ;;  %v1242_v35 = vld [vmem:[%s4399_s7 + $0x7b0] sm:$0xff]  ;;  %v1924_v49 = vrot.slane %v2890_v48, 10  ;;  %v1277_v27 = vld [vmem:[%s4399_s7 + $0x8c8] sm:$0xff] }
 0x3d1   :  { %2802 = vmatprep.subr.bf16.mxu0 %v2801_v54 }
 0x3d2   :  { %2676 = vmatpush1.bf16.msra.mxu1 %v2675_v46  ;;  %v1214_v46 = vld [vmem:[%s4399_s7 + $0x6d0] sm:$0xff] }
 0x3d3   :  { %2678 = vmatprep.subr.bf16.mxu1 %v2677_v52  ;;  %v1219_v52 = vld [vmem:[%s4399_s7 + $0x6f8] sm:$0xff]  ;;  %v2695_v56 = vpack.c.bf16 %v1214_v46, %v1212_v39 }
 0x3d4   :  { %2804 = vmatpush3.bf16.msra.mxu0 %v2803_v62  ;;  %v2697_v59 = vpack.c.bf16 %v1219_v52, %v1217_v51  ;;  %v1221_v62 = vld [vmem:[%s4399_s7 + $0x708] sm:$0xff]  ;;  %v1248_v51 = vld [vmem:[%s4399_s7 + $0x7e0] sm:$0xff]  ;;  %v1250_v52 = vld [vmem:[%s4399_s7 + $0x7f0] sm:$0xff] }
 0x3d5   :  { %2806 = vmatprep.subr.bf16.mxu0 %v2805_v11 }
 0x3d6   :  { %2680 = vmatpush1.bf16.msra.mxu1 %v2679_v63  ;;  %v1223_v63 = vld [vmem:[%s4399_s7 + $0x718] sm:$0xff] }
 0x3d7   :  { %2682 = vmatprep.subr.bf16.mxu1 %v2681_v2  ;;  %v2701_v11 = vpack.c.bf16 %v1223_v63, %v1221_v62  ;;  %v1225_v2 = vld [vmem:[%s4399_s7 + $0x728] sm:$0xff]  ;;  %v1259_v62 = vld [vmem:[%s4399_s7 + $0x838] sm:$0xff] }
 0x3d8   :  { %2808 = vmatpush3.bf16.msra.mxu0 %v2807_v9  ;;  %v2705_v5 = vpack.c.bf16 %v1227_v3, %v1225_v2  ;;  %v1229_v9 = vld [vmem:[%s4399_s7 + $0x748] sm:$0xff]  ;;  %v1263_v3 = vld [vmem:[%s4399_s7 + $0x858] sm:$0xff] }
 0x3d9   :  { %2810 = vmatprep.subr.bf16.mxu0 %v2809_v13  ;;  %v1261_v2 = vld [vmem:[%s4399_s7 + $0x848] sm:$0xff] }
 0x3da   :  { %2684 = vmatpush1.bf16.msra.mxu1 %v2683_v10  ;;  %v1231_v10 = vld [vmem:[%s4399_s7 + $0x758] sm:$0xff] }
 0x3db   :  { %2686 = vmatprep.subr.bf16.mxu1 %v2685_v16  ;;  %v2709_v13 = vpack.c.bf16 %v1231_v10, %v1229_v9  ;;  %v1233_v16 = vld [vmem:[%s4399_s7 + $0x768] sm:$0xff]  ;;  %v2743_v10 = vpack.c.bf16 %v1262_v7, %v1260_v6 }
 0x3dc   :  { %2812 = vmatpush3.bf16.msra.mxu0 %v2811_v21  ;;  %v2713_v18 = vpack.c.bf16 %v1235_v17, %v1233_v16  ;;  %v1237_v21 = vld [vmem:[%s4399_s7 + $0x788] sm:$0xff]  ;;  %v1271_v16 = vld [vmem:[%s4399_s7 + $0x898] sm:$0xff] }
 0x3dd   :  { %2814 = vmatprep.subr.bf16.mxu0 %v2813_v25  ;;  %v1265_v9 = vld [vmem:[%s4399_s7 + $0x868] sm:$0xff] }
 0x3de   :  { %2688 = vmatpush1.bf16.msra.mxu1 %v2687_v22  ;;  %v1239_v22 = vld [vmem:[%s4399_s7 + $0x798] sm:$0xff] }
 0x3df   :  { %2690 = vmatprep.subr.bf16.mxu1 %v2689_v58  ;;  %v2717_v25 = vpack.c.bf16 %v1239_v22, %v1237_v21  ;;  %v1241_v58 = vld [vmem:[%s4399_s7 + $0x7a8] sm:$0xff]  ;;  %v1275_v21 = vld [vmem:[%s4399_s7 + $0x8b8] sm:$0xff] }
 0x3e0   :  { %v970_v50 = vpop.f32.mrb[2].mxu1  ;;  %2816 = vmatpush3.bf16.msra.mxu0 %v2815_v37  ;;  %v2721_v31 = vpack.c.bf16 %v1243_v28, %v1241_v58  ;;  %v1247_v37 = vld [vmem:[%s4399_s7 + $0x7d8] sm:$0xff] }
 0x3e1   :  { %v971_v53 = vadd.f32 %v1919_v36, %v970_v50  ;;  %v2065_v54 = vpop.f32.mrb[3].mxu1  ;;  %2818 = vmatprep.subr.bf16.mxu0 %v2817_v41  ;;  %v1245_v36 = vld [vmem:[%s4399_s7 + $0x7c8] sm:$0xff]  ;;  %v1244_v41 = vld [vmem:[%s4399_s7 + $0x7c0] sm:$0xff]  ;;  %v1279_v58 = vld [vmem:[%s4399_s7 + $0x8d8] sm:$0xff] }
 0x3e2   :  { %2692 = vmatpush1.bf16.msra.mxu1 %v2691_v38  ;;  %v2723_v38 = vpack.c.bf16 %v1242_v35, %v1240_v40  ;;  %v2725_v39 = vpack.c.bf16 %v1247_v37, %v1245_v36  ;;  %v2727_v46 = vpack.c.bf16 %v1246_v43, %v1244_v41  ;;  %v1255_v54 = vld [vmem:[%s4399_s7 + $0x818] sm:$0xff]  ;;  %v1278_v40 = vld [vmem:[%s4399_s7 + $0x8d0] sm:$0xff]  ;;  %v1281_v35 = vld [vmem:[%s4399_s7 + $0x8e8] sm:$0xff] }
 0x3e3   :  { %975 = vst.msk [vmem:[%s4406_s14] sm:$0xf] %vm974_vm1, %v971_v53  ;;  %2694 = vmatprep.subr.bf16.mxu1 %v2693_v45  ;;  %v1251_v45 = vld [vmem:[%s4399_s7 + $0x7f8] sm:$0xff]  ;;  %v1253_v53 = vld [vmem:[%s4399_s7 + $0x808] sm:$0xff]  ;;  %v1282_v41 = vld [vmem:[%s4399_s7 + $0x8f0] sm:$0xff] }
 0x3e4   :  { %2820 = vmatpush3.bf16.msra.mxu0 %v2819_v55  ;;  %v2729_v50 = vpack.c.bf16 %v1251_v45, %v1249_v44  ;;  %v2731_v55 = vpack.c.bf16 %v1250_v52, %v1248_v51  ;;  %v1283_v36 = vld [vmem:[%s4399_s7 + $0x8f8] sm:$0xff]  ;;  %v1285_v43 = vld [vmem:[%s4399_s7 + $0x908] sm:$0xff] }
 0x3e5   :  { %2822 = vmatprep.subr.bf16.mxu0 %v2821_v57  ;;  %v2733_v57 = vpack.c.bf16 %v1255_v54, %v1253_v53  ;;  %v1287_v44 = vld [vmem:[%s4399_s7 + $0x918] sm:$0xff]  ;;  %v1288_v54 = vld [vmem:[%s4399_s7 + $0x920] sm:$0xff] }
 0x3e6   :  { %2696 = vmatpush1.bf16.msra.mxu1 %v2695_v56  ;;  %v4111_v56 = vmul.f32 %v2890_v48, %v1924_v49  ;;  %v1284_v48 = vld [vmem:[%s4399_s7 + $0x900] sm:$0xff]  ;;  %v1286_v49 = vld [vmem:[%s4399_s7 + $0x910] sm:$0xff]  ;;  %v1291_v51 = vld [vmem:[%s4399_s7 + $0x938] sm:$0xff] }
 0x3e7   :  { %2698 = vmatprep.subr.bf16.mxu1 %v2697_v59  ;;  %v1252_v59 = vld [vmem:[%s4399_s7 + $0x800] sm:$0xff]  ;;  %v2767_v52 = vpack.c.bf16 %v1286_v49, %v1284_v48 }
 0x3e8   :  { %v2735_v63 = vpack.c.bf16 %v1254_v60, %v1252_v59  ;;  %v1295_v59 = vld [vmem:[%s4399_s7 + $0x958] sm:$0xff]  ;;  %v1810_v49 = vld [vmem:[%s4403_s11] sm:$0xff] }
 0x3ea   :  { %2700 = vmatpush1.bf16.msra.mxu1 %v2699_v42  ;;  %v1337_v42 = vcombine.high %v4111_v56, %v4111_v56 }
 0x3eb   :  { %2702 = vmatprep.subr.bf16.mxu1 %v2701_v11  ;;  %v2737_v11 = vpack.c.bf16 %v1259_v62, %v1257_v61  ;;  %v1292_v62 = vld [vmem:[%s4399_s7 + $0x940] sm:$0xff] }
 0x3ee   :  { %2704 = vmatpush1.bf16.msra.mxu1 %v2703_v4  ;;  %v2739_v4 = vpack.c.bf16 %v1258_v1, %v1256_v0 }
 0x3ef   :  { %2706 = vmatprep.subr.bf16.mxu1 %v2705_v5  ;;  %v2741_v5 = vpack.c.bf16 %v1263_v3, %v1261_v2  ;;  %v1296_v2 = vld [vmem:[%s4399_s7 + $0x960] sm:$0xff]  ;;  %v1298_v3 = vld [vmem:[%s4399_s7 + $0x970] sm:$0xff] }
 0x3f0   :  { %v2779_v6 = vpack.c.bf16 %v1298_v3, %v1296_v2  ;;  %v1822_v2 = vld [vmem:[%s4403_s11 + $0x60] sm:$0xff]  ;;  %v1823_v3 = vld [vmem:[%s4403_s11 + $0x68] sm:$0xff] }
 0x3f2   :  { %2708 = vmatpush1.bf16.msra.mxu1 %v2707_v12 }
 0x3f3   :  { %2710 = vmatprep.subr.bf16.mxu1 %v2709_v13  ;;  %v1264_v13 = vld [vmem:[%s4399_s7 + $0x860] sm:$0xff] }
 0x3f4   :  { %v2747_v17 = vpack.c.bf16 %v1266_v14, %v1264_v13 }
 0x3f6   :  { %2712 = vmatpush1.bf16.msra.mxu1 %v2711_v15  ;;  %v2749_v15 = vpack.c.bf16 %v1271_v16, %v1269_v47  ;;  %v1304_v47 = vld [vmem:[%s4399_s7 + $0x9a0] sm:$0xff]  ;;  %v1306_v16 = vld [vmem:[%s4399_s7 + $0x9b0] sm:$0xff] }
 0x3f7   :  { %2714 = vmatprep.subr.bf16.mxu1 %v2713_v18  ;;  %v1268_v18 = vld [vmem:[%s4399_s7 + $0x880] sm:$0xff] }
 0x3f8   :  { %v2751_v22 = vpack.c.bf16 %v1270_v19, %v1268_v18  ;;  %v2787_v18 = vpack.c.bf16 %v1306_v16, %v1304_v47 }
 0x3fa   :  { %2716 = vmatpush1.bf16.msra.mxu1 %v2715_v23  ;;  %v2753_v23 = vpack.c.bf16 %v1275_v21, %v1273_v20  ;;  %v1308_v20 = vld [vmem:[%s4399_s7 + $0x9c0] sm:$0xff]  ;;  %v1310_v21 = vld [vmem:[%s4399_s7 + $0x9d0] sm:$0xff] }
 0x3fb   :  { %2718 = vmatprep.subr.bf16.mxu1 %v2717_v25  ;;  %v1272_v25 = vld [vmem:[%s4399_s7 + $0x8a0] sm:$0xff] }
 0x3fc   :  { %v2755_v28 = vpack.c.bf16 %v1274_v26, %v1272_v25  ;;  %v2791_v25 = vpack.c.bf16 %v1310_v21, %v1308_v20 }
 0x3fe   :  { %2720 = vmatpush1.bf16.msra.mxu1 %v2719_v29  ;;  %v2757_v29 = vpack.c.bf16 %v1279_v58, %v1277_v27  ;;  %v1312_v27 = vld [vmem:[%s4399_s7 + $0x9e0] sm:$0xff]  ;;  %v1314_v58 = vld [vmem:[%s4399_s7 + $0x9f0] sm:$0xff] }
 0x3ff   :  { %2722 = vmatprep.subr.bf16.mxu1 %v2721_v31  ;;  %v1276_v31 = vld [vmem:[%s4399_s7 + $0x8c0] sm:$0xff] }
 0x400   :  { %v2759_v37 = vpack.c.bf16 %v1278_v40, %v1276_v31  ;;  %v1713_v31 = vld [vmem:[%s4401_s9 + $0x68] sm:$0xff] }
 0x402   :  { %2724 = vmatpush1.bf16.msra.mxu1 %v2723_v38  ;;  %v2761_v38 = vpack.c.bf16 %v1283_v36, %v1281_v35  ;;  %v1730_v35 = vld [vmem:[%s4401_s9 + $0xf0] sm:$0xff]  ;;  %v1731_v36 = vld [vmem:[%s4401_s9 + $0xf8] sm:$0xff] }
 0x403   :  { %2726 = vmatprep.subr.bf16.mxu1 %v2725_v39  ;;  %v1280_v39 = vld [vmem:[%s4399_s7 + $0x8e0] sm:$0xff] }
 0x404   :  { %v2763_v45 = vpack.c.bf16 %v1282_v41, %v1280_v39  ;;  %v1316_v41 = vld [vmem:[%s4400_s8] sm:$0x3] }
 0x406   :  { %2728 = vmatpush1.bf16.msra.mxu1 %v2727_v46  ;;  %v2765_v46 = vpack.c.bf16 %v1287_v44, %v1285_v43  ;;  %v1321_v43 = vrot.slane %v1316_v41, %v391_v33  ;;  %v1325_v44 = vrot.slane %v1316_v41, %v395_v34  ;;  %v1813_v33 = vld [vmem:[%s4403_s11 + $0x18] sm:$0xff] }
 0x407   :  { %2730 = vmatprep.subr.bf16.mxu1 %v2729_v50  ;;  %v1289_v50 = vld [vmem:[%s4399_s7 + $0x928] sm:$0xff]  ;;  %v2833_v34 = vpack.c.bf16 %v1813_v33, %v1812_v32 }
 0x408   :  { %v2769_v53 = vpack.c.bf16 %v1291_v51, %v1289_v50  ;;  %v1811_v50 = vld [vmem:[%s4403_s11 + $0x8] sm:$0xff] }
 0x40a   :  { %2732 = vmatpush1.bf16.msra.mxu1 %v2731_v55  ;;  %v1290_v55 = vld [vmem:[%s4399_s7 + $0x930] sm:$0xff] }
 0x40b   :  { %2734 = vmatprep.subr.bf16.mxu1 %v2733_v57  ;;  %v1293_v57 = vld [vmem:[%s4399_s7 + $0x948] sm:$0xff]  ;;  %v2771_v60 = vpack.c.bf16 %v1290_v55, %v1288_v54  ;;  %v1814_v55 = vld [vmem:[%s4403_s11 + $0x20] sm:$0xff] }
 0x40c   :  { %v2773_v61 = vpack.c.bf16 %v1295_v59, %v1293_v57  ;;  %v1815_v57 = vld [vmem:[%s4403_s11 + $0x28] sm:$0xff] }
 0x40d   :  { %1621 = vmatmul.mubr.f32.vlgmr.msra.gmra.mrb[4].mxu1 %v3827_v24  ;;  %v1267_v24 = vld [vmem:[%s4399_s7 + $0x878] sm:$0xff]  ;;  %v2836_v59 = vpack.c.bf16 %v1815_v57, %v1814_v55 }
 0x40e   :  { %2736 = vmatpush1.bf16.msra.mxu1 %v2735_v63  ;;  %1691 = vmatprep.mubr.f32.mxu1 %v1337_v42  ;;  %v2745_v12 = vpack.c.bf16 %v1267_v24, %v1265_v9  ;;  %v1294_v63 = vld [vmem:[%s4399_s7 + $0x950] sm:$0xff]  ;;  %v1297_v42 = vld [vmem:[%s4399_s7 + $0x968] sm:$0xff]  ;;  %v1300_v9 = vld [vmem:[%s4399_s7 + $0x980] sm:$0xff] }
 0x40f   :  { %2738 = vmatprep.subr.bf16.mxu1 %v2737_v11  ;;  %v1299_v11 = vld [vmem:[%s4399_s7 + $0x978] sm:$0xff]  ;;  %v2775_v0 = vpack.c.bf16 %v1294_v63, %v1292_v62  ;;  %v1302_v24 = vld [vmem:[%s4399_s7 + $0x990] sm:$0xff]  ;;  %v1818_v62 = vld [vmem:[%s4403_s11 + $0x40] sm:$0xff] }
 0x410   :  { %v2777_v1 = vpack.c.bf16 %v1299_v11, %v1297_v42  ;;  %v2783_v13 = vpack.c.bf16 %v1302_v24, %v1300_v9  ;;  %v1819_v63 = vld [vmem:[%s4403_s11 + $0x48] sm:$0xff]  ;;  %v1820_v11 = vld [vmem:[%s4403_s11 + $0x50] sm:$0xff]  ;;  %v1925_v24 = vld [vmem:[%s4402_s10] ss:$0 sm:$0xff] }
 0x411   :  { %v2842_v42 = vpack.c.bf16 %v1819_v63, %v1818_v62 }
 0x412   :  { %2740 = vmatpush1.bf16.msra.mxu1 %v2739_v4  ;;  %v1301_v4 = vld [vmem:[%s4399_s7 + $0x988] sm:$0xff] }
 0x413   :  { %2742 = vmatprep.subr.bf16.mxu1 %v2741_v5  ;;  %v1303_v5 = vld [vmem:[%s4399_s7 + $0x998] sm:$0xff] }
 0x414   :  { %v2781_v7 = vpack.c.bf16 %v1303_v5, %v1301_v4  ;;  %v2848_v4 = vpack.c.bf16 %v1823_v3, %v1822_v2  ;;  %v1824_v5 = vld [vmem:[%s4403_s11 + $0x70] sm:$0xff] }
 0x416   :  { %2744 = vmatpush1.bf16.msra.mxu1 %v2743_v10  ;;  %v1305_v10 = vld [vmem:[%s4399_s7 + $0x9a8] sm:$0xff] }
 0x417   :  { %2746 = vmatprep.subr.bf16.mxu1 %v2745_v12  ;;  %v1307_v12 = vld [vmem:[%s4399_s7 + $0x9b8] sm:$0xff] }
 0x418   :  { %v2785_v14 = vpack.c.bf16 %v1307_v12, %v1305_v10 }
 0x41a   :  { %2748 = vmatpush1.bf16.msra.mxu1 %v2747_v17  ;;  %v1309_v17 = vld [vmem:[%s4399_s7 + $0x9c8] sm:$0xff] }
 0x41b   :  { %2750 = vmatprep.subr.bf16.mxu1 %v2749_v15  ;;  %v1311_v15 = vld [vmem:[%s4399_s7 + $0x9d8] sm:$0xff] }
 0x41c   :  { %v2789_v19 = vpack.c.bf16 %v1311_v15, %v1309_v17 }
 0x41e   :  { %2752 = vmatpush1.bf16.msra.mxu1 %v2751_v22  ;;  %v1313_v22 = vld [vmem:[%s4399_s7 + $0x9e8] sm:$0xff] }
 0x41f   :  { %2754 = vmatprep.subr.bf16.mxu1 %v2753_v23  ;;  %v1315_v23 = vld [vmem:[%s4399_s7 + $0x9f8] sm:$0xff] }
 0x420   :  { %v2793_v26 = vpack.c.bf16 %v1315_v23, %v1313_v22 }
 0x422   :  { %2756 = vmatpush1.bf16.msra.mxu1 %v2755_v28  ;;  %v2795_v28 = vpack.c.bf16 %v1314_v58, %v1312_v27 }
 0x423   :  { %2758 = vmatprep.subr.bf16.mxu1 %v2757_v29  ;;  %v1712_v29 = vld [vmem:[%s4401_s9 + $0x60] sm:$0xff] }
 0x424   :  { %v2823_v40 = vpack.c.bf16 %v1713_v31, %v1712_v29 }
 0x426   :  { %2760 = vmatpush1.bf16.msra.mxu1 %v2759_v37  ;;  %2824 = vmatpush3.bf16.msra.mxu0 %v2823_v40  ;;  %v2825_v37 = vpack.c.bf16 %v1731_v36, %v1730_v35 }
 0x427   :  { %2762 = vmatprep.subr.bf16.mxu1 %v2761_v38  ;;  %v1715_v38 = vld [vmem:[%s4401_s9 + $0x78] sm:$0xff] }
 0x428   :  { %2826 = vmatprep.subr.bf16.mxu0 %v2825_v37 }
 0x42a   :  { %2764 = vmatpush1.bf16.msra.mxu1 %v2763_v45 }
 0x42b   :  { %2766 = vmatprep.subr.bf16.mxu1 %v2765_v46 }
 0x42e   :  { %2768 = vmatpush1.bf16.msra.mxu1 %v2767_v52 }
 0x42f   :  { %2770 = vmatprep.subr.bf16.mxu1 %v2769_v53  ;;  %v2830_v53 = vpack.c.bf16 %v1811_v50, %v1810_v49 }
 0x432   :  { %2772 = vmatpush1.bf16.msra.mxu1 %v2771_v60  ;;  %v1816_v60 = vld [vmem:[%s4403_s11 + $0x30] sm:$0xff] }
 0x433   :  { %2774 = vmatprep.subr.bf16.mxu1 %v2773_v61 }
 0x436   :  { %2776 = vmatpush1.bf16.msra.mxu1 %v2775_v0  ;;  %v1821_v0 = vld [vmem:[%s4403_s11 + $0x58] sm:$0xff] }
 0x437   :  { %2778 = vmatprep.subr.bf16.mxu1 %v2777_v1  ;;  %v2845_v1 = vpack.c.bf16 %v1821_v0, %v1820_v11 }
 0x43a   :  { %2780 = vmatpush1.bf16.msra.mxu1 %v2779_v6  ;;  %v1825_v6 = vld [vmem:[%s4403_s11 + $0x78] sm:$0xff] }
 0x43b   :  { %2782 = vmatprep.subr.bf16.mxu1 %v2781_v7  ;;  %v2851_v7 = vpack.c.bf16 %v1825_v6, %v1824_v5 }
 0x43e   :  { %2784 = vmatpush1.bf16.msra.mxu1 %v2783_v13 }
 0x43f   :  { %2786 = vmatprep.subr.bf16.mxu1 %v2785_v14 }
 0x442   :  { %2788 = vmatpush1.bf16.msra.mxu1 %v2787_v18 }
 0x443   :  { %2790 = vmatprep.subr.bf16.mxu1 %v2789_v19 }
 0x446   :  { %2792 = vmatpush1.bf16.msra.mxu1 %v2791_v25 }
 0x447   :  { %2794 = vmatprep.subr.bf16.mxu1 %v2793_v26 }
 0x44a   :  { %2796 = vmatpush1.bf16.msra.mxu1 %v2795_v28 }
 0x44d   :  { %1692 = vmatmul.mubr.f32.vlgmr.msra.gmra.mrb[4].mxu1 %v4111_v56  ;;  %v1714_v56 = vld [vmem:[%s4401_s9 + $0x70] sm:$0xff] }
 0x44e   :  { %v2827_v39 = vpack.c.bf16 %v1715_v38, %v1714_v56 }
 0x450   :  { %2828 = vmatpush3.bf16.msra.mxu0 %v2827_v39 }
 0x451   :  { %2829 = vmatprep.subr.bf16.mxu0 %v2918_v30 }
 0x520   :  { %v1693_v45 = vpop.f32.mrb[4].mxu1 }
 0x521   :  { %v2855_v46 = vadd.f32 %v1693_v45, %v1321_v43  ;;  %v1695_v48 = vpop.f32.mrb[5].mxu1 }
 0x522   :  { %v2856_v51 = vadd.f32 %v1695_v48, %v1325_v44 }
 0x523   :  { %v1698_v54 = vmax.f32 %v2855_v46, 0.0 }
 0x524   :  { %v1699_v52 = vmax.f32 %v2856_v51, 0.0 }
 0x526   :  { %1803 = vmatprep.mubr.f32.mxu0 %v1699_v52 }
 0x527   :  { %1804 = vmatmul.mubr.f32.vlgmr.msra.gmra.mrb[2].mxu0 %v1698_v54 }
 0x528   :  { %2831 = vmatpush3.bf16.msra.mxu0 %v2830_v53  ;;  %2098 = vmatprep.mubr.msk.f32.mxu0 %vm2919_vm0, %v2920_v8  ;;  %v1817_v8 = vld [vmem:[%s4403_s11 + $0x38] sm:$0xff] }
 0x529   :  { %2832 = vmatprep.subr.bf16.mxu0 %v2918_v30  ;;  %v2839_v61 = vpack.c.bf16 %v1817_v8, %v1816_v60 }
 0x52c   :  { %2834 = vmatpush3.bf16.msra.mxu0 %v2833_v34 }
 0x52d   :  { %2835 = vmatprep.subr.bf16.mxu0 %v2918_v30 }
 0x530   :  { %2837 = vmatpush3.bf16.msra.mxu0 %v2836_v59 }
 0x531   :  { %2838 = vmatprep.subr.bf16.mxu0 %v2918_v30 }
 0x534   :  { %2840 = vmatpush3.bf16.msra.mxu0 %v2839_v61 }
 0x535   :  { %2841 = vmatprep.subr.bf16.mxu0 %v2918_v30 }
 0x538   :  { %2843 = vmatpush3.bf16.msra.mxu0 %v2842_v42 }
 0x539   :  { %2844 = vmatprep.subr.bf16.mxu0 %v2918_v30 }
 0x53c   :  { %2846 = vmatpush3.bf16.msra.mxu0 %v2845_v1 }
 0x53d   :  { %2847 = vmatprep.subr.bf16.mxu0 %v2918_v30 }
 0x540   :  { %2849 = vmatpush3.bf16.msra.mxu0 %v2848_v4 }
 0x541   :  { %2850 = vmatprep.subr.bf16.mxu0 %v2918_v30  ;;  %v1926_v30 = vld [vmem:[#allocation2] ss:$0 sm:$0xff] }
 0x544   :  { %2852 = vmatpush3.bf16.msra.mxu0 %v2851_v7 }
 0x5fa   :  { %v2011_v9 = vpop.f32.mrb[2].mxu0 }
 0x5fb   :  { %v2012_v10 = vpop.f32.mrb[3].mxu0 }
 0x5fc   :  { %v2013_v12 = vadd.f32 %v2012_v10, %v2011_v9 }
 0x5fe   :  { %v1806_v13 = vadd.f32 %v2013_v12, %v1925_v24 }
 0x600   :  { %v1809_v14 = vmax.f32 %v1806_v13, 0.0 }
 0x602   :  { %2099 = vmatmul.mubr.f32.vlgmr.msra.gmra.mrb[4].mxu0 %v1809_v14 }
 0x6d5   :  { %v1899_v47 = vpop.f32.mrb[4].mxu0 }
 0x6d6   :  { %v1900_v16 = vadd.f32 %v1926_v30, %v1899_v47  ;;  %v2100_v17 = vpop.f32.mrb[5].mxu0 }
 0x6d8   :  { %v1903_v15 = vmul.f32 0.5, %v1900_v16 }
 0x6da   :  { %2884 = vtanh.f32 %v1903_v15 }
 0x6e4   :  { %v2885_v18 = vpop.eup %2884 }
 0x6e5   :  { %v1905_v19 = vadd.f32 1.0, %v2885_v18 }
 0x6e7   :  { %v1906_v20 = vmul.f32 0.5, %v1905_v19 }
 0x6e9   :  { %1908 = vst.msk [vmem:[%s4405_s13] sm:$0x3] %vm1907_vm2, %v1906_v20 }
 0x6ea   :  { %1917 = vsyncpa [#allocation4], 1 }

// kernel: _lambda_.2
= control target key start
LH: loop header
LB: loop body
LE: loop exit
PB: predicated region body
PF: predicated region fallthrough
CT: control target
= control target key end

     0   :  { %12 = vsyncpa [#allocation5], 0  ;;  %s12448_s0 = inlined_call_operand.vmem [shape: f32[4,12,28,1], index: 0, kind: input, shape index: {}]   ;;  %s12449_s1 = inlined_call_operand.hbm [shape: f32[3,3,1,64], index: 1, kind: input, shape index: {}]   ;;  %s12450_s2 = inlined_call_operand.hbm [shape: f32[1,64], index: 2, kind: input, shape index: {}]   ;;  %s12451_s3 = inlined_call_operand.hbm [shape: f32[256,128], index: 3, kind: input, shape index: {}]   ;;  %s12452_s4 = inlined_call_operand.hbm [shape: f32[1,128], index: 4, kind: input, shape index: {}]   ;;  %s12453_s5 = inlined_call_operand.hbm [shape: f32[512,256], index: 5, kind: input, shape index: {}]   ;;  %s12454_s6 = inlined_call_operand.hbm [shape: f32[1,256], index: 6, kind: input, shape index: {}]   ;;  %s12455_s7 = inlined_call_operand.vmem [shape: f32[4,5,256], index: 7, kind: output, shape index: {}]  }
   0x1   :  { %13 = vsyncpa [#allocation7], 0 }
   0x2   :  { %14 = vsyncpa [#allocation10], 0 }
   0x3   :  { %15 = vsyncpa [#allocation13], 0  ;;  %s7650_s24 = smov 0  }
   0x4 LB: > { %s7597_s25 = smov [#allocation6]   ;;  %s6369_s27 = sadd.s32 4294967295, %s7595_s24   ;;  %s7595_s24 = sphi %s7650_s24, %s21_s24  }
   0x5   : > { %s230_s26 = sshll.u32 %s7597_s25, 4  ;;  %p6371_p0 = scmp.ge.s32.totalorder %s7595_s24, 1  ;;  %s7664_s26 = int_to_ptr.vmem [resolvable:$true] %s230_s26 }
   0x6   : > { %p204_p1 = scmp.lt.s32.totalorder %s7595_s24, 3  ;;  %p7660_p2 = scmp.eq.s32.totalorder %s6369_s27, 0 }
   0x7   : > { %s7598_s30 = smov [#allocation9]   ;;  %s7599_s9 = smov [#allocation4]  }
   0x8   : > { %s12597_s28 = scalar_select %p7660_p2, 1, 0 }
   0x9   : > { %p7666_p3 = pnand %p6371_p0, %p204_p1  ;;  %s254_s8 = sshll.u32 %s7598_s30, 4  ;;  %s7672_s8 = int_to_ptr.vmem [resolvable:$true] %s254_s8 }
   0xa   : > { %s216_s10 = sshll.u32 %s7599_s9, 4  ;;  %s7600_s12 = smov [#allocation8]   ;;  %s7680_s10 = int_to_ptr.vmem [resolvable:$true] %s216_s10 }
   0xb   : > { %s12598_s29 = scalar_select %p7666_p3, 1, 0 }
   0xc   : > { %p7257_p4 = pneg %p7666_p3  ;;  %s7682_s13 = sshll.u32 %s7600_s12, 4  ;;  %s241_s13 = int_to_ptr.vmem [resolvable:$true] %s7682_s13 }
   0xd   : > { %s7405_s16 = scalar_lea.hbm %s12450_s2, 16 }
   0xe   : > { %p7676_p5 = pnand %p7660_p2, %p7257_p4  ;;  %p7406_p6 = scmp.ne.s32.totalorder %s12450_s2, %s7405_s16 }
   0xf   : > { %p7412_p10 = scmp.lt.u32.totalorder %s7405_s16, %s12450_s2 }
  0x10   : > { %p7692_p7 = pneg %p7676_p5 }
  0x12   : > { %p7408_p8 = pnand %p7692_p7, %p7406_p6 }
  0x14   : > { %p7409_p9 = pneg %p7408_p8 }
  0x16   : > { %p7414_p11 = pnand %p7412_p10, %p7409_p9 }
  0x18   : > { %7417 = shalt.err (!%p7414_p11)
}
  0x19   : > { %s7418_s22 = scalar_lea.vmem %s7664_s26, 16  ;;  %s7425_s23 = scalar_lea.vmem %s7664_s26, 32 }
  0x1a   : > { %p7419_p12 = scmp.ne.s32.totalorder %s7664_s26, %s7418_s22  ;;  %p7426_p1 = scmp.lt.s32.totalorder %s7664_s26, %s7664_s26 }
  0x1b   : > { %p7427_p4 = scmp.lt.s32.totalorder %s7425_s23, %s7418_s22 }
  0x1c   : > { %p7421_p13 = pnand %p7419_p12, %p7692_p7 }
  0x1d   : > { %p7428_p6 = por %p7427_p4, %p7426_p1 }
  0x1e   : > { %p7422_p0 = pneg %p7421_p13 }
  0x20   : > { %p7429_p8 = pnand %p7428_p6, %p7422_p0 }
  0x22   : > { %7432 = shalt.err (!%p7429_p8)
}
  0x23   : > { %7263 = dma.hbm_to_vmem [thread:$0]  (!%p7676_p5), %s12450_s2, 16, %s7664_s26, [#allocation7]  }
  0x24   : > { %s7433_s14 = scalar_lea.hbm %s12452_s4, 16 }
  0x25   : > { %p7434_p9 = scmp.ne.s32.totalorder %s12452_s4, %s7433_s14  ;;  %p7440_p12 = scmp.lt.u32.totalorder %s7433_s14, %s12452_s4 }
  0x27   : > { %p7436_p10 = pnand %p7434_p9, %p7692_p7 }
  0x29   : > { %p7437_p11 = pneg %p7436_p10 }
  0x2b   : > { %p7442_p13 = pnand %p7440_p12, %p7437_p11 }
  0x2d   : > { %7445 = shalt.err (!%p7442_p13)
}
  0x2e   : > { %s7446_s26 = scalar_lea.vmem %s7672_s8, 16  ;;  %s7453_s20 = scalar_lea.vmem %s7672_s8, 32 }
  0x2f   : > { %p7447_p0 = scmp.ne.s32.totalorder %s7672_s8, %s7446_s26  ;;  %p7454_p6 = scmp.lt.s32.totalorder %s7672_s8, %s7672_s8 }
  0x30   : > { %p7455_p8 = scmp.lt.s32.totalorder %s7453_s20, %s7446_s26 }
  0x31   : > { %p7449_p1 = pnand %p7447_p0, %p7692_p7 }
  0x32   : > { %p7456_p9 = por %p7455_p8, %p7454_p6 }
  0x33   : > { %p7450_p4 = pneg %p7449_p1 }
  0x35   : > { %p7457_p10 = pnand %p7456_p9, %p7450_p4 }
  0x37   : > { %7460 = shalt.err (!%p7457_p10)
}
  0x38   : > { %7269 = dma.hbm_to_vmem [thread:$0]  (!%p7676_p5), %s12452_s4, 16, %s7672_s8, [#allocation10]  }
  0x39   : > { %s7461_s30 = scalar_lea.hbm %s12449_s1, 144 }
  0x3a   : > { %p7462_p11 = scmp.ne.s32.totalorder %s12449_s1, %s7461_s30  ;;  %p7468_p0 = scmp.lt.u32.totalorder %s7461_s30, %s12449_s1 }
  0x3c   : > { %p7464_p12 = pnand %p7462_p11, %p7692_p7 }
  0x3e   : > { %p7465_p13 = pneg %p7464_p12 }
  0x40   : > { %p7470_p1 = pnand %p7468_p0, %p7465_p13 }
  0x42   : > { %7473 = shalt.err (!%p7470_p1)
}
  0x43   : > { %s7474_s8 = scalar_lea.vmem %s7680_s10, 144  ;;  %s7481_s16 = scalar_lea.vmem %s7680_s10, 160 }
  0x44   : > { %p7475_p4 = scmp.ne.s32.totalorder %s7680_s10, %s7474_s8  ;;  %p7482_p9 = scmp.lt.s32.totalorder %s7680_s10, %s7680_s10 }
  0x45   : > { %p7483_p10 = scmp.lt.s32.totalorder %s7481_s16, %s7474_s8 }
  0x46   : > { %p7477_p6 = pnand %p7475_p4, %p7692_p7 }
  0x47   : > { %p7484_p11 = por %p7483_p10, %p7482_p9 }
  0x48   : > { %p7478_p8 = pneg %p7477_p6 }
  0x4a   : > { %p7485_p12 = pnand %p7484_p11, %p7478_p8 }
  0x4c   : > { %7488 = shalt.err (!%p7485_p12)
}
  0x4d   : > { %s7601_s17 = smov 16   ;;  %s7602_s18 = smov 1  }
  0x4e   : > { %7260 = dma.hbm_to_vmem [thread:$0]  (!%p7676_p5), %s12449_s1, 144, %s7680_s10, [#allocation5], %s7601_s17, %s7601_s17, %s7602_s18  }
  0x4f   : > { %s7489_s23 = scalar_lea.hbm %s12451_s3, 4096 }
  0x50   : > { %p7490_p13 = scmp.ne.s32.totalorder %s12451_s3, %s7489_s23  ;;  %p7496_p4 = scmp.lt.u32.totalorder %s7489_s23, %s12451_s3 }
  0x52   : > { %p7492_p0 = pnand %p7490_p13, %p7692_p7 }
  0x54   : > { %p7493_p1 = pneg %p7492_p0 }
  0x56   : > { %p7498_p6 = pnand %p7496_p4, %p7493_p1 }
  0x58   : > { %7501 = shalt.err (!%p7498_p6)
}
  0x59   : > { %s7502_s14 = scalar_lea.vmem %s241_s13, 4096  ;;  %p7510_p11 = scmp.lt.s32.totalorder %s241_s13, %s241_s13 }
  0x5a   : > { %p7503_p8 = scmp.ne.s32.totalorder %s241_s13, %s7502_s14  ;;  %p7511_p12 = scmp.lt.s32.totalorder %s7502_s14, %s7502_s14 }
  0x5c   : > { %p7505_p9 = pnand %p7503_p8, %p7692_p7  ;;  %p7512_p2 = por %p7511_p12, %p7510_p11 }
  0x5e   : > { %p7506_p10 = pneg %p7505_p9 }
  0x60   : > { %p7513_p3 = pnand %p7512_p2, %p7506_p10 }
  0x62   : > { %7516 = shalt.err (!%p7513_p3)
}
  0x63   : > { %s7603_s10 = smov 128   ;;  %s7604_s15 = smov 8  }
  0x64   : > { %7266 = dma.hbm_to_vmem [thread:$0]  (!%p7676_p5), %s12451_s3, 4096, %s241_s13, [#allocation7], %s7603_s10, %s7603_s10, %s7604_s15  }
  0x65   : > { %s7605_s18 = smov [#allocation11]   ;;  %s7517_s22 = scalar_lea.hbm %s12453_s5, 16384 }
  0x66   : > { %s264_s26 = sshll.u32 %s7605_s18, 4  ;;  %p7518_p2 = scmp.ne.s32.totalorder %s12453_s5, %s7517_s22  ;;  %s265_s26 = int_to_ptr.vmem [resolvable:$true] %s264_s26 }
  0x67   : > { %p7524_p0 = scmp.lt.u32.totalorder %s7517_s22, %s12453_s5 }
  0x68   : > { %p7520_p3 = pnand %p7518_p2, %p7692_p7 }
  0x6a   : > { %p7521_p13 = pneg %p7520_p3 }
  0x6c   : > { %p7526_p1 = pnand %p7524_p0, %p7521_p13 }
  0x6e   : > { %7529 = shalt.err (!%p7526_p1)
}
  0x6f   : > { %s7530_s13 = scalar_lea.vmem %s265_s26, 16384  ;;  %p7538_p9 = scmp.lt.s32.totalorder %s265_s26, %s265_s26 }
  0x70   : > { %p7531_p4 = scmp.ne.s32.totalorder %s265_s26, %s7530_s13  ;;  %p7539_p10 = scmp.lt.s32.totalorder %s7530_s13, %s7530_s13 }
  0x72   : > { %p7533_p6 = pnand %p7531_p4, %p7692_p7  ;;  %p7540_p11 = por %p7539_p10, %p7538_p9 }
  0x74   : > { %p7534_p8 = pneg %p7533_p6 }
  0x76   : > { %p7541_p12 = pnand %p7540_p11, %p7534_p8 }
  0x78   : > { %7544 = shalt.err (!%p7541_p12)
}
  0x79   : > { %s7606_s12 = smov 256   ;;  %s7607_s15 = smov [#allocation12]  }
  0x7a   : > { %7272 = dma.hbm_to_vmem [thread:$0]  (!%p7676_p5), %s12453_s5, 16384, %s265_s26, [#allocation10], %s7606_s12, %s7606_s12, %s7601_s17  }
  0x7b   : > { %s278_s8 = sshll.u32 %s7607_s15, 4  ;;  %s7545_s20 = scalar_lea.hbm %s12454_s6, 32  ;;  %s279_s8 = int_to_ptr.vmem [resolvable:$true] %s278_s8 }
  0x7c   : > { %p7546_p2 = scmp.ne.s32.totalorder %s12454_s6, %s7545_s20  ;;  %p7552_p0 = scmp.lt.u32.totalorder %s7545_s20, %s12454_s6 }
  0x7e   : > { %p7548_p3 = pnand %p7546_p2, %p7692_p7 }
  0x80   : > { %p7549_p13 = pneg %p7548_p3 }
  0x82   : > { %p7554_p1 = pnand %p7552_p0, %p7549_p13 }
  0x84   : > { %7557 = shalt.err (!%p7554_p1)
}
  0x85   : > { %s7558_s17 = scalar_lea.vmem %s279_s8, 32  ;;  %p7566_p9 = scmp.lt.s32.totalorder %s279_s8, %s279_s8 }
  0x86   : > { %p7559_p4 = scmp.ne.s32.totalorder %s279_s8, %s7558_s17  ;;  %p7567_p10 = scmp.lt.s32.totalorder %s7558_s17, %s7558_s17 }
  0x88   : > { %p7561_p6 = pnand %p7559_p4, %p7692_p7  ;;  %p7568_p11 = por %p7567_p10, %p7566_p9 }
  0x8a   : > { %p7562_p8 = pneg %p7561_p6 }
  0x8c   : > { %p7569_p12 = pnand %p7568_p11, %p7562_p8 }
  0x8e   : > { %7572 = shalt.err (!%p7569_p12)
}
  0x8f   : > { %7275 = dma.hbm_to_vmem [thread:$0]  (!%p7676_p5), %s12454_s6, 32, %s279_s8, [#allocation13]  }
  0x90   : > { %p12601_p2 = scmp.ne.s32.totalorder %s12598_s29, 0 }
  0x92   : > { %301 = sbr.rel (%p12601_p2) target bundleno = 1560 (0x618), region = 48 }
  0x99   : > { %p12602_p3 = scmp.ne.s32.totalorder %s12597_s28, 0 }
  0x9b   : > { %7578 = dma.done.wait (%p12602_p3), [#allocation5], 144  }
  0x9c   : > { %7580 = vsyncadd (%p12602_p3), [#allocation5], 4294967152 }
  0x9d   : > { %7582 = dma.done.wait (%p12602_p3), [#allocation7], 4112  }
  0x9e   : > { %7584 = vsyncadd (%p12602_p3), [#allocation7], 4294963184 }
  0x9f   : > { %7586 = dma.done.wait (%p12602_p3), [#allocation10], 16400  }
  0xa0   : > { %7588 = vsyncadd (%p12602_p3), [#allocation10], 4294950896 }
  0xa1   : > { %7590 = dma.done.wait (%p12602_p3), [#allocation13], 32  }
  0xa2   : > { %7592 = vsyncadd (%p12602_p3), [#allocation13], 4294967264  ;;  %s6386_s29 = sshll.u32 %s6369_s27, 1  ;;  %v7608_v0 = vmov 0   ;;  %vm1200_vm0 = vcmask 1046528   ;;  %vm1669_vm1 = vcmask 1045504  }
  0xa3   : > { %7310 = vset.pattern.permute.xlu1 %v7608_v0  ;;  %7309 = vset.pattern.permute.xlu0 %v7608_v0  ;;  %p356_p5 = scmp.lt.s32.totalorder %s6386_s29, 3  ;;  %vm4505_vm2 = vcmask 516096   ;;  %vm4516_vm3 = vcmask 518146   ;;  %vm4527_vm4 = vcmask 520196   ;;  %vm4538_vm5 = vcmask 522246   ;;  %s7609_s27 = smov 64  }
  0xa4   : > { %vm4784_vm6 = vcmask 523264  }
  0xa5   : > { %s13048_s29 = smov (!%p356_p5, %s6386_s29), 3 }
  0xa6   : > { %s7232_s11 = smul.u32 384, %s13048_s29  ;;  %s6407_s28 = sshll.u32 %s13048_s29, 4 }
  0xa7   : > { %s367_s10 = scalar_lea.vmem %s12455_s7, %s6407_s28 }
  0xa8   : > { %s7846_s13 = scalar_lea.vmem %s12448_s0, %s7232_s11 }
  0xa9   : > { %v379_v1 = vld [vmem:[%s7846_s13 + $0x50] sm:$0xff]  ;;  %v377_v2 = vld [vmem:[%s7846_s13 + $0x40] sm:$0xff]  ;;  %v380_v3 = vld [vmem:[%s7846_s13 + $0x58] sm:$0xf] }
  0xaa   : > { %518 = vperm.xlu1 %7310, %v379_v1   ;;  %508 = vperm.xlu0 %7309, %v377_v2   ;;  %v378_v4 = vld [vmem:[%s7846_s13 + $0x48] sm:$0xff]  ;;  %v381_v6 = vld [vmem:[%s7846_s13 + $0x60] sm:$0xff]  ;;  %v384_v7 = vld [vmem:[%s7846_s13 + $0x78] sm:$0xf] }
  0xab   : > { %v382_v5 = vld [vmem:[%s7846_s13 + $0x68] sm:$0xff]  ;;  %v383_v8 = vld [vmem:[%s7846_s13 + $0x70] sm:$0xff]  ;;  %v385_v10 = vld [vmem:[%s7846_s13 + $0x80] sm:$0xff] }
  0xac   : > { %v386_v9 = vld [vmem:[%s7846_s13 + $0x88] sm:$0xff]  ;;  %v388_v11 = vld [vmem:[%s7846_s13 + $0x98] sm:$0xf]  ;;  %v387_v12 = vld [vmem:[%s7846_s13 + $0x90] sm:$0xff] }
  0xad   : > { %v390_v13 = vld [vmem:[%s7846_s13 + $0xa8] sm:$0xff]  ;;  %v389_v14 = vld [vmem:[%s7846_s13 + $0xa0] sm:$0xff]  ;;  %v392_v15 = vld [vmem:[%s7846_s13 + $0xb8] sm:$0xf] }
  0xae   : > { %523 = vperm.xlu1 %7310, %v380_v3   ;;  %513 = vperm.xlu0 %7309, %v378_v4   ;;  %v391_v16 = vld [vmem:[%s7846_s13 + $0xb0] sm:$0xff]  ;;  %v370_v17 = vld [vmem:[%s7846_s13 + $0x8] sm:$0xff]  ;;  %v369_v18 = vld [vmem:[%s7846_s13] sm:$0xff] }
  0xaf   : > { %v372_v19 = vld [vmem:[%s7846_s13 + $0x18] sm:$0xf]  ;;  %v371_v20 = vld [vmem:[%s7846_s13 + $0x10] sm:$0xff]  ;;  %v374_v21 = vld [vmem:[%s7846_s13 + $0x28] sm:$0xff] }
  0xb0   : > { %v373_v22 = vld [vmem:[%s7846_s13 + $0x20] sm:$0xff]  ;;  %v376_v23 = vld [vmem:[%s7846_s13 + $0x38] sm:$0xf]  ;;  %v375_v24 = vld [vmem:[%s7846_s13 + $0x30] sm:$0xff] }
  0xb1   : > { %v394_v25 = vld [vmem:[%s7846_s13 + $0xc8] sm:$0xff]  ;;  %v393_v26 = vld [vmem:[%s7846_s13 + $0xc0] sm:$0xff]  ;;  %v396_v27 = vld [vmem:[%s7846_s13 + $0xd8] sm:$0xf] }
  0xb2   : > { %533 = vperm.xlu1 %7310, %v382_v5   ;;  %528 = vperm.xlu0 %7309, %v381_v6   ;;  %v395_v28 = vld [vmem:[%s7846_s13 + $0xd0] sm:$0xff]  ;;  %v398_v29 = vld [vmem:[%s7846_s13 + $0xe8] sm:$0xff]  ;;  %v397_v30 = vld [vmem:[%s7846_s13 + $0xe0] sm:$0xff] }
  0xb3   : > { %v400_v31 = vld [vmem:[%s7846_s13 + $0xf8] sm:$0xf]  ;;  %v399_v32 = vld [vmem:[%s7846_s13 + $0xf0] sm:$0xff]  ;;  %v402_v33 = vld [vmem:[%s7846_s13 + $0x108] sm:$0xff] }
  0xb4   : > { %v401_v34 = vld [vmem:[%s7846_s13 + $0x100] sm:$0xff]  ;;  %v404_v35 = vld [vmem:[%s7846_s13 + $0x118] sm:$0xf]  ;;  %v403_v36 = vld [vmem:[%s7846_s13 + $0x110] sm:$0xff] }
  0xb5   : > { %v406_v37 = vld [vmem:[%s7846_s13 + $0x128] sm:$0xff]  ;;  %v405_v38 = vld [vmem:[%s7846_s13 + $0x120] sm:$0xff]  ;;  %v408_v39 = vld [vmem:[%s7846_s13 + $0x138] sm:$0xf] }
  0xb6   : > { %543 = vperm.xlu1 %7310, %v384_v7   ;;  %538 = vperm.xlu0 %7309, %v383_v8   ;;  %v407_v40 = vld [vmem:[%s7846_s13 + $0x130] sm:$0xff]  ;;  %v410_v41 = vld [vmem:[%s7846_s13 + $0x148] sm:$0xff]  ;;  %v409_v42 = vld [vmem:[%s7846_s13 + $0x140] sm:$0xff] }
  0xb7   : > { %v412_v43 = vld [vmem:[%s7846_s13 + $0x158] sm:$0xf]  ;;  %v411_v44 = vld [vmem:[%s7846_s13 + $0x150] sm:$0xff]  ;;  %v414_v45 = vld [vmem:[%s7846_s13 + $0x168] sm:$0xff] }
  0xb8   : > { %v413_v46 = vld [vmem:[%s7846_s13 + $0x160] sm:$0xff]  ;;  %v416_v47 = vld [vmem:[%s7846_s13 + $0x178] sm:$0xf]  ;;  %v415_v48 = vld [vmem:[%s7846_s13 + $0x170] sm:$0xff] }
  0xb9   : > { %v426_v49 = vld [vmem:[%s7846_s13 + $0x1c8] sm:$0xff]  ;;  %v425_v50 = vld [vmem:[%s7846_s13 + $0x1c0] sm:$0xff]  ;;  %v428_v51 = vld [vmem:[%s7846_s13 + $0x1d8] sm:$0xf] }
  0xba   : > { %553 = vperm.xlu1 %7310, %v386_v9   ;;  %548 = vperm.xlu0 %7309, %v385_v10   ;;  %v427_v52 = vld [vmem:[%s7846_s13 + $0x1d0] sm:$0xff]  ;;  %v430_v53 = vld [vmem:[%s7846_s13 + $0x1e8] sm:$0xff]  ;;  %v429_v54 = vld [vmem:[%s7846_s13 + $0x1e0] sm:$0xff] }
  0xbb   : > { %v432_v55 = vld [vmem:[%s7846_s13 + $0x1f8] sm:$0xf]  ;;  %v431_v56 = vld [vmem:[%s7846_s13 + $0x1f0] sm:$0xff]  ;;  %v434_v57 = vld [vmem:[%s7846_s13 + $0x208] sm:$0xff] }
  0xbc   : > { %v433_v58 = vld [vmem:[%s7846_s13 + $0x200] sm:$0xff]  ;;  %v436_v59 = vld [vmem:[%s7846_s13 + $0x218] sm:$0xf]  ;;  %v435_v60 = vld [vmem:[%s7846_s13 + $0x210] sm:$0xff] }
  0xbd   : > { %v438_v61 = vld [vmem:[%s7846_s13 + $0x228] sm:$0xff]  ;;  %v437_v62 = vld [vmem:[%s7846_s13 + $0x220] sm:$0xff]  ;;  %v440_v63 = vld [vmem:[%s7846_s13 + $0x238] sm:$0xf] }
  0xbe   : > { %563 = vperm.xlu1 %7310, %v388_v11   ;;  %558 = vperm.xlu0 %7309, %v387_v12   ;;  %v439_v0 = vld [vmem:[%s7846_s13 + $0x230] sm:$0xff]  ;;  %v7912_v1 = vld [vmem:[#allocation4 + $0x1] ss:$0 sm:$0xff]  ;;  %v418_v2 = vld [vmem:[%s7846_s13 + $0x188] sm:$0xff] }
  0xbf   : > { %v7915_v3 = vld [vmem:[#allocation4 + $0x2] ss:$0 sm:$0xff]  ;;  %v7922_v7 = vld [vmem:[#allocation4] ss:$0 sm:$0xff]  ;;  %v420_v10 = vld [vmem:[%s7846_s13 + $0x198] sm:$0xf] }
  0xc0   : > { %v417_v4 = vld [vmem:[%s7846_s13 + $0x180] sm:$0xff] }
  0xc1   : > { %v7931_v11 = vld [vmem:[#allocation4 + $0x3] ss:$0 sm:$0xff]  ;;  %v7933_v12 = vld [vmem:[#allocation4 + $0x4] ss:$0 sm:$0xff] }
  0xc2   : > { %573 = vperm.xlu1 %7310, %v390_v13   ;;  %568 = vperm.xlu0 %7309, %v389_v14   ;;  %v419_v14 = vld [vmem:[%s7846_s13 + $0x190] sm:$0xff] }
  0xc6   : > { %583 = vperm.xlu1 %7310, %v392_v15   ;;  %578 = vperm.xlu0 %7309, %v391_v16   ;;  %v7938_v15 = vld [vmem:[#allocation4 + $0x5] ss:$0 sm:$0xff] }
  0xca   : > { %473 = vperm.xlu1 %7310, %v370_v17   ;;  %468 = vperm.xlu0 %7309, %v369_v18  }
  0xce   : > { %483 = vperm.xlu1 %7310, %v372_v19   ;;  %478 = vperm.xlu0 %7309, %v371_v20  }
  0xd2   : > { %493 = vperm.xlu1 %7310, %v374_v21   ;;  %488 = vperm.xlu0 %7309, %v373_v22   ;;  %v7954_v21 = vld [vmem:[#allocation4 + $0x6] ss:$0 sm:$0xff] }
  0xd6   : > { %503 = vperm.xlu1 %7310, %v376_v23   ;;  %498 = vperm.xlu0 %7309, %v375_v24  }
  0xda   : > { %593 = vperm.xlu1 %7310, %v394_v25   ;;  %588 = vperm.xlu0 %7309, %v393_v26  }
  0xde   : > { %603 = vperm.xlu1 %7310, %v396_v27   ;;  %598 = vperm.xlu0 %7309, %v395_v28  }
  0xe2   : > { %613 = vperm.xlu1 %7310, %v398_v29   ;;  %608 = vperm.xlu0 %7309, %v397_v30   ;;  %v422_v29 = vld [vmem:[%s7846_s13 + $0x1a8] sm:$0xff] }
  0xe6   : > { %623 = vperm.xlu1 %7310, %v400_v31   ;;  %618 = vperm.xlu0 %7309, %v399_v32  }
  0xea   : > { %633 = vperm.xlu1 %7310, %v402_v33   ;;  %628 = vperm.xlu0 %7309, %v401_v34   ;;  %v421_v34 = vld [vmem:[%s7846_s13 + $0x1a0] sm:$0xff] }
  0xee   : > { %643 = vperm.xlu1 %7310, %v404_v35   ;;  %638 = vperm.xlu0 %7309, %v403_v36  }
  0xf2   : > { %653 = vperm.xlu1 %7310, %v406_v37   ;;  %648 = vperm.xlu0 %7309, %v405_v38   ;;  %v7987_v38 = vld [vmem:[#allocation4 + $0x7] ss:$0 sm:$0xff] }
  0xf6   : > { %663 = vperm.xlu1 %7310, %v408_v39   ;;  %658 = vperm.xlu0 %7309, %v407_v40  }
  0xfa   : > { %1979 = vperm.xlu1 %7310, %v410_v41   ;;  %1974 = vperm.xlu0 %7309, %v409_v42  }
  0xfe   : > { %1989 = vperm.xlu1 %7310, %v412_v43   ;;  %1984 = vperm.xlu0 %7309, %v411_v44  }
 0x102   : > { %3123 = vperm.xlu1 %7310, %v414_v45   ;;  %3118 = vperm.xlu0 %7309, %v413_v46  }
 0x106   : > { %3133 = vperm.xlu1 %7310, %v416_v47   ;;  %3128 = vperm.xlu0 %7309, %v415_v48  }
 0x10a   : > { %713 = vperm.xlu1 %7310, %v426_v49   ;;  %708 = vperm.xlu0 %7309, %v425_v50   ;;  %v424_v50 = vld [vmem:[%s7846_s13 + $0x1b8] sm:$0xf] }
 0x10e   : > { %723 = vperm.xlu1 %7310, %v428_v51   ;;  %718 = vperm.xlu0 %7309, %v427_v52   ;;  %v423_v52 = vld [vmem:[%s7846_s13 + $0x1b0] sm:$0xff] }
 0x112   : > { %733 = vperm.xlu1 %7310, %v430_v53   ;;  %728 = vperm.xlu0 %7309, %v429_v54  }
 0x116   : > { %743 = vperm.xlu1 %7310, %v432_v55   ;;  %738 = vperm.xlu0 %7309, %v431_v56  }
 0x11a   : > { %753 = vperm.xlu1 %7310, %v434_v57   ;;  %748 = vperm.xlu0 %7309, %v433_v58  }
 0x11e   : > { %763 = vperm.xlu1 %7310, %v436_v59   ;;  %758 = vperm.xlu0 %7309, %v435_v60  }
 0x122   : > { %773 = vperm.xlu1 %7310, %v438_v61   ;;  %768 = vperm.xlu0 %7309, %v437_v62  }
 0x126   : > { %783 = vperm.xlu1 %7310, %v440_v63   ;;  %778 = vperm.xlu0 %7309, %v439_v0  }
 0x129   : > { %v7918_v5 = vpop.permute.xlu1 %518  ;;  %v7920_v6 = vpop.permute.xlu0 %508 }
 0x12a   : > { %12603 = vst [vmem:[#allocation18_spill] sm:$0xff] %v7918_v5  ;;  %v1050_v8 = vmul.f32 %v7912_v1, %v7918_v5  ;;  %673 = vperm.xlu1 %7310, %v418_v2   ;;  %v7928_v9 = vmul.f32 %v7915_v3, %v7918_v5  ;;  %668 = vperm.xlu0 %7309, %v417_v4  }
 0x12b   : > { %v1048_v13 = vmul.f32 %v7912_v1, %v7920_v6  ;;  %v7942_v16 = vmul.f32 %v7922_v7, %v7918_v5  ;;  %v880_v17 = vmul.f32 %v7922_v7, %v7920_v6  ;;  %v7948_v18 = vmul.f32 %v7915_v3, %v7920_v6 }
 0x12c   : > { %v1218_v22 = vrot.slane %v1050_v8, 1  ;;  %v7960_v24 = vmul.f32 %v7931_v11, %v7920_v6  ;;  %v7964_v25 = vmul.f32 %v7933_v12, %v7920_v6  ;;  %v1687_v26 = vrot.slane %v7928_v9, 2 }
 0x12d   : > { %v7950_v19 = vpop.permute.xlu1 %523  ;;  %v7952_v20 = vpop.permute.xlu0 %513  ;;  %v7974_v30 = vmul.f32 %v7938_v15, %v7920_v6  ;;  %v1215_v31 = vrot.slane %v1048_v13, 1  ;;  %v7983_v35 = vmul.f32 %v7954_v21, %v7920_v6  ;;  %v1684_v42 = vrot.slane %v7948_v18, 2  ;;  %v442_v13 = vld [vmem:[%s7846_s13 + $0x248] sm:$0xff] }
 0x12e   : > { %12604 = vst [vmem:[#allocation19_spill] sm:$0xff] %v7950_v19  ;;  %v1051_v23 = vmul.f32 %v7912_v1, %v7950_v19  ;;  %683 = vperm.xlu1 %7310, %v420_v10   ;;  %12605 = vst [vmem:[#allocation20_spill] sm:$0xff] %v7960_v24  ;;  %v1049_v27 = vmul.f32 %v7912_v1, %v7952_v20  ;;  %v1518_v28 = vmul.f32 %v7915_v3, %v7952_v20 }
 0x12f   : > { %678 = vperm.xlu0 %7309, %v419_v14   ;;  %v7978_v33 = vmul.f32 %v7915_v3, %v7950_v19  ;;  %12606 = vst [vmem:[#allocation21_spill] sm:$0xff] %v7983_v35  ;;  %v883_v36 = vmul.f32 %v7922_v7, %v7950_v19  ;;  %v7993_v40 = vmul.f32 %v7933_v12, %v7952_v20  ;;  %v8049_v14 = vld [vmem:[#allocation4 + $0x8] ss:$0 sm:$0xff] }
 0x130   : > { %v1220_v32 = vrot.slane %v1051_v23, 1  ;;  %v1216_v37 = vrot.slane %v1049_v27, 1  ;;  %v7997_v41 = vmul.f32 %v7938_v15, %v7952_v20  ;;  %v881_v43 = vmul.f32 %v7922_v7, %v7952_v20  ;;  %v441_v27 = vld [vmem:[%s7846_s13 + $0x240] sm:$0xff] }
 0x131   : > { %v7989_v39 = vpop.permute.xlu1 %533  ;;  %v1685_v44 = vrot.slane %v1518_v28, 2  ;;  %v1689_v51 = vrot.slane %v7978_v33, 2  ;;  %v8015_v54 = vmul.f32 %v7987_v38, %v7920_v6  ;;  %v8019_v55 = vmul.f32 %v7987_v38, %v7952_v20  ;;  %v8022_v58 = vpop.permute.xlu0 %528 }
 0x132   : > { %12607 = vst [vmem:[#allocation22_spill] sm:$0xff] %v7989_v39  ;;  %693 = vperm.xlu1 %7310, %v422_v29   ;;  %v1432_v46 = vadd.f32 %v1220_v32, %v883_v36  ;;  %v1217_v47 = vsel %vm1200_vm0, %v1215_v31, %v1216_v37  ;;  %v1219_v48 = vsel %vm1200_vm0, %v1216_v37, %v1218_v22  ;;  %12610 = vst [vmem:[#allocation25_spill] sm:$0xff] %v8022_v58 }
 0x133   : > { %v8007_v49 = vmul.f32 %v7912_v1, %v7989_v39  ;;  %688 = vperm.xlu0 %7309, %v421_v34   ;;  %12608 = vst [vmem:[#allocation23_spill] sm:$0xff] %v8015_v54  ;;  %12609 = vst [vmem:[#allocation24_spill] sm:$0xff] %v8019_v55  ;;  %v1221_v56 = vsel %vm1200_vm0, %v1218_v22, %v1220_v32  ;;  %v1430_v57 = vadd.f32 %v1219_v48, %v881_v43 }
 0x134   : > { %v8028_v61 = vmul.f32 %v7922_v7, %v7989_v39  ;;  %v8032_v62 = vmul.f32 %v7915_v3, %v7989_v39  ;;  %v1688_v63 = vsel %vm1669_vm1, %v1685_v44, %v1687_v26  ;;  %v1429_v0 = vadd.f32 %v1217_v47, %v880_v17 }
 0x135   : > { %v8039_v2 = vadd.f32 %v1689_v51, %v1432_v46  ;;  %v12459_v4 = vrot.slane %v8007_v49, 1  ;;  %v2027_v8 = vmul.f32 %v7931_v11, %v7989_v39  ;;  %v8046_v10 = vmul.f32 %v7933_v12, %v7989_v39  ;;  %v8078_v43 = vpop.permute.xlu1 %543 }
 0x136   : > { %703 = vperm.xlu1 %7310, %v424_v50   ;;  %v8053_v17 = vmul.f32 %v7938_v15, %v7989_v39  ;;  %v8057_v18 = vmul.f32 %v7987_v38, %v7989_v39  ;;  %v1686_v22 = vsel %vm1669_vm1, %v1684_v42, %v1685_v44  ;;  %v1052_v23 = vmul.f32 %v7912_v1, %v8022_v58  ;;  %v444_v50 = vld [vmem:[%s7846_s13 + $0x258] sm:$0xf] }
 0x137   : > { %698 = vperm.xlu0 %7309, %v423_v52   ;;  %v1899_v28 = vadd.f32 %v1688_v63, %v1430_v57  ;;  %v8065_v29 = vmul.f32 %v8049_v14, %v7989_v39  ;;  %v1898_v31 = vadd.f32 %v1686_v22, %v1429_v0  ;;  %v2194_v32 = vmul.f32 %v7933_v12, %v8022_v58  ;;  %v446_v22 = vld [vmem:[%s7846_s13 + $0x268] sm:$0xff] }
 0x138   : > { %12611 = vst [vmem:[#allocation26_spill] sm:$0xff] %v8057_v18  ;;  %v1222_v36 = vrot.slane %v1052_v23, 1  ;;  %v8072_v37 = vmul.f32 %v7915_v3, %v8022_v58  ;;  %v8076_v42 = vmul.f32 %v7938_v15, %v8022_v58  ;;  %12613 = vst [vmem:[#allocation28_spill] sm:$0xff] %v8078_v43  ;;  %v2361_v44 = vrot.slane %v8046_v10, 1  ;;  %v443_v10 = vld [vmem:[%s7846_s13 + $0x250] sm:$0xff] }
 0x139   : > { %12612 = vst [vmem:[#allocation27_spill] sm:$0xff] %v8065_v29  ;;  %v2026_v46 = vmul.f32 %v7931_v11, %v8022_v58  ;;  %v8085_v47 = vmul.f32 %v7987_v38, %v8022_v58  ;;  %v8089_v48 = vmul.f32 %v8049_v14, %v8022_v58  ;;  %v884_v63 = vmul.f32 %v7922_v7, %v8022_v58 }
 0x13a   : > { %793 = vperm.xlu1 %7310, %v442_v13   ;;  %v2360_v0 = vrot.slane %v2194_v32, 1  ;;  %v2107_v13 = vadd.f32 %v2027_v8, %v1899_v28  ;;  %v8100_v53 = vmul.f32 %v7922_v7, %v8078_v43  ;;  %v1224_v57 = vsel %vm1200_vm0, %v1222_v36, %v12459_v4  ;;  %v445_v28 = vld [vmem:[%s7846_s13 + $0x260] sm:$0xff]  ;;  %v448_v4 = vld [vmem:[%s7846_s13 + $0x278] sm:$0xf] }
 0x13b   : > { %12614 = vst [vmem:[#allocation29_spill] sm:$0xff] %v8085_v47  ;;  %12615 = vst [vmem:[#allocation30_spill] sm:$0xff] %v8089_v48  ;;  %788 = vperm.xlu0 %7309, %v441_v27   ;;  %v2106_v23 = vadd.f32 %v2026_v46, %v1898_v31  ;;  %v8102_v27 = vpop.permute.xlu0 %538  ;;  %v8111_v8 = vmul.f32 %v7912_v1, %v8078_v43  ;;  %v8117_v46 = vmul.f32 %v7915_v3, %v8078_v43 }
 0x13c   : > { %12616 = vst [vmem:[#allocation31_spill] sm:$0xff] %v8102_v27  ;;  %v2029_v36 = vmul.f32 %v7931_v11, %v8078_v43  ;;  %v2362_v45 = vsel %vm1200_vm0, %v2360_v0, %v2361_v44  ;;  %v8125_v59 = vmul.f32 %v7933_v12, %v8078_v43  ;;  %v8130_v31 = vmul.f32 %v7912_v1, %v8102_v27 }
 0x13d   : > { %v1433_v60 = vadd.f32 %v1224_v57, %v884_v63  ;;  %v2574_v32 = vadd.f32 %v2362_v45, %v2106_v23  ;;  %v8139_v0 = vmul.f32 %v7933_v12, %v8102_v27  ;;  %v8149_v45 = vmul.f32 %v7938_v15, %v8102_v27  ;;  %v554_v57 = vpop.permute.xlu1 %553 }
 0x13e   : > { %803 = vperm.xlu1 %7310, %v444_v50   ;;  %v1431_v50 = vadd.f32 %v1221_v56, %v7942_v16  ;;  %v8144_v16 = vmul.f32 %v7938_v15, %v8078_v43  ;;  %v2109_v23 = vadd.f32 %v2029_v36, %v8039_v2  ;;  %v1690_v52 = vsel %vm1669_vm1, %v1687_v26, %v1689_v51  ;;  %v447_v2 = vld [vmem:[%s7846_s13 + $0x270] sm:$0xff] }
 0x13f   : > { %798 = vperm.xlu0 %7309, %v443_v10   ;;  %v8135_v10 = vmul.f32 %v7915_v3, %v8102_v27  ;;  %v12463_v34 = vrot.slane %v8139_v0, 1  ;;  %v8165_v63 = vmul.f32 %v7987_v38, %v8102_v27  ;;  %v8171_v9 = vmul.f32 %v8049_v14, %v8102_v27 }
 0x140   : > { %v1900_v39 = vadd.f32 %v1690_v52, %v1431_v50  ;;  %v8174_v26 = vmul.f32 %v7912_v1, %v554_v57  ;;  %v12619_v51 = vrot.slane %v8130_v31, 1  ;;  %v12620_v52 = vrot.slane %v8007_v49, 1 }
 0x141   : > { %12617 = vst [vmem:[#allocation32_spill] sm:$0xff] %v8165_v63  ;;  %12618 = vst [vmem:[#allocation33_spill] sm:$0xff] %v8171_v9  ;;  %v8184_v56 = vmul.f32 %v7915_v3, %v554_v57  ;;  %v2364_v33 = vsel %vm1200_vm0, %v2361_v44, %v12463_v34  ;;  %v8192_v49 = vmul.f32 %v7922_v7, %v8102_v27  ;;  %v449_v44 = vld [vmem:[%s7846_s13 + $0x280] sm:$0xff]  ;;  %v12623_v63 = vrot.slane %v8149_v45, 2  ;;  %v549_v9 = vpop.permute.xlu0 %548 }
 0x142   : > { %813 = vperm.xlu1 %7310, %v446_v22   ;;  %v2028_v22 = vmul.f32 %v7931_v11, %v8102_v27  ;;  %v8201_v36 = vmul.f32 %v7922_v7, %v554_v57  ;;  %v12621_v27 = vrot.slane %v8135_v10, 2  ;;  %v12624_v34 = vrot.slane %v8053_v17, 2 }
 0x143   : > { %808 = vperm.xlu0 %7309, %v445_v28   ;;  %v1226_v28 = vsel %vm1200_vm0, %v12620_v52, %v12619_v51  ;;  %v8195_v51 = vmul.f32 %v7933_v12, %v554_v57  ;;  %v2575_v52 = vadd.f32 %v2364_v33, %v2107_v13  ;;  %v12622_v13 = vrot.slane %v8032_v62, 2 }
 0x144   : > { %v1434_v50 = vadd.f32 %v1226_v28, %v8028_v61  ;;  %v8197_v61 = vadd.f32 %v2028_v22, %v1900_v39  ;;  %v2031_v22 = vmul.f32 %v7931_v11, %v554_v57  ;;  %v8217_v28 = vmul.f32 %v7938_v15, %v554_v57 }
 0x145   : > { %v1695_v39 = vsel %vm1669_vm1, %v12622_v13, %v12621_v27  ;;  %v2832_v5 = vsel %vm1669_vm1, %v12624_v34, %v12623_v63  ;;  %v3171_v27 = vmul.f32 %v7954_v21, %v554_v57  ;;  %v12625_v13 = vmov %v12624_v34 }
 0x146   : > { %823 = vperm.xlu1 %7310, %v448_v4   ;;  %v8204_v4 = vmul.f32 %v7987_v38, %v554_v57  ;;  %v1903_v33 = vadd.f32 %v1695_v39, %v1434_v50  ;;  %v3043_v35 = vadd.f32 %v2832_v5, %v2575_v52  ;;  %v8233_v24 = vmul.f32 %v8049_v14, %v554_v57 }
 0x147   : > { %818 = vperm.xlu0 %7309, %v447_v2   ;;  %v12626_v2 = vrot.slane %v8076_v42, 2  ;;  %v12627_v34 = vrot.slane %v8032_v62, 2  ;;  %v12628_v63 = vrot.slane %v8072_v37, 2  ;;  %v3170_v17 = vmul.f32 %v7954_v21, %v549_v9 }
 0x148   : > { %v3338_v42 = vmul.f32 %v7987_v38, %v549_v9  ;;  %v8247_v57 = vmul.f32 %v7915_v3, %v549_v9  ;;  %v2030_v62 = vmul.f32 %v7931_v11, %v549_v9  ;;  %v8251_v37 = vmul.f32 %v7933_v12, %v549_v9 }
 0x149   : > { %v2830_v50 = vsel %vm1669_vm1, %v12626_v2, %v12625_v13  ;;  %v1693_v5 = vsel %vm1669_vm1, %v12628_v63, %v12627_v34  ;;  %v3806_v2 = vmul.f32 %v8049_v14, %v549_v9  ;;  %v8244_v13 = vmul.f32 %v7912_v1, %v549_v9 }
 0x14a   : > { %v3042_v52 = vadd.f32 %v2830_v50, %v2574_v32  ;;  %v1902_v43 = vadd.f32 %v1693_v5, %v1433_v60  ;;  %v8253_v32 = vadd.f32 %v2031_v22, %v1903_v33  ;;  %v8256_v50 = vadd.f32 %v3171_v27, %v3043_v35 }
 0x14b   : > { %828 = vperm.xlu0 %7309, %v449_v44   ;;  %v564_v44 = vpop.permute.xlu1 %563  ;;  %v3504_v34 = vrot.slane %v3338_v42, 1  ;;  %v8259_v63 = vmul.f32 %v7938_v15, %v549_v9  ;;  %v12629_v39 = vrot.slane %v8125_v59, 1  ;;  %v8266_v18 = vmul.f32 %v7922_v7, %v549_v9 }
 0x14c   : > { %v3250_v5 = vadd.f32 %v3170_v17, %v3042_v52  ;;  %v1059_v29 = vmul.f32 %v7912_v1, %v564_v44  ;;  %v12630_v22 = vrot.slane %v8204_v4, 1  ;;  %v3972_v33 = vrot.slane %v3806_v2, 2 }
 0x14d   : > { %v2577_v48 = vadd.f32 %v12629_v39, %v2109_v23  ;;  %v8273_v52 = vadd.f32 %v2030_v62, %v1902_v43  ;;  %v12631_v39 = vrot.slane %v8111_v8, 1  ;;  %v12632_v9 = vrot.slane %v8144_v16, 2 }
 0x14e   : > { %v3506_v35 = vsel %vm1200_vm0, %v3504_v34, %v12630_v22  ;;  %v8282_v47 = vmul.f32 %v7915_v3, %v564_v44  ;;  %v3173_v2 = vmul.f32 %v7954_v21, %v564_v44  ;;  %v1234_v42 = vrot.slane %v1059_v29, 1 }
 0x14f   : > { %v1436_v17 = vadd.f32 %v12631_v39, %v8100_v53  ;;  %v3045_v60 = vadd.f32 %v12632_v9, %v2577_v48  ;;  %v3718_v22 = vadd.f32 %v3506_v35, %v3250_v5  ;;  %v3341_v43 = vmul.f32 %v7987_v38, %v564_v44  ;;  %v559_v35 = vpop.permute.xlu0 %558 }
 0x150   : > { %v12633_v62 = vrot.slane %v8233_v24, 2  ;;  %v891_v53 = vmul.f32 %v7922_v7, %v564_v44  ;;  %v2033_v39 = vmul.f32 %v7931_v11, %v564_v44  ;;  %v2201_v9 = vmul.f32 %v7933_v12, %v564_v44 }
 0x151   : > { %v3253_v48 = vadd.f32 %v3173_v2, %v3045_v60  ;;  %v3509_v27 = vrot.slane %v3341_v43, 1  ;;  %v3809_v54 = vmul.f32 %v8049_v14, %v564_v44  ;;  %v12634_v34 = vrot.slane %v8111_v8, 1 }
 0x152   : > { %v3974_v23 = vsel %vm1669_vm1, %v3972_v33, %v12633_v62  ;;  %v12635_v29 = vrot.slane %v8130_v31, 1  ;;  %v12636_v19 = vrot.slane %v8117_v46, 2  ;;  %v12481_v62 = vrot.slane %v8282_v47, 2 }
 0x153   : > { %v8303_v58 = vmul.f32 %v7938_v15, %v564_v44  ;;  %v12637_v60 = vrot.slane %v8125_v59, 1  ;;  %v12638_v2 = vrot.slane %v8139_v0, 1  ;;  %v8310_v8 = vadd.f32 %v3974_v23, %v3718_v22 }
 0x154   : > { %v1228_v5 = vsel %vm1200_vm0, %v12635_v29, %v12634_v34  ;;  %v1905_v33 = vadd.f32 %v12636_v19, %v1436_v17  ;;  %v1440_v31 = vadd.f32 %v1234_v42, %v891_v53  ;;  %v3721_v55 = vadd.f32 %v3509_v27, %v3253_v48 }
 0x155   : > { %v2366_v43 = vsel %vm1200_vm0, %v12638_v2, %v12637_v60  ;;  %v1435_v29 = vadd.f32 %v1228_v5, %v8192_v49  ;;  %v12639_v19 = vrot.slane %v8144_v16, 2  ;;  %v12640_v17 = vrot.slane %v8149_v45, 2 }
 0x156   : > { %v2576_v34 = vadd.f32 %v2366_v43, %v8197_v61  ;;  %v1058_v59 = vmul.f32 %v7912_v1, %v559_v35  ;;  %v8321_v0 = vmul.f32 %v7915_v3, %v559_v35  ;;  %v2113_v60 = vadd.f32 %v2033_v39, %v1905_v33 }
 0x157   : > { %v2834_v44 = vsel %vm1669_vm1, %v12640_v17, %v12639_v19  ;;  %v2372_v23 = vrot.slane %v2201_v9, 1  ;;  %v3977_v22 = vrot.slane %v3809_v54, 2  ;;  %v12641_v48 = vrot.slane %v8117_v46, 2 }
 0x158   : > { %v3044_v53 = vadd.f32 %v2834_v44, %v2576_v34  ;;  %v12642_v61 = vrot.slane %v8135_v10, 2  ;;  %v1232_v16 = vrot.slane %v1058_v59, 1  ;;  %v2200_v45 = vmul.f32 %v7933_v12, %v559_v35  ;;  %v8344_v59 = vld [vmem:[#allocation6] ss:$0 sm:$0xff] }
 0x159   : > { %v3172_v5 = vmul.f32 %v7954_v21, %v559_v35  ;;  %v4189_v2 = vadd.f32 %v3977_v22, %v3721_v55  ;;  %v890_v43 = vmul.f32 %v7922_v7, %v559_v35  ;;  %v1701_v19 = vrot.slane %v8321_v0, 2 }
 0x15a   : > { %v1697_v49 = vsel %vm1669_vm1, %v12642_v61, %v12641_v48  ;;  %v3340_v39 = vmul.f32 %v7987_v38, %v559_v35  ;;  %v12643_v9 = vrot.slane %v8174_v26, 1  ;;  %v1235_v10 = vsel %vm1200_vm0, %v1232_v16, %v1234_v42 }
 0x15b   : > { %v1904_v54 = vadd.f32 %v1697_v49, %v1435_v29  ;;  %v2032_v33 = vmul.f32 %v7931_v11, %v559_v35  ;;  %v12483_v34 = vrot.slane %v8303_v58, 2  ;;  %v8339_v17 = vadd.f32 %v1235_v10, %v890_v43  ;;  %v574_v49 = vpop.permute.xlu1 %573 }
 0x15c   : > { %v1233_v46 = vsel %vm1200_vm0, %v12643_v9, %v1232_v16  ;;  %v8342_v55 = vmul.f32 %v7938_v15, %v559_v35  ;;  %v3252_v44 = vadd.f32 %v3172_v5, %v3044_v53  ;;  %v8348_v29 = vadd.f32 %v12481_v62, %v1440_v31 }
 0x15d   : > { %v2370_v48 = vrot.slane %v2200_v45, 1  ;;  %v3507_v61 = vrot.slane %v3340_v39, 1  ;;  %v3808_v42 = vmul.f32 %v8049_v14, %v559_v35  ;;  %v2581_v16 = vadd.f32 %v2372_v23, %v2113_v60 }
 0x15e   : > { %v8352_v9 = vadd.f32 %v8344_v59, %v4189_v2  ;;  %v1438_v43 = vadd.f32 %v1233_v46, %v8201_v36  ;;  %v12644_v53 = vrot.slane %v8184_v56, 2  ;;  %v2112_v10 = vadd.f32 %v2032_v33, %v1904_v54 }
 0x15f   : > { %v12645_v31 = vrot.slane %v8204_v4, 1  ;;  %v3510_v35 = vsel %vm1200_vm0, %v3507_v61, %v3509_v27  ;;  %v3975_v39 = vrot.slane %v3808_v42, 2  ;;  %v12482_v60 = vrot.slane %v8342_v55, 2 }
 0x160   : > { %v1702_v5 = vsel %vm1669_vm1, %v12644_v53, %v1701_v19  ;;  %v3720_v62 = vadd.f32 %v3510_v35, %v3252_v44  ;;  %v8367_v36 = vmul.f32 %v7912_v1, %v574_v49  ;;  %v2373_v46 = vsel %vm1200_vm0, %v2370_v48, %v2372_v23 }
 0x161   : > { %v3508_v45 = vsel %vm1200_vm0, %v12645_v31, %v3507_v61  ;;  %v8371_v53 = vmul.f32 %v7915_v3, %v574_v49  ;;  %v1907_v54 = vadd.f32 %v1702_v5, %v1438_v43  ;;  %v2035_v4 = vmul.f32 %v7931_v11, %v574_v49 }
 0x162   : > { %v3719_v2 = vadd.f32 %v3508_v45, %v8256_v50  ;;  %v12646_v33 = vrot.slane %v8195_v51, 1  ;;  %v12647_v61 = vrot.slane %v8233_v24, 2  ;;  %v3978_v44 = vsel %vm1669_vm1, %v3975_v39, %v3977_v22  ;;  %v584_v45 = vpop.permute.xlu1 %583 }
 0x163   : > { %v8382_v42 = vmul.f32 %v7933_v12, %v574_v49  ;;  %v8386_v23 = vadd.f32 %v12483_v34, %v2581_v16  ;;  %v4188_v5 = vadd.f32 %v3978_v44, %v3720_v62  ;;  %v8388_v31 = vadd.f32 %v2035_v4, %v1907_v54 }
 0x164   : > { %v2371_v27 = vsel %vm1200_vm0, %v12646_v33, %v2370_v48  ;;  %v3976_v50 = vsel %vm1669_vm1, %v12647_v61, %v3975_v39  ;;  %v8391_v48 = vadd.f32 %v2373_v46, %v2112_v10  ;;  %v8394_v24 = vmul.f32 %v7922_v7, %v574_v49 }
 0x165   : > { %v4187_v43 = vadd.f32 %v3976_v50, %v3719_v2  ;;  %v1237_v22 = vrot.slane %v8367_v36, 1  ;;  %v2579_v39 = vadd.f32 %v2371_v27, %v8253_v32  ;;  %v8400_v16 = vmul.f32 %v7938_v15, %v574_v49  ;;  %v569_v27 = vpop.permute.xlu0 %568 }
 0x166   : > { %v12648_v62 = vrot.slane %v8174_v26, 1  ;;  %v12649_v2 = vrot.slane %v8244_v13, 1  ;;  %v2375_v10 = vrot.slane %v8382_v42, 1  ;;  %v12650_v46 = vrot.slane %v8217_v28, 2 }
 0x167   : > { %v3175_v33 = vmul.f32 %v7954_v21, %v574_v49  ;;  %v8416_v61 = vadd.f32 %v8344_v59, %v4187_v43  ;;  %v8419_v26 = vadd.f32 %v8344_v59, %v4188_v5  ;;  %v12651_v13 = vrot.slane %v8184_v56, 2 }
 0x168   : > { %v1231_v54 = vsel %vm1200_vm0, %v12649_v2, %v12648_v62  ;;  %v2839_v4 = vsel %vm1669_vm1, %v12650_v46, %v12482_v60  ;;  %v12652_v50 = vrot.slane %v8247_v57, 2  ;;  %v12653_v62 = vrot.slane %v8195_v51, 1 }
 0x169   : > { %v1437_v32 = vadd.f32 %v1231_v54, %v8266_v18  ;;  %v12654_v2 = vrot.slane %v8251_v37, 1  ;;  %v8432_v18 = vmul.f32 %v7987_v38, %v574_v49  ;;  %v8435_v43 = vmul.f32 %v8049_v14, %v574_v49 }
 0x16a   : > { %v1700_v44 = vsel %vm1669_vm1, %v12652_v50, %v12651_v13  ;;  %v12655_v56 = vrot.slane %v8217_v28, 2  ;;  %v12656_v57 = vrot.slane %v8259_v63, 2  ;;  %v1060_v51 = vmul.f32 %v7912_v1, %v569_v27 }
 0x16b   : > { %v2369_v46 = vsel %vm1200_vm0, %v12654_v2, %v12653_v62  ;;  %v1906_v5 = vadd.f32 %v1700_v44, %v1437_v32  ;;  %v2034_v37 = vmul.f32 %v7931_v11, %v569_v27  ;;  %v2202_v50 = vmul.f32 %v7933_v12, %v569_v27 }
 0x16c   : > { %v2578_v54 = vadd.f32 %v2369_v46, %v8273_v52  ;;  %v2837_v13 = vsel %vm1669_vm1, %v12656_v57, %v12655_v56  ;;  %v3047_v2 = vadd.f32 %v2839_v4, %v2579_v39  ;;  %v3174_v32 = vmul.f32 %v7954_v21, %v569_v27 }
 0x16d   : > { %v1236_v44 = vrot.slane %v1060_v51, 1  ;;  %v2114_v28 = vadd.f32 %v2034_v37, %v1906_v5  ;;  %v2374_v46 = vrot.slane %v2202_v50, 1  ;;  %v12484_v63 = vrot.slane %v8432_v18, 1 }
 0x16e   : > { %v3046_v49 = vadd.f32 %v2837_v13, %v2578_v54  ;;  %v892_v56 = vmul.f32 %v7922_v7, %v569_v27  ;;  %v3342_v57 = vmul.f32 %v7987_v38, %v569_v27  ;;  %v3810_v35 = vmul.f32 %v8049_v14, %v569_v27 }
 0x16f   : > { %v12486_v62 = vrot.slane %v8435_v43, 2  ;;  %v1238_v39 = vsel %vm1200_vm0, %v1236_v44, %v1237_v22  ;;  %v2376_v4 = vsel %vm1200_vm0, %v2374_v46, %v2375_v10  ;;  %v1063_v52 = vmul.f32 %v7912_v1, %v584_v45 }
 0x170   : > { %v3254_v5 = vadd.f32 %v3174_v32, %v3046_v49  ;;  %v8460_v54 = vadd.f32 %v1238_v39, %v892_v56  ;;  %v8462_v13 = vadd.f32 %v2376_v4, %v2114_v28  ;;  %v3511_v51 = vrot.slane %v3342_v57, 1 }
 0x171   : > { %v3979_v37 = vrot.slane %v3810_v35, 2  ;;  %v2037_v60 = vmul.f32 %v7931_v11, %v584_v45  ;;  %v2205_v34 = vmul.f32 %v7933_v12, %v584_v45  ;;  %v8468_v44 = vadd.f32 %v3175_v33, %v3047_v2 }
 0x172   : > { %12657 = vst [vmem:[#allocation34_spill] sm:$0xff] %v8460_v54  ;;  %12658 = vst [vmem:[#allocation35_spill] sm:$0xff] %v8462_v13  ;;  %v3513_v49 = vsel %vm1200_vm0, %v3511_v51, %v12484_v63  ;;  %v8474_v32 = vmul.f32 %v7938_v15, %v584_v45  ;;  %v3177_v28 = vmul.f32 %v7954_v21, %v584_v45  ;;  %v1241_v50 = vrot.slane %v1063_v52, 1 }
 0x173   : > { %v4273_v35 = vadd.f32 %v8344_v59, %v8310_v8  ;;  %v8480_v46 = vmul.f32 %v7915_v3, %v569_v27  ;;  %v3722_v56 = vadd.f32 %v3513_v49, %v3254_v5  ;;  %v2117_v57 = vadd.f32 %v2037_v60, %v8348_v29  ;;  %v579_v60 = vpop.permute.xlu0 %578 }
 0x174   : > { %12659 = vst [vmem:[#allocation36_spill] sm:$0xff] %v8474_v32  ;;  %v3981_v33 = vsel %vm1669_vm1, %v3979_v37, %v12486_v62  ;;  %v2379_v2 = vrot.slane %v2205_v34, 1  ;;  %v3257_v39 = vadd.f32 %v3177_v28, %v8386_v23  ;;  %v3345_v4 = vmul.f32 %v7987_v38, %v584_v45 }
 0x175   : > { %12660 = vst [vmem:[#allocation37_spill] sm:$0xff] %v8480_v46  ;;  %v4190_v51 = vadd.f32 %v3981_v33, %v3722_v56  ;;  %v8489_v63 = vmul.f32 %v8049_v14, %v584_v45  ;;  %v12661_v8 = vrot.slane %v8282_v47, 2  ;;  %v12485_v37 = vrot.slane %v8474_v32, 2 }
 0x176   : > { %v2585_v5 = vadd.f32 %v2379_v2, %v2117_v57  ;;  %v3516_v34 = vrot.slane %v3345_v4, 1  ;;  %v4353_v49 = vmax.f32 %v4273_v35, 0.0  ;;  %v8499_v28 = vmul.f32 %v7938_v15, %v569_v27 }
 0x177   : > { %v1704_v29 = vsel %vm1669_vm1, %v1701_v19, %v12661_v8  ;;  %v895_v52 = vmul.f32 %v7922_v7, %v584_v45  ;;  %v8503_v56 = vmul.f32 %v7915_v3, %v584_v45  ;;  %v3984_v19 = vrot.slane %v8489_v63, 2 }
 0x178   : > { %v1908_v23 = vadd.f32 %v1704_v29, %v8339_v17  ;;  %12662 = vst [vmem:[#allocation38_spill] sm:$0xff] %v8499_v28  ;;  %v8507_v47 = vadd.f32 %v12485_v37, %v2585_v5  ;;  %v3725_v0 = vadd.f32 %v3516_v34, %v3257_v39  ;;  %v1062_v57 = vmul.f32 %v7912_v1, %v579_v60 }
 0x179   : > { %12663 = vst [vmem:[#allocation39_spill] sm:$0xff] %v8503_v56  ;;  %v4277_v17 = vadd.f32 %v8344_v59, %v4190_v51  ;;  %v12665_v35 = vrot.slane %v8303_v58, 2  ;;  %v12666_v27 = vrot.slane %v8342_v55, 2  ;;  %v2036_v45 = vmul.f32 %v7931_v11, %v579_v60  ;;  %v474_v58 = vpop.permute.xlu1 %473 }
 0x17a   : > { %12664 = vst [vmem:[#allocation40_spill] sm:$0xff] %v8507_v47  ;;  %v2204_v4 = vmul.f32 %v7933_v12, %v579_v60  ;;  %v1444_v8 = vadd.f32 %v1241_v50, %v895_v52  ;;  %v4193_v29 = vadd.f32 %v3984_v19, %v3725_v0  ;;  %v1239_v5 = vrot.slane %v1062_v57, 1 }
 0x17b   : > { %v2841_v33 = vsel %vm1669_vm1, %v12666_v27, %v12665_v35  ;;  %v894_v63 = vmul.f32 %v7922_v7, %v579_v60  ;;  %v2116_v37 = vadd.f32 %v2036_v45, %v1908_v23  ;;  %v3176_v51 = vmul.f32 %v7954_v21, %v579_v60  ;;  %v469_v45 = vpop.permute.xlu0 %468 }
 0x17c   : > { %v3048_v39 = vadd.f32 %v2841_v33, %v8391_v48  ;;  %v2377_v62 = vrot.slane %v2204_v4, 1  ;;  %v4280_v55 = vadd.f32 %v8344_v59, %v4193_v29  ;;  %v8526_v35 = vsel %vm1200_vm0, %v1237_v22, %v1239_v5 }
 0x17d   : > { %v1242_v52 = vsel %vm1200_vm0, %v1239_v5, %v1241_v50  ;;  %v8530_v0 = vmul.f32 %v7915_v3, %v579_v60  ;;  %v4357_v48 = vmax.f32 %v4277_v17, 0.0  ;;  %v8543_v36 = vmul.f32 %v7938_v15, %v579_v60 }
 0x17e   : > { %v8532_v57 = vadd.f32 %v1242_v52, %v894_v63  ;;  %v8537_v23 = vsel %vm1200_vm0, %v2375_v10, %v2377_v62  ;;  %v2380_v27 = vsel %vm1200_vm0, %v2377_v62, %v2379_v2  ;;  %v3344_v22 = vmul.f32 %v7987_v38, %v579_v60 }
 0x17f   : > { %v8540_v33 = vadd.f32 %v2380_v27, %v2116_v37  ;;  %v3812_v50 = vmul.f32 %v8049_v14, %v579_v60  ;;  %v12487_v4 = vrot.slane %v8503_v56, 2  ;;  %v3256_v42 = vadd.f32 %v3176_v51, %v3048_v39  ;;  %v484_v27 = vpop.permute.xlu1 %483 }
 0x180   : > { %12667 = vst [vmem:[#allocation41_spill] sm:$0xff] %v8532_v57  ;;  %v1041_v10 = vmul.f32 %v7912_v1, %v474_v58  ;;  %v4360_v62 = vmax.f32 %v4280_v55, 0.0  ;;  %v3514_v2 = vrot.slane %v3344_v22, 1  ;;  %v4429_v5 = vmax.f32 %v4353_v49, %v4357_v48 }
 0x181   : > { %12668 = vst [vmem:[#allocation42_spill] sm:$0xff] %v8540_v33  ;;  %v3982_v37 = vrot.slane %v3812_v50, 2  ;;  %v8553_v63 = vadd.f32 %v12487_v4, %v1444_v8  ;;  %v1040_v52 = vmul.f32 %v7912_v1, %v469_v45  ;;  %v12670_v39 = vrot.slane %v8432_v18, 1  ;;  %v479_v33 = vpop.permute.xlu0 %478 }
 0x182   : > { %v3517_v55 = vsel %vm1200_vm0, %v3514_v2, %v3516_v34  ;;  %v1510_v22 = vmul.f32 %v7915_v3, %v474_v58  ;;  %v1202_v8 = vrot.slane %v1041_v10, 1  ;;  %v12671_v4 = vmax.f32 %v8352_v9, 0.0 }
 0x183   : > { %12669 = vst [vmem:[#allocation43_spill] sm:$0xff] %v8553_v63  ;;  %v3515_v51 = vsel %vm1200_vm0, %v12670_v39, %v3514_v2  ;;  %v3724_v48 = vadd.f32 %v3517_v55, %v3256_v42  ;;  %v1201_v50 = vrot.slane %v1040_v52, 1  ;;  %v12672_v60 = vrot.slane %v8435_v43, 2 }
 0x184   : > { %v3723_v49 = vadd.f32 %v3515_v51, %v8468_v44  ;;  %v4432_v29 = vmax.f32 %v12671_v4, %v4360_v62  ;;  %v3985_v18 = vsel %vm1669_vm1, %v3982_v37, %v3984_v19  ;;  %v1043_v39 = vmul.f32 %v7912_v1, %v484_v27 }
 0x185   : > { %v3983_v17 = vsel %vm1669_vm1, %v12672_v60, %v3982_v37  ;;  %v4476_v34 = vrot.slane %v4429_v5, 1  ;;  %v4192_v57 = vadd.f32 %v3985_v18, %v3724_v48  ;;  %v1509_v44 = vmul.f32 %v7915_v3, %v469_v45 }
 0x186   : > { %v4191_v2 = vadd.f32 %v3983_v17, %v3723_v49  ;;  %v873_v42 = vmul.f32 %v7922_v7, %v474_v58  ;;  %v1671_v10 = vrot.slane %v1510_v22, 2  ;;  %v872_v9 = vmul.f32 %v7922_v7, %v469_v45  ;;  %v494_v49 = vpop.permute.xlu1 %493 }
 0x187   : > { %v1206_v4 = vrot.slane %v1043_v39, 1  ;;  %v4279_v62 = vadd.f32 %v8344_v59, %v4192_v57  ;;  %v1203_v19 = vsel %vm1200_vm0, %v1201_v50, %v1202_v8  ;;  %v1042_v37 = vmul.f32 %v7912_v1, %v479_v33 }
 0x188   : > { %v4278_v43 = vadd.f32 %v8344_v59, %v4191_v2  ;;  %v4720_v60 = vrot.slane %v4432_v29, 1  ;;  %v875_v17 = vmul.f32 %v7922_v7, %v484_v27  ;;  %v1512_v52 = vmul.f32 %v7915_v3, %v484_v27 }
 0x189   : > { %v1511_v51 = vmul.f32 %v7915_v3, %v479_v33  ;;  %v4359_v55 = vmax.f32 %v4279_v62, 0.0  ;;  %v1670_v22 = vrot.slane %v1509_v44, 2  ;;  %v1204_v45 = vrot.slane %v1042_v37, 1 }
 0x18a   : > { %v4358_v58 = vmax.f32 %v4278_v43, 0.0  ;;  %v1421_v48 = vadd.f32 %v1203_v19, %v872_v9  ;;  %v1424_v18 = vadd.f32 %v1206_v4, %v875_v17  ;;  %v874_v57 = vmul.f32 %v7922_v7, %v479_v33 }
 0x18b   : > { %v1673_v39 = vrot.slane %v1511_v51, 2  ;;  %v12673_v50 = vmax.f32 %v8416_v61, 0.0  ;;  %v12674_v32 = vmax.f32 %v8419_v26, 0.0  ;;  %v1205_v27 = vsel %vm1200_vm0, %v1202_v8, %v1204_v45 }
 0x18c   : > { %v1207_v63 = vsel %vm1200_vm0, %v1204_v45, %v1206_v4  ;;  %v1675_v43 = vrot.slane %v1512_v52, 2  ;;  %v1422_v62 = vadd.f32 %v1205_v27, %v873_v42  ;;  %v8589_v44 = vmul.f32 %v7912_v1, %v494_v49 }
 0x18d   : > { %v4430_v2 = vmax.f32 %v12673_v50, %v4358_v58  ;;  %v4431_v56 = vmax.f32 %v12674_v32, %v4359_v55  ;;  %v8592_v9 = vmul.f32 %v7915_v3, %v494_v49  ;;  %v1423_v37 = vadd.f32 %v1207_v63, %v874_v57  ;;  %v489_v58 = vpop.permute.xlu0 %488 }
 0x18e   : > { %v1674_v61 = vsel %vm1669_vm1, %v1671_v10, %v1673_v39  ;;  %v8595_v17 = vmax.f32 %v4429_v5, %v4476_v34  ;;  %v4740_v26 = vmax.f32 %v4432_v29, %v4720_v60  ;;  %v1672_v32 = vsel %vm1669_vm1, %v1670_v22, %v1671_v10 }
 0x18f   : > { %v4560_v33 = vrot.slane %v4430_v2, 1  ;;  %v4640_v19 = vrot.slane %v4431_v56, 1  ;;  %v1891_v8 = vadd.f32 %v1674_v61, %v1422_v62  ;;  %v1890_v4 = vadd.f32 %v1672_v32, %v1421_v48  ;;  %v12685_v62 = vld [vmem:[#allocation19_spill] sm:$0xff] }
 0x190   : > { %12675 = vst [vmem:[#allocation44_spill] sm:$0xff] %v8595_v17  ;;  %v8598_v52 = vadd.f32 %v1675_v43, %v1424_v18  ;;  %v8601_v42 = vmul.f32 %v7922_v7, %v494_v49  ;;  %v8604_v51 = vmul.f32 %v7933_v12, %v494_v49  ;;  %v1676_v63 = vsel %vm1669_vm1, %v1673_v39, %v1675_v43 }
 0x191   : > { %v12490_v55 = vrot.slane %v8589_v44, 1  ;;  %v2019_v5 = vmul.f32 %v7931_v11, %v494_v49  ;;  %v8610_v29 = vmul.f32 %v7938_v15, %v494_v49  ;;  %v8612_v34 = vmax.f32 %v4430_v2, %v4560_v33  ;;  %4507 = vst.msk [vmem:[#allocation2 + $0x10] sm:$0x1] %vm4505_vm2, %v8595_v17  ;;  %4750 = vst.msk [vmem:[#allocation2 + $0x1c] sm:$0x1] %vm4505_vm2, %v4740_v26 }
 0x192   : > { %v8614_v10 = vmax.f32 %v4431_v56, %v4640_v19  ;;  %v8616_v60 = vadd.f32 %v1676_v63, %v1423_v37  ;;  %v12491_v22 = vrot.slane %v8592_v9, 2  ;;  %v12678_v48 = vrot.slane %v7993_v40, 1  ;;  %v8709_v26 = vld [vmem:[#allocation4 + $0x2] ss:$0 sm:$0xff] }
 0x193   : > { %12676 = vst [vmem:[#allocation45_spill] sm:$0xff] %v8612_v34  ;;  %v8619_v45 = vadd.f32 %v2019_v5, %v1891_v8  ;;  %v12679_v18 = vrot.slane %v7964_v25, 1  ;;  %v12680_v39 = vrot.slane %v7997_v41, 2  ;;  %v12681_v49 = vrot.slane %v7974_v30, 2  ;;  %v12683_v8 = vld [vmem:[#allocation24_spill] sm:$0xff] }
 0x194   : > { %12677 = vst [vmem:[#allocation46_spill] sm:$0xff] %v8614_v10  ;;  %v1044_v56 = vmul.f32 %v7912_v1, %v489_v58  ;;  %v12492_v2 = vrot.slane %v8604_v51, 1  ;;  %v8635_v27 = vmul.f32 %v8049_v14, %v7952_v20  ;;  %v1513_v43 = vmul.f32 %v7915_v3, %v489_v58  ;;  %4590 = vst.msk [vmem:[#allocation2 + $0x14] sm:$0x1] %vm4505_vm2, %v8612_v34 }
 0x195   : > { %v2355_v57 = vsel %vm1200_vm0, %v12679_v18, %v12678_v48  ;;  %v2823_v50 = vsel %vm1669_vm1, %v12681_v49, %v12680_v39  ;;  %v2018_v25 = vmul.f32 %v7931_v11, %v489_v58  ;;  %v2186_v19 = vmul.f32 %v7933_v12, %v489_v58  ;;  %v12684_v18 = vld [vmem:[#allocation25_spill] sm:$0xff]  ;;  %4670 = vst.msk [vmem:[#allocation2 + $0x18] sm:$0x1] %vm4505_vm2, %v8614_v10 }
 0x196   : > { %12682 = vst [vmem:[#allocation47_spill] sm:$0xff] %v8635_v27  ;;  %v1208_v33 = vrot.slane %v1044_v56, 1  ;;  %v2654_v30 = vmul.f32 %v7938_v15, %v489_v58  ;;  %v3798_v1 = vmul.f32 %v8049_v14, %v7920_v6  ;;  %v876_v37 = vmul.f32 %v7922_v7, %v489_v58  ;;  %v12686_v7 = vld [vmem:[#allocation23_spill] sm:$0xff]  ;;  %v12687_v58 = vld [vmem:[#allocation26_spill] sm:$0xff] }
 0x197   : > { %v1677_v61 = vrot.slane %v1513_v43, 2  ;;  %v2098_v32 = vadd.f32 %v2018_v25, %v1890_v4  ;;  %v2346_v5 = vrot.slane %v2186_v19, 1  ;;  %v3166_v39 = vmul.f32 %v7954_v21, %v12684_v18  ;;  %v12689_v25 = vld [vmem:[#allocation29_spill] sm:$0xff]  ;;  %v12693_v18 = vld [vmem:[#allocation30_spill] sm:$0xff] }
 0x198   : > { %v1210_v3 = vsel %vm1200_vm0, %v1208_v33, %v12490_v55  ;;  %v2814_v48 = vrot.slane %v2654_v30, 2  ;;  %v8654_v6 = vmul.f32 %v7933_v12, %v12685_v62  ;;  %v3490_v4 = vrot.slane %v12686_v7, 1 }
 0x199   : > { %v1425_v56 = vadd.f32 %v1210_v3, %v876_v37  ;;  %v12688_v43 = vrot.slane %v12687_v58, 1  ;;  %v12690_v63 = vrot.slane %v12689_v25, 1  ;;  %v1679_v19 = vsel %vm1669_vm1, %v1677_v61, %v12491_v22  ;;  %v12691_v3 = vld [vmem:[#allocation27_spill] sm:$0xff]  ;;  %v504_v25 = vpop.permute.xlu1 %503 }
 0x19a   : > { %v2348_v30 = vsel %vm1200_vm0, %v2346_v5, %v12492_v2  ;;  %v3958_v37 = vrot.slane %v3798_v1, 2  ;;  %v12692_v12 = vrot.slane %v12691_v3, 2  ;;  %v12694_v55 = vrot.slane %v12693_v18, 2 }
 0x19b   : > { %v3499_v33 = vsel %vm1200_vm0, %v12690_v63, %v12688_v43  ;;  %v1894_v49 = vadd.f32 %v1679_v19, %v1425_v56  ;;  %v2566_v47 = vadd.f32 %v2348_v30, %v2098_v32  ;;  %v12695_v63 = vrot.slane %v12683_v8, 1  ;;  %v12699_v30 = vld [vmem:[#allocation21_spill] sm:$0xff]  ;;  %v12700_v19 = vld [vmem:[#allocation28_spill] sm:$0xff] }
 0x19c   : > { %v3967_v7 = vsel %vm1669_vm1, %v12694_v55, %v12692_v12  ;;  %v12696_v61 = vrot.slane %v8610_v29, 2  ;;  %v2025_v1 = vmul.f32 %v7931_v11, %v12685_v62  ;;  %v12697_v5 = vrot.slane %v8635_v27, 2  ;;  %v12698_v55 = vld [vmem:[#allocation20_spill] sm:$0xff] }
 0x19d   : > { %v3492_v43 = vsel %vm1200_vm0, %v3490_v4, %v12695_v63  ;;  %v2102_v56 = vadd.f32 %v12698_v55, %v1894_v49  ;;  %v8695_v11 = vmul.f32 %v7938_v15, %v12685_v62  ;;  %v8712_v15 = vmul.f32 %v8709_v26, %v504_v25  ;;  %v8714_v12 = vld [vmem:[#allocation4 + $0x3] ss:$0 sm:$0xff]  ;;  %v8717_v63 = vld [vmem:[#allocation4] ss:$0 sm:$0xff]  ;;  %v8721_v55 = vld [vmem:[#allocation4 + $0x4] ss:$0 sm:$0xff] }
 0x19e   : > { %v2816_v22 = vsel %vm1669_vm1, %v2814_v48, %v12696_v61  ;;  %v3960_v18 = vsel %vm1669_vm1, %v3958_v37, %v12697_v5  ;;  %v8703_v48 = vld [vmem:[#allocation4 + $0x1] ss:$0 sm:$0xff]  ;;  %v879_v61 = vmul.f32 %v8717_v63, %v504_v25  ;;  %v8733_v10 = vmul.f32 %v7987_v38, %v12700_v19 }
 0x19f   : > { %v3034_v32 = vadd.f32 %v2816_v22, %v2566_v47  ;;  %v3165_v47 = vmul.f32 %v7954_v21, %v12685_v62  ;;  %v8701_v22 = vmul.f32 %v7987_v38, %v12685_v62  ;;  %v8706_v49 = vmul.f32 %v8703_v48, %v504_v25 }
 0x1a0   : > { %v2570_v4 = vadd.f32 %v2355_v57, %v2102_v56  ;;  %v2021_v21 = vmul.f32 %v8714_v12, %v504_v25  ;;  %v8724_v57 = vmul.f32 %v8721_v55, %v504_v25  ;;  %v8726_v56 = vld [vmem:[#allocation4 + $0x5] ss:$0 sm:$0xff]  ;;  %v8738_v5 = vmul.f32 %v8049_v14, %v12685_v62 }
 0x1a1   : > { %v3242_v37 = vadd.f32 %v12699_v30, %v3034_v32  ;;  %v8729_v32 = vmul.f32 %v8726_v56, %v504_v25  ;;  %v12701_v17 = vrot.slane %v8706_v49, 1  ;;  %v12501_v28 = vrot.slane %v8712_v15, 2 }
 0x1a2   : > { %v3038_v30 = vadd.f32 %v2823_v50, %v2570_v4  ;;  %v2101_v34 = vadd.f32 %v2021_v21, %v8598_v52  ;;  %v12500_v25 = vrot.slane %v8724_v57, 1  ;;  %v8750_v52 = vmul.f32 %v8049_v14, %v12700_v19 }
 0x1a3   : > { %v3710_v2 = vadd.f32 %v3492_v43, %v3242_v37  ;;  %v1428_v13 = vadd.f32 %v12701_v17, %v879_v61  ;;  %v8744_v43 = vld [vmem:[#allocation4 + $0x6] ss:$0 sm:$0xff]  ;;  %v2826_v62 = vrot.slane %v8695_v11, 2  ;;  %v12703_v37 = vld [vmem:[#allocation18_spill] sm:$0xff]  ;;  %v12710_v3 = vrot.slane %v8654_v6, 1 }
 0x1a4   : > { %v3246_v54 = vadd.f32 %v3166_v39, %v3038_v30  ;;  %12702 = vst [vmem:[#allocation24_spill] sm:$0xff] %v8744_v43  ;;  %v3169_v38 = vmul.f32 %v8744_v43, %v12700_v19  ;;  %v2569_v4 = vadd.f32 %v12500_v25, %v2101_v34  ;;  %v12503_v39 = vrot.slane %v8729_v32, 2 }
 0x1a5   : > { %v4178_v50 = vadd.f32 %v3960_v18, %v3710_v2  ;;  %v1897_v17 = vadd.f32 %v12501_v28, %v1428_v13  ;;  %v2192_v21 = vmul.f32 %v8721_v55, %v12703_v37  ;;  %v2660_v19 = vmul.f32 %v8726_v56, %v12703_v37 }
 0x1a6   : > { %v3714_v2 = vadd.f32 %v3499_v33, %v3246_v54  ;;  %v3037_v13 = vadd.f32 %v12503_v39, %v2569_v4  ;;  %v2023_v33 = vmul.f32 %v8714_v12, %v7952_v20  ;;  %v12704_v28 = vrot.slane %v8654_v6, 1  ;;  %v12708_v54 = vld [vmem:[#allocation31_spill] sm:$0xff] }
 0x1a7   : > { %v2105_v30 = vadd.f32 %v2025_v1, %v1897_v17  ;;  %v4265_v25 = vadd.f32 %v8344_v59, %v4178_v50  ;;  %v2024_v61 = vmul.f32 %v8714_v12, %v12703_v37  ;;  %v8777_v1 = vmul.f32 %v8744_v43, %v7952_v20 }
 0x1a8   : > { %v4182_v34 = vadd.f32 %v3967_v7, %v3714_v2  ;;  %v3245_v46 = vadd.f32 %v3165_v47, %v3037_v13  ;;  %v2356_v17 = vrot.slane %v2192_v21, 1  ;;  %v2824_v50 = vrot.slane %v2660_v19, 2  ;;  %v499_v2 = vpop.permute.xlu0 %498 }
 0x1a9   : > { %v2573_v18 = vadd.f32 %v12704_v28, %v2105_v30  ;;  %v8782_v4 = vmul.f32 %v8744_v43, %v12703_v37  ;;  %v12705_v28 = vrot.slane %v8701_v22, 1  ;;  %v12706_v30 = vld [vmem:[#allocation22_spill] sm:$0xff]  ;;  %v8792_v20 = vmul.f32 %v8744_v43, %v12708_v54 }
 0x1aa   : > { %v4269_v7 = vadd.f32 %v8344_v59, %v4182_v34  ;;  %v8788_v13 = vmul.f32 %v8744_v43, %v12706_v30  ;;  %v4345_v34 = vmax.f32 %v4265_v25, 0.0  ;;  %v12709_v19 = vrot.slane %v7993_v40, 1  ;;  %v8807_v40 = vld [vmem:[#allocation4 + $0x7] ss:$0 sm:$0xff] }
 0x1ab   : > { %v3041_v39 = vadd.f32 %v2826_v62, %v2573_v18  ;;  %v3713_v47 = vadd.f32 %v12705_v28, %v3245_v46  ;;  %v2359_v18 = vsel %vm1200_vm0, %v2356_v17, %v12710_v3  ;;  %v12711_v46 = vrot.slane %v8738_v5, 2  ;;  %12713 = vst [vmem:[#allocation19_spill] sm:$0xff] %v8807_v40 }
 0x1ac   : > { %12707 = vst [vmem:[#allocation25_spill] sm:$0xff] %v8788_v13  ;;  %v4349_v21 = vmax.f32 %v4269_v7, 0.0  ;;  %v2357_v11 = vsel %vm1200_vm0, %v12709_v19, %v2356_v17  ;;  %v12712_v30 = vrot.slane %v7997_v41, 2  ;;  %v1046_v54 = vmul.f32 %v8703_v48, %v499_v2 }
 0x1ad   : > { %v3249_v27 = vadd.f32 %v3169_v38, %v3041_v39  ;;  %v4181_v28 = vadd.f32 %v12711_v46, %v3713_v47  ;;  %v2827_v7 = vsel %vm1669_vm1, %v2824_v50, %v2826_v62  ;;  %v3332_v6 = vmul.f32 %v8807_v40, %v12703_v37 }
 0x1ae   : > { %v2825_v13 = vsel %vm1669_vm1, %v12712_v30, %v2824_v50  ;;  %v4425_v25 = vmax.f32 %v4345_v34, %v4349_v21  ;;  %v1515_v3 = vmul.f32 %v8709_v26, %v499_v2  ;;  %v12714_v38 = vrot.slane %v8733_v10, 1 }
 0x1af   : > { %v4268_v17 = vadd.f32 %v8344_v59, %v4181_v28  ;;  %v8817_v41 = vmul.f32 %v8049_v14, %v12703_v37  ;;  %v878_v47 = vmul.f32 %v8717_v63, %v499_v2  ;;  %v1211_v62 = vrot.slane %v1046_v54, 1 }
 0x1b0   : > { %v3717_v39 = vadd.f32 %v12714_v38, %v3249_v27  ;;  %v4475_v34 = vrot.slane %v4425_v25, 1  ;;  %v1680_v50 = vrot.slane %v1515_v3, 2  ;;  %v2020_v21 = vmul.f32 %v8714_v12, %v499_v2 }
 0x1b1   : > { %v12715_v19 = vrot.slane %v8750_v52, 2  ;;  %v4348_v30 = vmax.f32 %v4268_v17, 0.0  ;;  %v2188_v40 = vmul.f32 %v8721_v55, %v499_v2  ;;  %v2656_v27 = vmul.f32 %v8726_v56, %v499_v2 }
 0x1b2   : > { %v8825_v28 = vmax.f32 %v4425_v25, %v4475_v34  ;;  %v12716_v14 = vrot.slane %v8589_v44, 1  ;;  %v12717_v38 = vrot.slane %v8706_v49, 1  ;;  %v12718_v3 = vrot.slane %v8592_v9, 2 }
 0x1b3   : > { %v4185_v46 = vadd.f32 %v12715_v19, %v3717_v39  ;;  %v12719_v2 = vrot.slane %v8712_v15, 2  ;;  %v2100_v44 = vadd.f32 %v2020_v21, %v8616_v60  ;;  %v2349_v49 = vrot.slane %v2188_v40, 1 }
 0x1b4   : > { %v1212_v37 = vsel %vm1200_vm0, %v12716_v14, %v1211_v62  ;;  %v1214_v54 = vsel %vm1200_vm0, %v1211_v62, %v12717_v38  ;;  %v1681_v43 = vsel %vm1669_vm1, %v12718_v3, %v1680_v50  ;;  %4506 = vst.msk [vmem:[#allocation2] sm:$0x1] %vm4505_vm2, %v8825_v28  ;;  %v2817_v34 = vrot.slane %v2656_v27, 2 }
 0x1b5   : > { %v4272_v39 = vadd.f32 %v8344_v59, %v4185_v46  ;;  %v1426_v17 = vadd.f32 %v1212_v37, %v8601_v42  ;;  %v1427_v19 = vadd.f32 %v1214_v54, %v878_v47  ;;  %v1683_v25 = vsel %vm1669_vm1, %v1680_v50, %v12719_v2  ;;  %4517 = vst.msk [vmem:[#allocation2 - $0x1] sm:$0x4] %vm4516_vm3, %v8825_v28 }
 0x1b6   : > { %v1442_v9 = vadd.f32 %v8526_v35, %v8394_v24  ;;  %v12720_v42 = vrot.slane %v8530_v0, 2  ;;  %v12721_v47 = vrot.slane %v8371_v53, 2  ;;  %v12722_v50 = vrot.slane %v8604_v51, 1  ;;  %4528 = vst.msk [vmem:[#allocation2 - $0x2] sm:$0x10] %vm4527_vm4, %v8825_v28 }
 0x1b7   : > { %v4352_v62 = vmax.f32 %v4272_v39, 0.0  ;;  %v1895_v14 = vadd.f32 %v1681_v43, %v1426_v17  ;;  %v1896_v46 = vadd.f32 %v1683_v25, %v1427_v19  ;;  %v12723_v60 = vrot.slane %v8724_v57, 1  ;;  %4539 = vst.msk [vmem:[#allocation2 - $0x3] sm:$0x40] %vm4538_vm5, %v8825_v28  ;;  %v12788_v28 = vld [vmem:[#allocation45_spill] sm:$0xff] }
 0x1b8   : > { %v1709_v15 = vsel %vm1669_vm1, %v12721_v47, %v12720_v42  ;;  %v2350_v37 = vsel %vm1200_vm0, %v12722_v50, %v2349_v49  ;;  %v12724_v21 = vrot.slane %v8610_v29, 2  ;;  %v12725_v35 = vrot.slane %v8729_v32, 2  ;;  %4600 = vst.msk [vmem:[#allocation2 + $0x13] sm:$0x4] %vm4516_vm3, %v12788_v28 }
 0x1b9   : > { %v2352_v40 = vsel %vm1200_vm0, %v2349_v49, %v12723_v60  ;;  %v4428_v27 = vmax.f32 %v4348_v30, %v4352_v62  ;;  %v2103_v38 = vadd.f32 %v2023_v33, %v1895_v14  ;;  %v2104_v54 = vadd.f32 %v2024_v61, %v1896_v46  ;;  %v12728_v33 = vld [vmem:[#allocation32_spill] sm:$0xff]  ;;  %4610 = vst.msk [vmem:[#allocation2 + $0x12] sm:$0x10] %vm4527_vm4, %v12788_v28 }
 0x1ba   : > { %v2818_v24 = vsel %vm1669_vm1, %v12724_v21, %v2817_v34  ;;  %v2820_v43 = vsel %vm1669_vm1, %v2817_v34, %v12725_v35  ;;  %v2567_v3 = vadd.f32 %v2350_v37, %v8619_v45  ;;  %v2568_v51 = vadd.f32 %v2352_v40, %v2100_v44  ;;  %v12736_v37 = vld [vmem:[#allocation47_spill] sm:$0xff]  ;;  %v12738_v21 = vld [vmem:[#allocation33_spill] sm:$0xff]  ;;  %4620 = vst.msk [vmem:[#allocation2 + $0x11] sm:$0x40] %vm4538_vm5, %v12788_v28 }
 0x1bb   : > { %v1911_v39 = vadd.f32 %v1709_v15, %v1442_v9  ;;  %v2583_v57 = vadd.f32 %v8537_v23, %v8388_v31  ;;  %v12726_v17 = vrot.slane %v8543_v36, 2  ;;  %v12727_v29 = vrot.slane %v8400_v16, 2 }
 0x1bc   : > { %v4719_v2 = vrot.slane %v4428_v27, 1  ;;  %v2571_v32 = vadd.f32 %v2357_v11, %v2103_v38  ;;  %v2572_v25 = vadd.f32 %v2359_v18, %v2104_v54  ;;  %v3035_v49 = vadd.f32 %v2818_v24, %v2567_v3  ;;  %v12740_v24 = vld [vmem:[#allocation27_spill] sm:$0xff] }
 0x1bd   : > { %v2846_v19 = vsel %vm1669_vm1, %v12727_v29, %v12726_v17  ;;  %v3493_v30 = vrot.slane %v3332_v6, 1  ;;  %v12729_v61 = vrot.slane %v12728_v33, 1  ;;  %v12730_v45 = vrot.slane %v12687_v58, 1 }
 0x1be   : > { %v3036_v34 = vadd.f32 %v2820_v43, %v2568_v51  ;;  %v3051_v9 = vadd.f32 %v2846_v19, %v2583_v57  ;;  %v4739_v31 = vmax.f32 %v4428_v27, %v4719_v2  ;;  %v3039_v23 = vadd.f32 %v2825_v13, %v2571_v32 }
 0x1bf   : > { %v3501_v44 = vsel %vm1200_vm0, %v12730_v45, %v12729_v61  ;;  %v3040_v62 = vadd.f32 %v2827_v7, %v2572_v25  ;;  %v3243_v14 = vadd.f32 %v8777_v1, %v3035_v49  ;;  %v12731_v46 = vrot.slane %v12683_v8, 1  ;;  %v12735_v7 = vld [vmem:[#allocation25_spill] sm:$0xff] }
 0x1c0   : > { %v12732_v18 = vrot.slane %v8733_v10, 1  ;;  %v12733_v6 = vmov %v12729_v61  ;;  %v3961_v58 = vrot.slane %v8817_v41, 2  ;;  %v3244_v47 = vadd.f32 %v8782_v4, %v3036_v34  ;;  %4749 = vst.msk [vmem:[#allocation2 + $0xc] sm:$0x1] %vm4505_vm2, %v4739_v31  ;;  %v594_v10 = vpop.permute.xlu1 %593  ;;  %v12746_v45 = vld [vmem:[#allocation37_spill] sm:$0xff] }
 0x1c1   : > { %v3494_v11 = vsel %vm1200_vm0, %v12731_v46, %v3493_v30  ;;  %v12734_v13 = vrot.slane %v8701_v22, 1  ;;  %v3247_v8 = vadd.f32 %v12735_v7, %v3039_v23  ;;  %v3248_v15 = vadd.f32 %v8792_v20, %v3040_v62  ;;  %v12748_v62 = vld [vmem:[#allocation24_spill] sm:$0xff]  ;;  %v12749_v46 = vld [vmem:[#allocation19_spill] sm:$0xff] }
 0x1c2   : > { %v3503_v42 = vsel %vm1200_vm0, %v12733_v6, %v12732_v18  ;;  %v3711_v50 = vadd.f32 %v3494_v11, %v3243_v14  ;;  %v12737_v60 = vrot.slane %v12736_v37, 2  ;;  %v12739_v41 = vrot.slane %v12738_v21, 2  ;;  %v589_v18 = vpop.permute.xlu0 %588 }
 0x1c3   : > { %v3496_v1 = vsel %vm1200_vm0, %v3493_v30, %v12734_v13  ;;  %v12741_v4 = vrot.slane %v12740_v24, 2  ;;  %v12742_v22 = vrot.slane %v8750_v52, 2  ;;  %v12744_v20 = vrot.slane %v8738_v5, 2 }
 0x1c4   : > { %v3962_v40 = vsel %vm1669_vm1, %v12737_v60, %v3961_v58  ;;  %v12743_v43 = vmov %v12739_v41  ;;  %v3712_v38 = vadd.f32 %v3496_v1, %v3244_v47  ;;  %v3715_v3 = vadd.f32 %v3501_v44, %v3247_v8  ;;  %v12752_v1 = vld [vmem:[#allocation38_spill] sm:$0xff]  ;;  %v12754_v60 = vld [vmem:[#allocation35_spill] sm:$0xff] }
 0x1c5   : > { %v3969_v35 = vsel %vm1669_vm1, %v12741_v4, %v12739_v41  ;;  %v3971_v27 = vsel %vm1669_vm1, %v12743_v43, %v12742_v22  ;;  %v3964_v54 = vsel %vm1669_vm1, %v3961_v58, %v12744_v20  ;;  %v3716_v51 = vadd.f32 %v3503_v42, %v3248_v15  ;;  %v8938_v42 = vld [vmem:[#allocation4 + $0x8] ss:$0 sm:$0xff] }
 0x1c6   : > { %v4179_v57 = vadd.f32 %v3962_v40, %v3711_v50  ;;  %v4180_v17 = vadd.f32 %v3964_v54, %v3712_v38  ;;  %v8910_v29 = vmul.f32 %v8717_v63, %v594_v10  ;;  %v8913_v19 = vmul.f32 %v8703_v48, %v594_v10 }
 0x1c7   : > { %v8916_v52 = vmul.f32 %v8709_v26, %v594_v10  ;;  %v4183_v2 = vadd.f32 %v3969_v35, %v3715_v3  ;;  %v4184_v32 = vadd.f32 %v3971_v27, %v3716_v51  ;;  %v2039_v5 = vmul.f32 %v8714_v12, %v594_v10 }
 0x1c8   : > { %v4266_v25 = vadd.f32 %v8344_v59, %v4179_v57  ;;  %v4267_v49 = vadd.f32 %v8344_v59, %v4180_v17  ;;  %v8922_v30 = vmul.f32 %v8721_v55, %v594_v10  ;;  %v8925_v33 = vmul.f32 %v8726_v56, %v594_v10  ;;  %v604_v57 = vpop.permute.xlu1 %603 }
 0x1c9   : > { %v12745_v61 = vrot.slane %v8371_v53, 2  ;;  %v12747_v44 = vrot.slane %v12746_v45, 2  ;;  %v4270_v31 = vadd.f32 %v8344_v59, %v4183_v2  ;;  %v4271_v23 = vadd.f32 %v8344_v59, %v4184_v32  ;;  %v12750_v53 = vld [vmem:[#allocation34_spill] sm:$0xff] }
 0x1ca   : > { %v3179_v14 = vmul.f32 %v12748_v62, %v594_v10  ;;  %v8936_v11 = vmul.f32 %v12749_v46, %v594_v10  ;;  %v4346_v6 = vmax.f32 %v4266_v25, 0.0  ;;  %v8941_v58 = vmul.f32 %v8938_v42, %v594_v10 }
 0x1cb   : > { %v1707_v34 = vsel %vm1669_vm1, %v12747_v44, %v12745_v61  ;;  %v12751_v13 = vrot.slane %v8400_v16, 2  ;;  %v12753_v7 = vrot.slane %v12752_v1, 2  ;;  %v4347_v15 = vmax.f32 %v4267_v49, 0.0 }
 0x1cc   : > { %v1910_v47 = vadd.f32 %v1707_v34, %v12750_v53  ;;  %v4350_v50 = vmax.f32 %v4270_v31, 0.0  ;;  %v4351_v37 = vmax.f32 %v4271_v23, 0.0  ;;  %v1244_v21 = vrot.slane %v8913_v19, 1  ;;  %v614_v1 = vpop.permute.xlu1 %613 }
 0x1cd   : > { %v2844_v8 = vsel %vm1669_vm1, %v12753_v7, %v12751_v13  ;;  %v1713_v41 = vrot.slane %v8916_v52, 2  ;;  %v8952_v24 = vadd.f32 %v2039_v5, %v1911_v39  ;;  %v1064_v10 = vmul.f32 %v8703_v48, %v589_v18 }
 0x1ce   : > { %v3050_v40 = vadd.f32 %v2844_v8, %v12754_v60  ;;  %v4426_v4 = vmax.f32 %v4346_v6, %v4350_v50  ;;  %v4427_v35 = vmax.f32 %v4347_v15, %v4351_v37  ;;  %v2382_v16 = vrot.slane %v8922_v30, 1 }
 0x1cf   : > { %v2206_v22 = vmul.f32 %v8721_v55, %v589_v18  ;;  %v2850_v43 = vrot.slane %v8925_v33, 2  ;;  %v8958_v27 = vadd.f32 %v3179_v14, %v3051_v9  ;;  %v3519_v38 = vrot.slane %v8936_v11, 1 }
 0x1d0   : > { %v3178_v20 = vmul.f32 %v12748_v62, %v589_v18  ;;  %v4559_v54 = vrot.slane %v4426_v4, 1  ;;  %v4639_v3 = vrot.slane %v4427_v35, 1  ;;  %v3987_v39 = vrot.slane %v8941_v58, 2 }
 0x1d1   : > { %v8964_v51 = vmul.f32 %v8709_v26, %v589_v18  ;;  %v1243_v17 = vrot.slane %v1064_v10, 1  ;;  %v2038_v2 = vmul.f32 %v8714_v12, %v589_v18  ;;  %v8968_v32 = vmul.f32 %v8726_v56, %v589_v18 }
 0x1d2   : > { %v3346_v9 = vmul.f32 %v12749_v46, %v589_v18  ;;  %v8971_v25 = vmax.f32 %v4426_v4, %v4559_v54  ;;  %v8973_v5 = vmax.f32 %v4427_v35, %v4639_v3  ;;  %v2381_v49 = vrot.slane %v2206_v22, 1  ;;  %v12756_v35 = vld [vmem:[#allocation43_spill] sm:$0xff] }
 0x1d3   : > { %v3814_v61 = vmul.f32 %v8938_v42, %v589_v18  ;;  %v896_v45 = vmul.f32 %v8717_v63, %v589_v18  ;;  %v3258_v44 = vadd.f32 %v3178_v20, %v3050_v40  ;;  %v8978_v31 = vmul.f32 %v8703_v48, %v604_v57  ;;  %v12757_v54 = vld [vmem:[#allocation39_spill] sm:$0xff] }
 0x1d4   : > { %v3518_v34 = vrot.slane %v3346_v9, 1  ;;  %4589 = vst.msk [vmem:[#allocation2 + $0x4] sm:$0x1] %vm4505_vm2, %v8971_v25  ;;  %4669 = vst.msk [vmem:[#allocation2 + $0x8] sm:$0x1] %vm4505_vm2, %v8973_v5  ;;  %v2041_v14 = vmul.f32 %v8714_v12, %v604_v57  ;;  %v8987_v6 = vmul.f32 %v8721_v55, %v604_v57  ;;  %v3181_v18 = vmul.f32 %v12748_v62, %v604_v57  ;;  %v12760_v9 = vld [vmem:[#allocation36_spill] sm:$0xff] }
 0x1d5   : > { %v1245_v53 = vsel %vm1200_vm0, %v1243_v17, %v1244_v21  ;;  %v2118_v13 = vadd.f32 %v2038_v2, %v1910_v47  ;;  %v2383_v8 = vsel %vm1200_vm0, %v2381_v49, %v2382_v16  ;;  %v3986_v15 = vrot.slane %v3814_v61, 2  ;;  %v12755_v47 = vld [vmem:[#allocation40_spill] sm:$0xff]  ;;  %4599 = vst.msk [vmem:[#allocation2 + $0x3] sm:$0x4] %vm4516_vm3, %v8971_v25  ;;  %4679 = vst.msk [vmem:[#allocation2 + $0x7] sm:$0x4] %vm4516_vm3, %v8973_v5 }
 0x1d6   : > { %v3520_v7 = vsel %vm1200_vm0, %v3518_v34, %v3519_v38  ;;  %v899_v50 = vmul.f32 %v8717_v63, %v604_v57  ;;  %v1248_v37 = vrot.slane %v8978_v31, 1  ;;  %v9003_v40 = vmul.f32 %v8709_v26, %v604_v57  ;;  %v599_v34 = vpop.permute.xlu0 %598  ;;  %4609 = vst.msk [vmem:[#allocation2 + $0x2] sm:$0x10] %vm4527_vm4, %v8971_v25  ;;  %4689 = vst.msk [vmem:[#allocation2 + $0x6] sm:$0x10] %vm4527_vm4, %v8973_v5 }
 0x1d7   : > { %v3726_v60 = vadd.f32 %v3520_v7, %v3258_v44  ;;  %v3261_v10 = vadd.f32 %v3181_v18, %v12755_v47  ;;  %v3349_v4 = vmul.f32 %v12749_v46, %v604_v57  ;;  %v2121_v22 = vadd.f32 %v2041_v14, %v12756_v35  ;;  %v12763_v7 = vld [vmem:[#allocation41_spill] sm:$0xff]  ;;  %4619 = vst.msk [vmem:[#allocation2 + $0x1] sm:$0x40] %vm4538_vm5, %v8971_v25  ;;  %v12789_v25 = vld [vmem:[#allocation46_spill] sm:$0xff] }
 0x1d8   : > { %v2386_v20 = vrot.slane %v8987_v6, 1  ;;  %v12758_v3 = vrot.slane %v12757_v54, 2  ;;  %v12759_v17 = vrot.slane %v8530_v0, 2  ;;  %v12761_v49 = vrot.slane %v12760_v9, 2  ;;  %v12764_v54 = vld [vmem:[#allocation42_spill] sm:$0xff] }
 0x1d9   : > { %v12762_v61 = vrot.slane %v8543_v36, 2  ;;  %v9019_v31 = vadd.f32 %v1245_v53, %v896_v45  ;;  %v3523_v18 = vrot.slane %v3349_v4, 1  ;;  %v3817_v14 = vmul.f32 %v8938_v42, %v604_v57  ;;  %4680 = vst.msk [vmem:[#allocation2 + $0x17] sm:$0x4] %vm4516_vm3, %v12789_v25 }
 0x1da   : > { %v1711_v2 = vsel %vm1669_vm1, %v12759_v17, %v12758_v3  ;;  %v9023_v47 = vadd.f32 %v2383_v8, %v2118_v13  ;;  %v1448_v35 = vadd.f32 %v1248_v37, %v899_v50  ;;  %v9026_v0 = vmul.f32 %v8726_v56, %v604_v57  ;;  %4690 = vst.msk [vmem:[#allocation2 + $0x16] sm:$0x10] %vm4527_vm4, %v12789_v25 }
 0x1db   : > { %v2848_v44 = vsel %vm1669_vm1, %v12762_v61, %v12761_v49  ;;  %v1912_v6 = vadd.f32 %v1711_v2, %v12763_v7  ;;  %v3988_v36 = vsel %vm1669_vm1, %v3986_v15, %v3987_v39  ;;  %v12509_v45 = vrot.slane %v9003_v40, 2  ;;  %4699 = vst.msk [vmem:[#allocation2 + $0x5] sm:$0x40] %vm4538_vm5, %v8973_v5  ;;  %4700 = vst.msk [vmem:[#allocation2 + $0x15] sm:$0x40] %vm4538_vm5, %v12789_v25 }
 0x1dc   : > { %v3052_v3 = vadd.f32 %v2848_v44, %v12764_v54  ;;  %v3729_v53 = vadd.f32 %v3523_v18, %v3261_v10  ;;  %v1066_v4 = vmul.f32 %v8703_v48, %v599_v34  ;;  %v4194_v17 = vadd.f32 %v3988_v36, %v3726_v60 }
 0x1dd   : > { %v2589_v9 = vadd.f32 %v2386_v20, %v2121_v22  ;;  %v2208_v13 = vmul.f32 %v8721_v55, %v599_v34  ;;  %v3180_v8 = vmul.f32 %v12748_v62, %v599_v34  ;;  %v3991_v50 = vrot.slane %v3817_v14, 2 }
 0x1de   : > { %v1246_v57 = vrot.slane %v1066_v4, 1  ;;  %v9037_v2 = vmul.f32 %v8709_v26, %v599_v34  ;;  %v2040_v49 = vmul.f32 %v8714_v12, %v599_v34  ;;  %v9042_v15 = vadd.f32 %v12509_v45, %v1448_v35 }
 0x1df   : > { %v2854_v10 = vrot.slane %v9026_v0, 2  ;;  %v9046_v60 = vmul.f32 %v8726_v56, %v599_v34  ;;  %v3348_v22 = vmul.f32 %v12749_v46, %v599_v34  ;;  %v4197_v61 = vadd.f32 %v3991_v50, %v3729_v53 }
 0x1e0   : > { %v1247_v44 = vsel %vm1200_vm0, %v1244_v21, %v1246_v57  ;;  %v3260_v14 = vadd.f32 %v3180_v8, %v3052_v3  ;;  %v3816_v7 = vmul.f32 %v8938_v42, %v599_v34  ;;  %v9054_v54 = vadd.f32 %v8344_v59, %v4194_v17 }
 0x1e1   : > { %v9058_v35 = vadd.f32 %v2854_v10, %v2589_v9  ;;  %v2384_v36 = vrot.slane %v2208_v13, 1  ;;  %v3521_v4 = vrot.slane %v3348_v22, 1  ;;  %v898_v45 = vmul.f32 %v8717_v63, %v599_v34  ;;  %v9068_v9 = vld [vmem:[#allocation6] ss:$0 sm:$0xff] }
 0x1e2   : > { %v12510_v53 = vrot.slane %v9037_v2, 2  ;;  %v2120_v23 = vadd.f32 %v2040_v49, %v1912_v6  ;;  %v3989_v19 = vrot.slane %v3816_v7, 2  ;;  %v12514_v21 = vrot.slane %v9046_v60, 2 }
 0x1e3   : > { %v3522_v59 = vsel %vm1200_vm0, %v3519_v38, %v3521_v4  ;;  %v3524_v3 = vsel %vm1200_vm0, %v3521_v4, %v3523_v18  ;;  %v1446_v17 = vadd.f32 %v1247_v44, %v8910_v29  ;;  %v9071_v13 = vadd.f32 %v9068_v9, %v4197_v61 }
 0x1e4   : > { %v1249_v34 = vsel %vm1200_vm0, %v1246_v57, %v1248_v37  ;;  %v3727_v6 = vadd.f32 %v3522_v59, %v8958_v27  ;;  %v3728_v8 = vadd.f32 %v3524_v3, %v3260_v14  ;;  %v2385_v11 = vsel %vm1200_vm0, %v2382_v16, %v2384_v36 }
 0x1e5   : > { %v2387_v38 = vsel %vm1200_vm0, %v2384_v36, %v2386_v20  ;;  %v3990_v29 = vsel %vm1669_vm1, %v3987_v39, %v3989_v19  ;;  %v9083_v18 = vmul.f32 %v8703_v48, %v614_v1  ;;  %v3992_v49 = vsel %vm1669_vm1, %v3989_v19, %v3991_v50  ;;  %v609_v36 = vpop.permute.xlu0 %608 }
 0x1e6   : > { %v4195_v22 = vadd.f32 %v3990_v29, %v3727_v6  ;;  %v9087_v37 = vmul.f32 %v8709_v26, %v614_v1  ;;  %v1716_v30 = vsel %vm1669_vm1, %v1713_v41, %v12510_v53  ;;  %v9095_v58 = vadd.f32 %v1249_v34, %v898_v45 }
 0x1e7   : > { %v4196_v27 = vadd.f32 %v3992_v49, %v3728_v8  ;;  %v1915_v39 = vadd.f32 %v1716_v30, %v1446_v17  ;;  %v9098_v57 = vadd.f32 %v2387_v38, %v2120_v23  ;;  %v9101_v50 = vmul.f32 %v8721_v55, %v614_v1 }
 0x1e8   : > { %v9104_v61 = vmul.f32 %v8726_v56, %v614_v1  ;;  %v9107_v44 = vadd.f32 %v9068_v9, %v4195_v22  ;;  %v2043_v14 = vmul.f32 %v8714_v12, %v614_v1  ;;  %v2587_v45 = vadd.f32 %v2385_v11, %v8952_v24 }
 0x1e9   : > { %v9112_v7 = vmul.f32 %v12749_v46, %v614_v1  ;;  %v9115_v23 = vmul.f32 %v8717_v63, %v614_v1  ;;  %v12513_v4 = vrot.slane %v9083_v18, 1  ;;  %v2853_v59 = vsel %vm1669_vm1, %v2850_v43, %v12514_v21 }
 0x1ea   : > { %v9125_v3 = vadd.f32 %v9068_v9, %v4196_v27  ;;  %v9127_v24 = vadd.f32 %v2043_v14, %v1915_v39  ;;  %v9130_v17 = vmul.f32 %v8938_v42, %v614_v1  ;;  %v12765_v34 = vrot.slane %v8968_v32, 2  ;;  %v624_v14 = vpop.permute.xlu1 %623 }
 0x1eb   : > { %v2389_v8 = vrot.slane %v9101_v50, 1  ;;  %v1068_v29 = vmul.f32 %v8703_v48, %v609_v36  ;;  %v3055_v22 = vadd.f32 %v2853_v59, %v2587_v45  ;;  %v3183_v30 = vmul.f32 %v12748_v62, %v614_v1 }
 0x1ec   : > { %v2851_v6 = vsel %vm1669_vm1, %v12765_v34, %v2850_v43  ;;  %v12512_v27 = vrot.slane %v9112_v7, 1  ;;  %v9145_v33 = vmul.f32 %v8709_v26, %v609_v36  ;;  %v3182_v43 = vmul.f32 %v12748_v62, %v609_v36 }
 0x1ed   : > { %v3054_v38 = vadd.f32 %v2851_v6, %v9023_v47  ;;  %v3350_v32 = vmul.f32 %v12749_v46, %v609_v36  ;;  %v3818_v39 = vmul.f32 %v8938_v42, %v609_v36  ;;  %v12511_v34 = vrot.slane %v9130_v17, 2 }
 0x1ee   : > { %v12766_v1 = vrot.slane %v8964_v51, 2  ;;  %v2210_v59 = vmul.f32 %v8721_v55, %v609_v36  ;;  %v1250_v6 = vrot.slane %v1068_v29, 1  ;;  %v9158_v20 = vadd.f32 %v3183_v30, %v3055_v22 }
 0x1ef   : > { %v3262_v49 = vadd.f32 %v3182_v43, %v3054_v38  ;;  %v3525_v11 = vrot.slane %v3350_v32, 1  ;;  %v3993_v19 = vrot.slane %v3818_v39, 2  ;;  %v900_v47 = vmul.f32 %v8717_v63, %v609_v36 }
 0x1f0   : > { %v1714_v45 = vsel %vm1669_vm1, %v12766_v1, %v1713_v41  ;;  %v9163_v16 = vmul.f32 %v8703_v48, %v624_v14  ;;  %v2042_v51 = vmul.f32 %v8714_v12, %v609_v36  ;;  %v9168_v41 = vmul.f32 %v8726_v56, %v609_v36 }
 0x1f1   : > { %v1914_v53 = vadd.f32 %v1714_v45, %v9019_v31  ;;  %v3527_v38 = vsel %vm1200_vm0, %v3525_v11, %v12512_v27  ;;  %v2388_v29 = vrot.slane %v2210_v59, 1  ;;  %v2045_v31 = vmul.f32 %v8714_v12, %v624_v14 }
 0x1f2   : > { %v3730_v22 = vadd.f32 %v3527_v38, %v3262_v49  ;;  %v9175_v30 = vmul.f32 %v8721_v55, %v624_v14  ;;  %v1252_v43 = vsel %vm1200_vm0, %v1250_v6, %v12513_v4  ;;  %v3995_v36 = vsel %vm1669_vm1, %v3993_v19, %v12511_v34 }
 0x1f3   : > { %v3185_v32 = vmul.f32 %v12748_v62, %v624_v14  ;;  %v3353_v39 = vmul.f32 %v12749_v46, %v624_v14  ;;  %v1255_v49 = vrot.slane %v9163_v16, 1  ;;  %v9187_v1 = vmul.f32 %v8709_v26, %v624_v14 }
 0x1f4   : > { %v4198_v11 = vadd.f32 %v3995_v36, %v3730_v22  ;;  %v2125_v45 = vadd.f32 %v2045_v31, %v9042_v15  ;;  %v2393_v59 = vrot.slane %v9175_v30, 1  ;;  %v3821_v52 = vmul.f32 %v8938_v42, %v624_v14  ;;  %v619_v36 = vpop.permute.xlu0 %618 }
 0x1f5   : > { %v3265_v6 = vadd.f32 %v3185_v32, %v9058_v35  ;;  %v3530_v38 = vrot.slane %v3353_v39, 1  ;;  %v2122_v19 = vadd.f32 %v2042_v51, %v1914_v53  ;;  %v903_v22 = vmul.f32 %v8717_v63, %v624_v14 }
 0x1f6   : > { %v4285_v27 = vadd.f32 %v9068_v9, %v4198_v11  ;;  %v9196_v4 = vadd.f32 %v1252_v43, %v900_v47  ;;  %v9199_v21 = vmul.f32 %v8726_v56, %v624_v14  ;;  %v3998_v31 = vrot.slane %v3821_v52, 2 }
 0x1f7   : > { %v3733_v15 = vadd.f32 %v3530_v38, %v3265_v6  ;;  %v2390_v35 = vsel %vm1200_vm0, %v2388_v29, %v2389_v8  ;;  %v1452_v53 = vadd.f32 %v1255_v49, %v903_v22  ;;  %v1724_v51 = vrot.slane %v9187_v1, 2 }
 0x1f8   : > { %v4365_v32 = vmax.f32 %v4285_v27, 0.0  ;;  %v2593_v39 = vadd.f32 %v2393_v59, %v2125_v45  ;;  %v12767_v14 = vrot.slane %v9046_v60, 2  ;;  %v1070_v43 = vmul.f32 %v8703_v48, %v619_v36 }
 0x1f9   : > { %v4201_v47 = vadd.f32 %v3998_v31, %v3733_v15  ;;  %v12768_v29 = vmax.f32 %v9054_v54, 0.0  ;;  %v2212_v6 = vmul.f32 %v8721_v55, %v619_v36  ;;  %v3184_v22 = vmul.f32 %v12748_v62, %v619_v36 }
 0x1fa   : > { %v2855_v52 = vsel %vm1669_vm1, %v12767_v14, %v2854_v10  ;;  %v12515_v45 = vrot.slane %v9199_v21, 2  ;;  %v12769_v0 = vrot.slane %v9003_v40, 2  ;;  %v12770_v60 = vrot.slane %v9037_v2, 2 }
 0x1fb   : > { %v4433_v27 = vmax.f32 %v12768_v29, %v4365_v32  ;;  %v3056_v11 = vadd.f32 %v2855_v52, %v9098_v57  ;;  %v4288_v15 = vadd.f32 %v9068_v9, %v4201_v47  ;;  %v1253_v14 = vrot.slane %v1070_v43, 1 }
 0x1fc   : > { %v1718_v10 = vsel %vm1669_vm1, %v12770_v60, %v12769_v0  ;;  %v9229_v57 = vmul.f32 %v8709_v26, %v619_v36  ;;  %v2044_v32 = vmul.f32 %v8714_v12, %v619_v36  ;;  %v9232_v52 = vadd.f32 %v2390_v35, %v2122_v19 }
 0x1fd   : > { %v4477_v34 = vrot.slane %v4433_v27, 1  ;;  %v1916_v54 = vadd.f32 %v1718_v10, %v9095_v58  ;;  %v9236_v47 = vadd.f32 %v1724_v51, %v1452_v53  ;;  %v4368_v40 = vmax.f32 %v4288_v15, 0.0 }
 0x1fe   : > { %v3352_v2 = vmul.f32 %v12749_v46, %v619_v36  ;;  %v9243_v43 = vadd.f32 %v12515_v45, %v2593_v39  ;;  %v2391_v58 = vrot.slane %v2212_v6, 1  ;;  %v3264_v0 = vadd.f32 %v3184_v22, %v3056_v11  ;;  %v634_v45 = vpop.permute.xlu1 %633 }
 0x1ff   : > { %v9239_v29 = vmax.f32 %v4433_v27, %v4477_v34  ;;  %v12771_v60 = vmax.f32 %v9071_v13, 0.0  ;;  %v12772_v19 = vrot.slane %v9083_v18, 1  ;;  %v3820_v15 = vmul.f32 %v8938_v42, %v619_v36 }
 0x200   : > { %v3528_v53 = vrot.slane %v3352_v2, 1  ;;  %v902_v34 = vmul.f32 %v8717_v63, %v619_v36  ;;  %v1722_v39 = vrot.slane %v9229_v57, 2  ;;  %v2124_v27 = vadd.f32 %v2044_v32, %v1916_v54 }
 0x201   : > { %v4436_v10 = vmax.f32 %v12771_v60, %v4368_v40  ;;  %v1254_v35 = vsel %vm1200_vm0, %v12772_v19, %v1253_v14  ;;  %4508 = vst.msk [vmem:[#allocation2 + $0x20] sm:$0x1] %vm4505_vm2, %v9239_v29  ;;  %v9256_v11 = vmul.f32 %v8726_v56, %v619_v36  ;;  %v12773_v6 = vrot.slane %v9112_v7, 1 }
 0x202   : > { %v3531_v22 = vsel %vm1200_vm0, %v3528_v53, %v3530_v38  ;;  %v3996_v40 = vrot.slane %v3820_v15, 2  ;;  %v2392_v2 = vsel %vm1200_vm0, %v2389_v8, %v2391_v58  ;;  %v1450_v54 = vadd.f32 %v1254_v35, %v9115_v23  ;;  %4519 = vst.msk [vmem:[#allocation2 + $0x1f] sm:$0x4] %vm4516_vm3, %v9239_v29 }
 0x203   : > { %v4721_v13 = vrot.slane %v4436_v10, 1  ;;  %v3529_v18 = vsel %vm1200_vm0, %v12773_v6, %v3528_v53  ;;  %v3732_v19 = vadd.f32 %v3531_v22, %v3264_v0  ;;  %v1256_v7 = vsel %vm1200_vm0, %v1253_v14, %v1255_v49  ;;  %4530 = vst.msk [vmem:[#allocation2 + $0x1e] sm:$0x10] %vm4527_vm4, %v9239_v29 }
 0x204   : > { %v3731_v60 = vadd.f32 %v3529_v18, %v9158_v20  ;;  %v12774_v32 = vrot.slane %v9130_v17, 2  ;;  %v3999_v53 = vsel %vm1669_vm1, %v3996_v40, %v3998_v31  ;;  %v2394_v50 = vsel %vm1200_vm0, %v2391_v58, %v2393_v59  ;;  %4541 = vst.msk [vmem:[#allocation2 + $0x1d] sm:$0x40] %vm4538_vm5, %v9239_v29 }
 0x205   : > { %v4741_v36 = vmax.f32 %v4436_v10, %v4721_v13  ;;  %v2859_v20 = vrot.slane %v9256_v11, 2  ;;  %v4200_v0 = vadd.f32 %v3999_v53, %v3732_v19  ;;  %v9280_v16 = vmul.f32 %v8703_v48, %v634_v45  ;;  %v629_v53 = vpop.permute.xlu0 %628 }
 0x206   : > { %v3997_v38 = vsel %vm1669_vm1, %v12774_v32, %v3996_v40  ;;  %v9283_v23 = vmul.f32 %v8709_v26, %v634_v45  ;;  %v12775_v17 = vrot.slane %v9087_v37, 2  ;;  %v2591_v49 = vadd.f32 %v2392_v2, %v9127_v24 }
 0x207   : > { %v4199_v8 = vadd.f32 %v3997_v38, %v3731_v60  ;;  %4751 = vst.msk [vmem:[#allocation2 + $0x2c] sm:$0x1] %vm4505_vm2, %v4741_v36  ;;  %v9291_v59 = vadd.f32 %v1256_v7, %v902_v34  ;;  %v4287_v14 = vadd.f32 %v9068_v9, %v4200_v0  ;;  %v9295_v10 = vadd.f32 %v2394_v50, %v2124_v27 }
 0x208   : > { %v1723_v30 = vsel %vm1669_vm1, %v12775_v17, %v1722_v39  ;;  %v9298_v35 = vmul.f32 %v8717_v63, %v634_v45  ;;  %v9301_v15 = vmul.f32 %v8721_v55, %v634_v45  ;;  %v9304_v13 = vmul.f32 %v8726_v56, %v634_v45 }
 0x209   : > { %v4286_v31 = vadd.f32 %v9068_v9, %v4199_v8  ;;  %v1919_v58 = vadd.f32 %v1723_v30, %v1450_v54  ;;  %v4367_v24 = vmax.f32 %v4287_v14, 0.0  ;;  %v2047_v34 = vmul.f32 %v8714_v12, %v634_v45  ;;  %v9399_v40 = vpop.permute.xlu0 %638 }
 0x20a   : > { %v12776_v18 = vrot.slane %v9104_v61, 2  ;;  %v1258_v22 = vrot.slane %v9280_v16, 1  ;;  %v9315_v60 = vmul.f32 %v12749_v46, %v634_v45  ;;  %v12777_v19 = vmax.f32 %v9107_v44, 0.0 }
 0x20b   : > { %v4366_v6 = vmax.f32 %v4286_v31, 0.0  ;;  %v12778_v36 = vmax.f32 %v9125_v3, 0.0  ;;  %v9321_v32 = vadd.f32 %v2047_v34, %v1919_v58  ;;  %v9324_v38 = vmul.f32 %v8938_v42, %v634_v45  ;;  %v9345_v34 = vpop.permute.xlu1 %643 }
 0x20c   : > { %v2860_v27 = vsel %vm1669_vm1, %v12776_v18, %v2859_v20  ;;  %v2396_v50 = vrot.slane %v9301_v15, 1  ;;  %v2864_v8 = vrot.slane %v9304_v13, 2  ;;  %v3187_v0 = vmul.f32 %v12748_v62, %v634_v45 }
 0x20d   : > { %v3059_v2 = vadd.f32 %v2860_v27, %v2591_v49  ;;  %v4434_v54 = vmax.f32 %v12777_v19, %v4366_v6  ;;  %v4435_v7 = vmax.f32 %v12778_v36, %v4367_v24  ;;  %v12779_v17 = vmov %v12776_v18  ;;  %v9464_v15 = vpop.permute.xlu0 %648 }
 0x20e   : > { %v12780_v44 = vrot.slane %v9168_v41, 2  ;;  %v12781_v31 = vrot.slane %v9087_v37, 2  ;;  %v12782_v14 = vrot.slane %v9145_v33, 2  ;;  %v3533_v45 = vrot.slane %v9315_v60, 1 }
 0x20f   : > { %v4561_v3 = vrot.slane %v4434_v54, 1  ;;  %v4641_v49 = vrot.slane %v4435_v7, 1  ;;  %v9340_v24 = vadd.f32 %v3187_v0, %v3059_v2  ;;  %v2214_v61 = vmul.f32 %v8721_v55, %v629_v53 }
 0x210   : > { %v2858_v30 = vsel %vm1669_vm1, %v12780_v44, %v12779_v17  ;;  %v1721_v58 = vsel %vm1669_vm1, %v12782_v14, %v12781_v31  ;;  %v3186_v41 = vmul.f32 %v12748_v62, %v629_v53  ;;  %v4001_v37 = vrot.slane %v9324_v38, 2 }
 0x211   : > { %v3058_v6 = vadd.f32 %v2858_v30, %v9232_v52  ;;  %v9347_v18 = vmax.f32 %v4434_v54, %v4561_v3  ;;  %v9349_v27 = vmax.f32 %v4435_v7, %v4641_v49  ;;  %v1918_v33 = vadd.f32 %v1721_v58, %v9196_v4 }
 0x212   : > { %v9354_v52 = vmul.f32 %v8703_v48, %v629_v53  ;;  %v9357_v2 = vmul.f32 %v8709_v26, %v629_v53  ;;  %v3354_v19 = vmul.f32 %v12749_v46, %v629_v53  ;;  %v3822_v36 = vmul.f32 %v8938_v42, %v629_v53 }
 0x213   : > { %4591 = vst.msk [vmem:[#allocation2 + $0x24] sm:$0x1] %vm4505_vm2, %v9347_v18  ;;  %4671 = vst.msk [vmem:[#allocation2 + $0x28] sm:$0x1] %vm4505_vm2, %v9349_v27  ;;  %v2046_v54 = vmul.f32 %v8714_v12, %v629_v53  ;;  %v3266_v7 = vadd.f32 %v3186_v41, %v3058_v6  ;;  %v2049_v4 = vmul.f32 %v8714_v12, %v9345_v34  ;;  %v2395_v17 = vrot.slane %v2214_v61, 1 }
 0x214   : > { %v2217_v0 = vmul.f32 %v8721_v55, %v9345_v34  ;;  %v9371_v44 = vmul.f32 %v8726_v56, %v629_v53  ;;  %v3532_v30 = vrot.slane %v3354_v19, 1  ;;  %v4000_v3 = vrot.slane %v3822_v36, 2  ;;  %4601 = vst.msk [vmem:[#allocation2 + $0x23] sm:$0x4] %vm4516_vm3, %v9347_v18  ;;  %4681 = vst.msk [vmem:[#allocation2 + $0x27] sm:$0x4] %vm4516_vm3, %v9349_v27 }
 0x215   : > { %v2129_v49 = vadd.f32 %v2049_v4, %v9236_v47  ;;  %v9376_v14 = vmul.f32 %v8726_v56, %v9345_v34  ;;  %v3189_v58 = vmul.f32 %v12748_v62, %v9345_v34  ;;  %v9381_v6 = vmul.f32 %v8717_v63, %v629_v53  ;;  %4611 = vst.msk [vmem:[#allocation2 + $0x22] sm:$0x10] %vm4527_vm4, %v9347_v18 }
 0x216   : > { %v2400_v31 = vrot.slane %v2217_v0, 1  ;;  %v3534_v41 = vsel %vm1200_vm0, %v3532_v30, %v3533_v45  ;;  %v3357_v47 = vmul.f32 %v12749_v46, %v9345_v34  ;;  %v1726_v19 = vrot.slane %v9357_v2, 2  ;;  %4621 = vst.msk [vmem:[#allocation2 + $0x21] sm:$0x40] %vm4538_vm5, %v9347_v18  ;;  %4701 = vst.msk [vmem:[#allocation2 + $0x25] sm:$0x40] %vm4538_vm5, %v9349_v27 }
 0x217   : > { %v3734_v36 = vadd.f32 %v3534_v41, %v3266_v7  ;;  %v3269_v4 = vadd.f32 %v3189_v58, %v9243_v43  ;;  %v9393_v0 = vmul.f32 %v8938_v42, %v9345_v34  ;;  %v2126_v63 = vadd.f32 %v2046_v54, %v1918_v33  ;;  %4691 = vst.msk [vmem:[#allocation2 + $0x26] sm:$0x10] %vm4527_vm4, %v9349_v27 }
 0x218   : > { %v2397_v53 = vsel %vm1200_vm0, %v2395_v17, %v2396_v50  ;;  %v2863_v61 = vrot.slane %v9371_v44, 2  ;;  %v3537_v30 = vrot.slane %v3357_v47, 1  ;;  %v4002_v7 = vsel %vm1669_vm1, %v4000_v3, %v4001_v37 }
 0x219   : > { %v2597_v41 = vadd.f32 %v2400_v31, %v2129_v49  ;;  %v2868_v43 = vrot.slane %v9376_v14, 2  ;;  %v1725_v33 = vsel %vm1669_vm1, %v1722_v39, %v1724_v51  ;;  %v4202_v54 = vadd.f32 %v4002_v7, %v3734_v36 }
 0x21a   : > { %v3737_v17 = vadd.f32 %v3537_v30, %v3269_v4  ;;  %v4005_v44 = vrot.slane %v9393_v0, 2  ;;  %v12783_v58 = vrot.slane %v9199_v21, 2  ;;  %v9419_v49 = vmul.f32 %v8703_v48, %v9399_v40 }
 0x21b   : > { %v2216_v1 = vmul.f32 %v8721_v55, %v9399_v40  ;;  %v2684_v51 = vmul.f32 %v8726_v56, %v9399_v40  ;;  %v1920_v57 = vadd.f32 %v1725_v33, %v9291_v59  ;;  %v9428_v21 = vmul.f32 %v8709_v26, %v9399_v40  ;;  %v9438_v56 = vpop.permute.xlu1 %653 }
 0x21c   : > { %v2862_v47 = vsel %vm1669_vm1, %v2859_v20, %v12783_v58  ;;  %v2048_v39 = vmul.f32 %v8714_v12, %v9399_v40  ;;  %v3188_v11 = vmul.f32 %v12748_v62, %v9399_v40  ;;  %v2594_v20 = vadd.f32 %v2397_v53, %v2126_v63 }
 0x21d   : > { %v3060_v3 = vadd.f32 %v2862_v47, %v9295_v10  ;;  %v9436_v10 = vmul.f32 %v8703_v48, %v9345_v34  ;;  %v4205_v55 = vadd.f32 %v4005_v44, %v3737_v17  ;;  %v2398_v36 = vrot.slane %v2216_v1, 1 }
 0x21e   : > { %v3065_v59 = vadd.f32 %v2868_v43, %v2597_v41  ;;  %v2866_v26 = vrot.slane %v2684_v51, 2  ;;  %v3356_v4 = vmul.f32 %v12749_v46, %v9399_v40  ;;  %v3824_v12 = vmul.f32 %v8938_v42, %v9399_v40 }
 0x21f   : > { %v9447_v0 = vadd.f32 %v9068_v9, %v4202_v54  ;;  %v1260_v48 = vrot.slane %v9419_v49, 1  ;;  %v2399_v63 = vsel %vm1200_vm0, %v2396_v50, %v2398_v36  ;;  %v3268_v53 = vadd.f32 %v3188_v11, %v3060_v3 }
 0x220   : > { %v1729_v7 = vrot.slane %v9428_v21, 2  ;;  %v2128_v41 = vadd.f32 %v2048_v39, %v1920_v57  ;;  %v3535_v33 = vrot.slane %v3356_v4, 1  ;;  %v4003_v17 = vrot.slane %v3824_v12, 2 }
 0x221   : > { %v9455_v58 = vadd.f32 %v9068_v9, %v4205_v55  ;;  %v2401_v47 = vsel %vm1200_vm0, %v2398_v36, %v2400_v31  ;;  %v3359_v54 = vmul.f32 %v12749_v46, %v9438_v56  ;;  %v9462_v1 = vmul.f32 %v8938_v42, %v9438_v56 }
 0x222   : > { %v3536_v50 = vsel %vm1200_vm0, %v3533_v45, %v3535_v33  ;;  %v3538_v3 = vsel %vm1200_vm0, %v3535_v33, %v3537_v30  ;;  %v2595_v51 = vadd.f32 %v2399_v63, %v9321_v32  ;;  %v2867_v31 = vsel %vm1669_vm1, %v2864_v8, %v2866_v26  ;;  %v9481_v45 = vpop.permute.xlu1 %663  ;;  %v9497_v33 = vpop.permute.xlu0 %658 }
 0x223   : > { %v3735_v57 = vadd.f32 %v3536_v50, %v9340_v24  ;;  %v3736_v39 = vadd.f32 %v3538_v3, %v3268_v53  ;;  %v4004_v11 = vsel %vm1669_vm1, %v4001_v37, %v4003_v17  ;;  %v2865_v60 = vsel %vm1669_vm1, %v2863_v61, %v2864_v8 }
 0x224   : > { %v3540_v30 = vrot.slane %v3359_v54, 1  ;;  %v3062_v55 = vadd.f32 %v2865_v60, %v2594_v20  ;;  %v3190_v32 = vmul.f32 %v12748_v62, %v9464_v15  ;;  %v3358_v36 = vmul.f32 %v12749_v46, %v9464_v15 }
 0x225   : > { %v2596_v24 = vadd.f32 %v2401_v47, %v2128_v41  ;;  %v4203_v4 = vadd.f32 %v4004_v11, %v3735_v57  ;;  %v4008_v38 = vrot.slane %v9462_v1, 2  ;;  %v3826_v37 = vmul.f32 %v8938_v42, %v9464_v15  ;;  %v9507_v11 = vld [vmem:[#allocation4 + $0x6] ss:$0 sm:$0xff] }
 0x226   : > { %v3270_v13 = vadd.f32 %v3190_v32, %v3062_v55  ;;  %v3539_v12 = vrot.slane %v3358_v36, 1  ;;  %v3193_v8 = vmul.f32 %v12748_v62, %v9481_v45  ;;  %v3361_v61 = vmul.f32 %v12749_v46, %v9481_v45 }
 0x227   : > { %v4006_v20 = vsel %vm1669_vm1, %v4003_v17, %v4005_v44  ;;  %v3063_v63 = vadd.f32 %v2867_v31, %v2595_v51  ;;  %v4007_v53 = vrot.slane %v3826_v37, 2  ;;  %v3829_v41 = vmul.f32 %v8938_v42, %v9481_v45 }
 0x228   : > { %v4204_v47 = vadd.f32 %v4006_v20, %v3736_v39  ;;  %v3541_v54 = vsel %vm1200_vm0, %v3539_v12, %v3540_v30  ;;  %v3273_v1 = vadd.f32 %v3193_v8, %v3065_v59  ;;  %v3544_v50 = vrot.slane %v3361_v61, 1 }
 0x229   : > { %v9501_v3 = vadd.f32 %v9068_v9, %v4203_v4  ;;  %v3738_v62 = vadd.f32 %v3541_v54, %v3270_v13  ;;  %v4009_v57 = vsel %vm1669_vm1, %v4007_v53, %v4008_v38  ;;  %v2869_v44 = vsel %vm1669_vm1, %v2866_v26, %v2868_v43 }
 0x22a   : > { %v3741_v17 = vadd.f32 %v3544_v50, %v3273_v1  ;;  %v4012_v51 = vrot.slane %v3829_v41, 2  ;;  %v3064_v31 = vadd.f32 %v2869_v44, %v2596_v24  ;;  %v3192_v39 = vmul.f32 %v9507_v11, %v9497_v33 }
 0x22b   : > { %v4369_v59 = vmax.f32 %v9447_v0, 0.0  ;;  %v4206_v60 = vadd.f32 %v4009_v57, %v3738_v62  ;;  %v3360_v55 = vmul.f32 %v12749_v46, %v9497_v33  ;;  %v3828_v32 = vmul.f32 %v8938_v42, %v9497_v33  ;;  %v9531_v62 = vld [vmem:[#allocation4 + $0x4] ss:$0 sm:$0xff] }
 0x22c   : > { %v4372_v14 = vmax.f32 %v9455_v58, 0.0  ;;  %v3191_v43 = vmul.f32 %v9507_v11, %v9438_v56  ;;  %v4209_v26 = vadd.f32 %v4012_v51, %v3741_v17  ;;  %v3272_v36 = vadd.f32 %v3192_v39, %v3064_v31 }
 0x22d   : > { %v4293_v24 = vadd.f32 %v9068_v9, %v4206_v60  ;;  %v3542_v4 = vrot.slane %v3360_v55, 1  ;;  %v4010_v37 = vrot.slane %v3828_v32, 2  ;;  %v1261_v46 = vsel %vm1200_vm0, %v1258_v22, %v1260_v48  ;;  %v9548_v60 = vld [vmem:[#allocation4 + $0x5] ss:$0 sm:$0xff] }
 0x22e   : > { %v4291_v0 = vadd.f32 %v9068_v9, %v4204_v47  ;;  %v4370_v13 = vmax.f32 %v9501_v3, 0.0  ;;  %v3271_v58 = vadd.f32 %v3191_v43, %v3063_v63  ;;  %v4296_v12 = vadd.f32 %v9068_v9, %v4209_v26 }
 0x22f   : > { %v4373_v8 = vmax.f32 %v4293_v24, 0.0  ;;  %v3543_v61 = vsel %vm1200_vm0, %v3540_v30, %v3542_v4  ;;  %v3545_v20 = vsel %vm1200_vm0, %v3542_v4, %v3544_v50  ;;  %v1454_v53 = vadd.f32 %v1261_v46, %v9298_v35  ;;  %v9560_v24 = vld [vmem:[#allocation4 + $0x3] ss:$0 sm:$0xff] }
 0x230   : > { %v4376_v41 = vmax.f32 %v4296_v12, 0.0  ;;  %v3739_v54 = vadd.f32 %v3543_v61, %v3271_v58  ;;  %v3740_v1 = vadd.f32 %v3545_v20, %v3272_v36  ;;  %v9535_v47 = vmul.f32 %v9531_v62, %v9438_v56 }
 0x231   : > { %v4437_v3 = vmax.f32 %v4369_v59, %v4373_v8  ;;  %v4011_v63 = vsel %vm1669_vm1, %v4008_v38, %v4010_v37  ;;  %v4013_v57 = vsel %vm1669_vm1, %v4010_v37, %v4012_v51  ;;  %v9541_v30 = vmul.f32 %v9531_v62, %v9497_v33  ;;  %v1980_v8 = vpop.permute.xlu1 %1979 }
 0x232   : > { %v4440_v50 = vmax.f32 %v4372_v14, %v4376_v41  ;;  %v4207_v35 = vadd.f32 %v4011_v63, %v3739_v54  ;;  %v4208_v44 = vadd.f32 %v4013_v57, %v3740_v1  ;;  %v12784_v17 = vrot.slane %v9283_v23, 2 }
 0x233   : > { %v4478_v39 = vrot.slane %v4437_v3, 1  ;;  %v9552_v38 = vmul.f32 %v9548_v60, %v9438_v56  ;;  %v2405_v59 = vrot.slane %v9541_v30, 1  ;;  %v2403_v43 = vrot.slane %v9535_v47, 1 }
 0x234   : > { %v1730_v31 = vsel %vm1669_vm1, %v12784_v17, %v1729_v7  ;;  %v4722_v55 = vrot.slane %v4440_v50, 1  ;;  %v4294_v32 = vadd.f32 %v9068_v9, %v4207_v35  ;;  %v4295_v14 = vadd.f32 %v9068_v9, %v4208_v44 }
 0x235   : > { %v1923_v51 = vadd.f32 %v1730_v31, %v1454_v53  ;;  %v4371_v26 = vmax.f32 %v4291_v0, 0.0  ;;  %v9558_v36 = vmax.f32 %v4437_v3, %v4478_v39  ;;  %v2051_v4 = vmul.f32 %v9560_v24, %v9438_v56  ;;  %v9571_v0 = vld [vmem:[#allocation4] ss:$0 sm:$0xff] }
 0x236   : > { %v9566_v37 = vmul.f32 %v9548_v60, %v9497_v33  ;;  %v4742_v46 = vmax.f32 %v4440_v50, %v4722_v55  ;;  %v4374_v58 = vmax.f32 %v4294_v32, 0.0  ;;  %v4375_v12 = vmax.f32 %v4295_v14, 0.0 }
 0x237   : > { %v2406_v9 = vsel %vm1200_vm0, %v2403_v43, %v2405_v59  ;;  %v907_v61 = vmul.f32 %v9571_v0, %v9345_v34  ;;  %v1262_v20 = vrot.slane %v9436_v10, 1  ;;  %v9578_v53 = vmul.f32 %v9571_v0, %v9399_v40  ;;  %4509 = vst.msk [vmem:[#allocation2 + $0x30] sm:$0x1] %vm4505_vm2, %v9558_v36 }
 0x238   : > { %v2131_v41 = vadd.f32 %v2051_v4, %v1923_v51  ;;  %4752 = vst.msk [vmem:[#allocation2 + $0x3c] sm:$0x1] %vm4505_vm2, %v4742_v46  ;;  %v4438_v54 = vmax.f32 %v4370_v13, %v4374_v58  ;;  %v4439_v1 = vmax.f32 %v4371_v26, %v4375_v12  ;;  %v2871_v47 = vrot.slane %v9552_v38, 2  ;;  %v1975_v38 = vpop.permute.xlu0 %1974 }
 0x239   : > { %v12785_v3 = vrot.slane %v9354_v52, 1  ;;  %v9590_v57 = vmul.f32 %v9531_v62, %v1980_v8  ;;  %v9593_v50 = vmul.f32 %v9548_v60, %v1980_v8  ;;  %v2873_v17 = vrot.slane %v9566_v37, 2  ;;  %4520 = vst.msk [vmem:[#allocation2 + $0x2f] sm:$0x4] %vm4516_vm3, %v9558_v36 }
 0x23a   : > { %v2599_v40 = vadd.f32 %v2406_v9, %v2131_v41  ;;  %v4562_v44 = vrot.slane %v4438_v54, 1  ;;  %v4642_v13 = vrot.slane %v4439_v1, 1  ;;  %v12786_v31 = vrot.slane %v9283_v23, 2  ;;  %v9612_v23 = vld [vmem:[#allocation4 + $0x7] ss:$0 sm:$0xff] }
 0x23b   : > { %v1259_v63 = vsel %vm1200_vm0, %v12785_v3, %v1258_v22  ;;  %v2050_v52 = vmul.f32 %v9560_v24, %v9464_v15  ;;  %v2218_v39 = vmul.f32 %v9531_v62, %v9464_v15  ;;  %v9615_v2 = vmul.f32 %v9612_v23, %v1980_v8  ;;  %4531 = vst.msk [vmem:[#allocation2 + $0x2e] sm:$0x10] %vm4527_vm4, %v9558_v36 }
 0x23c   : > { %v1453_v35 = vadd.f32 %v1259_v63, %v9381_v6  ;;  %v1728_v16 = vsel %vm1669_vm1, %v1726_v19, %v12786_v31  ;;  %v2686_v6 = vmul.f32 %v9548_v60, %v9464_v15  ;;  %v9608_v51 = vmax.f32 %v4438_v54, %v4562_v44  ;;  %4542 = vst.msk [vmem:[#allocation2 + $0x2d] sm:$0x40] %vm4538_vm5, %v9558_v36  ;;  %v1985_v27 = vpop.permute.xlu0 %1984 }
 0x23d   : > { %v9610_v55 = vmax.f32 %v4439_v1, %v4642_v13  ;;  %v9618_v19 = vmul.f32 %v8938_v42, %v1980_v8  ;;  %v9621_v32 = vmul.f32 %v9560_v24, %v1980_v8  ;;  %v2402_v26 = vrot.slane %v2218_v39, 1 }
 0x23e   : > { %v1922_v22 = vadd.f32 %v1728_v16, %v1453_v35  ;;  %v2870_v4 = vrot.slane %v2686_v6, 2  ;;  %4592 = vst.msk [vmem:[#allocation2 + $0x34] sm:$0x1] %vm4505_vm2, %v9608_v51  ;;  %v2410_v46 = vrot.slane %v9590_v57, 1  ;;  %v2874_v58 = vsel %vm1669_vm1, %v2871_v47, %v2873_v17  ;;  %v9646_v16 = vld [vmem:[#allocation4 + $0x2] ss:$0 sm:$0xff] }
 0x23f   : > { %4672 = vst.msk [vmem:[#allocation2 + $0x38] sm:$0x1] %vm4505_vm2, %v9610_v55  ;;  %v2878_v12 = vrot.slane %v9593_v50, 2  ;;  %v3362_v9 = vmul.f32 %v9612_v23, %v1975_v38  ;;  %v3067_v41 = vadd.f32 %v2874_v58, %v2599_v40  ;;  %v3195_v54 = vmul.f32 %v9507_v11, %v1980_v8 }
 0x240   : > { %v2130_v14 = vadd.f32 %v2050_v52, %v1922_v22  ;;  %v2404_v1 = vsel %vm1200_vm0, %v2402_v26, %v2403_v43  ;;  %v9636_v3 = vmul.f32 %v8938_v42, %v1975_v38  ;;  %v3547_v63 = vrot.slane %v9615_v2, 1  ;;  %4602 = vst.msk [vmem:[#allocation2 + $0x33] sm:$0x4] %vm4516_vm3, %v9608_v51  ;;  %4682 = vst.msk [vmem:[#allocation2 + $0x37] sm:$0x4] %vm4516_vm3, %v9610_v55 }
 0x241   : > { %v4015_v35 = vrot.slane %v9618_v19, 2  ;;  %v9641_v13 = vmul.f32 %v9531_v62, %v1975_v38  ;;  %v2872_v31 = vsel %vm1669_vm1, %v2870_v4, %v2871_v47  ;;  %v1456_v40 = vadd.f32 %v1262_v20, %v907_v61  ;;  %4612 = vst.msk [vmem:[#allocation2 + $0x32] sm:$0x10] %vm4527_vm4, %v9608_v51  ;;  %4692 = vst.msk [vmem:[#allocation2 + $0x36] sm:$0x10] %vm4527_vm4, %v9610_v55 }
 0x242   : > { %v2598_v44 = vadd.f32 %v2404_v1, %v2130_v14  ;;  %v9650_v43 = vmul.f32 %v9646_v16, %v9345_v34  ;;  %v9654_v42 = vmul.f32 %v9531_v62, %v9481_v45  ;;  %v9657_v22 = vmul.f32 %v9548_v60, %v1975_v38  ;;  %4622 = vst.msk [vmem:[#allocation2 + $0x31] sm:$0x40] %vm4538_vm5, %v9608_v51 }
 0x243   : > { %v3194_v52 = vmul.f32 %v9507_v11, %v1975_v38  ;;  %v3546_v47 = vrot.slane %v3362_v9, 1  ;;  %v9660_v39 = vadd.f32 %v3195_v54, %v3067_v41  ;;  %v4014_v61 = vrot.slane %v9636_v3, 2  ;;  %v9675_v41 = vpop.permute.xlu1 %1989  ;;  %v12787_v3 = vld [vmem:[#allocation44_spill] sm:$0xff]  ;;  %4702 = vst.msk [vmem:[#allocation2 + $0x35] sm:$0x40] %vm4538_vm5, %v9610_v55 }
 0x244   : > { %v3066_v8 = vadd.f32 %v2872_v31, %v2598_v44  ;;  %v1731_v6 = vrot.slane %v9650_v43, 2  ;;  %v2053_v34 = vmul.f32 %v9560_v24, %v9481_v45  ;;  %v9667_v14 = vmul.f32 %v9560_v24, %v1975_v38  ;;  %4518 = vst.msk [vmem:[#allocation2 + $0xf] sm:$0x4] %vm4516_vm3, %v12787_v3  ;;  %v9782_v43 = vld [vmem:[#allocation4 + $0x8] ss:$0 sm:$0xff] }
 0x245   : > { %v2409_v26 = vrot.slane %v9641_v13, 1  ;;  %v2407_v4 = vrot.slane %v9654_v42, 1  ;;  %v9673_v58 = vmul.f32 %v9548_v60, %v9481_v45  ;;  %v2877_v54 = vrot.slane %v9657_v22, 2  ;;  %4529 = vst.msk [vmem:[#allocation2 + $0xe] sm:$0x10] %vm4527_vm4, %v12787_v3  ;;  %v4761_v42 = vld [vmem:[#allocation2 + $0x1] sm:$0xff] }
 0x246   : > { %v1925_v9 = vadd.f32 %v1731_v6, %v1456_v40  ;;  %v3274_v1 = vadd.f32 %v3194_v52, %v3066_v8  ;;  %v3548_v38 = vsel %vm1200_vm0, %v3546_v47, %v3547_v63  ;;  %4540 = vst.msk [vmem:[#allocation2 + $0xd] sm:$0x40] %vm4538_vm5, %v12787_v3  ;;  %v1263_v29 = vsel %vm1200_vm0, %v1260_v48, %v1262_v20 }
 0x247   : > { %v4016_v18 = vsel %vm1669_vm1, %v4014_v61, %v4015_v35  ;;  %v1455_v36 = vadd.f32 %v1263_v29, %v9578_v53  ;;  %v2052_v51 = vmul.f32 %v9560_v24, %v9497_v33  ;;  %v2875_v44 = vrot.slane %v9673_v58, 2  ;;  %4770 = vrot.lane.b32.xlu1 %v4761_v42, %s7609_s27 }
 0x248   : > { %v2133_v5 = vadd.f32 %v2053_v34, %v1925_v9  ;;  %v9767_v10 = vmul.f32 %v9560_v24, %v9675_v41  ;;  %v3365_v49 = vmul.f32 %v9612_v23, %v9675_v41  ;;  %v1732_v48 = vsel %vm1669_vm1, %v1729_v7, %v1731_v6 }
 0x249   : > { %v9778_v53 = vmul.f32 %v9531_v62, %v9675_v41  ;;  %v3197_v55 = vmul.f32 %v9507_v11, %v9675_v41  ;;  %v1924_v31 = vadd.f32 %v1732_v48, %v1455_v36  ;;  %v3742_v40 = vadd.f32 %v3548_v38, %v3274_v1  ;;  %v9797_v1 = vld [vmem:[#allocation4 + $0x1] ss:$0 sm:$0xff] }
 0x24a   : > { %v2601_v20 = vadd.f32 %v2407_v4, %v2133_v5  ;;  %v3833_v8 = vmul.f32 %v9782_v43, %v9675_v41  ;;  %v2408_v21 = vsel %vm1200_vm0, %v2405_v59, %v2407_v4  ;;  %v3364_v7 = vmul.f32 %v9612_v23, %v1985_v27 }
 0x24b   : > { %v2132_v47 = vadd.f32 %v2052_v51, %v1924_v31  ;;  %v9793_v61 = vmul.f32 %v9531_v62, %v1985_v27  ;;  %v3832_v6 = vmul.f32 %v9782_v43, %v1985_v27  ;;  %v3551_v34 = vrot.slane %v3365_v49, 1 }
 0x24c   : > { %v3069_v52 = vadd.f32 %v2875_v44, %v2601_v20  ;;  %v3196_v58 = vmul.f32 %v9507_v11, %v1985_v27  ;;  %v3549_v9 = vrot.slane %v3364_v7, 1  ;;  %v1077_v30 = vmul.f32 %v9797_v1, %v9438_v56  ;;  %v450_v20 = vld [vmem:[%s7846_s13 + $0x288] sm:$0xff] }
 0x24d   : > { %v2600_v4 = vadd.f32 %v2408_v21, %v2132_v47  ;;  %v9803_v38 = vmul.f32 %v9797_v1, %v9497_v33  ;;  %v9807_v3 = vmul.f32 %v9646_v16, %v9497_v33  ;;  %v4019_v28 = vrot.slane %v3833_v8, 2  ;;  %833 = vperm.xlu1 %7310, %v450_v20  }
 0x24e   : > { %v3277_v59 = vadd.f32 %v3197_v55, %v3069_v52  ;;  %v2876_v25 = vsel %vm1669_vm1, %v2873_v17, %v2875_v44  ;;  %v9814_v29 = vmul.f32 %v9548_v60, %v1985_v27  ;;  %v1546_v5 = vmul.f32 %v9646_v16, %v9438_v56 }
 0x24f   : > { %v9818_v36 = vadd.f32 %v4016_v18, %v3742_v40  ;;  %v3068_v51 = vadd.f32 %v2876_v25, %v2600_v4  ;;  %v2412_v49 = vrot.slane %v9793_v61, 1  ;;  %v4017_v48 = vrot.slane %v3832_v6, 2 }
 0x250   : > { %v3550_v55 = vsel %vm1200_vm0, %v3547_v63, %v3549_v9  ;;  %v1265_v37 = vrot.slane %v1077_v30, 1  ;;  %v1267_v17 = vrot.slane %v9803_v38, 1  ;;  %v1736_v44 = vrot.slane %v9807_v3, 2  ;;  %v3124_v63 = vpop.permute.xlu1 %3123  ;;  %v4908_v30 = vld [vmem:[#allocation2 + $0x21] sm:$0xff] }
 0x251   : > { %v3745_v31 = vadd.f32 %v3551_v34, %v3277_v59  ;;  %v9828_v8 = vmul.f32 %v9560_v24, %v1985_v27  ;;  %v3276_v18 = vadd.f32 %v3196_v58, %v3068_v51  ;;  %v909_v40 = vmul.f32 %v9571_v0, %v9438_v56  ;;  %v452_v58 = vld [vmem:[%s7846_s13 + $0x298] sm:$0xf] }
 0x252   : > { %v2880_v21 = vrot.slane %v9814_v29, 2  ;;  %v3552_v2 = vsel %vm1200_vm0, %v3549_v9, %v3551_v34  ;;  %v1734_v7 = vrot.slane %v1546_v5, 2  ;;  %v1268_v52 = vsel %vm1200_vm0, %v1265_v37, %v1267_v17  ;;  %843 = vperm.xlu1 %7310, %v452_v58  }
 0x253   : > { %v3743_v47 = vadd.f32 %v3550_v55, %v9660_v39  ;;  %v4018_v27 = vsel %vm1669_vm1, %v4015_v35, %v4017_v48  ;;  %v4020_v6 = vsel %vm1669_vm1, %v4017_v48, %v4019_v28  ;;  %v1458_v56 = vadd.f32 %v1268_v52, %v909_v40  ;;  %v3119_v35 = vpop.permute.xlu0 %3118  ;;  %v4766_v55 = vld [vmem:[#allocation2 + $0x11] sm:$0xff] }
 0x254   : > { %v1737_v34 = vsel %vm1669_vm1, %v1734_v7, %v1736_v44  ;;  %v2413_v9 = vsel %vm1200_vm0, %v2410_v46, %v2412_v49  ;;  %v1076_v39 = vmul.f32 %v9797_v1, %v9464_v15  ;;  %v1545_v19 = vmul.f32 %v9646_v16, %v9464_v15 }
 0x255   : > { %v9855_v59 = vadd.f32 %v4019_v28, %v3745_v31  ;;  %v3744_v42 = vadd.f32 %v3552_v2, %v3276_v18  ;;  %v1927_v4 = vadd.f32 %v1737_v34, %v1458_v56  ;;  %v9858_v25 = vmul.f32 %v9612_v23, %v3124_v63  ;;  %v454_v2 = vld [vmem:[%s7846_s13 + $0x2a8] sm:$0xff] }
 0x256   : > { %v9861_v5 = vmul.f32 %v9782_v43, %v3124_v63  ;;  %v908_v51 = vmul.f32 %v9571_v0, %v9464_v15  ;;  %v1264_v48 = vrot.slane %v1076_v39, 1  ;;  %v1733_v20 = vrot.slane %v1545_v19, 2  ;;  %853 = vperm.xlu1 %7310, %v454_v2  }
 0x257   : > { %v2135_v40 = vadd.f32 %v9621_v32, %v1927_v4  ;;  %v3366_v28 = vmul.f32 %v9612_v23, %v3119_v35  ;;  %v3834_v31 = vmul.f32 %v9782_v43, %v3119_v35  ;;  %v7311_v18 = vpack.i.bf16 %v4908_v30, %v4766_v55  ;;  %v3134_v55 = vpop.permute.xlu1 %3133 }
 0x258   : > { %v9869_v52 = vadd.f32 %v4018_v27, %v3743_v47  ;;  %v2881_v15 = vsel %vm1669_vm1, %v2878_v12, %v2880_v21  ;;  %v3199_v56 = vmul.f32 %v9507_v11, %v3124_v63  ;;  %v1266_v58 = vsel %vm1200_vm0, %v1264_v48, %v1265_v37 }
 0x259   : > { %v2603_v32 = vadd.f32 %v2413_v9, %v2135_v40  ;;  %v3554_v34 = vrot.slane %v9858_v25, 1  ;;  %v1457_v39 = vadd.f32 %v1266_v58, %v908_v51  ;;  %v2411_v47 = vsel %vm1200_vm0, %v2409_v26, %v2410_v46  ;;  %7312 = vrot.lane.b32.xlu0 %v7311_v18, %s7609_s27  ;;  %v451_v9 = vld [vmem:[%s7846_s13 + $0x290] sm:$0xff]  ;;  %v456_v51 = vld [vmem:[%s7846_s13 + $0x2b8] sm:$0xf]  ;;  %v453_v40 = vld [vmem:[%s7846_s13 + $0x2a0] sm:$0xff] }
 0x25a   : > { %v4212_v27 = vadd.f32 %v4020_v6, %v3744_v42  ;;  %v1735_v19 = vsel %vm1669_vm1, %v1733_v20, %v1734_v7  ;;  %v1079_v63 = vmul.f32 %v9797_v1, %v9481_v45  ;;  %v1548_v37 = vmul.f32 %v9646_v16, %v9481_v45  ;;  %v9903_v20 = vld [vmem:[#allocation6] ss:$0 sm:$0xff]  ;;  %863 = vperm.xlu1 %7310, %v456_v51  }
 0x25b   : > { %v4022_v30 = vrot.slane %v9861_v5, 2  ;;  %v1926_v57 = vadd.f32 %v1735_v19, %v1457_v39  ;;  %v3553_v4 = vrot.slane %v3366_v28, 1  ;;  %v4021_v13 = vrot.slane %v3834_v31, 2  ;;  %v458_v31 = vld [vmem:[%s7846_s13 + $0x2c8] sm:$0xff] }
 0x25c   : > { %v2879_v46 = vsel %vm1669_vm1, %v2877_v54, %v2878_v12  ;;  %v911_v26 = vmul.f32 %v9571_v0, %v9481_v45  ;;  %v1269_v7 = vrot.slane %v1079_v63, 1  ;;  %v2693_v6 = vmul.f32 %v9548_v60, %v9675_v41 }
 0x25d   : > { %v3071_v42 = vadd.f32 %v2881_v15, %v2603_v32  ;;  %v2134_v48 = vadd.f32 %v9667_v14, %v1926_v57  ;;  %v9907_v50 = vadd.f32 %v9903_v20, %v9818_v36  ;;  %v1738_v22 = vrot.slane %v1548_v37, 2  ;;  %838 = vperm.xlu0 %7309, %v451_v9   ;;  %v455_v37 = vld [vmem:[%s7846_s13 + $0x2b0] sm:$0xff] }
 0x25e   : > { %v3198_v12 = vmul.f32 %v9507_v11, %v3119_v35  ;;  %v1460_v45 = vadd.f32 %v1269_v7, %v911_v26  ;;  %v2414_v54 = vrot.slane %v9778_v53, 1  ;;  %v910_v41 = vmul.f32 %v9571_v0, %v9497_v33  ;;  %v3129_v53 = vpop.permute.xlu0 %3128  ;;  %1999 = vperm.xlu1 %7310, %v458_v31  }
 0x25f   : > { %v2602_v14 = vadd.f32 %v2411_v47, %v2134_v48  ;;  %v3555_v28 = vsel %vm1200_vm0, %v3553_v4, %v3554_v34  ;;  %v4023_v36 = vsel %vm1669_vm1, %v4021_v13, %v4022_v30  ;;  %v1270_v35 = vsel %vm1200_vm0, %v1267_v17, %v1269_v7  ;;  %v457_v48 = vld [vmem:[%s7846_s13 + $0x2c0] sm:$0xff] }
 0x260   : > { %v1929_v18 = vadd.f32 %v1738_v22, %v1460_v45  ;;  %v2882_v33 = vrot.slane %v2693_v6, 2  ;;  %v3369_v2 = vmul.f32 %v9612_v23, %v3134_v55  ;;  %v1459_v15 = vadd.f32 %v1270_v35, %v910_v41 }
 0x261   : > { %v3279_v58 = vadd.f32 %v3199_v56, %v3071_v42  ;;  %v3070_v32 = vadd.f32 %v2879_v46, %v2602_v14  ;;  %v9927_v39 = vadd.f32 %v9903_v20, %v9855_v59  ;;  %v1739_v38 = vsel %vm1669_vm1, %v1736_v44, %v1738_v22  ;;  %848 = vperm.xlu0 %7309, %v453_v40   ;;  %v460_v44 = vld [vmem:[%s7846_s13 + $0x2d8] sm:$0xf] }
 0x262   : > { %v2137_v17 = vadd.f32 %v9767_v10, %v1929_v18  ;;  %v3201_v47 = vmul.f32 %v9507_v11, %v3134_v55  ;;  %v1928_v19 = vadd.f32 %v1739_v38, %v1459_v15  ;;  %v3368_v63 = vmul.f32 %v9612_v23, %v3129_v53  ;;  %2009 = vperm.xlu1 %7310, %v460_v44   ;;  %v9984_v15 = vpop.permute.xlu0 %708 }
 0x263   : > { %v3278_v56 = vadd.f32 %v3198_v12, %v3070_v32  ;;  %v3837_v9 = vmul.f32 %v9782_v43, %v3134_v55  ;;  %v2415_v59 = vsel %vm1200_vm0, %v2412_v49, %v2414_v54  ;;  %v3836_v3 = vmul.f32 %v9782_v43, %v3129_v53 }
 0x264   : > { %v2605_v57 = vadd.f32 %v2414_v54, %v2137_v17  ;;  %v3558_v10 = vrot.slane %v3369_v2, 1  ;;  %v2136_v4 = vadd.f32 %v9828_v8, %v1928_v19  ;;  %v3556_v13 = vrot.slane %v3368_v63, 1 }
 0x265   : > { %v3746_v51 = vadd.f32 %v3555_v28, %v3278_v56  ;;  %v4298_v46 = vadd.f32 %v9903_v20, %v9869_v52  ;;  %v9946_v26 = vadd.f32 %v9903_v20, %v4212_v27  ;;  %v4024_v7 = vrot.slane %v3836_v3, 2  ;;  %858 = vperm.xlu0 %7309, %v455_v37  }
 0x266   : > { %v3073_v61 = vadd.f32 %v2882_v33, %v2605_v57  ;;  %v2604_v49 = vadd.f32 %v2415_v59, %v2136_v4  ;;  %v3200_v6 = vmul.f32 %v9507_v11, %v3129_v53  ;;  %v3557_v42 = vsel %vm1200_vm0, %v3554_v34, %v3556_v13  ;;  %v9961_v34 = vpop.permute.xlu1 %713 }
 0x267   : > { %v4377_v8 = vmax.f32 %v9907_v50, 0.0  ;;  %v4214_v22 = vadd.f32 %v4023_v36, %v3746_v51  ;;  %v2883_v52 = vsel %vm1669_vm1, %v2880_v21, %v2882_v33  ;;  %v3747_v27 = vadd.f32 %v3557_v42, %v3279_v58  ;;  %12790 = vst [vmem:[#allocation23_spill] sm:$0xff] %v9961_v34  ;;  %v459_v36 = vld [vmem:[%s7846_s13 + $0x2d0] sm:$0xff]  ;;  %v10015_v42 = vpop.permute.xlu0 %718 }
 0x268   : > { %v4380_v55 = vmax.f32 %v9927_v39, 0.0  ;;  %v3281_v12 = vadd.f32 %v3201_v47, %v3073_v61  ;;  %v3072_v45 = vadd.f32 %v2883_v52, %v2604_v49  ;;  %v4025_v25 = vsel %vm1669_vm1, %v4022_v30, %v4024_v7  ;;  %12793 = vst [vmem:[#allocation30_spill] sm:$0xff] %v10015_v42 }
 0x269   : > { %v4301_v54 = vadd.f32 %v9903_v20, %v4214_v22  ;;  %v4026_v50 = vrot.slane %v3837_v9, 2  ;;  %v3559_v41 = vsel %vm1200_vm0, %v3556_v13, %v3558_v10  ;;  %v4215_v29 = vadd.f32 %v4025_v25, %v3747_v27  ;;  %1994 = vperm.xlu0 %7309, %v457_v48  }
 0x26a   : > { %v3749_v21 = vadd.f32 %v3558_v10, %v3281_v12  ;;  %v4378_v40 = vmax.f32 %v4298_v46, 0.0  ;;  %v4379_v14 = vmax.f32 %v9946_v26, 0.0  ;;  %v3280_v28 = vadd.f32 %v3200_v6, %v3072_v45  ;;  %v10006_v4 = vpop.permute.xlu1 %723 }
 0x26b   : > { %v4381_v35 = vmax.f32 %v4301_v54, 0.0  ;;  %v4302_v5 = vadd.f32 %v9903_v20, %v4215_v29  ;;  %v9970_v30 = vmul.f32 %v9571_v0, %v9961_v34  ;;  %v9974_v53 = vmul.f32 %v9797_v1, %v9961_v34  ;;  %12792 = vst [vmem:[#allocation29_spill] sm:$0xff] %v10006_v4 }
 0x26c   : > { %v4217_v31 = vadd.f32 %v4026_v50, %v3749_v21  ;;  %v3748_v18 = vadd.f32 %v3559_v41, %v3280_v28  ;;  %v9978_v33 = vmul.f32 %v9646_v16, %v9961_v34  ;;  %v9982_v2 = vmul.f32 %v9531_v62, %v9961_v34 }
 0x26d   : > { %v4441_v58 = vmax.f32 %v4377_v8, %v4381_v35  ;;  %v4027_v32 = vsel %vm1669_vm1, %v4024_v7, %v4026_v50  ;;  %v4382_v39 = vmax.f32 %v4302_v5, 0.0  ;;  %v9989_v38 = vmul.f32 %v9548_v60, %v9961_v34  ;;  %2004 = vperm.xlu0 %7309, %v459_v36  }
 0x26e   : > { %v4304_v17 = vadd.f32 %v9903_v20, %v4217_v31  ;;  %v4216_v47 = vadd.f32 %v4027_v32, %v3748_v18  ;;  %v9994_v19 = vmul.f32 %v9612_v23, %v9961_v34  ;;  %v9998_v63 = vmul.f32 %v9782_v43, %v9961_v34  ;;  %v734_v32 = vpop.permute.xlu1 %733 }
 0x26f   : > { %v4479_v37 = vrot.slane %v4441_v58, 1  ;;  %v4442_v56 = vmax.f32 %v4378_v40, %v4382_v39  ;;  %v1286_v9 = vrot.slane %v9974_v53, 1  ;;  %v1088_v59 = vmul.f32 %v9797_v1, %v9984_v15 }
 0x270   : > { %12791 = vst [vmem:[#allocation26_spill] sm:$0xff] %v9998_v63  ;;  %v4384_v3 = vmax.f32 %v4304_v17, 0.0  ;;  %v4303_v44 = vadd.f32 %v9903_v20, %v4216_v47  ;;  %v1755_v57 = vrot.slane %v9978_v33, 2  ;;  %v10011_v26 = vmul.f32 %v9646_v16, %v9984_v15 }
 0x271   : > { %v4499_v13 = vmax.f32 %v4441_v58, %v4479_v37  ;;  %v4563_v51 = vrot.slane %v4442_v56, 1  ;;  %v1285_v8 = vrot.slane %v1088_v59, 1  ;;  %v10023_v22 = vmul.f32 %v9531_v62, %v9984_v15 }
 0x272   : > { %v4444_v7 = vmax.f32 %v4380_v55, %v4384_v3  ;;  %v4383_v61 = vmax.f32 %v4303_v44, 0.0  ;;  %v1091_v52 = vmul.f32 %v9797_v1, %v10006_v4  ;;  %v920_v12 = vmul.f32 %v9571_v0, %v9984_v15 }
 0x273   : > { %4510 = vst.msk [vmem:[#allocation2 + $0x40] sm:$0x1] %vm4505_vm2, %v4499_v13  ;;  %v4583_v48 = vmax.f32 %v4442_v56, %v4563_v51  ;;  %v10031_v45 = vmul.f32 %v9548_v60, %v9984_v15  ;;  %v1754_v25 = vrot.slane %v10011_v26, 2  ;;  %v923_v54 = vmul.f32 %v9571_v0, %v10006_v4 }
 0x274   : > { %4521 = vst.msk [vmem:[#allocation2 + $0x3f] sm:$0x4] %vm4516_vm3, %v4499_v13  ;;  %v4723_v27 = vrot.slane %v4444_v7, 1  ;;  %v4443_v55 = vmax.f32 %v4379_v14, %v4383_v61  ;;  %v1290_v50 = vrot.slane %v1091_v52, 1  ;;  %v1090_v41 = vmul.f32 %v9797_v1, %v10015_v42  ;;  %v729_v52 = vpop.permute.xlu0 %728 }
 0x275   : > { %4532 = vst.msk [vmem:[#allocation2 + $0x3e] sm:$0x10] %vm4527_vm4, %v4499_v13  ;;  %4613 = vst.msk [vmem:[#allocation2 + $0x42] sm:$0x10] %vm4527_vm4, %v4583_v48  ;;  %v10044_v40 = vmul.f32 %v9646_v16, %v10006_v4  ;;  %v10048_v14 = vmul.f32 %v9646_v16, %v10015_v42  ;;  %v1287_v28 = vsel %vm1200_vm0, %v1285_v8, %v1286_v9 }
 0x276   : > { %4543 = vst.msk [vmem:[#allocation2 + $0x3d] sm:$0x40] %vm4538_vm5, %v4499_v13  ;;  %4623 = vst.msk [vmem:[#allocation2 + $0x41] sm:$0x40] %vm4538_vm5, %v4583_v48  ;;  %v4743_v29 = vmax.f32 %v4444_v7, %v4723_v27  ;;  %v4643_v21 = vrot.slane %v4443_v55, 1  ;;  %v10054_v35 = vmul.f32 %v9612_v23, %v9984_v15  ;;  %v1288_v5 = vrot.slane %v1090_v41, 1  ;;  %v10139_v13 = vpop.permute.xlu1 %743 }
 0x277   : > { %4593 = vst.msk [vmem:[#allocation2 + $0x44] sm:$0x1] %vm4505_vm2, %v4583_v48  ;;  %v10060_v18 = vmul.f32 %v9782_v43, %v9984_v15  ;;  %v1472_v58 = vadd.f32 %v1290_v50, %v923_v54  ;;  %v10065_v17 = vmul.f32 %v9531_v62, %v10015_v42  ;;  %v10069_v47 = vmul.f32 %v9548_v60, %v10015_v42 }
 0x278   : > { %4603 = vst.msk [vmem:[#allocation2 + $0x43] sm:$0x4] %vm4516_vm3, %v4583_v48  ;;  %v4663_v53 = vmax.f32 %v4443_v55, %v4643_v21  ;;  %v1289_v39 = vsel %vm1200_vm0, %v1286_v9, %v1288_v5  ;;  %v10073_v37 = vmul.f32 %v9612_v23, %v10015_v42  ;;  %v1759_v56 = vrot.slane %v10044_v40, 2  ;;  %12801 = vst [vmem:[#allocation25_spill] sm:$0xff] %v10139_v13 }
 0x279   : > { %4753 = vst.msk [vmem:[#allocation2 + $0x4c] sm:$0x1] %vm4505_vm2, %v4743_v29  ;;  %12794 = vst [vmem:[#allocation20_spill] sm:$0xff] %v10060_v18  ;;  %v1291_v9 = vsel %vm1200_vm0, %v1288_v5, %v1290_v50  ;;  %v1757_v59 = vrot.slane %v10048_v14, 2  ;;  %v10084_v3 = vmul.f32 %v9782_v43, %v10015_v42  ;;  %v1469_v44 = vadd.f32 %v1287_v28, %v920_v12 }
 0x27a   : > { %12795 = vst [vmem:[#allocation21_spill] sm:$0xff] %v10065_v17  ;;  %12796 = vst [vmem:[#allocation28_spill] sm:$0xff] %v10069_v47  ;;  %v922_v51 = vmul.f32 %v9571_v0, %v10015_v42  ;;  %v10090_v26 = vmul.f32 %v9797_v1, %v734_v32  ;;  %v1941_v61 = vadd.f32 %v1759_v56, %v1472_v58 }
 0x27b   : > { %12797 = vst [vmem:[#allocation18_spill] sm:$0xff] %v10073_v37  ;;  %4673 = vst.msk [vmem:[#allocation2 + $0x48] sm:$0x1] %vm4505_vm2, %v4663_v53  ;;  %v1470_v48 = vadd.f32 %v1289_v39, %v9970_v30  ;;  %v10097_v8 = vmul.f32 %v9646_v16, %v734_v32  ;;  %v10104_v41 = vmul.f32 %v9571_v0, %v734_v32 }
 0x27c   : > { %4683 = vst.msk [vmem:[#allocation2 + $0x47] sm:$0x4] %vm4516_vm3, %v4663_v53  ;;  %12798 = vst [vmem:[#allocation22_spill] sm:$0xff] %v10084_v3  ;;  %v1471_v27 = vadd.f32 %v1291_v9, %v922_v51  ;;  %v1758_v30 = vsel %vm1669_vm1, %v1755_v57, %v1757_v59  ;;  %v10112_v29 = vmul.f32 %v9531_v62, %v734_v32  ;;  %v12516_v21 = vrot.slane %v10090_v26, 1 }
 0x27d   : > { %4693 = vst.msk [vmem:[#allocation2 + $0x46] sm:$0x10] %vm4527_vm4, %v4663_v53  ;;  %v2067_v28 = vmul.f32 %v9560_v24, %v734_v32  ;;  %v10117_v5 = vmul.f32 %v9548_v60, %v734_v32  ;;  %v1939_v39 = vadd.f32 %v1758_v30, %v1470_v48  ;;  %v10122_v9 = vmul.f32 %v9507_v11, %v734_v32 }
 0x27e   : > { %4703 = vst.msk [vmem:[#allocation2 + $0x45] sm:$0x40] %vm4538_vm5, %v4663_v53  ;;  %v1092_v53 = vmul.f32 %v9797_v1, %v729_v52  ;;  %v10125_v51 = vmul.f32 %v9612_v23, %v734_v32  ;;  %v10128_v50 = vmul.f32 %v9782_v43, %v734_v32  ;;  %v1756_v54 = vsel %vm1669_vm1, %v1754_v25, %v1755_v57 }
 0x27f   : > { %12799 = vst [vmem:[#allocation31_spill] sm:$0xff] %v10122_v9  ;;  %v2234_v55 = vmul.f32 %v9531_v62, %v729_v52  ;;  %v2431_v7 = vrot.slane %v10112_v29, 1  ;;  %v1938_v6 = vadd.f32 %v1756_v54, %v1469_v44  ;;  %v10136_v48 = vmul.f32 %v9646_v16, %v729_v52 }
 0x280   : > { %12800 = vst [vmem:[#allocation32_spill] sm:$0xff] %v10128_v50  ;;  %v1292_v12 = vrot.slane %v1092_v53, 1  ;;  %v2066_v30 = vmul.f32 %v9560_v24, %v729_v52  ;;  %v10143_v33 = vmul.f32 %v9548_v60, %v729_v52  ;;  %v10146_v57 = vmul.f32 %v9612_v23, %v729_v52 }
 0x281   : > { %v2430_v49 = vrot.slane %v2234_v55, 1  ;;  %v10148_v25 = vadd.f32 %v2067_v28, %v1939_v39  ;;  %v924_v44 = vmul.f32 %v9571_v0, %v729_v52  ;;  %v10155_v29 = vmul.f32 %v9782_v43, %v729_v52  ;;  %v739_v55 = vpop.permute.xlu0 %738 }
 0x282   : > { %v1294_v54 = vsel %vm1200_vm0, %v1292_v12, %v12516_v21  ;;  %v1095_v31 = vmul.f32 %v9797_v1, %v10139_v13  ;;  %v2069_v28 = vmul.f32 %v9560_v24, %v10139_v13  ;;  %v2146_v46 = vadd.f32 %v2066_v30, %v1938_v6  ;;  %v5092_v34 = vld [vmem:[#allocation2 + $0x41] sm:$0xff] }
 0x283   : > { %12802 = vst [vmem:[#allocation47_spill] sm:$0xff] %v10155_v29  ;;  %v10165_v36 = vmul.f32 %v9507_v11, %v729_v52  ;;  %v2237_v12 = vmul.f32 %v9531_v62, %v10139_v13  ;;  %v10169_v10 = vadd.f32 %v1294_v54, %v924_v44  ;;  %v2432_v53 = vsel %vm1200_vm0, %v2430_v49, %v2431_v7  ;;  %v462_v29 = vld [vmem:[%s7846_s13 + $0x2e8] sm:$0xff] }
 0x284   : > { %v10177_v6 = vmul.f32 %v9646_v16, %v10139_v13  ;;  %v10181_v52 = vmul.f32 %v9548_v60, %v10139_v13  ;;  %v10185_v30 = vmul.f32 %v9612_v23, %v10139_v13  ;;  %v927_v49 = vmul.f32 %v9571_v0, %v10139_v13 }
 0x285   : > { %12803 = vst [vmem:[#allocation33_spill] sm:$0xff] %v10165_v36  ;;  %v1297_v44 = vrot.slane %v1095_v31, 1  ;;  %v2149_v54 = vadd.f32 %v2069_v28, %v1941_v61  ;;  %v2435_v58 = vrot.slane %v2237_v12, 1  ;;  %v2614_v39 = vadd.f32 %v2432_v53, %v2146_v46 }
 0x286   : > { %12804 = vst [vmem:[#allocation27_spill] sm:$0xff] %v10185_v30  ;;  %v10191_v21 = vmul.f32 %v9782_v43, %v10139_v13  ;;  %v1760_v32 = vsel %vm1669_vm1, %v1757_v59, %v1759_v56  ;;  %v1094_v9 = vmul.f32 %v9797_v1, %v739_v55  ;;  %v10200_v37 = vmul.f32 %v9646_v16, %v739_v55 }
 0x287   : > { %v1940_v3 = vadd.f32 %v1760_v32, %v1471_v27  ;;  %v2068_v31 = vmul.f32 %v9560_v24, %v739_v55  ;;  %v2236_v46 = vmul.f32 %v9531_v62, %v739_v55  ;;  %v1476_v14 = vadd.f32 %v1297_v44, %v927_v49  ;;  %v754_v27 = vpop.permute.xlu1 %753 }
 0x288   : > { %12805 = vst [vmem:[#allocation37_spill] sm:$0xff] %v10191_v21  ;;  %v1295_v28 = vrot.slane %v1094_v9, 1  ;;  %v2617_v12 = vadd.f32 %v2435_v58, %v2149_v54  ;;  %v10208_v59 = vmul.f32 %v9782_v43, %v739_v55  ;;  %v926_v47 = vmul.f32 %v9571_v0, %v739_v55 }
 0x289   : > { %v2433_v56 = vrot.slane %v2236_v46, 1  ;;  %v12807_v17 = vrot.slane %v10090_v26, 1  ;;  %v10216_v53 = vmul.f32 %v9548_v60, %v739_v55  ;;  %v2148_v54 = vadd.f32 %v2068_v31, %v1940_v3 }
 0x28a   : > { %12806 = vst [vmem:[#allocation24_spill] sm:$0xff] %v10208_v59  ;;  %v1298_v9 = vsel %vm1200_vm0, %v1295_v28, %v1297_v44  ;;  %v10221_v46 = vmul.f32 %v9612_v23, %v739_v55  ;;  %v12529_v21 = vrot.slane %v10208_v59, 2  ;;  %v10227_v26 = vmul.f32 %v9797_v1, %v754_v27  ;;  %v10289_v59 = vld [vmem:[#allocation4 + $0x6] ss:$0 sm:$0xff] }
 0x28b   : > { %v1296_v61 = vsel %vm1200_vm0, %v12807_v17, %v1295_v28  ;;  %v2434_v40 = vsel %vm1200_vm0, %v2431_v7, %v2433_v56  ;;  %v2436_v32 = vsel %vm1200_vm0, %v2433_v56, %v2435_v58  ;;  %v12809_v17 = vrot.slane %v10177_v6, 2 }
 0x28c   : > { %12808 = vst [vmem:[#allocation19_spill] sm:$0xff] %v10221_v46  ;;  %v12810_v44 = vrot.slane %v10181_v52, 2  ;;  %v10238_v3 = vmul.f32 %v9507_v11, %v739_v55  ;;  %v1474_v7 = vadd.f32 %v1296_v61, %v10104_v41  ;;  %v10241_v31 = vadd.f32 %v1298_v9, %v926_v47 }
 0x28d   : > { %v10231_v30 = vadd.f32 %v12809_v17, %v1476_v14  ;;  %v10245_v56 = vmul.f32 %v9571_v0, %v754_v27  ;;  %v10248_v49 = vmul.f32 %v9646_v16, %v754_v27  ;;  %v5000_v14 = vld [vmem:[#allocation2 + $0x31] sm:$0xff]  ;;  %v10250_v17 = vadd.f32 %v2436_v32, %v2148_v54  ;;  %v4762_v54 = vld [vmem:[#allocation2 + $0x9] sm:$0xf] }
 0x28e   : > { %v10235_v28 = vadd.f32 %v12810_v44, %v2617_v12  ;;  %12811 = vst [vmem:[#allocation34_spill] sm:$0xff] %v10238_v3  ;;  %v10254_v11 = vmul.f32 %v9531_v62, %v754_v27  ;;  %v2615_v41 = vadd.f32 %v2434_v40, %v10148_v25  ;;  %v12812_v47 = vrot.slane %v10128_v50, 2  ;;  %v749_v44 = vpop.permute.xlu0 %748  ;;  %v4767_v3 = vld [vmem:[#allocation2 + $0x19] sm:$0xf] }
 0x28f   : > { %v12814_v61 = vrot.slane %v10200_v37, 2  ;;  %v12815_v32 = vrot.slane %v10097_v8, 2  ;;  %v2071_v62 = vmul.f32 %v9560_v24, %v754_v27  ;;  %v10272_v40 = vmul.f32 %v9612_v23, %v754_v27 }
 0x290   : > { %v10262_v0 = vsel %vm1669_vm1, %v12812_v47, %v12529_v21  ;;  %v7321_v12 = vpack.i.bf16 %v5000_v14, %v4762_v54  ;;  %v12816_v47 = vrot.slane %v10117_v5, 2  ;;  %v12817_v21 = vrot.slane %v10143_v33, 2 }
 0x291   : > { %12813 = vst [vmem:[#allocation38_spill] sm:$0xff] %v10262_v0  ;;  %v1765_v9 = vsel %vm1669_vm1, %v12815_v32, %v12814_v61  ;;  %v10281_v61 = vmul.f32 %v9548_v60, %v754_v27  ;;  %v12818_v32 = vrot.slane %v10216_v53, 2  ;;  %v1096_v33 = vmul.f32 %v9797_v1, %v749_v44 }
 0x292   : > { %v1943_v25 = vadd.f32 %v1765_v9, %v1474_v7  ;;  %v2900_v55 = vsel %vm1669_vm1, %v12817_v21, %v12816_v47  ;;  %v12819_v7 = vmov %v12816_v47  ;;  %v3211_v21 = vmul.f32 %v10289_v59, %v754_v27  ;;  %7322 = vrot.lane.b32.xlu1 %v7321_v12, %s7609_s27 }
 0x293   : > { %v2902_v9 = vsel %vm1669_vm1, %v12819_v7, %v12818_v32  ;;  %v3082_v0 = vadd.f32 %v2900_v55, %v2614_v39  ;;  %v10295_v60 = vmul.f32 %v9782_v43, %v754_v27  ;;  %v12820_v47 = vrot.slane %v10097_v8, 2  ;;  %v10302_v55 = vld [vmem:[#allocation4 + $0x4] ss:$0 sm:$0xff]  ;;  %v4909_v7 = vld [vmem:[#allocation2 + $0x29] sm:$0xf] }
 0x294   : > { %v3083_v54 = vadd.f32 %v2902_v9, %v2615_v41  ;;  %v12821_v5 = vrot.slane %v10136_v48, 2  ;;  %v2238_v41 = vmul.f32 %v10302_v55, %v749_v44  ;;  %v3210_v32 = vmul.f32 %v10289_v59, %v749_v44  ;;  %v461_v9 = vld [vmem:[%s7846_s13 + $0x2e0] sm:$0xff]  ;;  %v764_v48 = vpop.permute.xlu1 %763 }
 0x295   : > { %v3378_v27 = vmul.f32 %v9612_v23, %v749_v44  ;;  %v3846_v8 = vmul.f32 %v9782_v43, %v749_v44  ;;  %v1299_v14 = vrot.slane %v1096_v33, 1  ;;  %v10312_v42 = vadd.f32 %v2071_v62, %v1943_v25  ;;  %v463_v33 = vld [vmem:[%s7846_s13 + $0x2f0] sm:$0xff]  ;;  %v10328_v25 = vld [vmem:[#allocation4 + $0x5] ss:$0 sm:$0xff] }
 0x296   : > { %v1763_v39 = vsel %vm1669_vm1, %v12821_v5, %v12820_v47  ;;  %v2070_v47 = vmul.f32 %v9560_v24, %v749_v44  ;;  %v2437_v5 = vrot.slane %v2238_v41, 1  ;;  %v3290_v46 = vadd.f32 %v3210_v32, %v3082_v0  ;;  %3138 = vperm.xlu1 %7310, %v461_v9   ;;  %v10322_v24 = vld [vmem:[#allocation4] ss:$0 sm:$0xff] }
 0x297   : > { %v1942_v58 = vadd.f32 %v1763_v39, %v10169_v10  ;;  %v3574_v36 = vrot.slane %v3378_v27, 1  ;;  %v7316_v12 = vpack.i.bf16 %v4909_v7, %v4767_v3  ;;  %v10315_v10 = vadd.f32 %v3211_v21, %v3083_v54 }
 0x298   : > { %v4042_v13 = vrot.slane %v3846_v8, 2  ;;  %v10319_v4 = vmul.f32 %v9797_v1, %v764_v48  ;;  %v928_v0 = vmul.f32 %v10322_v24, %v749_v44  ;;  %v10326_v62 = vmul.f32 %v9646_v16, %v749_v44 }
 0x299   : > { %v10331_v3 = vmul.f32 %v10328_v25, %v749_v44  ;;  %v12822_v54 = vrot.slane %v10272_v40, 1  ;;  %7317 = vrot.lane.b32.xlu0 %v7316_v12, %s7609_s27  ;;  %v12823_v41 = vrot.slane %v10227_v26, 1  ;;  %v2150_v7 = vadd.f32 %v2070_v47, %v1942_v58  ;;  %v10353_v47 = vld [vmem:[#allocation4 + $0x3] ss:$0 sm:$0xff]  ;;  %v759_v44 = vpop.permute.xlu0 %758 }
 0x29a   : > { %v12824_v9 = vrot.slane %v10254_v11, 1  ;;  %v10345_v39 = vmul.f32 %v9646_v16, %v764_v48  ;;  %v3381_v12 = vmul.f32 %v9612_v23, %v764_v48  ;;  %3148 = vperm.xlu1 %7310, %v463_v33   ;;  %v12833_v63 = vrot.slane %v10319_v4, 1 }
 0x29b   : > { %v3576_v21 = vsel %vm1200_vm0, %v3574_v36, %v12822_v54  ;;  %v1301_v32 = vsel %vm1200_vm0, %v1299_v14, %v12823_v41  ;;  %v3213_v36 = vmul.f32 %v10289_v59, %v764_v48  ;;  %v12825_v54 = vrot.slane %v10295_v60, 2 }
 0x29c   : > { %v2439_v27 = vsel %vm1200_vm0, %v2437_v5, %v12824_v9  ;;  %v3758_v8 = vadd.f32 %v3576_v21, %v3290_v46  ;;  %v931_v14 = vmul.f32 %v10322_v24, %v764_v48  ;;  %v2073_v46 = vmul.f32 %v10353_v47, %v764_v48 }
 0x29d   : > { %v4044_v58 = vsel %vm1669_vm1, %v4042_v13, %v12825_v54  ;;  %v10357_v5 = vmul.f32 %v10302_v55, %v764_v48  ;;  %v10360_v21 = vmul.f32 %v10328_v25, %v764_v48  ;;  %v3293_v23 = vadd.f32 %v3213_v36, %v10235_v28  ;;  %5096 = vrot.lane.b32.xlu0 %v5092_v34, %s7609_s27 }
 0x29e   : > { %v4226_v16 = vadd.f32 %v4044_v58, %v3758_v8  ;;  %v3579_v33 = vrot.slane %v3381_v12, 1  ;;  %v10364_v41 = vadd.f32 %v1301_v32, %v928_v0  ;;  %v3849_v54 = vmul.f32 %v9782_v43, %v764_v48 }
 0x29f   : > { %v10370_v50 = vadd.f32 %v2439_v27, %v2150_v7  ;;  %v12826_v8 = vrot.slane %v10319_v4, 1  ;;  %v12543_v28 = vrot.slane %v10345_v39, 2  ;;  %v12827_v36 = vrot.slane %v10181_v52, 2 }
 0x2a0   : > { %v12828_v34 = vrot.slane %v10216_v53, 2  ;;  %v2153_v32 = vadd.f32 %v2073_v46, %v10231_v30  ;;  %v2442_v48 = vrot.slane %v10357_v5, 1  ;;  %v3761_v12 = vadd.f32 %v3579_v33, %v3293_v23  ;;  %v464_v23 = vld [vmem:[%s7846_s13 + $0x2f8] sm:$0xf] }
 0x2a1   : > { %v1480_v58 = vadd.f32 %v12826_v8, %v931_v14  ;;  %v10384_v27 = vadd.f32 %v9903_v20, %v4226_v16  ;;  %v12829_v8 = vrot.slane %v10177_v6, 2  ;;  %v12830_v52 = vrot.slane %v10200_v37, 2  ;;  %3143 = vperm.xlu0 %7309, %v462_v29  }
 0x2a2   : > { %v2904_v0 = vsel %vm1669_vm1, %v12828_v34, %v12827_v36  ;;  %v1098_v36 = vmul.f32 %v9797_v1, %v759_v44  ;;  %v4047_v30 = vrot.slane %v3849_v54, 2  ;;  %v2240_v46 = vmul.f32 %v10302_v55, %v759_v44 }
 0x2a3   : > { %v3084_v7 = vadd.f32 %v2904_v0, %v10250_v17  ;;  %v1767_v53 = vsel %vm1669_vm1, %v12830_v52, %v12829_v8  ;;  %v3212_v5 = vmul.f32 %v10289_v59, %v759_v44  ;;  %v10395_v17 = vld [vmem:[#allocation4 + $0x7] ss:$0 sm:$0xff]  ;;  %v10401_v6 = vadd.f32 %v12543_v28, %v1480_v58  ;;  %v10404_v0 = vld [vmem:[#allocation4 + $0x2] ss:$0 sm:$0xff] }
 0x2a4   : > { %v3380_v16 = vmul.f32 %v10395_v17, %v759_v44  ;;  %v1944_v37 = vadd.f32 %v1767_v53, %v10241_v31  ;;  %v1302_v34 = vrot.slane %v1098_v36, 1  ;;  %v10407_v29 = vmul.f32 %v10404_v0, %v759_v44 }
 0x2a5   : > { %v4229_v54 = vadd.f32 %v4047_v30, %v3761_v12  ;;  %v2072_v8 = vmul.f32 %v10353_v47, %v759_v44  ;;  %v3292_v52 = vadd.f32 %v3212_v5, %v3084_v7  ;;  %v2621_v9 = vadd.f32 %v2442_v48, %v2153_v32  ;;  %3153 = vperm.xlu0 %7309, %v464_v23   ;;  %v774_v32 = vpop.permute.xlu1 %773 }
 0x2a6   : > { %v3577_v13 = vrot.slane %v3380_v16, 1  ;;  %v12831_v14 = vrot.slane %v10227_v26, 1  ;;  %v2440_v58 = vrot.slane %v2240_v46, 1  ;;  %v3848_v28 = vmul.f32 %v9782_v43, %v759_v44 }
 0x2a7   : > { %v930_v53 = vmul.f32 %v10322_v24, %v759_v44  ;;  %v10417_v36 = vmul.f32 %v10328_v25, %v759_v44  ;;  %v12832_v12 = vrot.slane %v10272_v40, 1  ;;  %v10426_v16 = vadd.f32 %v9903_v20, %v4229_v54 }
 0x2a8   : > { %v1303_v18 = vsel %vm1200_vm0, %v12831_v14, %v1302_v34  ;;  %v3580_v14 = vsel %vm1200_vm0, %v3577_v13, %v3579_v33  ;;  %v4045_v5 = vrot.slane %v3848_v28, 2  ;;  %v2152_v23 = vadd.f32 %v2072_v8, %v1944_v37 }
 0x2a9   : > { %v3578_v7 = vsel %vm1200_vm0, %v12832_v12, %v3577_v13  ;;  %v3760_v31 = vadd.f32 %v3580_v14, %v3292_v52  ;;  %v1478_v44 = vadd.f32 %v1303_v18, %v10245_v56  ;;  %v1305_v40 = vsel %vm1200_vm0, %v1302_v34, %v12833_v63 }
 0x2aa   : > { %v3759_v46 = vadd.f32 %v3578_v7, %v10315_v10  ;;  %v12834_v12 = vrot.slane %v10254_v11, 1  ;;  %v12835_v33 = vrot.slane %v10295_v60, 2  ;;  %v10439_v13 = vmul.f32 %v9797_v1, %v774_v32 }
 0x2ab   : > { %v2443_v28 = vsel %vm1200_vm0, %v2440_v58, %v2442_v48  ;;  %v4048_v37 = vsel %vm1669_vm1, %v4045_v5, %v4047_v30  ;;  %v10444_v4 = vmul.f32 %v10404_v0, %v774_v32  ;;  %v12837_v63 = vrot.slane %v10360_v21, 2 }
 0x2ac   : > { %v2441_v26 = vsel %vm1200_vm0, %v12834_v12, %v2440_v58  ;;  %v4046_v10 = vsel %vm1669_vm1, %v12835_v33, %v4045_v5  ;;  %v12546_v11 = vrot.slane %v10417_v36, 2  ;;  %v4228_v60 = vadd.f32 %v4048_v37, %v3760_v31 }
 0x2ad   : > { %v4227_v18 = vadd.f32 %v4046_v10, %v3759_v46  ;;  %12836 = vst [vmem:[#allocation35_spill] sm:$0xff] %v10444_v4  ;;  %v10448_v56 = vadd.f32 %v12837_v63, %v2621_v9  ;;  %v12838_v34 = vrot.slane %v10407_v29, 2  ;;  %v12839_v54 = vrot.slane %v10248_v49, 2 }
 0x2ae   : > { %v10457_v30 = vadd.f32 %v1305_v40, %v930_v53  ;;  %v10460_v58 = vmul.f32 %v10302_v55, %v774_v32  ;;  %v10462_v7 = vadd.f32 %v2443_v28, %v2152_v23  ;;  %v10465_v9 = vmul.f32 %v10322_v24, %v774_v32  ;;  %v769_v40 = vpop.permute.xlu0 %768 }
 0x2af   : > { %v1772_v8 = vsel %vm1669_vm1, %v12839_v54, %v12838_v34  ;;  %v2619_v14 = vadd.f32 %v2441_v26, %v10312_v42  ;;  %v10470_v46 = vadd.f32 %v9903_v20, %v4227_v18  ;;  %v2075_v53 = vmul.f32 %v10353_v47, %v774_v32  ;;  %v10528_v18 = vld [vmem:[#allocation4 + $0x1] ss:$0 sm:$0xff] }
 0x2b0   : > { %v1947_v52 = vadd.f32 %v1772_v8, %v1478_v44  ;;  %v10475_v44 = vmul.f32 %v10395_v17, %v774_v32  ;;  %v10478_v23 = vadd.f32 %v9903_v20, %v4228_v60  ;;  %v10481_v12 = vmul.f32 %v10328_v25, %v774_v32 }
 0x2b1   : > { %v12841_v42 = vrot.slane %v10281_v61, 2  ;;  %v12843_v10 = vrot.slane %v10331_v3, 2  ;;  %v10497_v63 = vmul.f32 %v9782_v43, %v774_v32  ;;  %v3215_v54 = vmul.f32 %v10289_v59, %v774_v32 }
 0x2b2   : > { %12840 = vst [vmem:[#allocation40_spill] sm:$0xff] %v10481_v12  ;;  %v10493_v37 = vadd.f32 %v2075_v53, %v1947_v52  ;;  %v12845_v8 = vrot.slane %v10248_v49, 2  ;;  %v12846_v61 = vrot.slane %v10326_v62, 2  ;;  %v12548_v52 = vrot.slane %v10475_v44, 1  ;;  %v10516_v62 = vld [vmem:[#allocation4 + $0x8] ss:$0 sm:$0xff] }
 0x2b3   : > { %v2909_v26 = vsel %vm1669_vm1, %v12841_v42, %v12546_v11  ;;  %v12842_v33 = vmov %v12841_v42  ;;  %v1100_v42 = vmul.f32 %v9797_v1, %v769_v40  ;;  %v2242_v53 = vmul.f32 %v10302_v55, %v769_v40  ;;  %12848 = vst [vmem:[#allocation36_spill] sm:$0xff] %v10516_v62  ;;  %v784_v1 = vpop.permute.xlu1 %783 }
 0x2b4   : > { %v2907_v28 = vsel %vm1669_vm1, %v12843_v10, %v12842_v33  ;;  %12844 = vst [vmem:[#allocation43_spill] sm:$0xff] %v10493_v37  ;;  %v3087_v34 = vadd.f32 %v2909_v26, %v2619_v14  ;;  %v1770_v3 = vsel %vm1669_vm1, %v12846_v61, %v12845_v8  ;;  %v3214_v43 = vmul.f32 %v10289_v59, %v769_v40 }
 0x2b5   : > { %v3086_v60 = vadd.f32 %v2907_v28, %v10370_v50  ;;  %v3382_v33 = vmul.f32 %v10395_v17, %v769_v40  ;;  %v1946_v32 = vadd.f32 %v1770_v3, %v10364_v41  ;;  %v10514_v49 = vmul.f32 %v10404_v0, %v769_v40 }
 0x2b6   : > { %v3850_v14 = vmul.f32 %v10516_v62, %v769_v40  ;;  %v12547_v26 = vrot.slane %v10497_v63, 2  ;;  %v2074_v10 = vmul.f32 %v10353_v47, %v769_v40  ;;  %v1306_v50 = vrot.slane %v1100_v42, 1 }
 0x2b7   : > { %12847 = vst [vmem:[#allocation39_spill] sm:$0xff] %v10514_v49  ;;  %v3294_v28 = vadd.f32 %v3214_v43, %v3086_v60  ;;  %v3581_v8 = vrot.slane %v3382_v33, 1  ;;  %v10523_v3 = vadd.f32 %v3215_v54, %v3087_v34  ;;  %v2444_v48 = vrot.slane %v2242_v53, 1  ;;  %v779_v49 = vpop.permute.xlu0 %778 }
 0x2b8   : > { %v4049_v41 = vrot.slane %v3850_v14, 2  ;;  %v10531_v31 = vmul.f32 %v10528_v18, %v784_v1  ;;  %v932_v60 = vmul.f32 %v10322_v24, %v769_v40  ;;  %v10536_v33 = vmul.f32 %v10328_v25, %v769_v40 }
 0x2b9   : > { %v3583_v11 = vsel %vm1200_vm0, %v3581_v8, %v12548_v52  ;;  %v2154_v34 = vadd.f32 %v2074_v10, %v1946_v32  ;;  %v2077_v53 = vmul.f32 %v10353_v47, %v784_v1  ;;  %v10543_v14 = vmul.f32 %v10302_v55, %v784_v1  ;;  %v5001_v52 = vld [vmem:[#allocation2 + $0x39] sm:$0xf] }
 0x2ba   : > { %12849 = vst [vmem:[#allocation41_spill] sm:$0xff] %v10536_v33  ;;  %v3762_v42 = vadd.f32 %v3583_v11, %v3294_v28  ;;  %v4051_v54 = vsel %vm1669_vm1, %v4049_v41, %v12547_v26  ;;  %v12850_v8 = vrot.slane %v10439_v13, 1  ;;  %v3217_v43 = vmul.f32 %v10289_v59, %v784_v1  ;;  %v5093_v11 = vld [vmem:[#allocation2 + $0x49] sm:$0xf] }
 0x2bb   : > { %v10550_v40 = vmul.f32 %v10395_v17, %v784_v1  ;;  %v12851_v32 = vrot.slane %v10460_v58, 1  ;;  %v1311_v28 = vrot.slane %v10531_v31, 1  ;;  %v2157_v41 = vadd.f32 %v2077_v53, %v10401_v6 }
 0x2bc   : > { %v1308_v5 = vsel %vm1200_vm0, %v1306_v50, %v12850_v8  ;;  %v4230_v61 = vadd.f32 %v4051_v54, %v3762_v42  ;;  %v10558_v26 = vmul.f32 %v10516_v62, %v784_v1  ;;  %v3297_v54 = vadd.f32 %v3217_v43, %v10448_v56 }
 0x2bd   : > { %v2446_v10 = vsel %vm1200_vm0, %v2444_v48, %v12851_v32  ;;  %v3586_v8 = vrot.slane %v10550_v40, 1  ;;  %v935_v12 = vmul.f32 %v10322_v24, %v784_v1  ;;  %v10566_v48 = vmul.f32 %v10404_v0, %v784_v1 }
 0x2be   : > { %v4317_v50 = vadd.f32 %v9903_v20, %v4230_v61  ;;  %v10569_v6 = vmul.f32 %v10328_v25, %v784_v1  ;;  %v7326_v31 = vpack.i.bf16 %v5093_v11, %v5001_v52  ;;  %v4054_v42 = vrot.slane %v10558_v26, 2 }
 0x2bf   : > { %12852 = vst [vmem:[#allocation42_spill] sm:$0xff] %v10566_v48  ;;  %v3765_v32 = vadd.f32 %v3586_v8, %v3297_v54  ;;  %v10573_v56 = vadd.f32 %v1308_v5, %v932_v60  ;;  %v10575_v43 = vadd.f32 %v2446_v10, %v2154_v34  ;;  %v1484_v40 = vadd.f32 %v1311_v28, %v935_v12 }
 0x2c0   : > { %12853 = vst [vmem:[#allocation44_spill] sm:$0xff] %v10569_v6  ;;  %v4397_v61 = vmax.f32 %v4317_v50, 0.0  ;;  %7327 = vrot.lane.b32.xlu1 %v7326_v31, %s7609_s27  ;;  %v1102_v4 = vmul.f32 %v10528_v18, %v779_v49  ;;  %v12856_v37 = vmax.f32 %v10384_v27, 0.0  ;;  %v12857_v52 = vrot.slane %v10543_v14, 1  ;;  %v10601_v31 = vpop.permute.xlu1 %673 }
 0x2c1   : > { %12854 = vst [vmem:[#allocation45_spill] sm:$0xff] %v10573_v56  ;;  %12855 = vst [vmem:[#allocation46_spill] sm:$0xff] %v10575_v43  ;;  %v4233_v53 = vadd.f32 %v4054_v42, %v3765_v32  ;;  %v12858_v50 = vrot.slane %v10360_v21, 2  ;;  %v12859_v26 = vrot.slane %v10417_v36, 2  ;;  %v12555_v60 = vrot.slane %v10566_v48, 2  ;;  %v12902_v56 = vld [vmem:[#allocation27_spill] sm:$0xff] }
 0x2c2   : > { %v4449_v1 = vmax.f32 %v12856_v37, %v4397_v61  ;;  %v2625_v11 = vadd.f32 %v12857_v52, %v2157_v41  ;;  %v12554_v12 = vrot.slane %v10569_v6, 2  ;;  %v12860_v34 = vrot.slane %v10345_v39, 2  ;;  %v12893_v6 = vld [vmem:[#allocation25_spill] sm:$0xff] }
 0x2c3   : > { %v2911_v5 = vsel %vm1669_vm1, %v12859_v26, %v12858_v50  ;;  %v12861_v10 = vrot.slane %v10407_v29, 2  ;;  %v4320_v54 = vadd.f32 %v9903_v20, %v4233_v53  ;;  %v10598_v21 = vmul.f32 %v10404_v0, %v779_v49  ;;  %v669_v50 = vpop.permute.xlu0 %668 }
 0x2c4   : > { %v3088_v37 = vadd.f32 %v2911_v5, %v10462_v7  ;;  %v4481_v41 = vrot.slane %v4449_v1, 1  ;;  %v3216_v36 = vmul.f32 %v10289_v59, %v779_v49  ;;  %v10605_v61 = vadd.f32 %v12555_v60, %v1484_v40 }
 0x2c5   : > { %v1774_v27 = vsel %vm1669_vm1, %v12861_v10, %v12860_v34  ;;  %v1309_v29 = vrot.slane %v1102_v4, 1  ;;  %v2076_v32 = vmul.f32 %v10353_v47, %v779_v49  ;;  %v10611_v20 = vadd.f32 %v12554_v12, %v2625_v11 }
 0x2c6   : > { %12862 = vst [vmem:[#allocation48_spill] sm:$0xff] %v10605_v61  ;;  %v1948_v39 = vadd.f32 %v1774_v27, %v10457_v30  ;;  %v4501_v7 = vmax.f32 %v4449_v1, %v4481_v41  ;;  %v4400_v53 = vmax.f32 %v4320_v54, 0.0  ;;  %v10614_v52 = vmul.f32 %v10302_v55, %v779_v49 }
 0x2c7   : > { %12863 = vst [vmem:[#allocation49_spill] sm:$0xff] %v10611_v20  ;;  %v934_v26 = vmul.f32 %v10322_v24, %v779_v49  ;;  %v10618_v40 = vmul.f32 %v10328_v25, %v779_v49  ;;  %v3384_v30 = vmul.f32 %v10395_v17, %v779_v49  ;;  %v3852_v4 = vmul.f32 %v10516_v62, %v779_v49 }
 0x2c8   : > { %4512 = vst.msk [vmem:[#allocation2 + $0x60] sm:$0x1] %vm4505_vm2, %v4501_v7  ;;  %v12864_v1 = vmax.f32 %v10426_v16, 0.0  ;;  %v3296_v34 = vadd.f32 %v3216_v36, %v3088_v37  ;;  %v1081_v10 = vmul.f32 %v10528_v18, %v10601_v31  ;;  %v12865_v27 = vrot.slane %v10439_v13, 1 }
 0x2c9   : > { %4523 = vst.msk [vmem:[#allocation2 + $0x5f] sm:$0x4] %vm4516_vm3, %v4501_v7  ;;  %v2156_v41 = vadd.f32 %v2076_v32, %v1948_v39  ;;  %v3584_v54 = vrot.slane %v3384_v30, 1  ;;  %v4052_v12 = vrot.slane %v3852_v4, 2  ;;  %v2447_v16 = vrot.slane %v10614_v52, 1 }
 0x2ca   : > { %4534 = vst.msk [vmem:[#allocation2 + $0x5e] sm:$0x10] %vm4527_vm4, %v4501_v7  ;;  %v4452_v11 = vmax.f32 %v12864_v1, %v4400_v53  ;;  %v10634_v49 = vsel %vm1200_vm0, %v12865_v27, %v1309_v29  ;;  %v1080_v53 = vmul.f32 %v10528_v18, %v669_v50  ;;  %v684_v1 = vpop.permute.xlu1 %683  ;;  %v12866_v37 = vrot.slane %v10475_v44, 1 }
 0x2cb   : > { %4545 = vst.msk [vmem:[#allocation2 + $0x5d] sm:$0x40] %vm4538_vm5, %v4501_v7  ;;  %v1312_v7 = vsel %vm1200_vm0, %v1309_v29, %v1311_v28  ;;  %v3587_v13 = vsel %vm1200_vm0, %v3584_v54, %v3586_v8  ;;  %v1272_v5 = vrot.slane %v1081_v10, 1  ;;  %v1550_v39 = vmul.f32 %v10404_v0, %v10601_v31  ;;  %v679_v29 = vpop.permute.xlu0 %678 }
 0x2cc   : > { %v4725_v60 = vrot.slane %v4452_v11, 1  ;;  %v3585_v36 = vsel %vm1200_vm0, %v12866_v37, %v3584_v54  ;;  %v3764_v4 = vadd.f32 %v3587_v13, %v3296_v34  ;;  %v1549_v28 = vmul.f32 %v10404_v0, %v669_v50 }
 0x2cd   : > { %v3763_v30 = vadd.f32 %v3585_v36, %v10523_v3  ;;  %v12867_v52 = vrot.slane %v10497_v63, 2  ;;  %v4055_v44 = vsel %vm1669_vm1, %v4052_v12, %v4054_v42  ;;  %v1271_v37 = vrot.slane %v1080_v53, 1  ;;  %v10660_v42 = vld [vmem:[#allocation6] ss:$0 sm:$0xff] }
 0x2ce   : > { %v4745_v32 = vmax.f32 %v4452_v11, %v4725_v60  ;;  %v1083_v8 = vmul.f32 %v10528_v18, %v684_v1  ;;  %v10653_v10 = vadd.f32 %v1312_v7, %v934_v26  ;;  %v4232_v11 = vadd.f32 %v4055_v44, %v3764_v4 }
 0x2cf   : > { %v4053_v27 = vsel %vm1669_vm1, %v12867_v52, %v4052_v12  ;;  %v12869_v34 = vrot.slane %v10543_v14, 1  ;;  %v1741_v63 = vrot.slane %v1550_v39, 2  ;;  %v1082_v13 = vmul.f32 %v10528_v18, %v679_v29 }
 0x2d0   : > { %4755 = vst.msk [vmem:[#allocation2 + $0x6c] sm:$0x1] %vm4505_vm2, %v4745_v32  ;;  %12868 = vst [vmem:[#allocation50_spill] sm:$0xff] %v10653_v10  ;;  %v4231_v3 = vadd.f32 %v4053_v27, %v3763_v30  ;;  %v1276_v36 = vrot.slane %v1083_v8, 1  ;;  %v4319_v53 = vadd.f32 %v10660_v42, %v4232_v11  ;;  %v1273_v26 = vsel %vm1200_vm0, %v1271_v37, %v1272_v5  ;;  %v694_v8 = vpop.permute.xlu1 %693 }
 0x2d1   : > { %v2450_v54 = vsel %vm1200_vm0, %v2447_v16, %v12869_v34  ;;  %v1740_v7 = vrot.slane %v1549_v28, 2  ;;  %v912_v32 = vmul.f32 %v10322_v24, %v669_v50  ;;  %v1552_v30 = vmul.f32 %v10404_v0, %v684_v1 }
 0x2d2   : > { %v4318_v12 = vadd.f32 %v10660_v42, %v4231_v3  ;;  %v1274_v14 = vrot.slane %v1082_v13, 1  ;;  %v1551_v4 = vmul.f32 %v10404_v0, %v679_v29  ;;  %v4399_v52 = vmax.f32 %v4319_v53, 0.0 }
 0x2d3   : > { %v913_v27 = vmul.f32 %v10322_v24, %v10601_v31  ;;  %v915_v44 = vmul.f32 %v10322_v24, %v684_v1  ;;  %v1461_v3 = vadd.f32 %v1273_v26, %v912_v32  ;;  %v914_v11 = vmul.f32 %v10322_v24, %v679_v29 }
 0x2d4   : > { %v4398_v39 = vmax.f32 %v4318_v12, 0.0  ;;  %v1275_v28 = vsel %vm1200_vm0, %v1272_v5, %v1274_v14  ;;  %v1277_v50 = vsel %vm1200_vm0, %v1274_v14, %v1276_v36  ;;  %v12870_v37 = vmax.f32 %v10470_v46, 0.0 }
 0x2d5   : > { %v12871_v13 = vmax.f32 %v10478_v23, 0.0  ;;  %v1742_v53 = vsel %vm1669_vm1, %v1740_v7, %v1741_v63  ;;  %v1743_v60 = vrot.slane %v1551_v4, 2  ;;  %v1464_v31 = vadd.f32 %v1276_v36, %v915_v44  ;;  %v689_v44 = vpop.permute.xlu0 %688 }
 0x2d6   : > { %v4450_v34 = vmax.f32 %v12870_v37, %v4398_v39  ;;  %v1745_v10 = vrot.slane %v1552_v30, 2  ;;  %v1462_v1 = vadd.f32 %v1275_v28, %v913_v27  ;;  %v10680_v26 = vmul.f32 %v10528_v18, %v694_v8 }
 0x2d7   : > { %v4451_v12 = vmax.f32 %v12871_v13, %v4399_v52  ;;  %v1463_v5 = vadd.f32 %v1277_v50, %v914_v11  ;;  %v10683_v14 = vmul.f32 %v10404_v0, %v694_v8  ;;  %v12872_v46 = vrot.slane %v10460_v58, 1 }
 0x2d8   : > { %v4565_v29 = vrot.slane %v4450_v34, 1  ;;  %v10690_v39 = vadd.f32 %v2450_v54, %v2156_v41  ;;  %v1930_v7 = vadd.f32 %v1742_v53, %v1461_v3  ;;  %v10693_v36 = vmul.f32 %v10322_v24, %v694_v8 }
 0x2d9   : > { %v4645_v32 = vrot.slane %v4451_v12, 1  ;;  %v10688_v23 = vsel %vm1200_vm0, %v12872_v46, %v2447_v16  ;;  %v1744_v52 = vsel %vm1669_vm1, %v1741_v63, %v1743_v60  ;;  %v10697_v27 = vmul.f32 %v10302_v55, %v694_v8 }
 0x2da   : > { %12873 = vst [vmem:[#allocation51_spill] sm:$0xff] %v10690_v39  ;;  %v4585_v30 = vmax.f32 %v4450_v34, %v4565_v29  ;;  %v1933_v11 = vadd.f32 %v1745_v10, %v1464_v31  ;;  %v1746_v58 = vsel %vm1669_vm1, %v1743_v60, %v1745_v10  ;;  %v1931_v28 = vadd.f32 %v1744_v52, %v1462_v1 }
 0x2db   : > { %v4665_v4 = vmax.f32 %v4451_v12, %v4645_v32  ;;  %v10701_v16 = vmul.f32 %v10328_v25, %v694_v8  ;;  %v10711_v41 = vadd.f32 %v1746_v58, %v1463_v5  ;;  %v12556_v10 = vrot.slane %v10680_v26, 1 }
 0x2dc   : > { %4595 = vst.msk [vmem:[#allocation2 + $0x64] sm:$0x1] %vm4505_vm2, %v4585_v30  ;;  %v2059_v54 = vmul.f32 %v10353_v47, %v694_v8  ;;  %v2062_v63 = vmul.f32 %v10353_v47, %v9984_v15  ;;  %v12874_v3 = vrot.slane %v9982_v2, 1  ;;  %v12875_v50 = vrot.slane %v10023_v22, 1 }
 0x2dd   : > { %4605 = vst.msk [vmem:[#allocation2 + $0x63] sm:$0x4] %vm4516_vm3, %v4585_v30  ;;  %4685 = vst.msk [vmem:[#allocation2 + $0x67] sm:$0x4] %vm4516_vm3, %v4665_v4  ;;  %v1084_v34 = vmul.f32 %v10528_v18, %v689_v44  ;;  %v1553_v13 = vmul.f32 %v10404_v0, %v689_v44  ;;  %v12557_v12 = vrot.slane %v10697_v27, 1  ;;  %v2058_v53 = vmul.f32 %v10353_v47, %v689_v44 }
 0x2de   : > { %4615 = vst.msk [vmem:[#allocation2 + $0x62] sm:$0x10] %vm4527_vm4, %v4585_v30  ;;  %4695 = vst.msk [vmem:[#allocation2 + $0x66] sm:$0x10] %vm4527_vm4, %v4665_v4  ;;  %v2425_v37 = vsel %vm1200_vm0, %v12875_v50, %v12874_v3  ;;  %v2226_v31 = vmul.f32 %v10302_v55, %v689_v44  ;;  %v2694_v8 = vmul.f32 %v10328_v25, %v689_v44  ;;  %v12876_v52 = vrot.slane %v9989_v38, 2 }
 0x2df   : > { %4625 = vst.msk [vmem:[#allocation2 + $0x61] sm:$0x40] %vm4538_vm5, %v4585_v30  ;;  %4705 = vst.msk [vmem:[#allocation2 + $0x65] sm:$0x40] %vm4538_vm5, %v4665_v4  ;;  %v10729_v1 = vadd.f32 %v2059_v54, %v1931_v28  ;;  %v1278_v32 = vrot.slane %v1084_v34, 1  ;;  %v1747_v22 = vrot.slane %v1553_v13, 2  ;;  %v916_v5 = vmul.f32 %v10322_v24, %v689_v44  ;;  %v704_v44 = vpop.permute.xlu1 %703 }
 0x2e0   : > { %4675 = vst.msk [vmem:[#allocation2 + $0x68] sm:$0x1] %vm4505_vm2, %v4665_v4  ;;  %v2138_v46 = vadd.f32 %v2058_v53, %v1930_v7  ;;  %v2416_v30 = vrot.slane %v2226_v31, 1  ;;  %v2884_v4 = vrot.slane %v2694_v8, 2  ;;  %v12877_v58 = vrot.slane %v10031_v45, 2  ;;  %v12882_v31 = vld [vmem:[#allocation26_spill] sm:$0xff] }
 0x2e1   : > { %v3202_v50 = vmul.f32 %v10289_v59, %v9984_v15  ;;  %v12878_v28 = vrot.slane %v9994_v19, 1  ;;  %v12879_v54 = vrot.slane %v10054_v35, 1  ;;  %v1280_v7 = vsel %vm1200_vm0, %v1278_v32, %v12556_v10  ;;  %v12884_v15 = vld [vmem:[#allocation20_spill] sm:$0xff]  ;;  %v12888_v10 = vld [vmem:[#allocation47_spill] sm:$0xff] }
 0x2e2   : > { %v2893_v3 = vsel %vm1669_vm1, %v12877_v58, %v12876_v52  ;;  %v12880_v13 = vrot.slane %v10125_v51, 1  ;;  %v12881_v45 = vrot.slane %v10146_v57, 1  ;;  %v12883_v8 = vrot.slane %v12882_v31, 2 }
 0x2e3   : > { %v3562_v34 = vsel %vm1200_vm0, %v12879_v54, %v12878_v28  ;;  %v12885_v52 = vrot.slane %v12884_v15, 2  ;;  %v1465_v35 = vadd.f32 %v1280_v7, %v916_v5  ;;  %v2418_v28 = vsel %vm1200_vm0, %v2416_v30, %v12557_v12  ;;  %v12886_v54 = vld [vmem:[#allocation32_spill] sm:$0xff] }
 0x2e4   : > { %v3569_v53 = vsel %vm1200_vm0, %v12881_v45, %v12880_v13  ;;  %v12887_v32 = vrot.slane %v12886_v54, 2  ;;  %v12889_v29 = vrot.slane %v12888_v10, 2  ;;  %v12890_v57 = vrot.slane %v10683_v14, 2 }
 0x2e5   : > { %v4030_v58 = vsel %vm1669_vm1, %v12885_v52, %v12883_v8  ;;  %v2606_v45 = vadd.f32 %v2418_v28, %v2138_v46  ;;  %v12891_v15 = vrot.slane %v10701_v16, 2  ;;  %v10773_v7 = vmul.f32 %v10528_v18, %v704_v44 }
 0x2e6   : > { %v4037_v60 = vsel %vm1669_vm1, %v12889_v29, %v12887_v32  ;;  %v1749_v13 = vsel %vm1669_vm1, %v1747_v22, %v12890_v57  ;;  %v10776_v30 = vmul.f32 %v10404_v0, %v704_v44  ;;  %v2061_v10 = vmul.f32 %v10353_v47, %v704_v44  ;;  %v12892_v29 = vld [vmem:[#allocation29_spill] sm:$0xff] }
 0x2e7   : > { %v2886_v8 = vsel %vm1669_vm1, %v2884_v4, %v12891_v15  ;;  %v1934_v5 = vadd.f32 %v1749_v13, %v1465_v35  ;;  %v2233_v54 = vmul.f32 %v10302_v55, %v12892_v29  ;;  %v10783_v22 = vmul.f32 %v10328_v25, %v12892_v29 }
 0x2e8   : > { %v3074_v52 = vadd.f32 %v2886_v8, %v2606_v45  ;;  %v10786_v46 = vmul.f32 %v10302_v55, %v704_v44  ;;  %v919_v35 = vmul.f32 %v10322_v24, %v704_v44  ;;  %v1283_v28 = vrot.slane %v10773_v7, 1 }
 0x2e9   : > { %v2142_v4 = vadd.f32 %v2062_v63, %v1934_v5  ;;  %v2141_v32 = vadd.f32 %v2061_v10, %v1933_v11  ;;  %v10792_v13 = vmul.f32 %v10395_v17, %v12892_v29  ;;  %v10796_v15 = vmul.f32 %v10328_v25, %v704_v44 }
 0x2ea   : > { %v3282_v57 = vadd.f32 %v3202_v50, %v3074_v52  ;;  %v12560_v45 = vrot.slane %v10786_v46, 1  ;;  %v10800_v12 = vmul.f32 %v10516_v62, %v12892_v29  ;;  %v1468_v63 = vadd.f32 %v1283_v28, %v919_v35 }
 0x2eb   : > { %v2610_v8 = vadd.f32 %v2425_v37, %v2142_v4  ;;  %v1752_v5 = vrot.slane %v10776_v30, 2  ;;  %v2065_v11 = vmul.f32 %v10353_v47, %v12892_v29  ;;  %v12561_v10 = vrot.slane %v10796_v15, 2 }
 0x2ec   : > { %v3750_v7 = vadd.f32 %v3562_v34, %v3282_v57  ;;  %v2609_v50 = vadd.f32 %v12560_v45, %v2141_v32  ;;  %v2428_v44 = vrot.slane %v2233_v54, 1  ;;  %v3205_v37 = vmul.f32 %v10289_v59, %v12892_v29  ;;  %v12894_v57 = vld [vmem:[#allocation33_spill] sm:$0xff] }
 0x2ed   : > { %v3078_v52 = vadd.f32 %v2893_v3, %v2610_v8  ;;  %v1937_v4 = vadd.f32 %v1752_v5, %v1468_v63  ;;  %v3209_v34 = vmul.f32 %v10289_v59, %v12893_v6  ;;  %v12562_v32 = vrot.slane %v10792_v13, 1  ;;  %v12895_v63 = vld [vmem:[#allocation23_spill] sm:$0xff]  ;;  %v699_v6 = vpop.permute.xlu0 %698 }
 0x2ee   : > { %v4218_v39 = vadd.f32 %v4030_v58, %v3750_v7  ;;  %v3077_v30 = vadd.f32 %v12561_v10, %v2609_v50  ;;  %v12563_v3 = vrot.slane %v10800_v12, 2  ;;  %v2063_v58 = vmul.f32 %v10353_v47, %v12895_v63  ;;  %v12896_v7 = vld [vmem:[#allocation30_spill] sm:$0xff]  ;;  %v12897_v50 = vld [vmem:[#allocation21_spill] sm:$0xff] }
 0x2ef   : > { %v3286_v48 = vadd.f32 %v12894_v57, %v3078_v52  ;;  %v2145_v54 = vadd.f32 %v2065_v11, %v1937_v4  ;;  %v2064_v45 = vmul.f32 %v10353_v47, %v12896_v7  ;;  %v12898_v10 = vrot.slane %v12897_v50, 1 }
 0x2f0   : > { %v4305_v8 = vadd.f32 %v10660_v42, %v4218_v39  ;;  %v3285_v29 = vadd.f32 %v3205_v37, %v3077_v30  ;;  %v12899_v52 = vrot.slane %v9982_v2, 1  ;;  %v3203_v30 = vmul.f32 %v10289_v59, %v12895_v63 }
 0x2f1   : > { %v3754_v35 = vadd.f32 %v3569_v53, %v3286_v48  ;;  %v2613_v20 = vadd.f32 %v2428_v44, %v2145_v54  ;;  %v12900_v11 = vmov %v12898_v10  ;;  %v3204_v48 = vmul.f32 %v10289_v59, %v12896_v7 }
 0x2f2   : > { %v2427_v57 = vsel %vm1200_vm0, %v12899_v52, %v12898_v10  ;;  %v2429_v39 = vsel %vm1200_vm0, %v12900_v11, %v2428_v44  ;;  %v4385_v37 = vmax.f32 %v4305_v8, 0.0  ;;  %v3753_v4 = vadd.f32 %v12562_v32, %v3285_v29 }
 0x2f3   : > { %v4222_v53 = vadd.f32 %v4037_v60, %v3754_v35  ;;  %v12901_v54 = vrot.slane %v10783_v22, 2  ;;  %v1086_v10 = vmul.f32 %v10528_v18, %v699_v6  ;;  %v1555_v50 = vmul.f32 %v10404_v0, %v699_v6 }
 0x2f4   : > { %v4221_v44 = vadd.f32 %v12563_v3, %v3753_v4  ;;  %v2060_v8 = vmul.f32 %v10353_v47, %v699_v6  ;;  %v2228_v29 = vmul.f32 %v10302_v55, %v699_v6  ;;  %v2696_v63 = vmul.f32 %v10328_v25, %v699_v6 }
 0x2f5   : > { %v3081_v2 = vadd.f32 %v12901_v54, %v2613_v20  ;;  %v4309_v52 = vadd.f32 %v10660_v42, %v4222_v53  ;;  %v1281_v60 = vrot.slane %v1086_v10, 1  ;;  %v1750_v35 = vrot.slane %v1555_v50, 2  ;;  %v12906_v50 = vld [vmem:[#allocation37_spill] sm:$0xff] }
 0x2f6   : > { %v918_v20 = vmul.f32 %v10322_v24, %v699_v6  ;;  %v2140_v11 = vadd.f32 %v2060_v8, %v10711_v41  ;;  %v2419_v54 = vrot.slane %v2228_v29, 1  ;;  %v2887_v32 = vrot.slane %v2696_v63, 2 }
 0x2f7   : > { %v3289_v7 = vadd.f32 %v3209_v34, %v3081_v2  ;;  %v4389_v61 = vmax.f32 %v4309_v52, 0.0  ;;  %v12903_v4 = vrot.slane %v12902_v56, 1  ;;  %v12904_v43 = vrot.slane %v10680_v26, 1 }
 0x2f8   : > { %v1284_v62 = vsel %vm1200_vm0, %v1281_v60, %v1283_v28  ;;  %v4308_v34 = vadd.f32 %v10660_v42, %v4221_v44  ;;  %v12905_v6 = vrot.slane %v10683_v14, 2  ;;  %v12907_v8 = vrot.slane %v12906_v50, 2 }
 0x2f9   : > { %v3757_v3 = vadd.f32 %v12903_v4, %v3289_v7  ;;  %v1282_v33 = vsel %vm1200_vm0, %v12904_v43, %v1281_v60  ;;  %v1467_v2 = vadd.f32 %v1284_v62, %v918_v20  ;;  %v4445_v10 = vmax.f32 %v4385_v37, %v4389_v61 }
 0x2fa   : > { %v1466_v53 = vadd.f32 %v1282_v33, %v10693_v36  ;;  %v1751_v41 = vsel %vm1669_vm1, %v12905_v6, %v1750_v35  ;;  %v1753_v63 = vsel %vm1669_vm1, %v1750_v35, %v1752_v5  ;;  %v12908_v26 = vrot.slane %v10697_v27, 1 }
 0x2fb   : > { %v4225_v29 = vadd.f32 %v12907_v8, %v3757_v3  ;;  %v1936_v52 = vadd.f32 %v1753_v63, %v1467_v2  ;;  %v12909_v44 = vrot.slane %v10786_v46, 1  ;;  %v4480_v14 = vrot.slane %v4445_v10, 1 }
 0x2fc   : > { %v2420_v43 = vsel %vm1200_vm0, %v12908_v26, %v2419_v54  ;;  %v1935_v28 = vadd.f32 %v1751_v41, %v1466_v53  ;;  %v12910_v3 = vrot.slane %v10701_v16, 2  ;;  %v12911_v7 = vrot.slane %v10796_v15, 2 }
 0x2fd   : > { %v2422_v62 = vsel %vm1200_vm0, %v2419_v54, %v12909_v44  ;;  %v2607_v33 = vadd.f32 %v2420_v43, %v10729_v1  ;;  %v4312_v61 = vadd.f32 %v10660_v42, %v4225_v29  ;;  %v2144_v27 = vadd.f32 %v2064_v45, %v1936_v52  ;;  %v12912_v1 = vld [vmem:[#allocation28_spill] sm:$0xff]  ;;  %v12922_v52 = vld [vmem:[#allocation22_spill] sm:$0xff] }
 0x2fe   : > { %v2608_v36 = vadd.f32 %v2422_v62, %v2140_v11  ;;  %v2888_v5 = vsel %vm1669_vm1, %v12910_v3, %v2887_v32  ;;  %v2143_v37 = vadd.f32 %v2063_v58, %v1935_v28  ;;  %v2890_v60 = vsel %vm1669_vm1, %v2887_v32, %v12911_v7  ;;  %v12917_v58 = vld [vmem:[#allocation18_spill] sm:$0xff] }
 0x2ff   : > { %v3075_v35 = vadd.f32 %v2888_v5, %v2607_v33  ;;  %v4500_v46 = vmax.f32 %v4445_v10, %v4480_v14  ;;  %v4388_v20 = vmax.f32 %v4308_v34, 0.0  ;;  %v4392_v54 = vmax.f32 %v4312_v61, 0.0  ;;  %v794_v10 = vpop.permute.xlu1 %793  ;;  %v12927_v61 = vld [vmem:[#allocation31_spill] sm:$0xff]  ;;  %v12928_v3 = vld [vmem:[#allocation34_spill] sm:$0xff] }
 0x300   : > { %v3076_v4 = vadd.f32 %v2890_v60, %v2608_v36  ;;  %v12913_v53 = vrot.slane %v12912_v1, 2  ;;  %v12914_v2 = vrot.slane %v9989_v38, 2  ;;  %v2611_v16 = vadd.f32 %v2427_v57, %v2143_v37  ;;  %v12929_v60 = vld [vmem:[#allocation19_spill] sm:$0xff] }
 0x301   : > { %v2612_v6 = vadd.f32 %v2429_v39, %v2144_v27  ;;  %v3283_v41 = vadd.f32 %v3203_v30, %v3075_v35  ;;  %4511 = vst.msk [vmem:[#allocation2 + $0x50] sm:$0x1] %vm4505_vm2, %v4500_v46  ;;  %v4448_v45 = vmax.f32 %v4388_v20, %v4392_v54  ;;  %v12915_v15 = vrot.slane %v10783_v22, 2 }
 0x302   : > { %v2895_v11 = vsel %vm1669_vm1, %v12914_v2, %v12913_v53  ;;  %4522 = vst.msk [vmem:[#allocation2 + $0x4f] sm:$0x4] %vm4516_vm3, %v4500_v46  ;;  %v12916_v32 = vmov %v12913_v53  ;;  %v12918_v34 = vrot.slane %v12917_v58, 1  ;;  %v12919_v57 = vrot.slane %v9994_v19, 1  ;;  %v12935_v53 = vld [vmem:[#allocation24_spill] sm:$0xff] }
 0x303   : > { %4533 = vst.msk [vmem:[#allocation2 + $0x4e] sm:$0x10] %vm4527_vm4, %v4500_v46  ;;  %v2897_v38 = vsel %vm1669_vm1, %v12916_v32, %v12915_v15  ;;  %v3284_v30 = vadd.f32 %v3204_v48, %v3076_v4  ;;  %v12920_v8 = vrot.slane %v10792_v13, 1  ;;  %v3079_v26 = vadd.f32 %v2895_v11, %v2611_v16  ;;  %v12937_v15 = vld [vmem:[#allocation38_spill] sm:$0xff] }
 0x304   : > { %4544 = vst.msk [vmem:[#allocation2 + $0x4d] sm:$0x40] %vm4538_vm5, %v4500_v46  ;;  %v3564_v39 = vsel %vm1200_vm0, %v12919_v57, %v12918_v34  ;;  %v12921_v29 = vmov %v12918_v34  ;;  %v3080_v22 = vadd.f32 %v2897_v38, %v2612_v6  ;;  %v4724_v28 = vrot.slane %v4448_v45, 1  ;;  %v12938_v34 = vld [vmem:[#allocation43_spill] sm:$0xff] }
 0x305   : > { %v3566_v63 = vsel %vm1200_vm0, %v12921_v29, %v12920_v8  ;;  %v3751_v43 = vadd.f32 %v3564_v39, %v3283_v41  ;;  %v12923_v44 = vrot.slane %v12922_v52, 2  ;;  %v12924_v62 = vrot.slane %v12882_v31, 2 }
 0x306   : > { %v12925_v33 = vrot.slane %v10800_v12, 2  ;;  %v3752_v14 = vadd.f32 %v3566_v63, %v3284_v30  ;;  %v3287_v36 = vadd.f32 %v12927_v61, %v3079_v26  ;;  %v3288_v5 = vadd.f32 %v12928_v3, %v3080_v22  ;;  %v12940_v30 = vld [vmem:[#allocation35_spill] sm:$0xff] }
 0x307   : > { %v4032_v19 = vsel %vm1669_vm1, %v12924_v62, %v12923_v44  ;;  %v12926_v48 = vmov %v12923_v44  ;;  %v10914_v27 = vmul.f32 %v10528_v18, %v794_v10  ;;  %v4744_v7 = vmax.f32 %v4448_v45, %v4724_v28 }
 0x308   : > { %v4034_v13 = vsel %vm1669_vm1, %v12926_v48, %v12925_v33  ;;  %v4219_v37 = vadd.f32 %v4032_v19, %v3751_v43  ;;  %v12930_v31 = vrot.slane %v12929_v60, 1  ;;  %v12931_v35 = vrot.slane %v10125_v51, 1  ;;  %v12943_v19 = vld [vmem:[#allocation40_spill] sm:$0xff] }
 0x309   : > { %v12932_v46 = vrot.slane %v12902_v56, 1  ;;  %v4220_v4 = vadd.f32 %v4034_v13, %v3752_v14  ;;  %v12934_v1 = vrot.slane %v12906_v50, 2  ;;  %v12936_v2 = vrot.slane %v12935_v53, 2  ;;  %4754 = vst.msk [vmem:[#allocation2 + $0x5c] sm:$0x1] %vm4505_vm2, %v4744_v7  ;;  %v789_v13 = vpop.permute.xlu0 %788  ;;  %v12945_v60 = vld [vmem:[#allocation36_spill] sm:$0xff] }
 0x30a   : > { %v3571_v12 = vsel %vm1200_vm0, %v12931_v35, %v12930_v31  ;;  %v12933_v20 = vmov %v12930_v31  ;;  %v10932_v41 = vmul.f32 %v10404_v0, %v794_v10  ;;  %v4306_v51 = vadd.f32 %v10660_v42, %v4219_v37 }
 0x30b   : > { %v3573_v54 = vsel %vm1200_vm0, %v12933_v20, %v12932_v46  ;;  %v4041_v11 = vsel %vm1669_vm1, %v12936_v2, %v12934_v1  ;;  %v3755_v16 = vadd.f32 %v3571_v12, %v3287_v36  ;;  %v4307_v56 = vadd.f32 %v10660_v42, %v4220_v4  ;;  %v12947_v4 = vld [vmem:[#allocation39_spill] sm:$0xff] }
 0x30c   : > { %v3756_v6 = vadd.f32 %v3573_v54, %v3288_v5  ;;  %v10938_v45 = vmul.f32 %v10322_v24, %v794_v10  ;;  %v1482_v50 = vadd.f32 %v10634_v49, %v10465_v9  ;;  %v1314_v58 = vrot.slane %v10914_v27, 1 }
 0x30d   : > { %v4223_v32 = vadd.f32 %v12937_v15, %v3755_v16  ;;  %v2623_v57 = vadd.f32 %v10688_v23, %v12938_v34  ;;  %v12939_v39 = vrot.slane %v10598_v21, 2  ;;  %v12941_v8 = vrot.slane %v12940_v30, 2  ;;  %v12952_v34 = vld [vmem:[#allocation46_spill] sm:$0xff] }
 0x30e   : > { %v4224_v38 = vadd.f32 %v4041_v11, %v3756_v6  ;;  %v2079_v63 = vmul.f32 %v10353_v47, %v794_v10  ;;  %v10953_v26 = vmul.f32 %v10302_v55, %v794_v10  ;;  %v10956_v9 = vmul.f32 %v10328_v25, %v794_v10  ;;  %v12950_v11 = vld [vmem:[#allocation41_spill] sm:$0xff] }
 0x30f   : > { %v1779_v29 = vsel %vm1669_vm1, %v12941_v8, %v12939_v39  ;;  %v4310_v49 = vadd.f32 %v10660_v42, %v4223_v32  ;;  %v1783_v23 = vrot.slane %v10932_v41, 2  ;;  %v3219_v43 = vmul.f32 %v10289_v59, %v794_v10 }
 0x310   : > { %v4311_v22 = vadd.f32 %v10660_v42, %v4224_v38  ;;  %v4386_v28 = vmax.f32 %v4306_v51, 0.0  ;;  %v4387_v52 = vmax.f32 %v4307_v56, 0.0  ;;  %v1951_v44 = vadd.f32 %v1779_v29, %v1482_v50 }
 0x311   : > { %v12942_v62 = vrot.slane %v10618_v40, 2  ;;  %v12944_v33 = vrot.slane %v12943_v19, 2  ;;  %v4390_v14 = vmax.f32 %v4310_v49, 0.0  ;;  %v10968_v3 = vmul.f32 %v10395_v17, %v794_v10  ;;  %v11015_v19 = vld [vmem:[#allocation4 + $0x4] ss:$0 sm:$0xff] }
 0x312   : > { %v4391_v61 = vmax.f32 %v4311_v22, 0.0  ;;  %v10970_v5 = vadd.f32 %v2079_v63, %v1951_v44  ;;  %v2452_v37 = vrot.slane %v10953_v26, 1  ;;  %v2920_v7 = vrot.slane %v10956_v9, 2 }
 0x313   : > { %v2916_v48 = vsel %vm1669_vm1, %v12944_v33, %v12942_v62  ;;  %v10975_v31 = vmul.f32 %v12945_v60, %v794_v10  ;;  %v4446_v35 = vmax.f32 %v4386_v28, %v4390_v14  ;;  %v1104_v20 = vmul.f32 %v10528_v18, %v789_v13  ;;  %v12953_v28 = vld [vmem:[#allocation45_spill] sm:$0xff] }
 0x314   : > { %v3091_v36 = vadd.f32 %v2916_v48, %v2623_v57  ;;  %v4447_v12 = vmax.f32 %v4387_v52, %v4391_v61  ;;  %v12946_v54 = vmov %v12941_v8  ;;  %v12948_v1 = vrot.slane %v12947_v4, 2  ;;  %v804_v8 = vpop.permute.xlu1 %803 }
 0x315   : > { %v12949_v2 = vmov %v12944_v33  ;;  %v12951_v16 = vrot.slane %v12950_v11, 2  ;;  %v2246_v10 = vmul.f32 %v10302_v55, %v789_v13  ;;  %v3218_v51 = vmul.f32 %v10289_v59, %v789_v13 }
 0x316   : > { %v10977_v46 = vadd.f32 %v3219_v43, %v3091_v36  ;;  %v1777_v53 = vsel %vm1669_vm1, %v12948_v1, %v12946_v54  ;;  %v4564_v56 = vrot.slane %v4446_v35, 1  ;;  %v4644_v50 = vrot.slane %v4447_v12, 1  ;;  %v11027_v36 = vld [vmem:[#allocation4 + $0x6] ss:$0 sm:$0xff]  ;;  %v11040_v1 = vld [vmem:[#allocation4 + $0x5] ss:$0 sm:$0xff] }
 0x317   : > { %v2914_v6 = vsel %vm1669_vm1, %v12951_v16, %v12949_v2  ;;  %v3589_v15 = vrot.slane %v10968_v3, 1  ;;  %v936_v32 = vmul.f32 %v10322_v24, %v789_v13  ;;  %v4057_v38 = vrot.slane %v10975_v31, 2  ;;  %v12954_v2 = vld [vmem:[#allocation48_spill] sm:$0xff] }
 0x318   : > { %v3090_v57 = vadd.f32 %v2914_v6, %v12952_v34  ;;  %v10997_v39 = vmul.f32 %v10404_v0, %v789_v13  ;;  %v3386_v30 = vmul.f32 %v10395_v17, %v789_v13  ;;  %v4584_v29 = vmax.f32 %v4446_v35, %v4564_v56  ;;  %v12955_v6 = vld [vmem:[#allocation49_spill] sm:$0xff]  ;;  %v799_v56 = vpop.permute.xlu0 %798 }
 0x319   : > { %v4664_v55 = vmax.f32 %v4447_v12, %v4644_v50  ;;  %v1313_v63 = vrot.slane %v1104_v20, 1  ;;  %v2078_v59 = vmul.f32 %v10353_v47, %v789_v13  ;;  %v2451_v49 = vrot.slane %v2246_v10, 1 }
 0x31a   : > { %v3298_v22 = vadd.f32 %v3218_v51, %v3090_v57  ;;  %v3588_v43 = vrot.slane %v3386_v30, 1  ;;  %v3854_v24 = vmul.f32 %v12945_v60, %v789_v13  ;;  %4594 = vst.msk [vmem:[#allocation2 + $0x54] sm:$0x1] %vm4505_vm2, %v4584_v29  ;;  %v1950_v52 = vadd.f32 %v1777_v53, %v12953_v28  ;;  %v11052_v57 = vld [vmem:[#allocation4] ss:$0 sm:$0xff] }
 0x31b   : > { %4604 = vst.msk [vmem:[#allocation2 + $0x53] sm:$0x4] %vm4516_vm3, %v4584_v29  ;;  %4684 = vst.msk [vmem:[#allocation2 + $0x57] sm:$0x4] %vm4516_vm3, %v4664_v55  ;;  %v11012_v44 = vmul.f32 %v10528_v18, %v804_v8  ;;  %v2081_v62 = vmul.f32 %v10353_v47, %v804_v8  ;;  %v11018_v33 = vmul.f32 %v11015_v19, %v804_v8  ;;  %v1782_v48 = vrot.slane %v10997_v39, 2 }
 0x31c   : > { %4614 = vst.msk [vmem:[#allocation2 + $0x52] sm:$0x10] %vm4527_vm4, %v4584_v29  ;;  %4694 = vst.msk [vmem:[#allocation2 + $0x56] sm:$0x10] %vm4527_vm4, %v4664_v55  ;;  %v11022_v14 = vmul.f32 %v10328_v25, %v789_v13  ;;  %v3590_v61 = vsel %vm1200_vm0, %v3588_v43, %v3589_v15  ;;  %v3221_v35 = vmul.f32 %v11027_v36, %v804_v8  ;;  %v4056_v20 = vrot.slane %v3854_v24, 2 }
 0x31d   : > { %4624 = vst.msk [vmem:[#allocation2 + $0x51] sm:$0x40] %vm4538_vm5, %v4584_v29  ;;  %4704 = vst.msk [vmem:[#allocation2 + $0x55] sm:$0x40] %vm4538_vm5, %v4664_v55  ;;  %v1315_v47 = vsel %vm1200_vm0, %v1313_v63, %v1314_v58  ;;  %v2158_v12 = vadd.f32 %v2078_v59, %v1950_v52  ;;  %v11034_v54 = vmul.f32 %v10404_v0, %v804_v8  ;;  %v1318_v4 = vrot.slane %v11012_v44, 1  ;;  %v12956_v44 = vld [vmem:[#allocation42_spill] sm:$0xff] }
 0x31e   : > { %4674 = vst.msk [vmem:[#allocation2 + $0x58] sm:$0x1] %vm4505_vm2, %v4664_v55  ;;  %v2453_v25 = vsel %vm1200_vm0, %v2451_v49, %v2452_v37  ;;  %v3766_v13 = vadd.f32 %v3590_v61, %v3298_v22  ;;  %v11043_v53 = vmul.f32 %v11040_v1, %v804_v8  ;;  %v2161_v11 = vadd.f32 %v2081_v62, %v12954_v2  ;;  %v12959_v61 = vld [vmem:[#allocation44_spill] sm:$0xff] }
 0x31f   : > { %v2456_v16 = vrot.slane %v11018_v33, 1  ;;  %v3301_v10 = vadd.f32 %v3221_v35, %v12955_v6  ;;  %v3389_v51 = vmul.f32 %v10395_v17, %v804_v8  ;;  %v11049_v50 = vadd.f32 %v1315_v47, %v936_v32 }
 0x320   : > { %v2919_v34 = vrot.slane %v11022_v14, 2  ;;  %v939_v30 = vmul.f32 %v11052_v57, %v804_v8  ;;  %v3857_v29 = vmul.f32 %v12945_v60, %v804_v8  ;;  %v11056_v55 = vadd.f32 %v2453_v25, %v2158_v12 }
 0x321   : > { %v4058_v63 = vsel %vm1669_vm1, %v4056_v20, %v4057_v38  ;;  %v1787_v59 = vrot.slane %v11034_v54, 2  ;;  %v3593_v49 = vrot.slane %v3389_v51, 1  ;;  %v2924_v43 = vrot.slane %v11043_v53, 2 }
 0x322   : > { %v4234_v22 = vadd.f32 %v4058_v63, %v3766_v13  ;;  %v1488_v32 = vadd.f32 %v1318_v4, %v939_v30  ;;  %v1106_v24 = vmul.f32 %v10528_v18, %v799_v56  ;;  %v2629_v28 = vadd.f32 %v2456_v16, %v2161_v11  ;;  %v12962_v11 = vld [vmem:[#allocation51_spill] sm:$0xff] }
 0x323   : > { %v3769_v52 = vadd.f32 %v3593_v49, %v3301_v10  ;;  %v12957_v62 = vrot.slane %v12956_v44, 2  ;;  %v12958_v8 = vrot.slane %v10598_v21, 2  ;;  %v12960_v35 = vrot.slane %v12959_v61, 2  ;;  %v11080_v21 = vld [vmem:[#allocation4 + $0x3] ss:$0 sm:$0xff] }
 0x324   : > { %v12961_v47 = vrot.slane %v10618_v40, 2  ;;  %v4061_v20 = vrot.slane %v3857_v29, 2  ;;  %v1316_v25 = vrot.slane %v1106_v24, 1  ;;  %v2248_v13 = vmul.f32 %v11015_v19, %v799_v56  ;;  %v12963_v29 = vld [vmem:[#allocation50_spill] sm:$0xff] }
 0x325   : > { %v1781_v33 = vsel %vm1669_vm1, %v12958_v8, %v12957_v62  ;;  %v3220_v2 = vmul.f32 %v11027_v36, %v799_v56  ;;  %v11078_v10 = vmul.f32 %v10404_v0, %v799_v56  ;;  %v2080_v51 = vmul.f32 %v11080_v21, %v799_v56  ;;  %v814_v62 = vpop.permute.xlu1 %813 }
 0x326   : > { %v2918_v12 = vsel %vm1669_vm1, %v12961_v47, %v12960_v35  ;;  %v3388_v30 = vmul.f32 %v10395_v17, %v799_v56  ;;  %v11085_v40 = vadd.f32 %v10660_v42, %v4234_v22  ;;  %v1952_v63 = vadd.f32 %v1781_v33, %v12963_v29 }
 0x327   : > { %v3092_v6 = vadd.f32 %v2918_v12, %v12962_v11  ;;  %v938_v24 = vmul.f32 %v11052_v57, %v799_v56  ;;  %v11090_v44 = vmul.f32 %v11040_v1, %v799_v56  ;;  %v4237_v8 = vadd.f32 %v4061_v20, %v3769_v52 }
 0x328   : > { %v2454_v0 = vrot.slane %v2248_v13, 1  ;;  %v3591_v35 = vrot.slane %v3388_v30, 1  ;;  %v11094_v47 = vadd.f32 %v1787_v59, %v1488_v32  ;;  %v11098_v17 = vadd.f32 %v2924_v43, %v2629_v28 }
 0x329   : > { %v3300_v61 = vadd.f32 %v3220_v2, %v3092_v6  ;;  %v1317_v22 = vsel %vm1200_vm0, %v1314_v58, %v1316_v25  ;;  %v3856_v33 = vmul.f32 %v12945_v60, %v799_v56  ;;  %v1785_v12 = vrot.slane %v11078_v10, 2  ;;  %v11131_v26 = vpop.permute.xlu1 %823 }
 0x32a   : > { %v2160_v52 = vadd.f32 %v2080_v51, %v1952_v63  ;;  %v3592_v13 = vsel %vm1200_vm0, %v3589_v15, %v3591_v35  ;;  %v3594_v32 = vsel %vm1200_vm0, %v3591_v35, %v3593_v49  ;;  %v1319_v2 = vsel %vm1200_vm0, %v1316_v25, %v1318_v4  ;;  %v11126_v49 = vld [vmem:[#allocation4 + $0x2] ss:$0 sm:$0xff] }
 0x32b   : > { %v3767_v28 = vadd.f32 %v3592_v13, %v10977_v46  ;;  %v3768_v11 = vadd.f32 %v3594_v32, %v3300_v61  ;;  %v4059_v6 = vrot.slane %v3856_v33, 2  ;;  %v11112_v27 = vadd.f32 %v10660_v42, %v4237_v8  ;;  %v11155_v33 = vld [vmem:[#allocation4 + $0x7] ss:$0 sm:$0xff]  ;;  %v809_v13 = vpop.permute.xlu0 %808 }
 0x32c   : > { %v2455_v58 = vsel %vm1200_vm0, %v2452_v37, %v2454_v0  ;;  %v2922_v56 = vrot.slane %v11090_v44, 2  ;;  %v1486_v3 = vadd.f32 %v1317_v22, %v10938_v45  ;;  %v2457_v15 = vsel %vm1200_vm0, %v2454_v0, %v2456_v16 }
 0x32d   : > { %v4060_v4 = vsel %vm1669_vm1, %v4057_v38, %v4059_v6  ;;  %v11124_v46 = vmul.f32 %v10528_v18, %v814_v62  ;;  %v11129_v25 = vmul.f32 %v11126_v49, %v814_v62  ;;  %v4062_v37 = vsel %vm1669_vm1, %v4059_v6, %v4061_v20  ;;  %v11160_v32 = vpop.permute.xlu1 %4770 }
 0x32e   : > { %v4235_v51 = vadd.f32 %v4060_v4, %v3767_v28  ;;  %v1786_v45 = vsel %vm1669_vm1, %v1783_v23, %v1785_v12  ;;  %v11140_v31 = vmul.f32 %v11015_v19, %v814_v62  ;;  %v4401_v38 = vmax.f32 %v11085_v40, 0.0 }
 0x32f   : > { %v11143_v16 = vadd.f32 %v1319_v2, %v938_v24  ;;  %v4236_v30 = vadd.f32 %v4062_v37, %v3768_v11  ;;  %v1955_v29 = vadd.f32 %v1786_v45, %v1486_v3  ;;  %v11146_v8 = vadd.f32 %v2457_v15, %v2160_v52 }
 0x330   : > { %v11149_v20 = vmul.f32 %v11052_v57, %v814_v62  ;;  %v2627_v0 = vadd.f32 %v2455_v58, %v10970_v5  ;;  %v12570_v61 = vrot.slane %v11124_v46, 1  ;;  %v2083_v22 = vmul.f32 %v11080_v21, %v814_v62 }
 0x331   : > { %v11158_v24 = vmul.f32 %v11155_v33, %v814_v62  ;;  %v11163_v52 = vadd.f32 %v10660_v42, %v4235_v51  ;;  %v12569_v2 = vrot.slane %v11140_v31, 1  ;;  %v11167_v5 = vmul.f32 %v11040_v1, %v814_v62 }
 0x332   : > { %v2923_v28 = vsel %vm1669_vm1, %v2920_v7, %v2922_v56  ;;  %v11175_v11 = vadd.f32 %v10660_v42, %v4236_v30  ;;  %v11177_v6 = vadd.f32 %v2083_v22, %v1955_v29  ;;  %v3223_v58 = vmul.f32 %v11027_v36, %v814_v62 }
 0x333   : > { %v2921_v3 = vsel %vm1669_vm1, %v2919_v34, %v2920_v7  ;;  %v3095_v15 = vadd.f32 %v2923_v28, %v2627_v0  ;;  %v11186_v4 = vmul.f32 %v12945_v60, %v814_v62  ;;  %v1108_v51 = vmul.f32 %v10528_v18, %v809_v13  ;;  %v11198_v34 = vpop.permute.xlu1 %833 }
 0x334   : > { %v3094_v37 = vadd.f32 %v2921_v3, %v11056_v55  ;;  %v12568_v45 = vrot.slane %v11158_v24, 1  ;;  %v1784_v9 = vsel %vm1669_vm1, %v1782_v48, %v1783_v23  ;;  %v2250_v14 = vmul.f32 %v11015_v19, %v809_v13 }
 0x335   : > { %v3222_v7 = vmul.f32 %v11027_v36, %v809_v13  ;;  %v1954_v62 = vadd.f32 %v1784_v9, %v11049_v50  ;;  %v2082_v55 = vmul.f32 %v11080_v21, %v809_v13  ;;  %v3390_v30 = vmul.f32 %v11155_v33, %v809_v13 }
 0x336   : > { %v3858_v29 = vmul.f32 %v12945_v60, %v809_v13  ;;  %v1320_v0 = vrot.slane %v1108_v51, 1  ;;  %v2458_v39 = vrot.slane %v2250_v14, 1  ;;  %v12567_v48 = vrot.slane %v11186_v4, 2 }
 0x337   : > { %v3302_v22 = vadd.f32 %v3222_v7, %v3094_v37  ;;  %v3595_v28 = vrot.slane %v3390_v30, 1  ;;  %v11208_v50 = vadd.f32 %v3223_v58, %v3095_v15  ;;  %v940_v9 = vmul.f32 %v11052_v57, %v809_v13 }
 0x338   : > { %v4063_v3 = vrot.slane %v3858_v29, 2  ;;  %v11212_v63 = vmul.f32 %v11126_v49, %v809_v13  ;;  %v2162_v60 = vadd.f32 %v2082_v55, %v1954_v62  ;;  %v11215_v51 = vmul.f32 %v11040_v1, %v809_v13  ;;  %v11234_v62 = vpop.permute.xlu1 %843 }
 0x339   : > { %v3597_v37 = vsel %vm1200_vm0, %v3595_v28, %v12568_v45  ;;  %v11222_v14 = vmul.f32 %v10528_v18, %v11131_v26  ;;  %v1322_v58 = vsel %vm1200_vm0, %v1320_v0, %v12570_v61  ;;  %v2460_v15 = vsel %vm1200_vm0, %v2458_v39, %v12569_v2  ;;  %v11250_v28 = vld [vmem:[#allocation4 + $0x8] ss:$0 sm:$0xff] }
 0x33a   : > { %v3770_v7 = vadd.f32 %v3597_v37, %v3302_v22  ;;  %v11232_v13 = vmul.f32 %v11126_v49, %v11131_v26  ;;  %v4065_v18 = vsel %vm1669_vm1, %v4063_v3, %v12567_v48  ;;  %v2085_v55 = vmul.f32 %v11080_v21, %v11131_v26  ;;  %v819_v48 = vpop.permute.xlu0 %818 }
 0x33b   : > { %v3225_v30 = vmul.f32 %v11027_v36, %v11131_v26  ;;  %v11245_v29 = vmul.f32 %v11155_v33, %v11131_v26  ;;  %v2253_v22 = vmul.f32 %v11015_v19, %v11131_v26  ;;  %v11254_v3 = vmul.f32 %v11250_v28, %v11131_v26 }
 0x33c   : > { %v4238_v39 = vadd.f32 %v4065_v18, %v3770_v7  ;;  %v1325_v35 = vrot.slane %v11222_v14, 1  ;;  %v11260_v0 = vadd.f32 %v1322_v58, %v940_v9  ;;  %v11262_v7 = vadd.f32 %v2460_v15, %v2162_v60  ;;  %v11276_v60 = vld [vmem:[#allocation4 + $0x1] ss:$0 sm:$0xff]  ;;  %v11279_v15 = vpop.permute.xlu1 %853 }
 0x33d   : > { %v3305_v23 = vadd.f32 %v3225_v30, %v11098_v17  ;;  %v3600_v41 = vrot.slane %v11245_v29, 1  ;;  %v943_v45 = vmul.f32 %v11052_v57, %v11131_v26  ;;  %v2165_v37 = vadd.f32 %v2085_v55, %v11094_v47  ;;  %12965 = vst [vmem:[#allocation20_spill] sm:$0xff] %v11279_v15  ;;  %v4801_v15 = vld [vmem:[#allocation8 + $0x60] sm:$0xff] }
 0x33e   : > { %v4325_v18 = vadd.f32 %v10660_v42, %v4238_v39  ;;  %v4068_v17 = vrot.slane %v11254_v3, 2  ;;  %v2463_v61 = vrot.slane %v2253_v22, 1  ;;  %v11274_v9 = vmul.f32 %v11040_v1, %v11131_v26  ;;  %v11302_v53 = vpop.permute.xlu0 %828 }
 0x33f   : > { %v3773_v14 = vadd.f32 %v3600_v41, %v3305_v23  ;;  %v1110_v58 = vmul.f32 %v11276_v60, %v819_v48  ;;  %v1492_v39 = vadd.f32 %v1325_v35, %v943_v45  ;;  %v1788_v47 = vsel %vm1669_vm1, %v1785_v12, %v1787_v59 }
 0x340   : > { %v4405_v30 = vmax.f32 %v4325_v18, 0.0  ;;  %12964 = vst [vmem:[#allocation26_spill] sm:$0xff] %v11274_v9  ;;  %v2252_v23 = vmul.f32 %v11015_v19, %v819_v48  ;;  %v1956_v55 = vadd.f32 %v1788_v47, %v11143_v16  ;;  %v2925_v45 = vsel %vm1669_vm1, %v2922_v56, %v2924_v43 }
 0x341   : > { %v4241_v2 = vadd.f32 %v4068_v17, %v3773_v14  ;;  %v2084_v22 = vmul.f32 %v11080_v21, %v819_v48  ;;  %v3096_v10 = vadd.f32 %v2925_v45, %v11146_v8  ;;  %v1323_v59 = vrot.slane %v1110_v58, 1  ;;  %v11314_v58 = vpop.permute.xlu1 %863 }
 0x342   : > { %v4453_v26 = vmax.f32 %v4401_v38, %v4405_v30  ;;  %v3224_v12 = vmul.f32 %v11027_v36, %v819_v48  ;;  %v2633_v40 = vadd.f32 %v2463_v61, %v2165_v37  ;;  %v11300_v38 = vmul.f32 %v11126_v49, %v819_v48  ;;  %12967 = vst [vmem:[#allocation32_spill] sm:$0xff] %v11314_v58 }
 0x343   : > { %v4328_v54 = vadd.f32 %v10660_v42, %v4241_v2  ;;  %v2461_v16 = vrot.slane %v2252_v23, 1  ;;  %v12966_v44 = vrot.slane %v11232_v13, 2  ;;  %v12571_v56 = vrot.slane %v11274_v9, 2  ;;  %v4804_v9 = vld [vmem:[#allocation8 + $0x78] sm:$0xff] }
 0x344   : > { %v4482_v3 = vrot.slane %v4453_v26, 1  ;;  %v11310_v8 = vmul.f32 %v11040_v1, %v819_v48  ;;  %v942_v14 = vmul.f32 %v11052_v57, %v819_v48  ;;  %v2164_v37 = vadd.f32 %v2084_v22, %v1956_v55  ;;  %v11330_v22 = vpop.permute.xlu0 %7312 }
 0x345   : > { %v11306_v43 = vadd.f32 %v12966_v44, %v1492_v39  ;;  %v4408_v2 = vmax.f32 %v4328_v54, 0.0  ;;  %v3392_v30 = vmul.f32 %v11155_v33, %v819_v48  ;;  %v12968_v47 = vmax.f32 %v11112_v27, 0.0 }
 0x346   : > { %v4502_v18 = vmax.f32 %v4453_v26, %v4482_v3  ;;  %v1326_v39 = vsel %vm1200_vm0, %v1323_v59, %v1325_v35  ;;  %v3304_v45 = vadd.f32 %v3224_v12, %v3096_v10  ;;  %v3860_v44 = vmul.f32 %v11250_v28, %v819_v48  ;;  %v4812_v12 = vld [vmem:[#allocation8 + $0xb8] sm:$0xff] }
 0x347   : > { %v4456_v23 = vmax.f32 %v12968_v47, %v4408_v2  ;;  %v11326_v26 = vadd.f32 %v12571_v56, %v2633_v40  ;;  %v2464_v55 = vsel %vm1200_vm0, %v2461_v16, %v2463_v61  ;;  %v3598_v35 = vrot.slane %v3392_v30, 1  ;;  %v4811_v56 = vld [vmem:[#allocation8 + $0xb0] sm:$0xff] }
 0x348   : > { %4513 = vst.msk [vmem:[#allocation2 + $0x70] sm:$0x1] %vm4505_vm2, %v4502_v18  ;;  %v12969_v54 = vrot.slane %v11124_v46, 1  ;;  %v4066_v3 = vrot.slane %v3860_v44, 2  ;;  %v11338_v2 = vadd.f32 %v1326_v39, %v942_v14  ;;  %v12970_v40 = vrot.slane %v11140_v31, 1  ;;  %v4805_v39 = vld [vmem:[#allocation8 + $0x80] sm:$0xff] }
 0x349   : > { %4524 = vst.msk [vmem:[#allocation2 + $0x6f] sm:$0x4] %vm4516_vm3, %v4502_v18  ;;  %v4726_v48 = vrot.slane %v4456_v23, 1  ;;  %v12971_v61 = vrot.slane %v11158_v24, 1  ;;  %v3601_v46 = vsel %vm1200_vm0, %v3598_v35, %v3600_v41  ;;  %v11351_v47 = vadd.f32 %v2464_v55, %v2164_v37  ;;  %v11369_v55 = vpop.permute.xlu1 %1999 }
 0x34a   : > { %4535 = vst.msk [vmem:[#allocation2 + $0x6e] sm:$0x10] %vm4527_vm4, %v4502_v18  ;;  %v11335_v10 = vsel %vm1200_vm0, %v12969_v54, %v1323_v59  ;;  %v3772_v14 = vadd.f32 %v3601_v46, %v3304_v45  ;;  %v4806_v54 = vld [vmem:[#allocation8 + $0x88] sm:$0xff]  ;;  %v12973_v31 = vrot.slane %v11186_v4, 2  ;;  %v4069_v24 = vsel %vm1669_vm1, %v4066_v3, %v4068_v17  ;;  %v11367_v45 = vpop.permute.xlu0 %838  ;;  %12978 = vst [vmem:[#allocation33_spill] sm:$0xff] %v11369_v55 }
 0x34b   : > { %4546 = vst.msk [vmem:[#allocation2 + $0x6d] sm:$0x40] %vm4538_vm5, %v4502_v18  ;;  %v11343_v18 = vsel %vm1200_vm0, %v12970_v40, %v2461_v16  ;;  %v3599_v30 = vsel %vm1200_vm0, %v12971_v61, %v3598_v35  ;;  %v4746_v59 = vmax.f32 %v4456_v23, %v4726_v48  ;;  %12972 = vst [vmem:[#allocation47_spill] sm:$0xff] %v11351_v47  ;;  %v12974_v40 = vrot.slane %v11129_v25, 2  ;;  %v4790_v23 = vld [vmem:[#allocation8 + $0x8] sm:$0xff]  ;;  %v4807_v61 = vld [vmem:[#allocation8 + $0x90] sm:$0xff] }
 0x34c   : > { %v3771_v44 = vadd.f32 %v3599_v30, %v11208_v50  ;;  %v4067_v16 = vsel %vm1669_vm1, %v12973_v31, %v4066_v3  ;;  %v12975_v29 = vrot.slane %v11212_v63, 2  ;;  %v11365_v37 = vmul.f32 %v11276_v60, %v11302_v53  ;;  %v4789_v50 = vld [vmem:[#allocation8] sm:$0xff]  ;;  %12977 = vst [vmem:[#allocation25_spill] sm:$0xff] %v11367_v45  ;;  %v4808_v30 = vld [vmem:[#allocation8 + $0x98] sm:$0xff]  ;;  %v4803_v45 = vld [vmem:[#allocation8 + $0x70] sm:$0xff] }
 0x34d   : > { %4756 = vst.msk [vmem:[#allocation2 + $0x7c] sm:$0x1] %vm4505_vm2, %v4746_v59  ;;  %v4240_v17 = vadd.f32 %v4069_v24, %v3772_v14  ;;  %v12979_v63 = vrot.slane %v11167_v5, 2  ;;  %v12980_v48 = vrot.slane %v11215_v51, 2  ;;  %v11380_v46 = vmul.f32 %v11126_v49, %v11302_v53  ;;  %v4792_v14 = vld [vmem:[#allocation8 + $0x18] sm:$0xff]  ;;  %v5217_v51 = vld [vmem:[#allocation2 + $0x51] sm:$0xff] }
 0x34e   : > { %v1791_v41 = vsel %vm1669_vm1, %v12975_v29, %v12974_v40  ;;  %12976 = vst [vmem:[#allocation29_spill] sm:$0xff] %v11365_v37  ;;  %v4239_v4 = vadd.f32 %v4067_v16, %v3771_v44  ;;  %v2086_v31 = vmul.f32 %v11080_v21, %v11302_v53  ;;  %v11386_v59 = vmul.f32 %v11015_v19, %v11302_v53  ;;  %v4791_v44 = vld [vmem:[#allocation8 + $0x10] sm:$0xff]  ;;  %v4820_v47 = vld [vmem:[#allocation8 + $0xf8] sm:$0xff] }
 0x34f   : > { %v1958_v35 = vadd.f32 %v1791_v41, %v11260_v0  ;;  %v2928_v3 = vsel %vm1669_vm1, %v12980_v48, %v12979_v63  ;;  %12981 = vst [vmem:[#allocation23_spill] sm:$0xff] %v11380_v46  ;;  %v11388_v0 = vpack.c.bf16 %v4806_v54, %v4805_v39  ;;  %v4327_v24 = vadd.f32 %v10660_v42, %v4240_v17  ;;  %v4809_v41 = vld [vmem:[#allocation8 + $0xa0] sm:$0xff]  ;;  %v4810_v63 = vld [vmem:[#allocation8 + $0xa8] sm:$0xff] }
 0x350   : > { %v4326_v16 = vadd.f32 %v10660_v42, %v4239_v4  ;;  %v3098_v40 = vadd.f32 %v2928_v3, %v11262_v7  ;;  %v11393_v29 = vpack.c.bf16 %v4790_v23, %v4789_v50  ;;  %v11397_v48 = vmul.f32 %v11052_v57, %v11302_v53  ;;  %v5223_v7 = vld [vmem:[#allocation2 + $0x69] sm:$0xf]  ;;  %v4794_v39 = vld [vmem:[#allocation8 + $0x28] sm:$0xff] }
 0x351   : > { %12982 = vst [vmem:[#allocation30_spill] sm:$0xff] %v11388_v0  ;;  %v3226_v54 = vmul.f32 %v11027_v36, %v11302_v53  ;;  %6713 = vmatprep.subr.bf16.mxu0 %v11388_v0  ;;  %6745 = vmatprep.subr.bf16.mxu1 %v11388_v0  ;;  %v11404_v42 = vpack.c.bf16 %v4808_v30, %v4807_v61  ;;  %v4793_v50 = vld [vmem:[#allocation8 + $0x20] sm:$0xff]  ;;  %v4407_v4 = vmax.f32 %v4327_v24, 0.0  ;;  %v4796_v24 = vld [vmem:[#allocation8 + $0x38] sm:$0xff]  ;;  %v4798_v46 = vld [vmem:[#allocation8 + $0x48] sm:$0xff]  ;;  %v7315_v37 = vunpack.i.h.bf16 %v11330_v22 }
 0x352   : > { %12983 = vst [vmem:[#allocation21_spill] sm:$0xff] %v11393_v29  ;;  %12984 = vst [vmem:[#allocation27_spill] sm:$0xff] %v11397_v48  ;;  %v4406_v23 = vmax.f32 %v4326_v16, 0.0  ;;  %6715 = vmatpush3.bf16.msra.mxu0 %v11393_v29  ;;  %6747 = vmatpush3.bf16.msra.mxu1 %v11393_v29  ;;  %v11408_v17 = vpack.c.bf16 %v4792_v14, %v4791_v44  ;;  %v7336_v3 = vpack.i.bf16 %v5223_v7, %v5217_v51  ;;  %v4795_v16 = vld [vmem:[#allocation8 + $0x30] sm:$0xff]  ;;  %v4813_v44 = vld [vmem:[#allocation8 + $0xc0] sm:$0xff]  ;;  %v11418_v14 = vpop.permute.xlu0 %848  ;;  %v11420_v51 = vpop.permute.xlu1 %2009 }
 0x353   : > { %12985 = vst [vmem:[#allocation37_spill] sm:$0xff] %v11404_v42  ;;  %v11411_v48 = vadd.f32 %v2086_v31, %v1958_v35  ;;  %6717 = vmatprep.subr.bf16.mxu0 %v11404_v42  ;;  %6749 = vmatprep.subr.bf16.mxu1 %v11404_v42  ;;  %v11416_v30 = vpack.c.bf16 %v4810_v63, %v4809_v41  ;;  %12989 = vst [vmem:[#allocation31_spill] sm:$0xff] %v11418_v14  ;;  %v12991_v7 = vmax.f32 %v11163_v52, 0.0  ;;  %v4814_v41 = vld [vmem:[#allocation8 + $0xc8] sm:$0xff]  ;;  %v4797_v63 = vld [vmem:[#allocation8 + $0x40] sm:$0xff] }
 0x354   : > { %12986 = vst [vmem:[#allocation28_spill] sm:$0xff] %v11408_v17  ;;  %12990 = vst [vmem:[#allocation34_spill] sm:$0xff] %v11420_v51  ;;  %v12992_v35 = vmax.f32 %v11175_v11, 0.0  ;;  %v11428_v61 = vmul.f32 %v11040_v1, %v11302_v53  ;;  %7337 = vrot.lane.b32.xlu1 %v7336_v3, %s7609_s27  ;;  %v11432_v55 = vadd.f32 %v3226_v54, %v3098_v40  ;;  %v4799_v3 = vld [vmem:[#allocation8 + $0x50] sm:$0xff]  ;;  %v4800_v54 = vld [vmem:[#allocation8 + $0x58] sm:$0xff] }
 0x355   : > { %12987 = vst [vmem:[#allocation18_spill] sm:$0xff] %v11411_v48  ;;  %12988 = vst [vmem:[#allocation22_spill] sm:$0xff] %v11416_v30  ;;  %v4454_v27 = vmax.f32 %v12991_v7, %v4406_v23  ;;  %v11436_v52 = vmul.f32 %v11155_v33, %v11302_v53  ;;  %v11440_v11 = vmul.f32 %v11250_v28, %v11302_v53  ;;  %v4816_v7 = vld [vmem:[#allocation8 + $0xd8] sm:$0xff]  ;;  %v4817_v14 = vld [vmem:[#allocation8 + $0xe0] sm:$0xff]  ;;  %v7314_v53 = vunpack.i.l.bf16 %v11330_v22 }
 0x356   : > { %v4455_v31 = vmax.f32 %v12992_v35, %v4407_v4  ;;  %v11442_v23 = vpack.c.bf16 %v4794_v39, %v4793_v50  ;;  %v4815_v4 = vld [vmem:[#allocation8 + $0xd0] sm:$0xff]  ;;  %v4764_v35 = vld [vmem:[#allocation2 + $0x10] sm:$0xff]  ;;  %6719 = vmatpush3.bf16.msra.mxu0 %v11408_v17  ;;  %6751 = vmatpush3.bf16.msra.mxu1 %v11408_v17  ;;  %v11446_v40 = vpack.c.bf16 %v4812_v12, %v4811_v56 }
 0x357   : > { %v4906_v51 = vld [vmem:[#allocation2 + $0x20] sm:$0xff]  ;;  %v4566_v58 = vrot.slane %v4454_v27, 1  ;;  %v4818_v29 = vld [vmem:[#allocation8 + $0xe8] sm:$0xff]  ;;  %6721 = vmatprep.subr.bf16.mxu0 %v11416_v30  ;;  %6753 = vmatprep.subr.bf16.mxu1 %v11416_v30  ;;  %v11451_v39 = vpack.c.bf16 %v4796_v24, %v4795_v16  ;;  %v11453_v50 = vpack.c.bf16 %v4814_v41, %v4813_v44  ;;  %v11455_v48 = vpack.c.bf16 %v4798_v46, %v4797_v63 }
 0x358   : > { %v4646_v42 = vrot.slane %v4455_v31, 1  ;;  %v4802_v0 = vld [vmem:[#allocation8 + $0x68] sm:$0xff]  ;;  %v4819_v17 = vld [vmem:[#allocation8 + $0xf0] sm:$0xff]  ;;  %v11458_v22 = vsel %vm4784_vm6, %v4764_v35, %v7314_v53  ;;  %v11461_v30 = vsel %vm4784_vm6, %v4906_v51, %v7315_v37  ;;  %v11464_v24 = vpack.c.bf16 %v4816_v7, %v4815_v4 }
 0x359   : > { %v4586_v56 = vmax.f32 %v4454_v27, %v4566_v58  ;;  %12993 = vst [vmem:[#allocation19_spill] sm:$0xff] %v11461_v30  ;;  %v11466_v46 = vpack.c.bf16 %v4800_v54, %v4799_v3  ;;  %v11468_v44 = vpack.c.bf16 %v4818_v29, %v4817_v14  ;;  %4892 = vmatprep.mubr.f32.mxu0 %v11458_v22  ;;  %v11472_v58 = vpop.permute.xlu0 %858  ;;  %v11474_v27 = vpop.permute.xlu1 %7322  ;;  %v3602_v37 = vrot.slane %v11436_v52, 1  ;;  %v4759_v63 = vld [vmem:[#allocation2] sm:$0xff] }
 0x35a   : > { %v4666_v12 = vmax.f32 %v4455_v31, %v4646_v42  ;;  %4984 = vmatprep.mubr.f32.mxu1 %v11461_v30  ;;  %12994 = vst [vmem:[#allocation24_spill] sm:$0xff] %v11474_v27  ;;  %6723 = vmatpush3.bf16.msra.mxu0 %v11442_v23  ;;  %v11487_v29 = vpack.c.bf16 %v4802_v0, %v4801_v15  ;;  %v4070_v51 = vrot.slane %v11440_v11, 2 }
 0x35b   : > { %4596 = vst.msk [vmem:[#allocation2 + $0x74] sm:$0x1] %vm4505_vm2, %v4586_v56  ;;  %6755 = vmatpush3.bf16.msra.mxu1 %v11442_v23  ;;  %v11491_v42 = vmul.f32 %v11276_v60, %v11198_v34  ;;  %v1490_v14 = vadd.f32 %v11335_v10, %v11149_v20  ;;  %6725 = vmatprep.subr.bf16.mxu0 %v11446_v40  ;;  %v12995_v10 = vrot.slane %v11300_v38, 2 }
 0x35c   : > { %4606 = vst.msk [vmem:[#allocation2 + $0x73] sm:$0x4] %vm4516_vm3, %v4586_v56  ;;  %4686 = vst.msk [vmem:[#allocation2 + $0x77] sm:$0x4] %vm4516_vm3, %v4666_v12  ;;  %6757 = vmatprep.subr.bf16.mxu1 %v11446_v40  ;;  %v11498_v31 = vpack.c.bf16 %v4820_v47, %v4819_v17  ;;  %v11500_v41 = vpack.c.bf16 %v4804_v9, %v4803_v45  ;;  %v11504_v15 = vmul.f32 %v11126_v49, %v11198_v34 }
 0x35d   : > { %4616 = vst.msk [vmem:[#allocation2 + $0x72] sm:$0x10] %vm4527_vm4, %v4586_v56  ;;  %4696 = vst.msk [vmem:[#allocation2 + $0x76] sm:$0x10] %vm4527_vm4, %v4666_v12  ;;  %v11508_v0 = vsel %vm4784_vm6, %v4759_v63, %v11160_v32  ;;  %v11512_v20 = vmul.f32 %v11052_v57, %v11198_v34  ;;  %v12996_v47 = vrot.slane %v11129_v25, 2  ;;  %v2087_v17 = vmul.f32 %v11080_v21, %v11198_v34 }
 0x35e   : > { %4626 = vst.msk [vmem:[#allocation2 + $0x71] sm:$0x40] %vm4538_vm5, %v4586_v56  ;;  %4706 = vst.msk [vmem:[#allocation2 + $0x75] sm:$0x40] %vm4538_vm5, %v4666_v12  ;;  %v11524_v52 = vmul.f32 %v11015_v19, %v11198_v34  ;;  %v11528_v32 = vmul.f32 %v11155_v33, %v11198_v34  ;;  %6727 = vmatpush3.bf16.msra.mxu0 %v11451_v39  ;;  %v2631_v7 = vadd.f32 %v11343_v18, %v11177_v6  ;;  %v11550_v6 = vpop.permute.xlu0 %1994 }
 0x35f   : > { %4676 = vst.msk [vmem:[#allocation2 + $0x78] sm:$0x1] %vm4505_vm2, %v4666_v12  ;;  %v1793_v9 = vsel %vm1669_vm1, %v12996_v47, %v12995_v10  ;;  %6759 = vmatpush3.bf16.msra.mxu1 %v11451_v39  ;;  %v11538_v3 = vmul.f32 %v11250_v28, %v11198_v34  ;;  %6729 = vmatprep.subr.bf16.mxu0 %v11453_v50  ;;  %v12997_v18 = vrot.slane %v11310_v8, 2  ;;  %v12998_v12 = vrot.slane %v11167_v5, 2 }
 0x360   : > { %v1959_v4 = vadd.f32 %v1793_v9, %v1490_v14  ;;  %6761 = vmatprep.subr.bf16.mxu1 %v11453_v50  ;;  %v11545_v54 = vmul.f32 %v11040_v1, %v11198_v34  ;;  %v12591_v53 = vrot.slane %v11528_v32, 1  ;;  %v2089_v56 = vmul.f32 %v11080_v21, %v11234_v62  ;;  %v5222_v9 = vld [vmem:[#allocation2 + $0x61] sm:$0xff] }
 0x361   : > { %v2930_v14 = vsel %vm1669_vm1, %v12998_v12, %v12997_v18  ;;  %v3227_v63 = vmul.f32 %v11027_v36, %v11198_v34  ;;  %v12592_v10 = vrot.slane %v11538_v3, 2  ;;  %v11562_v47 = vmul.f32 %v11015_v19, %v11234_v62 }
 0x362   : > { %v3604_v35 = vsel %vm1200_vm0, %v3602_v37, %v12591_v53  ;;  %v3229_v5 = vmul.f32 %v11027_v36, %v11234_v62  ;;  %v11572_v34 = vmul.f32 %v11155_v33, %v11234_v62  ;;  %6731 = vmatpush3.bf16.msra.mxu0 %v11455_v48  ;;  %v2169_v16 = vadd.f32 %v2089_v56, %v11306_v43 }
 0x363   : > { %6763 = vmatpush3.bf16.msra.mxu1 %v11455_v48  ;;  %v3774_v25 = vadd.f32 %v3604_v35, %v11432_v55  ;;  %v2470_v11 = vrot.slane %v11562_v47, 1  ;;  %6733 = vmatprep.subr.bf16.mxu0 %v11464_v24  ;;  %v2167_v37 = vadd.f32 %v2087_v17, %v1959_v4  ;;  %v11583_v53 = vmul.f32 %v11040_v1, %v11234_v62  ;;  %v5218_v55 = vld [vmem:[#allocation2 + $0x59] sm:$0xf] }
 0x364   : > { %6765 = vmatprep.subr.bf16.mxu1 %v11464_v24  ;;  %v3099_v35 = vadd.f32 %v2930_v14, %v2631_v7  ;;  %v4072_v43 = vsel %vm1669_vm1, %v4070_v51, %v12592_v10  ;;  %v11593_v56 = vmul.f32 %v11052_v57, %v11234_v62  ;;  %v11597_v17 = vmul.f32 %v11250_v28, %v11234_v62  ;;  %v11610_v14 = vpop.permute.xlu0 %2004  ;;  %v13003_v10 = vld [vmem:[#allocation26_spill] sm:$0xff] }
 0x365   : > { %v5364_v12 = vld [vmem:[#allocation2 + $0x79] sm:$0xf]  ;;  %v13000_v47 = vrot.slane %v11386_v59, 1  ;;  %v4242_v7 = vadd.f32 %v4072_v43, %v3774_v25  ;;  %v11608_v51 = vmul.f32 %v11276_v60, %v11234_v62  ;;  %v13001_v59 = vrot.slane %v11232_v13, 2 }
 0x366   : > { %v5363_v45 = vld [vmem:[#allocation2 + $0x71] sm:$0xff]  ;;  %v7341_v4 = vpack.i.bf16 %v5218_v55, %v5364_v12  ;;  %6735 = vmatpush3.bf16.msra.mxu0 %v11466_v46  ;;  %v13002_v55 = vrot.slane %v11300_v38, 2  ;;  %v3307_v43 = vadd.f32 %v3227_v63, %v3099_v35  ;;  %v13004_v30 = vrot.slane %v13003_v10, 2  ;;  %v13006_v38 = vld [vmem:[#allocation25_spill] sm:$0xff] }
 0x367   : > { %v7331_v18 = vpack.i.bf16 %v5363_v45, %v5222_v9  ;;  %v3309_v45 = vadd.f32 %v3229_v5, %v11326_v26  ;;  %v3607_v9 = vrot.slane %v11572_v34, 1  ;;  %v12999_v26 = vrot.slane %v11524_v52, 1  ;;  %6767 = vmatpush3.bf16.msra.mxu1 %v11466_v46  ;;  %6737 = vmatprep.subr.bf16.mxu0 %v11468_v44 }
 0x368   : > { %v1795_v25 = vsel %vm1669_vm1, %v13002_v55, %v13001_v59  ;;  %6769 = vmatprep.subr.bf16.mxu1 %v11468_v44  ;;  %v4075_v13 = vrot.slane %v11597_v17, 2  ;;  %v2088_v59 = vmul.f32 %v11080_v21, %v13006_v38  ;;  %v2256_v63 = vmul.f32 %v11015_v19, %v13006_v38 }
 0x369   : > { %7332 = vrot.lane.b32.xlu0 %v7331_v18, %s7609_s27  ;;  %v11604_v5 = vsel %vm1200_vm0, %v13000_v47, %v12999_v26  ;;  %v2637_v18 = vadd.f32 %v2470_v11, %v2169_v16  ;;  %v3777_v12 = vadd.f32 %v3607_v9, %v3309_v45  ;;  %v12594_v26 = vrot.slane %v11583_v53, 2 }
 0x36a   : > { %v1960_v47 = vadd.f32 %v1795_v25, %v11338_v2  ;;  %v13005_v16 = vrot.slane %v11310_v8, 2  ;;  %v11637_v35 = vmul.f32 %v11040_v1, %v13006_v38  ;;  %v11639_v2 = vld [vmem:[#allocation6] ss:$0 sm:$0xff]  ;;  %v11647_v17 = vmul.f32 %v11052_v57, %v13006_v38  ;;  %6739 = vmatpush3.bf16.msra.mxu0 %v11487_v29 }
 0x36b   : > { %v11642_v8 = vadd.f32 %v11639_v2, %v4242_v7  ;;  %6771 = vmatpush3.bf16.msra.mxu1 %v11487_v29  ;;  %v11655_v19 = vadd.f32 %v12594_v26, %v2637_v18  ;;  %v4245_v1 = vadd.f32 %v4075_v13, %v3777_v12  ;;  %v2468_v7 = vrot.slane %v2256_v63, 1  ;;  %6741 = vmatprep.subr.bf16.mxu0 %v11498_v31 }
 0x36c   : > { %v2932_v45 = vsel %vm1669_vm1, %v13005_v16, %v13004_v30  ;;  %v13007_v30 = vld [vmem:[#allocation47_spill] sm:$0xff]  ;;  %v3396_v55 = vmul.f32 %v11155_v33, %v13006_v38  ;;  %6773 = vmatprep.subr.bf16.mxu1 %v11498_v31  ;;  %v11664_v25 = vmul.f32 %v11276_v60, %v13006_v38  ;;  %v3864_v18 = vmul.f32 %v11250_v28, %v13006_v38 }
 0x36d   : > { %7342 = vrot.lane.b32.xlu0 %v7341_v4, %s7609_s27  ;;  %v3100_v10 = vadd.f32 %v2932_v45, %v13007_v30  ;;  %v3228_v4 = vmul.f32 %v11027_v36, %v13006_v38  ;;  %v11668_v45 = vpop.permute.xlu0 %7317  ;;  %v2168_v12 = vadd.f32 %v2088_v59, %v1960_v47  ;;  %v13008_v63 = vrot.slane %v11524_v52, 1 }
 0x36e   : > { %v2936_v26 = vrot.slane %v11637_v35, 2  ;;  %v3605_v34 = vrot.slane %v3396_v55, 1  ;;  %v11676_v57 = vmul.f32 %v11126_v49, %v13006_v38  ;;  %v2471_v27 = vsel %vm1200_vm0, %v2468_v7, %v2470_v11  ;;  %6743 = vmatpush3.bf16.msra.mxu0 %v11500_v41  ;;  %v13010_v11 = vld [vmem:[#allocation30_spill] sm:$0xff]  ;;  %v13011_v55 = vld [vmem:[#allocation20_spill] sm:$0xff] }
 0x36f   : > { %v3308_v16 = vadd.f32 %v3228_v4, %v3100_v10  ;;  %v2469_v30 = vsel %vm1200_vm0, %v13008_v63, %v2468_v7  ;;  %v4073_v10 = vrot.slane %v3864_v18, 2  ;;  %6775 = vmatpush3.bf16.msra.mxu1 %v11500_v41  ;;  %v11682_v47 = vadd.f32 %v11639_v2, %v4245_v1  ;;  %6777 = vmatprep.subr.bf16.mxu0 %v13010_v11 }
 0x370   : > { %v2635_v4 = vadd.f32 %v2469_v30, %v2167_v37  ;;  %v13009_v52 = vrot.slane %v11528_v32, 1  ;;  %v3608_v35 = vsel %vm1200_vm0, %v3605_v34, %v3607_v9  ;;  %6809 = vmatprep.subr.bf16.mxu1 %v13010_v11  ;;  %v3399_v1 = vmul.f32 %v11155_v33, %v13011_v55 }
 0x371   : > { %v3776_v7 = vadd.f32 %v3608_v35, %v3308_v16  ;;  %v2636_v18 = vadd.f32 %v2471_v27, %v2168_v12  ;;  %v13012_v32 = vrot.slane %v11538_v3, 2  ;;  %v13013_v9 = vrot.slane %v11545_v54, 2  ;;  %4893 = vmatmul.mubr.f32.vlgmr.msra.gmra.mrb[0].mxu0 %v11508_v0  ;;  %v13014_v27 = vld [vmem:[#allocation18_spill] sm:$0xff]  ;;  %v13015_v12 = vld [vmem:[#allocation21_spill] sm:$0xff] }
 0x372   : > { %v3606_v59 = vsel %vm1200_vm0, %v13009_v52, %v3605_v34  ;;  %v3231_v30 = vmul.f32 %v11027_v36, %v13011_v55  ;;  %4985 = vmatmul.mubr.f32.vlgmr.msra.gmra.mrb[0].mxu1 %v11458_v22  ;;  %v2634_v3 = vadd.f32 %v11604_v5, %v13014_v27  ;;  %6779 = vmatpush3.bf16.msra.mxu0 %v13015_v12  ;;  %v13017_v0 = vrot.slane %v11428_v61, 2 }
 0x373   : > { %v3775_v37 = vadd.f32 %v3606_v59, %v3307_v43  ;;  %v4074_v63 = vsel %vm1669_vm1, %v13012_v32, %v4073_v10  ;;  %v2937_v34 = vsel %vm1669_vm1, %v13013_v9, %v2936_v26  ;;  %v1330_v43 = vrot.slane %v11664_v25, 1  ;;  %6811 = vmatpush3.bf16.msra.mxu1 %v13015_v12  ;;  %v13018_v32 = vld [vmem:[#allocation31_spill] sm:$0xff]  ;;  %v13022_v59 = vld [vmem:[#allocation22_spill] sm:$0xff] }
 0x374   : > { %v3103_v52 = vadd.f32 %v2937_v34, %v2635_v4  ;;  %v4076_v35 = vsel %vm1669_vm1, %v4073_v10, %v4075_v13  ;;  %v13016_v11 = vmov %v13013_v9  ;;  %v3230_v4 = vmul.f32 %v11027_v36, %v13018_v32  ;;  %v13020_v13 = vld [vmem:[#allocation32_spill] sm:$0xff] }
 0x375   : > { %v4243_v16 = vadd.f32 %v4074_v63, %v3775_v37  ;;  %v2935_v22 = vsel %vm1669_vm1, %v13017_v0, %v13016_v11  ;;  %v4244_v37 = vadd.f32 %v4076_v35, %v3776_v7  ;;  %v13019_v63 = vld [vmem:[#allocation37_spill] sm:$0xff]  ;;  %v3610_v5 = vrot.slane %v3399_v1, 1  ;;  %v11735_v35 = vpop.permute.xlu1 %3138  ;;  %v13021_v11 = vld [vmem:[#allocation28_spill] sm:$0xff] }
 0x376   : > { %6781 = vmatprep.subr.bf16.mxu0 %v13019_v63  ;;  %6813 = vmatprep.subr.bf16.mxu1 %v13019_v63  ;;  %v3867_v9 = vmul.f32 %v11250_v28, %v13011_v55  ;;  %v3102_v34 = vadd.f32 %v2935_v22, %v2634_v3  ;;  %v3398_v54 = vmul.f32 %v11155_v33, %v13018_v32 }
 0x377   : > { %v3866_v61 = vmul.f32 %v11250_v28, %v13018_v32  ;;  %v3233_v10 = vmul.f32 %v11027_v36, %v13020_v13  ;;  %v3401_v7 = vmul.f32 %v11155_v33, %v13020_v13  ;;  %v11731_v27 = vadd.f32 %v11639_v2, %v4243_v16  ;;  %6783 = vmatpush3.bf16.msra.mxu0 %v13021_v11 }
 0x378   : > { %v3311_v1 = vadd.f32 %v3231_v30, %v3103_v52  ;;  %v3310_v12 = vadd.f32 %v3230_v4, %v3102_v34  ;;  %v3869_v3 = vmul.f32 %v11250_v28, %v13020_v13  ;;  %6815 = vmatpush3.bf16.msra.mxu1 %v13021_v11  ;;  %v3609_v0 = vrot.slane %v3398_v54, 1  ;;  %6785 = vmatprep.subr.bf16.mxu0 %v13022_v59 }
 0x379   : > { %v4077_v22 = vrot.slane %v3866_v61, 2  ;;  %v3313_v63 = vadd.f32 %v3233_v10, %v11655_v19  ;;  %v3614_v49 = vrot.slane %v3401_v7, 1  ;;  %v4078_v38 = vrot.slane %v3867_v9, 2  ;;  %6817 = vmatprep.subr.bf16.mxu1 %v13022_v59 }
 0x37a   : > { %v13023_v30 = vrot.slane %v11583_v53, 2  ;;  %v3232_v52 = vmul.f32 %v11027_v36, %v11472_v58  ;;  %v3400_v4 = vmul.f32 %v11155_v33, %v11472_v58  ;;  %v3611_v34 = vsel %vm1200_vm0, %v3609_v0, %v3610_v5  ;;  %v11763_v0 = vpop.permute.xlu1 %3148 }
 0x37b   : > { %v3781_v54 = vadd.f32 %v3614_v49, %v3313_v63  ;;  %v4082_v19 = vrot.slane %v3869_v3, 2  ;;  %v11751_v9 = vadd.f32 %v11639_v2, %v4244_v37  ;;  %v3778_v10 = vadd.f32 %v3611_v34, %v3310_v12  ;;  %6787 = vmatpush3.bf16.msra.mxu0 %v11442_v23 }
 0x37c   : > { %v2939_v16 = vsel %vm1669_vm1, %v2936_v26, %v13023_v30  ;;  %v3612_v59 = vrot.slane %v3400_v4, 1  ;;  %v3868_v53 = vmul.f32 %v11250_v28, %v11472_v58  ;;  %v4079_v26 = vsel %vm1669_vm1, %v4077_v22, %v4078_v38  ;;  %6819 = vmatpush3.bf16.msra.mxu1 %v11442_v23  ;;  %6789 = vmatprep.subr.bf16.mxu0 %v11446_v40 }
 0x37d   : > { %v3104_v61 = vadd.f32 %v2939_v16, %v2636_v18  ;;  %v4249_v7 = vadd.f32 %v4082_v19, %v3781_v54  ;;  %v7319_v11 = vunpack.i.l.bf16 %v11668_v45  ;;  %v4246_v3 = vadd.f32 %v4079_v26, %v3778_v10  ;;  %6821 = vmatprep.subr.bf16.mxu1 %v11446_v40 }
 0x37e   : > { %v3613_v18 = vsel %vm1200_vm0, %v3610_v5, %v3612_v59  ;;  %v3615_v37 = vsel %vm1200_vm0, %v3612_v59, %v3614_v49  ;;  %v4080_v12 = vrot.slane %v3868_v53, 2  ;;  %v4412_v22 = vmax.f32 %v11682_v47, 0.0 }
 0x37f   : > { %v3312_v36 = vadd.f32 %v3232_v52, %v3104_v61  ;;  %v4336_v63 = vadd.f32 %v11639_v2, %v4249_v7  ;;  %v3779_v23 = vadd.f32 %v3613_v18, %v3311_v1  ;;  %v4410_v16 = vmax.f32 %v11731_v27, 0.0  ;;  %6791 = vmatpush3.bf16.msra.mxu0 %v11451_v39  ;;  %v11779_v61 = vld [vmem:[#allocation4 + $0x4] ss:$0 sm:$0xff] }
 0x380   : > { %v4333_v52 = vadd.f32 %v11639_v2, %v4246_v3  ;;  %v4081_v5 = vsel %vm1669_vm1, %v4078_v38, %v4080_v12  ;;  %v4083_v49 = vsel %vm1669_vm1, %v4080_v12, %v4082_v19  ;;  %v13024_v40 = vrot.slane %v11491_v42, 1  ;;  %6823 = vmatpush3.bf16.msra.mxu1 %v11451_v39  ;;  %6793 = vmatprep.subr.bf16.mxu0 %v11453_v50  ;;  %v11797_v3 = vld [vmem:[#allocation4 + $0x5] ss:$0 sm:$0xff] }
 0x381   : > { %v3780_v30 = vadd.f32 %v3615_v37, %v3312_v36  ;;  %v4416_v4 = vmax.f32 %v4336_v63, 0.0  ;;  %v4247_v34 = vadd.f32 %v4081_v5, %v3779_v23  ;;  %v4411_v27 = vmax.f32 %v11751_v9, 0.0  ;;  %6825 = vmatprep.subr.bf16.mxu1 %v11453_v50  ;;  %v11807_v37 = vpop.permute.xlu1 %7327 }
 0x382   : > { %v1331_v47 = vsel %vm1200_vm0, %v13024_v40, %v1330_v43  ;;  %v4413_v1 = vmax.f32 %v4333_v52, 0.0  ;;  %v11783_v38 = vmul.f32 %v11779_v61, %v13011_v55  ;;  %v13025_v9 = vrot.slane %v11676_v57, 2 }
 0x383   : > { %v4248_v54 = vadd.f32 %v4083_v49, %v3780_v30  ;;  %v1494_v19 = vadd.f32 %v1331_v47, %v11512_v20  ;;  %v4460_v10 = vmax.f32 %v4412_v22, %v4416_v4  ;;  %v4334_v59 = vadd.f32 %v11639_v2, %v4247_v34  ;;  %6795 = vmatpush3.bf16.msra.mxu0 %v11455_v48 }
 0x384   : > { %v13026_v53 = vrot.slane %v11504_v15, 2  ;;  %v13027_v7 = vmax.f32 %v11642_v8, 0.0  ;;  %v11801_v20 = vmul.f32 %v11797_v3, %v13011_v55  ;;  %v11805_v18 = vmul.f32 %v11779_v61, %v11472_v58  ;;  %6827 = vmatpush3.bf16.msra.mxu1 %v11455_v48  ;;  %6797 = vmatprep.subr.bf16.mxu0 %v11464_v24 }
 0x385   : > { %v4335_v39 = vadd.f32 %v11639_v2, %v4248_v54  ;;  %v4727_v12 = vrot.slane %v4460_v10, 1  ;;  %v4414_v22 = vmax.f32 %v4334_v59, 0.0  ;;  %v11811_v8 = vmul.f32 %v11797_v3, %v11472_v58  ;;  %6829 = vmatprep.subr.bf16.mxu1 %v11464_v24 }
 0x386   : > { %v1800_v26 = vsel %vm1669_vm1, %v13026_v53, %v13025_v9  ;;  %v4457_v36 = vmax.f32 %v13027_v7, %v4413_v1  ;;  %v2091_v30 = vmul.f32 %v11080_v21, %v13011_v55  ;;  %v2473_v52 = vrot.slane %v11783_v38, 1 }
 0x387   : > { %v1963_v50 = vadd.f32 %v1800_v26, %v1494_v19  ;;  %v4415_v63 = vmax.f32 %v4335_v39, 0.0  ;;  %v2475_v5 = vrot.slane %v11805_v18, 1  ;;  %v4747_v49 = vmax.f32 %v4460_v10, %v4727_v12  ;;  %6799 = vmatpush3.bf16.msra.mxu0 %v11466_v46 }
 0x388   : > { %v4483_v23 = vrot.slane %v4457_v36, 1  ;;  %v4458_v4 = vmax.f32 %v4410_v16, %v4414_v22  ;;  %v2941_v24 = vrot.slane %v11801_v20, 2  ;;  %v2943_v16 = vrot.slane %v11811_v8, 2  ;;  %6831 = vmatpush3.bf16.msra.mxu1 %v11466_v46  ;;  %v13030_v46 = vld [vmem:[#allocation29_spill] sm:$0xff]  ;;  %6801 = vmatprep.subr.bf16.mxu0 %v11468_v44  ;;  %v13032_v22 = vld [vmem:[#allocation27_spill] sm:$0xff] }
 0x389   : > { %v4459_v34 = vmax.f32 %v4411_v27, %v4415_v63  ;;  %v2171_v47 = vadd.f32 %v2091_v30, %v1963_v50  ;;  %v2476_v21 = vsel %vm1200_vm0, %v2473_v52, %v2475_v5  ;;  %4757 = vst.msk [vmem:[#allocation2 + $0x8c] sm:$0x1] %vm4505_vm2, %v4747_v49  ;;  %v13028_v27 = vld [vmem:[#allocation33_spill] sm:$0xff]  ;;  %v13029_v9 = vrot.slane %v11491_v42, 1  ;;  %v11851_v50 = vld [vmem:[#allocation4 + $0x3] ss:$0 sm:$0xff]  ;;  %6833 = vmatprep.subr.bf16.mxu1 %v11468_v44 }
 0x38a   : > { %v4503_v40 = vmax.f32 %v4457_v36, %v4483_v23  ;;  %v4567_v1 = vrot.slane %v4458_v4, 1  ;;  %v11839_v10 = vmul.f32 %v11779_v61, %v13028_v27  ;;  %v11843_v39 = vmul.f32 %v11797_v3, %v13028_v27  ;;  %v13034_v49 = vld [vmem:[#allocation23_spill] sm:$0xff] }
 0x38b   : > { %v4647_v19 = vrot.slane %v4459_v34, 1  ;;  %v2639_v59 = vadd.f32 %v2476_v21, %v2171_v47  ;;  %v13031_v53 = vrot.slane %v13030_v46, 1  ;;  %v11855_v12 = vmul.f32 %v11851_v50, %v13028_v27  ;;  %6803 = vmatpush3.bf16.msra.mxu0 %v11487_v29 }
 0x38c   : > { %4514 = vst.msk [vmem:[#allocation2 + $0x80] sm:$0x1] %vm4505_vm2, %v4503_v40  ;;  %v4587_v7 = vmax.f32 %v4458_v4, %v4567_v1  ;;  %v11861_v42 = vmul.f32 %v11155_v33, %v13028_v27  ;;  %v11865_v23 = vmul.f32 %v11250_v28, %v13028_v27  ;;  %v13033_v30 = vrot.slane %v11504_v15, 2  ;;  %6835 = vmatpush3.bf16.msra.mxu1 %v11487_v29 }
 0x38d   : > { %4525 = vst.msk [vmem:[#allocation2 + $0x7f] sm:$0x4] %vm4516_vm3, %v4503_v40  ;;  %v1329_v26 = vsel %vm1200_vm0, %v13031_v53, %v13029_v9  ;;  %v4667_v36 = vmax.f32 %v4459_v34, %v4647_v19  ;;  %v13035_v4 = vrot.slane %v13034_v49, 2  ;;  %v2944_v33 = vsel %vm1669_vm1, %v2941_v24, %v2943_v16  ;;  %v11894_v9 = vld [vmem:[#allocation4 + $0x6] ss:$0 sm:$0xff]  ;;  %6805 = vmatprep.subr.bf16.mxu0 %v11498_v31 }
 0x38e   : > { %4536 = vst.msk [vmem:[#allocation2 + $0x7e] sm:$0x10] %vm4527_vm4, %v4503_v40  ;;  %v1493_v63 = vadd.f32 %v1329_v26, %v13032_v22  ;;  %4617 = vst.msk [vmem:[#allocation2 + $0x82] sm:$0x10] %vm4527_vm4, %v4587_v7  ;;  %v2258_v15 = vmul.f32 %v11779_v61, %v13018_v32  ;;  %v2726_v47 = vmul.f32 %v11797_v3, %v13018_v32  ;;  %v2480_v21 = vrot.slane %v11839_v10, 1 }
 0x38f   : > { %4547 = vst.msk [vmem:[#allocation2 + $0x7d] sm:$0x40] %vm4538_vm5, %v4503_v40  ;;  %v1798_v34 = vsel %vm1669_vm1, %v13035_v4, %v13033_v30  ;;  %v2090_v40 = vmul.f32 %v11851_v50, %v13018_v32  ;;  %4627 = vst.msk [vmem:[#allocation2 + $0x81] sm:$0x40] %vm4538_vm5, %v4587_v7  ;;  %v2948_v1 = vrot.slane %v11843_v39, 2  ;;  %v3107_v19 = vadd.f32 %v2944_v33, %v2639_v59 }
 0x390   : > { %4597 = vst.msk [vmem:[#allocation2 + $0x84] sm:$0x1] %vm4505_vm2, %v4587_v7  ;;  %4677 = vst.msk [vmem:[#allocation2 + $0x88] sm:$0x1] %vm4505_vm2, %v4667_v36  ;;  %v1962_v44 = vadd.f32 %v1798_v34, %v1493_v63  ;;  %v3235_v46 = vmul.f32 %v11894_v9, %v13028_v27  ;;  %v2472_v26 = vrot.slane %v2258_v15, 1  ;;  %6837 = vmatprep.subr.bf16.mxu1 %v11498_v31  ;;  %v3617_v59 = vrot.slane %v11861_v42, 1 }
 0x391   : > { %4607 = vst.msk [vmem:[#allocation2 + $0x83] sm:$0x4] %vm4516_vm3, %v4587_v7  ;;  %4687 = vst.msk [vmem:[#allocation2 + $0x87] sm:$0x4] %vm4516_vm3, %v4667_v36  ;;  %v2940_v7 = vrot.slane %v2726_v47, 2  ;;  %v4085_v63 = vrot.slane %v11865_v23, 2  ;;  %v11909_v27 = vmul.f32 %v11779_v61, %v11550_v6  ;;  %v3870_v29 = vmul.f32 %v11250_v28, %v11550_v6  ;;  %6807 = vmatpush3.bf16.msra.mxu0 %v11500_v41 }
 0x392   : > { %4697 = vst.msk [vmem:[#allocation2 + $0x86] sm:$0x10] %vm4527_vm4, %v4667_v36  ;;  %v2170_v53 = vadd.f32 %v2090_v40, %v1962_v44  ;;  %v2474_v30 = vsel %vm1200_vm0, %v2472_v26, %v2473_v52  ;;  %v11918_v49 = vmul.f32 %v11797_v3, %v11550_v6  ;;  %v13036_v31 = vrot.slane %v11608_v51, 1  ;;  %v11923_v34 = vld [vmem:[#allocation4 + $0x2] ss:$0 sm:$0xff]  ;;  %6839 = vmatpush3.bf16.msra.mxu1 %v11500_v41 }
 0x393   : > { %4707 = vst.msk [vmem:[#allocation2 + $0x85] sm:$0x40] %vm4538_vm5, %v4667_v36  ;;  %v11899_v36 = vld [vmem:[#allocation4 + $0x7] ss:$0 sm:$0xff]  ;;  %v1584_v40 = vmul.f32 %v11923_v34, %v11234_v62  ;;  %v3234_v38 = vmul.f32 %v11894_v9, %v11550_v6  ;;  %v2261_v44 = vmul.f32 %v11779_v61, %v13020_v13  ;;  %v3315_v15 = vadd.f32 %v3235_v46, %v3107_v19 }
 0x394   : > { %v3402_v22 = vmul.f32 %v11899_v36, %v11550_v6  ;;  %v1496_v4 = vadd.f32 %v13036_v31, %v11593_v56  ;;  %v2638_v33 = vadd.f32 %v2474_v30, %v2170_v53  ;;  %v2942_v56 = vsel %vm1669_vm1, %v2940_v7, %v2941_v24  ;;  %v13037_v31 = vld [vmem:[#allocation34_spill] sm:$0xff] }
 0x395   : > { %v1801_v47 = vrot.slane %v1584_v40, 2  ;;  %v2093_v62 = vmul.f32 %v11851_v50, %v13020_v13  ;;  %v11940_v53 = vmul.f32 %v11851_v50, %v11550_v6  ;;  %v2729_v30 = vmul.f32 %v11797_v3, %v13020_v13 }
 0x396   : > { %v3616_v52 = vrot.slane %v3402_v22, 1  ;;  %v3106_v26 = vadd.f32 %v2942_v56, %v2638_v33  ;;  %v4084_v22 = vrot.slane %v3870_v29, 2  ;;  %v2479_v41 = vrot.slane %v11909_v27, 1 }
 0x397   : > { %v2947_v19 = vrot.slane %v11918_v49, 2  ;;  %v1965_v20 = vadd.f32 %v1801_v47, %v1496_v4  ;;  %v2477_v46 = vrot.slane %v2261_v44, 1  ;;  %v11951_v40 = vmul.f32 %v11779_v61, %v13037_v31 }
 0x398   : > { %v3314_v24 = vadd.f32 %v3234_v38, %v3106_v26  ;;  %v3618_v7 = vsel %vm1200_vm0, %v3616_v52, %v3617_v59  ;;  %v11955_v6 = vmul.f32 %v11797_v3, %v13037_v31  ;;  %v11959_v33 = vmul.f32 %v11851_v50, %v13037_v31 }
 0x399   : > { %v2173_v29 = vadd.f32 %v2093_v62, %v1965_v20  ;;  %v3405_v4 = vmul.f32 %v11899_v36, %v13037_v31  ;;  %v13038_v38 = vrot.slane %v11608_v51, 1  ;;  %v4086_v44 = vsel %vm1669_vm1, %v4084_v22, %v4085_v63 }
 0x39a   : > { %v2945_v56 = vrot.slane %v2729_v30, 2  ;;  %v11973_v62 = vmul.f32 %v11250_v28, %v13037_v31  ;;  %v3782_v20 = vadd.f32 %v3618_v7, %v3314_v24  ;;  %v13039_v48 = vrot.slane %v11676_v57, 2  ;;  %v11994_v7 = vld [vmem:[#allocation4 + $0x8] ss:$0 sm:$0xff] }
 0x39b   : > { %v1333_v52 = vsel %vm1200_vm0, %v1330_v43, %v13038_v38  ;;  %v2641_v54 = vadd.f32 %v2477_v46, %v2173_v29  ;;  %v2092_v25 = vmul.f32 %v11851_v50, %v11472_v58  ;;  %v2484_v43 = vrot.slane %v11951_v40, 1 }
 0x39c   : > { %v1495_v26 = vadd.f32 %v1333_v52, %v11647_v17  ;;  %v1802_v51 = vsel %vm1669_vm1, %v13039_v48, %v1801_v47  ;;  %v2952_v22 = vrot.slane %v11955_v6, 2  ;;  %v3237_v30 = vmul.f32 %v11894_v9, %v13037_v31 }
 0x39d   : > { %v3621_v38 = vrot.slane %v3405_v4, 1  ;;  %v2478_v17 = vsel %vm1200_vm0, %v2475_v5, %v2477_v46  ;;  %v11990_v57 = vmul.f32 %v11779_v61, %v11610_v14  ;;  %v3404_v48 = vmul.f32 %v11899_v36, %v11610_v14 }
 0x39e   : > { %v1964_v28 = vadd.f32 %v1802_v51, %v1495_v26  ;;  %v3109_v47 = vadd.f32 %v2945_v56, %v2641_v54  ;;  %v3872_v31 = vmul.f32 %v11994_v7, %v11610_v14  ;;  %v12000_v29 = vmul.f32 %v11276_v60, %v13011_v55 }
 0x39f   : > { %v12002_v18 = vadd.f32 %v4086_v44, %v3782_v20  ;;  %v4089_v5 = vrot.slane %v11973_v62, 2  ;;  %v2946_v61 = vsel %vm1669_vm1, %v2943_v16, %v2945_v56  ;;  %v3619_v46 = vrot.slane %v3404_v48, 1 }
 0x3a0   : > { %v2172_v24 = vadd.f32 %v2092_v25, %v1964_v28  ;;  %v3317_v54 = vadd.f32 %v3237_v30, %v3109_v47  ;;  %v3236_v52 = vmul.f32 %v11894_v9, %v11610_v14  ;;  %v4087_v26 = vrot.slane %v3872_v31, 2  ;;  %v12028_v30 = vld [vmem:[#allocation4] ss:$0 sm:$0xff] }
 0x3a1   : > { %v12012_v51 = vmul.f32 %v11851_v50, %v11610_v14  ;;  %v2482_v60 = vrot.slane %v11990_v57, 1  ;;  %v12017_v44 = vmul.f32 %v11797_v3, %v11610_v14  ;;  %v3620_v8 = vsel %vm1200_vm0, %v3617_v59, %v3619_v46  ;;  %v7404_v3 = vld [vmem:[#allocation4 + $0x1] ss:$0 sm:$0xff] }
 0x3a2   : > { %v2640_v4 = vadd.f32 %v2478_v17, %v2172_v24  ;;  %v3783_v56 = vadd.f32 %v3620_v8, %v3315_v15  ;;  %v1335_v20 = vrot.slane %v12000_v29, 1  ;;  %v12025_v25 = vmul.f32 %v11923_v34, %v13011_v55 }
 0x3a3   : > { %v3622_v50 = vsel %vm1200_vm0, %v3619_v46, %v3621_v38  ;;  %v948_v14 = vmul.f32 %v12028_v30, %v13018_v32  ;;  %v1116_v42 = vmul.f32 %v7404_v3, %v13018_v32  ;;  %v1585_v59 = vmul.f32 %v11923_v34, %v13018_v32 }
 0x3a4   : > { %v3108_v16 = vadd.f32 %v2946_v61, %v2640_v4  ;;  %v12035_v15 = vadd.f32 %v3621_v38, %v3317_v54  ;;  %v4088_v17 = vsel %vm1669_vm1, %v4085_v63, %v4087_v26  ;;  %v4090_v48 = vsel %vm1669_vm1, %v4087_v26, %v4089_v5  ;;  %v4765_v38 = vld [vmem:[#allocation2 + $0x18] sm:$0xf]  ;;  %v4907_v61 = vld [vmem:[#allocation2 + $0x28] sm:$0xf] }
 0x3a5   : > { %v12043_v47 = vadd.f32 %v4088_v17, %v3783_v56  ;;  %v1334_v24 = vrot.slane %v1116_v42, 1  ;;  %v1803_v31 = vrot.slane %v1585_v59, 2  ;;  %v2481_v32 = vsel %vm1200_vm0, %v2479_v41, %v2480_v21 }
 0x3a6   : > { %v3316_v28 = vadd.f32 %v3236_v52, %v3108_v16  ;;  %v12052_v23 = vmul.f32 %v11899_v36, %v11735_v35  ;;  %v4788_v63 = vsel %vm4784_vm6, %v4765_v38, %v7319_v11  ;;  %v13040_v54 = vunpack.i.h.bf16 %v11668_v45  ;;  %v4760_v52 = vld [vmem:[#allocation2 + $0x8] sm:$0xf]  ;;  %v13041_v45 = vld [vmem:[#allocation24_spill] sm:$0xff] }
 0x3a7   : > { %v1804_v27 = vrot.slane %v12025_v25, 2  ;;  %v1336_v41 = vsel %vm1200_vm0, %v1334_v24, %v1335_v20  ;;  %v2949_v26 = vsel %vm1669_vm1, %v2947_v19, %v2948_v1  ;;  %4897 = vmatprep.mubr.f32.mxu0 %v4788_v63  ;;  %v13042_v11 = vunpack.i.l.bf16 %v13041_v45  ;;  %v5097_v24 = vpop.permute.xlu0 %5096 }
 0x3a8   : > { %v3784_v46 = vadd.f32 %v3622_v50, %v3316_v28  ;;  %v12060_v4 = vsel %vm4784_vm6, %v4907_v61, %v13040_v54  ;;  %v2950_v16 = vrot.slane %v12017_v44, 2  ;;  %v1497_v56 = vadd.f32 %v1336_v41, %v948_v14  ;;  %v4998_v54 = vld [vmem:[#allocation2 + $0x30] sm:$0xff] }
 0x3a9   : > { %4989 = vmatprep.mubr.f32.mxu1 %v12060_v4  ;;  %v4786_v8 = vsel %vm4784_vm6, %v4760_v52, %v13042_v11  ;;  %v3238_v25 = vmul.f32 %v11894_v9, %v11735_v35  ;;  %v12079_v50 = vmul.f32 %v7404_v3, %v13020_v13  ;;  %v1805_v49 = vsel %vm1669_vm1, %v1803_v31, %v1804_v27 }
 0x3aa   : > { %4898 = vmatmul.mubr.f32.gmra.mrb[2].mxu0 %v4786_v8  ;;  %4990 = vmatmul.mubr.f32.gmra.mrb[2].mxu1 %v4788_v63  ;;  %v12084_v19 = vmul.f32 %v11923_v34, %v13020_v13  ;;  %v1118_v42 = vmul.f32 %v7404_v3, %v11472_v58  ;;  %v1587_v44 = vmul.f32 %v11923_v34, %v11472_v58  ;;  %v3623_v28 = vrot.slane %v12052_v23, 1  ;;  %v5090_v23 = vld [vmem:[#allocation2 + $0x40] sm:$0xff] }
 0x3ab   : > { %v4252_v14 = vadd.f32 %v4090_v48, %v3784_v46  ;;  %v1966_v59 = vadd.f32 %v1805_v49, %v1497_v56  ;;  %v3874_v17 = vmul.f32 %v11994_v7, %v11735_v35  ;;  %v1339_v38 = vrot.slane %v12079_v50, 1  ;;  %v3144_v49 = vpop.permute.xlu0 %3143 }
 0x3ac   : > { %v950_v31 = vmul.f32 %v12028_v30, %v11472_v58  ;;  %v1337_v61 = vrot.slane %v1118_v42, 1  ;;  %v1806_v63 = vrot.slane %v1587_v44, 2  ;;  %v12098_v34 = vmul.f32 %v11899_v36, %v11763_v0 }
 0x3ad   : > { %v2174_v3 = vadd.f32 %v11940_v53, %v1966_v59  ;;  %v12102_v48 = vmul.f32 %v11994_v7, %v11763_v0  ;;  %v13043_v35 = vunpack.i.h.bf16 %v13041_v45  ;;  %v1808_v58 = vrot.slane %v12084_v19, 2  ;;  %v13044_v45 = vld [vmem:[#allocation19_spill] sm:$0xff] }
 0x3ae   : > { %v1340_v52 = vsel %vm1200_vm0, %v1337_v61, %v1339_v38  ;;  %v2485_v53 = vsel %vm1200_vm0, %v2482_v60, %v2484_v43  ;;  %v5102_v41 = vsel %vm4784_vm6, %v5090_v23, %v5097_v24  ;;  %v4091_v8 = vrot.slane %v3874_v17, 2 }
 0x3af   : > { %v5010_v46 = vsel %vm4784_vm6, %v4998_v54, %v13043_v35  ;;  %v2642_v11 = vadd.f32 %v2481_v32, %v2174_v3  ;;  %v1499_v56 = vadd.f32 %v1340_v52, %v950_v31  ;;  %5168 = vmatprep.mubr.f32.mxu1 %v5102_v41  ;;  %v949_v50 = vmul.f32 %v12028_v30, %v13011_v55  ;;  %v3154_v39 = vpop.permute.xlu0 %3153  ;;  %v5260_v41 = vld [vmem:[#allocation8 + $0x80] sm:$0xff] }
 0x3b0   : > { %5076 = vmatprep.mubr.f32.mxu0 %v5010_v46  ;;  %v1809_v19 = vsel %vm1669_vm1, %v1806_v63, %v1808_v58  ;;  %v2953_v42 = vsel %vm1669_vm1, %v2950_v16, %v2952_v22  ;;  %v3240_v44 = vmul.f32 %v11894_v9, %v11763_v0  ;;  %5169 = vmatmul.mubr.f32.vlgmr.msra.gmra.mrb[4].mxu1 %v5010_v46  ;;  %v3626_v17 = vrot.slane %v12098_v34, 1 }
 0x3b1   : > { %5077 = vmatmul.mubr.f32.vlgmr.msra.gmra.mrb[4].mxu0 %v13044_v45  ;;  %v1338_v32 = vsel %vm1200_vm0, %v1335_v20, %v1337_v61  ;;  %v1968_v59 = vadd.f32 %v1809_v19, %v1499_v56  ;;  %v4094_v55 = vrot.slane %v12102_v48, 2  ;;  %v1807_v31 = vsel %vm1669_vm1, %v1804_v27, %v1806_v63  ;;  %v5249_v48 = vld [vmem:[#allocation8 + $0x28] sm:$0xff] }
 0x3b2   : > { %v1498_v24 = vadd.f32 %v1338_v32, %v949_v50  ;;  %v2483_v54 = vsel %vm1200_vm0, %v2480_v21, %v2482_v60  ;;  %v3407_v0 = vmul.f32 %v11899_v36, %v3144_v49  ;;  %v3875_v29 = vmul.f32 %v11994_v7, %v3144_v49  ;;  %v5261_v50 = vld [vmem:[#allocation8 + $0x88] sm:$0xff] }
 0x3b3   : > { %v3110_v3 = vadd.f32 %v2949_v26, %v2642_v11  ;;  %v2176_v20 = vadd.f32 %v12012_v51, %v1968_v59  ;;  %v2951_v34 = vsel %vm1669_vm1, %v2948_v1, %v2950_v16  ;;  %v12143_v27 = vadd.f32 %v11639_v2, %v12002_v18 }
 0x3b4   : > { %v1967_v61 = vadd.f32 %v1807_v31, %v1498_v24  ;;  %v12147_v10 = vadd.f32 %v11639_v2, %v12043_v47  ;;  %v3624_v21 = vrot.slane %v3407_v0, 1  ;;  %v4092_v57 = vrot.slane %v3875_v29, 2  ;;  %v5247_v0 = vld [vmem:[#allocation8 + $0x18] sm:$0xff] }
 0x3b5   : > { %v3318_v60 = vadd.f32 %v3238_v25, %v3110_v3  ;;  %v2644_v63 = vadd.f32 %v2485_v53, %v2176_v20  ;;  %v951_v51 = vmul.f32 %v12028_v30, %v13020_v13  ;;  %v3239_v1 = vmul.f32 %v11894_v9, %v3144_v49  ;;  %v5091_v53 = vld [vmem:[#allocation2 + $0x48] sm:$0xf]  ;;  %v5245_v49 = vld [vmem:[#allocation8 + $0x8] sm:$0xff] }
 0x3b6   : > { %v2175_v26 = vadd.f32 %v11855_v12, %v1967_v61  ;;  %v3625_v16 = vsel %vm1200_vm0, %v3623_v28, %v3624_v21  ;;  %v3627_v18 = vsel %vm1200_vm0, %v3624_v21, %v3626_v17  ;;  %v12156_v35 = vadd.f32 %v11639_v2, %v4252_v14  ;;  %v4999_v28 = vld [vmem:[#allocation2 + $0x38] sm:$0xf]  ;;  %v5264_v21 = vld [vmem:[#allocation8 + $0xa0] sm:$0xff] }
 0x3b7   : > { %v3112_v47 = vadd.f32 %v2953_v42, %v2644_v63  ;;  %v3786_v23 = vadd.f32 %v3625_v16, %v3318_v60  ;;  %v1500_v25 = vadd.f32 %v1339_v38, %v951_v51  ;;  %v4093_v52 = vsel %vm1669_vm1, %v4091_v8, %v4092_v57  ;;  %v5244_v38 = vld [vmem:[#allocation8] sm:$0xff] }
 0x3b8   : > { %v2643_v46 = vadd.f32 %v2483_v54, %v2175_v26  ;;  %v4095_v13 = vsel %vm1669_vm1, %v4092_v57, %v4094_v55  ;;  %v3241_v12 = vmul.f32 %v11894_v9, %v3154_v39  ;;  %v12164_v30 = vmul.f32 %v11899_v36, %v3154_v39  ;;  %v5246_v54 = vld [vmem:[#allocation8 + $0x10] sm:$0xff]  ;;  %v5265_v57 = vld [vmem:[#allocation8 + $0xa8] sm:$0xff]  ;;  %v5248_v51 = vld [vmem:[#allocation8 + $0x20] sm:$0xff] }
 0x3b9   : > { %v3320_v14 = vadd.f32 %v3240_v44, %v3112_v47  ;;  %v4254_v56 = vadd.f32 %v4093_v52, %v3786_v23  ;;  %v1969_v45 = vadd.f32 %v1808_v58, %v1500_v25  ;;  %v12168_v19 = vmul.f32 %v11994_v7, %v3154_v39  ;;  %v5262_v44 = vld [vmem:[#allocation8 + $0x90] sm:$0xff]  ;;  %v5263_v7 = vld [vmem:[#allocation8 + $0x98] sm:$0xff] }
 0x3ba   : > { %v3111_v11 = vadd.f32 %v2951_v34, %v2643_v46  ;;  %v3628_v8 = vrot.slane %v12164_v30, 1  ;;  %v13045_v9 = vunpack.i.l.bf16 %v11807_v37  ;;  %v13046_v42 = vunpack.i.h.bf16 %v11807_v37  ;;  %v5267_v47 = vld [vmem:[#allocation8 + $0xb8] sm:$0xff] }
 0x3bb   : > { %v4417_v59 = vmax.f32 %v12143_v27, 0.0  ;;  %v4341_v24 = vadd.f32 %v11639_v2, %v4254_v56  ;;  %v2177_v31 = vadd.f32 %v11959_v33, %v1969_v45  ;;  %v4096_v3 = vrot.slane %v12168_v19, 2  ;;  %v5251_v30 = vld [vmem:[#allocation8 + $0x38] sm:$0xff] }
 0x3bc   : > { %v5011_v36 = vsel %vm4784_vm6, %v4999_v28, %v13045_v9  ;;  %v5103_v32 = vsel %vm4784_vm6, %v5091_v53, %v13046_v42  ;;  %v3319_v58 = vadd.f32 %v3239_v1, %v3111_v11  ;;  %v3629_v29 = vsel %vm1200_vm0, %v3626_v17, %v3628_v8 }
 0x3bd   : > { %5081 = vmatprep.mubr.f32.mxu0 %v5011_v36  ;;  %5173 = vmatprep.mubr.f32.mxu1 %v5103_v32  ;;  %v12182_v37 = vpack.c.bf16 %v5261_v50, %v5260_v41  ;;  %v12184_v20 = vpack.c.bf16 %v5245_v49, %v5244_v38  ;;  %v4421_v34 = vmax.f32 %v4341_v24, 0.0  ;;  %v2645_v33 = vadd.f32 %v2484_v43, %v2177_v31  ;;  %v5268_v41 = vld [vmem:[#allocation8 + $0xc0] sm:$0xff]  ;;  %v5271_v32 = vld [vmem:[#allocation8 + $0xd8] sm:$0xff]  ;;  %v5254_v24 = vld [vmem:[#allocation8 + $0x50] sm:$0xff] }
 0x3be   : > { %5082 = vmatmul.mubr.f32.gmra.mrb[6].mxu0 %v12060_v4  ;;  %5174 = vmatmul.mubr.f32.gmra.mrb[6].mxu1 %v5011_v36  ;;  %v3787_v61 = vadd.f32 %v3627_v18, %v3319_v58  ;;  %v3788_v27 = vadd.f32 %v3629_v29, %v3320_v14  ;;  %v4097_v17 = vsel %vm1669_vm1, %v4094_v55, %v4096_v3  ;;  %v5266_v18 = vld [vmem:[#allocation8 + $0xb0] sm:$0xff]  ;;  %v4418_v46 = vmax.f32 %v12147_v10, 0.0  ;;  %v5269_v14 = vld [vmem:[#allocation8 + $0xc8] sm:$0xff]  ;;  %v5252_v49 = vld [vmem:[#allocation8 + $0x40] sm:$0xff] }
 0x3bf   : > { %6841 = vmatprep.subr.bf16.mxu0 %v12182_v37  ;;  %6873 = vmatprep.subr.bf16.mxu1 %v12182_v37  ;;  %v12193_v4 = vpack.c.bf16 %v5263_v7, %v5262_v44  ;;  %v12195_v60 = vpack.c.bf16 %v5247_v0, %v5246_v54  ;;  %v4461_v26 = vmax.f32 %v4417_v59, %v4421_v34  ;;  %v4419_v62 = vmax.f32 %v12156_v35, 0.0  ;;  %v5255_v31 = vld [vmem:[#allocation8 + $0x58] sm:$0xff]  ;;  %v5272_v54 = vld [vmem:[#allocation8 + $0xe0] sm:$0xff]  ;;  %v5273_v0 = vld [vmem:[#allocation8 + $0xe8] sm:$0xff] }
 0x3c0   : > { %v4255_v63 = vadd.f32 %v4095_v13, %v3787_v61  ;;  %v3113_v40 = vadd.f32 %v2952_v22, %v2645_v33  ;;  %v4256_v43 = vadd.f32 %v4097_v17, %v3788_v27  ;;  %6843 = vmatpush3.bf16.msra.mxu0 %v12184_v20  ;;  %v4253_v55 = vadd.f32 %v4089_v5, %v12035_v15  ;;  %v5256_v34 = vld [vmem:[#allocation8 + $0x60] sm:$0xff]  ;;  %v5257_v33 = vld [vmem:[#allocation8 + $0x68] sm:$0xff]  ;;  %v5274_v27 = vld [vmem:[#allocation8 + $0xf0] sm:$0xff] }
 0x3c1   : > { %6875 = vmatpush3.bf16.msra.mxu1 %v12184_v20  ;;  %6845 = vmatprep.subr.bf16.mxu0 %v12193_v4  ;;  %v12205_v39 = vpack.c.bf16 %v5265_v57, %v5264_v21  ;;  %v4484_v16 = vrot.slane %v4461_v26, 1  ;;  %v12212_v5 = vpack.c.bf16 %v5249_v48, %v5248_v51  ;;  %v12217_v13 = vpack.c.bf16 %v5267_v47, %v5266_v18  ;;  %v5275_v21 = vld [vmem:[#allocation8 + $0xf8] sm:$0xff] }
 0x3c2   : > { %v4342_v1 = vadd.f32 %v11639_v2, %v4255_v63  ;;  %v3321_v6 = vadd.f32 %v3241_v12, %v3113_v40  ;;  %v4343_v22 = vadd.f32 %v11639_v2, %v4256_v43  ;;  %6877 = vmatprep.subr.bf16.mxu1 %v12193_v4  ;;  %v5250_v12 = vld [vmem:[#allocation8 + $0x30] sm:$0xff]  ;;  %v4340_v10 = vadd.f32 %v11639_v2, %v4253_v55  ;;  %v5259_v51 = vld [vmem:[#allocation8 + $0x78] sm:$0xff] }
 0x3c3   : > { %v4504_v23 = vmax.f32 %v4461_v26, %v4484_v16  ;;  %v12227_v50 = vpack.c.bf16 %v5251_v30, %v5250_v12  ;;  %v12231_v38 = vpack.c.bf16 %v5269_v14, %v5268_v41  ;;  %v12255_v61 = vpack.c.bf16 %v5273_v0, %v5272_v54  ;;  %v5455_v57 = vld [vmem:[#allocation2 + $0x81] sm:$0xff]  ;;  %v5456_v55 = vld [vmem:[#allocation2 + $0x89] sm:$0xf]  ;;  %v5215_v12 = vld [vmem:[#allocation2 + $0x50] sm:$0xff] }
 0x3c4   : > { %v4422_v15 = vmax.f32 %v4342_v1, 0.0  ;;  %v3789_v25 = vadd.f32 %v3628_v8, %v3321_v6  ;;  %v4423_v52 = vmax.f32 %v4343_v22, 0.0  ;;  %6847 = vmatpush3.bf16.msra.mxu0 %v12195_v60  ;;  %v5253_v8 = vld [vmem:[#allocation8 + $0x48] sm:$0xff]  ;;  %v4420_v9 = vmax.f32 %v4340_v10, 0.0  ;;  %v5258_v43 = vld [vmem:[#allocation8 + $0x70] sm:$0xff] }
 0x3c5   : > { %6879 = vmatpush3.bf16.msra.mxu1 %v12195_v60  ;;  %6849 = vmatprep.subr.bf16.mxu0 %v12205_v39  ;;  %4515 = vst.msk [vmem:[#allocation2 + $0x90] sm:$0x1] %vm4505_vm2, %v4504_v23  ;;  %v12243_v59 = vpack.c.bf16 %v5253_v8, %v5252_v49  ;;  %v12260_v26 = vpack.c.bf16 %v5257_v33, %v5256_v34  ;;  %v5221_v10 = vld [vmem:[#allocation2 + $0x68] sm:$0xf]  ;;  %v5362_v41 = vld [vmem:[#allocation2 + $0x78] sm:$0xf] }
 0x3c6   : > { %v4462_v28 = vmax.f32 %v4418_v46, %v4422_v15  ;;  %4526 = vst.msk [vmem:[#allocation2 + $0x8f] sm:$0x4] %vm4516_vm3, %v4504_v23  ;;  %v4257_v35 = vadd.f32 %v4096_v3, %v3789_v25  ;;  %v4463_v53 = vmax.f32 %v4419_v62, %v4423_v52  ;;  %6881 = vmatprep.subr.bf16.mxu1 %v12205_v39  ;;  %v7338_v6 = vpop.permute.xlu1 %7337  ;;  %v5220_v15 = vld [vmem:[#allocation2 + $0x60] sm:$0xff]  ;;  %v5216_v14 = vld [vmem:[#allocation2 + $0x58] sm:$0xf] }
 0x3c7   : > { %4537 = vst.msk [vmem:[#allocation2 + $0x8e] sm:$0x10] %vm4527_vm4, %v4504_v23  ;;  %v12251_v3 = vpack.c.bf16 %v5255_v31, %v5254_v24  ;;  %v12264_v40 = vpack.c.bf16 %v5275_v21, %v5274_v27  ;;  %v12269_v48 = vpack.c.bf16 %v5259_v51, %v5258_v43  ;;  %v7339_v22 = vunpack.i.l.bf16 %v7338_v6  ;;  %v5453_v8 = vld [vmem:[#allocation2 + $0x80] sm:$0xff] }
 0x3c8   : > { %4548 = vst.msk [vmem:[#allocation2 + $0x8d] sm:$0x40] %vm4538_vm5, %v4504_v23  ;;  %v4568_v11 = vrot.slane %v4462_v28, 1  ;;  %v4344_v56 = vadd.f32 %v11639_v2, %v4257_v35  ;;  %v4648_v45 = vrot.slane %v4463_v53, 1  ;;  %6851 = vmatpush3.bf16.msra.mxu0 %v12212_v5  ;;  %v5270_v2 = vld [vmem:[#allocation8 + $0xd0] sm:$0xff]  ;;  %v7340_v47 = vunpack.i.h.bf16 %v7338_v6  ;;  %v5361_v23 = vld [vmem:[#allocation2 + $0x70] sm:$0xff] }
 0x3c9   : > { %6883 = vmatpush3.bf16.msra.mxu1 %v12212_v5  ;;  %6853 = vmatprep.subr.bf16.mxu0 %v12217_v13  ;;  %v12247_v58 = vpack.c.bf16 %v5271_v32, %v5270_v2  ;;  %v5689_v6 = vld [vmem:[#allocation11 + $0x78] sm:$0xff] }
 0x3ca   : > { %v4588_v19 = vmax.f32 %v4462_v28, %v4568_v11  ;;  %v4424_v36 = vmax.f32 %v4344_v56, 0.0  ;;  %v4668_v42 = vmax.f32 %v4463_v53, %v4648_v45  ;;  %6885 = vmatprep.subr.bf16.mxu1 %v12217_v13  ;;  %v5240_v28 = vsel %vm4784_vm6, %v5215_v12, %v7339_v22  ;;  %v5679_v45 = vld [vmem:[#allocation11 + $0x28] sm:$0xff] }
 0x3cc   : > { %4598 = vst.msk [vmem:[#allocation2 + $0x94] sm:$0x1] %vm4505_vm2, %v4588_v19  ;;  %v4464_v44 = vmax.f32 %v4420_v9, %v4424_v36  ;;  %4678 = vst.msk [vmem:[#allocation2 + $0x98] sm:$0x1] %vm4505_vm2, %v4668_v42  ;;  %6855 = vmatpush3.bf16.msra.mxu0 %v12227_v50 }
 0x3cd   : > { %4608 = vst.msk [vmem:[#allocation2 + $0x93] sm:$0x4] %vm4516_vm3, %v4588_v19  ;;  %4688 = vst.msk [vmem:[#allocation2 + $0x97] sm:$0x4] %vm4516_vm3, %v4668_v42  ;;  %6887 = vmatpush3.bf16.msra.mxu1 %v12227_v50  ;;  %6857 = vmatprep.subr.bf16.mxu0 %v12231_v38 }
 0x3ce   : > { %4618 = vst.msk [vmem:[#allocation2 + $0x92] sm:$0x10] %vm4527_vm4, %v4588_v19  ;;  %4698 = vst.msk [vmem:[#allocation2 + $0x96] sm:$0x10] %vm4527_vm4, %v4668_v42  ;;  %v4728_v7 = vrot.slane %v4464_v44, 1  ;;  %6889 = vmatprep.subr.bf16.mxu1 %v12231_v38 }
 0x3cf   : > { %4628 = vst.msk [vmem:[#allocation2 + $0x91] sm:$0x40] %vm4538_vm5, %v4588_v19  ;;  %4708 = vst.msk [vmem:[#allocation2 + $0x95] sm:$0x40] %vm4538_vm5, %v4668_v42 }
 0x3d0   : > { %v4748_v29 = vmax.f32 %v4464_v44, %v4728_v7  ;;  %6859 = vmatpush3.bf16.msra.mxu0 %v12243_v59  ;;  %v5680_v7 = vld [vmem:[#allocation11 + $0x30] sm:$0xff] }
 0x3d1   : > { %6891 = vmatpush3.bf16.msra.mxu1 %v12243_v59  ;;  %6861 = vmatprep.subr.bf16.mxu0 %v12247_v58 }
 0x3d2   : > { %4758 = vst.msk [vmem:[#allocation2 + $0x9c] sm:$0x1] %vm4505_vm2, %v4748_v29  ;;  %6893 = vmatprep.subr.bf16.mxu1 %v12247_v58  ;;  %v5683_v29 = vld [vmem:[#allocation11 + $0x48] sm:$0xff] }
 0x3d4   : > { %6863 = vmatpush3.bf16.msra.mxu0 %v12251_v3 }
 0x3d5   : > { %6895 = vmatpush3.bf16.msra.mxu1 %v12251_v3  ;;  %6865 = vmatprep.subr.bf16.mxu0 %v12255_v61 }
 0x3d6   : > { %v5547_v17 = vld [vmem:[#allocation2 + $0x91] sm:$0xff]  ;;  %6897 = vmatprep.subr.bf16.mxu1 %v12255_v61 }
 0x3d7   : > { %v7346_v63 = vpack.i.bf16 %v5547_v17, %v5455_v57  ;;  %v5545_v19 = vld [vmem:[#allocation2 + $0x90] sm:$0xff]  ;;  %v5454_v57 = vld [vmem:[#allocation2 + $0x88] sm:$0xf]  ;;  %v5546_v17 = vld [vmem:[#allocation2 + $0x98] sm:$0xf] }
 0x3d8   : > { %6867 = vmatpush3.bf16.msra.mxu0 %v12260_v26 }
 0x3d9   : > { %7347 = vrot.lane.b32.xlu1 %v7346_v63, %s7609_s27  ;;  %v5548_v1 = vld [vmem:[#allocation2 + $0x99] sm:$0xf]  ;;  %6899 = vmatpush3.bf16.msra.mxu1 %v12260_v26 }
 0x3da   : > { %6869 = vmatprep.subr.bf16.mxu0 %v12264_v40  ;;  %v7351_v16 = vpack.i.bf16 %v5548_v1, %v5456_v55  ;;  %6901 = vmatprep.subr.bf16.mxu1 %v12264_v40  ;;  %v5682_v55 = vld [vmem:[#allocation11 + $0x40] sm:$0xff]  ;;  %v5684_v1 = vld [vmem:[#allocation11 + $0x50] sm:$0xff] }
 0x3db   : > { %v7333_v18 = vpop.permute.xlu0 %7332 }
 0x3dc   : > { %7352 = vrot.lane.b32.xlu0 %v7351_v16, %s7609_s27  ;;  %6871 = vmatpush3.bf16.msra.mxu0 %v12269_v48  ;;  %v7335_v46 = vunpack.i.h.bf16 %v7333_v18  ;;  %v7334_v62 = vunpack.i.l.bf16 %v7333_v18  ;;  %v5687_v16 = vld [vmem:[#allocation11 + $0x68] sm:$0xff]  ;;  %v6978_v18 = vpack.c.bf16 %v5684_v1, %v5682_v55  ;;  %v5722_v55 = vld [vmem:[#allocation11 + $0x180] sm:$0xff]  ;;  %v5724_v1 = vld [vmem:[#allocation11 + $0x190] sm:$0xff] }
 0x3dd   : > { %6903 = vmatpush3.bf16.msra.mxu1 %v12269_v48  ;;  %6905 = vmatprep.subr.bf16.mxu0 %v12182_v37 }
 0x3de   : > { %6937 = vmatprep.subr.bf16.mxu1 %v12182_v37  ;;  %v5242_v25 = vsel %vm4784_vm6, %v5220_v15, %v7334_v62  ;;  %v12281_v52 = vsel %vm4784_vm6, %v5361_v23, %v7335_v46  ;;  %v5243_v37 = vsel %vm4784_vm6, %v5221_v10, %v7340_v47  ;;  %v6980_v46 = vpack.c.bf16 %v5689_v6, %v5687_v16  ;;  %v5686_v62 = vld [vmem:[#allocation11 + $0x60] sm:$0xff]  ;;  %v5688_v15 = vld [vmem:[#allocation11 + $0x70] sm:$0xff]  ;;  %v5691_v23 = vld [vmem:[#allocation11 + $0x88] sm:$0xff] }
 0x3df   : > { %v7343_v30 = vpop.permute.xlu0 %7342  ;;  %5347 = vmatprep.mubr.f32.mxu0 %v5242_v25  ;;  %5439 = vmatprep.mubr.f32.mxu1 %v12281_v52  ;;  %v6982_v12 = vpack.c.bf16 %v5688_v15, %v5686_v62  ;;  %v5692_v10 = vld [vmem:[#allocation11 + $0x90] sm:$0xff]  ;;  %v5727_v16 = vld [vmem:[#allocation11 + $0x1a8] sm:$0xff]  ;;  %v5729_v6 = vld [vmem:[#allocation11 + $0x1b8] sm:$0xff] }
 0x3e0   : > { %v7345_v35 = vunpack.i.h.bf16 %v7343_v30  ;;  %v7344_v53 = vunpack.i.l.bf16 %v7343_v30  ;;  %5348 = vmatmul.mubr.f32.vlgmr.msra.gmra.mrb[8].mxu0 %v5240_v28  ;;  %5440 = vmatmul.mubr.f32.vlgmr.msra.gmra.mrb[8].mxu1 %v5242_v25  ;;  %v5693_v25 = vld [vmem:[#allocation11 + $0x98] sm:$0xff]  ;;  %v5690_v28 = vld [vmem:[#allocation11 + $0x80] sm:$0xff]  ;;  %v5728_v15 = vld [vmem:[#allocation11 + $0x1b0] sm:$0xff] }
 0x3e1   : > { %5352 = vmatprep.mubr.f32.mxu0 %v5243_v37  ;;  %6907 = vmatpush3.bf16.msra.mxu0 %v12184_v20  ;;  %v6984_v30 = vpack.c.bf16 %v5693_v25, %v5691_v23  ;;  %v5726_v62 = vld [vmem:[#allocation11 + $0x1a0] sm:$0xff] }
 0x3e2   : > { %v12288_v11 = vsel %vm4784_vm6, %v5362_v41, %v7344_v53  ;;  %v5241_v56 = vsel %vm4784_vm6, %v5216_v14, %v7345_v35  ;;  %6939 = vmatpush3.bf16.msra.mxu1 %v12184_v20  ;;  %6909 = vmatprep.subr.bf16.mxu0 %v12193_v4  ;;  %v5675_v20 = vld [vmem:[#allocation11 + $0x8] sm:$0xff]  ;;  %v5697_v53 = vld [vmem:[#allocation11 + $0xb8] sm:$0xff]  ;;  %v5694_v14 = vld [vmem:[#allocation11 + $0xa0] sm:$0xff] }
 0x3e3   : > { %5444 = vmatprep.mubr.f32.mxu1 %v12288_v11  ;;  %6941 = vmatprep.subr.bf16.mxu1 %v12193_v4  ;;  %v5677_v4 = vld [vmem:[#allocation11 + $0x18] sm:$0xff]  ;;  %v5695_v35 = vld [vmem:[#allocation11 + $0xa8] sm:$0xff] }
 0x3e4   : > { %5353 = vmatmul.mubr.f32.gmra.mrb[10].mxu0 %v5241_v56  ;;  %5445 = vmatmul.mubr.f32.gmra.mrb[10].mxu1 %v5243_v37  ;;  %v6986_v37 = vpack.c.bf16 %v5692_v10, %v5690_v28  ;;  %v6988_v41 = vpack.c.bf16 %v5697_v53, %v5695_v35  ;;  %v5699_v56 = vld [vmem:[#allocation11 + $0xc8] sm:$0xff]  ;;  %v7022_v10 = vpack.c.bf16 %v5728_v15, %v5726_v62 }
 0x3e5   : > { %6911 = vmatpush3.bf16.msra.mxu0 %v12195_v60 }
 0x3e6   : > { %6943 = vmatpush3.bf16.msra.mxu1 %v12195_v60  ;;  %6913 = vmatprep.subr.bf16.mxu0 %v12205_v39  ;;  %v6968_v60 = vpack.c.bf16 %v5677_v4, %v5675_v20  ;;  %v5701_v20 = vld [vmem:[#allocation11 + $0xd8] sm:$0xff] }
 0x3e7   : > { %6945 = vmatprep.subr.bf16.mxu1 %v12205_v39  ;;  %v5674_v39 = vld [vmem:[#allocation11] sm:$0xff] }
 0x3e9   : > { %6915 = vmatpush3.bf16.msra.mxu0 %v12212_v5 }
 0x3ea   : > { %6947 = vmatpush3.bf16.msra.mxu1 %v12212_v5  ;;  %6917 = vmatprep.subr.bf16.mxu0 %v12217_v13  ;;  %v5676_v5 = vld [vmem:[#allocation11 + $0x10] sm:$0xff] }
 0x3eb   : > { %6949 = vmatprep.subr.bf16.mxu1 %v12217_v13  ;;  %v6970_v9 = vpack.c.bf16 %v5676_v5, %v5674_v39  ;;  %v5698_v39 = vld [vmem:[#allocation11 + $0xc0] sm:$0xff]  ;;  %v5700_v5 = vld [vmem:[#allocation11 + $0xd0] sm:$0xff] }
 0x3ed   : > { %6919 = vmatpush3.bf16.msra.mxu0 %v12227_v50 }
 0x3ee   : > { %6951 = vmatpush3.bf16.msra.mxu1 %v12227_v50  ;;  %6921 = vmatprep.subr.bf16.mxu0 %v12231_v38  ;;  %v5681_v50 = vld [vmem:[#allocation11 + $0x38] sm:$0xff] }
 0x3ef   : > { %6953 = vmatprep.subr.bf16.mxu1 %v12231_v38  ;;  %v6972_v2 = vpack.c.bf16 %v5681_v50, %v5679_v45  ;;  %v5705_v45 = vld [vmem:[#allocation11 + $0xf8] sm:$0xff]  ;;  %v6994_v50 = vpack.c.bf16 %v5700_v5, %v5698_v39 }
 0x3f1   : > { %6923 = vmatpush3.bf16.msra.mxu0 %v12243_v59 }
 0x3f2   : > { %6955 = vmatpush3.bf16.msra.mxu1 %v12243_v59  ;;  %6925 = vmatprep.subr.bf16.mxu0 %v12247_v58  ;;  %v5678_v59 = vld [vmem:[#allocation11 + $0x20] sm:$0xff] }
 0x3f3   : > { %6957 = vmatprep.subr.bf16.mxu1 %v12247_v58  ;;  %v12323_v58 = vld [vmem:[#allocation9] ss:$0 sm:$0xff]  ;;  %v6974_v63 = vpack.c.bf16 %v5680_v7, %v5678_v59  ;;  %v5710_v7 = vld [vmem:[#allocation11 + $0x120] sm:$0xff] }
 0x3f4   : > { %v5713_v59 = vld [vmem:[#allocation11 + $0x138] sm:$0xff] }
 0x3f5   : > { %6927 = vmatpush3.bf16.msra.mxu0 %v12251_v3 }
 0x3f6   : > { %6959 = vmatpush3.bf16.msra.mxu1 %v12251_v3  ;;  %6929 = vmatprep.subr.bf16.mxu0 %v12255_v61  ;;  %v5685_v3 = vld [vmem:[#allocation11 + $0x58] sm:$0xff] }
 0x3f7   : > { %6961 = vmatprep.subr.bf16.mxu1 %v12255_v61 }
 0x3f9   : > { %6931 = vmatpush3.bf16.msra.mxu0 %v12260_v26 }
 0x3fa   : > { %6963 = vmatpush3.bf16.msra.mxu1 %v12260_v26  ;;  %6933 = vmatprep.subr.bf16.mxu0 %v12264_v40  ;;  %v6976_v26 = vpack.c.bf16 %v5685_v3, %v5683_v29  ;;  %v5717_v29 = vld [vmem:[#allocation11 + $0x158] sm:$0xff] }
 0x3fb   : > { %6965 = vmatprep.subr.bf16.mxu1 %v12264_v40 }
 0x3fd   : > { %6935 = vmatpush3.bf16.msra.mxu0 %v12269_v48 }
 0x3fe   : > { %6967 = vmatpush3.bf16.msra.mxu1 %v12269_v48  ;;  %6969 = vmatprep.subr.bf16.mxu0 %v6968_v60 }
 0x3ff   : > { %7097 = vmatprep.subr.bf16.mxu1 %v6968_v60  ;;  %v6992_v60 = vpack.c.bf16 %v5701_v20, %v5699_v56  ;;  %v5737_v56 = vld [vmem:[#allocation11 + $0x1f8] sm:$0xff] }
 0x444   : > { %v6440_v32 = vpop.f32.mrb[0].mxu0 }
 0x445   : > { %v6478_v44 = vpop.f32.mrb[0].mxu1  ;;  %v6441_v24 = vpop.f32.mrb[1].mxu0 }
 0x446   : > { %v6479_v31 = vpop.f32.mrb[1].mxu1  ;;  %v6442_v54 = vadd.f32 %v6441_v24, %v6440_v32  ;;  %v5708_v32 = vld [vmem:[#allocation11 + $0x110] sm:$0xff] }
 0x447   : > { %v6480_v0 = vadd.f32 %v6479_v31, %v6478_v44  ;;  %v5711_v44 = vld [vmem:[#allocation11 + $0x128] sm:$0xff] }
 0x448   : > { %v4895_v27 = vadd.f32 %v6442_v54, %v12323_v58  ;;  %v7004_v31 = vpack.c.bf16 %v5713_v59, %v5711_v44  ;;  %v5712_v54 = vld [vmem:[#allocation11 + $0x130] sm:$0xff] }
 0x449   : > { %v4987_v21 = vadd.f32 %v6480_v0, %v12323_v58  ;;  %v5715_v0 = vld [vmem:[#allocation11 + $0x148] sm:$0xff]  ;;  %v7006_v3 = vpack.c.bf16 %v5712_v54, %v5710_v7 }
 0x44a   : > { %v4903_v51 = vmax.f32 %v4895_v27, 0.0  ;;  %v5719_v27 = vld [vmem:[#allocation11 + $0x168] sm:$0xff] }
 0x44b   : > { %v7348_v13 = vpop.permute.xlu1 %7347  ;;  %v4995_v48 = vmax.f32 %v4987_v21, 0.0  ;;  %v5721_v21 = vld [vmem:[#allocation11 + $0x178] sm:$0xff] }
 0x44c   : > { %v7350_v38 = vunpack.i.h.bf16 %v7348_v13  ;;  %v7349_v49 = vunpack.i.l.bf16 %v7348_v13  ;;  %v5703_v13 = vld [vmem:[#allocation11 + $0xe8] sm:$0xff] }
 0x44d   : > { %v5181_v22 = vmax.f32 %v4903_v51, %v4995_v48 }
 0x44e   : > { %v5465_v36 = vsel %vm4784_vm6, %v5453_v8, %v7349_v49  ;;  %v5557_v42 = vsel %vm4784_vm6, %v5545_v19, %v7350_v38  ;;  %v7353_v61 = vpop.permute.xlu0 %7352  ;;  %v6996_v38 = vpack.c.bf16 %v5705_v45, %v5703_v13  ;;  %v5702_v49 = vld [vmem:[#allocation11 + $0xe0] sm:$0xff]  ;;  %v5704_v8 = vld [vmem:[#allocation11 + $0xf0] sm:$0xff]  ;;  %v5707_v19 = vld [vmem:[#allocation11 + $0x108] sm:$0xff] }
 0x44f   : > { %5531 = vmatprep.mubr.f32.mxu0 %v5465_v36  ;;  %5623 = vmatprep.mubr.f32.mxu1 %v5557_v42  ;;  %v7355_v34 = vunpack.i.h.bf16 %v7353_v61  ;;  %v7354_v33 = vunpack.i.l.bf16 %v7353_v61  ;;  %v5184_v47 = vrot.slane %v5181_v22, 1  ;;  %v7008_v61 = vpack.c.bf16 %v5717_v29, %v5715_v0 }
 0x450   : > { %5532 = vmatmul.mubr.f32.vlgmr.msra.gmra.mrb[12].mxu0 %v12281_v52  ;;  %5624 = vmatmul.mubr.f32.vlgmr.msra.gmra.mrb[12].mxu1 %v5465_v36  ;;  %v6998_v36 = vpack.c.bf16 %v5704_v8, %v5702_v49  ;;  %v5734_v8 = vld [vmem:[#allocation11 + $0x1e0] sm:$0xff] }
 0x451   : > { %6971 = vmatpush1.bf16.msra.mxu0 %v6970_v9  ;;  %7099 = vmatpush1.bf16.msra.mxu1 %v6970_v9  ;;  %v5466_v40 = vsel %vm4784_vm6, %v5454_v57, %v7354_v33  ;;  %v5558_v43 = vsel %vm4784_vm6, %v5546_v17, %v7355_v34  ;;  %v5186_v52 = vmax.f32 %v5181_v22, %v5184_v47  ;;  %v5709_v9 = vld [vmem:[#allocation11 + $0x118] sm:$0xff]  ;;  %v5714_v34 = vld [vmem:[#allocation11 + $0x140] sm:$0xff]  ;;  %v5716_v33 = vld [vmem:[#allocation11 + $0x150] sm:$0xff] }
 0x452   : > { %6973 = vmatprep.subr.bf16.mxu0 %v6972_v2  ;;  %7101 = vmatprep.subr.bf16.mxu1 %v6972_v2  ;;  %v7000_v42 = vpack.c.bf16 %v5709_v9, %v5707_v19  ;;  %v5706_v2 = vld [vmem:[#allocation11 + $0x100] sm:$0xff]  ;;  %v7010_v57 = vpack.c.bf16 %v5716_v33, %v5714_v34  ;;  %v7012_v17 = vpack.c.bf16 %v5721_v21, %v5719_v27  ;;  %v5736_v19 = vld [vmem:[#allocation11 + $0x1f0] sm:$0xff]  ;;  %v5743_v34 = vld [vmem:[#allocation11 + $0x228] sm:$0xff] }
 0x453   : > { %5536 = vmatprep.mubr.f32.mxu0 %v5466_v40  ;;  %5628 = vmatprep.mubr.f32.mxu1 %v5558_v43  ;;  %5187 = vst [vmem:[#allocation3] sm:$0x1] %v5186_v52  ;;  %5188 = vst [vmem:[#allocation3 - $0x1] sm:$0x4] %v5186_v52  ;;  %v7002_v24 = vpack.c.bf16 %v5708_v32, %v5706_v2  ;;  %v5725_v43 = vld [vmem:[#allocation11 + $0x198] sm:$0xff]  ;;  %v7018_v22 = vpack.c.bf16 %v5724_v1, %v5722_v55 }
 0x454   : > { %5537 = vmatmul.mubr.f32.gmra.mrb[14].mxu0 %v12288_v11  ;;  %5629 = vmatmul.mubr.f32.gmra.mrb[14].mxu1 %v5466_v40  ;;  %5189 = vst [vmem:[#allocation3 - $0x2] sm:$0x10] %v5186_v52  ;;  %5190 = vst [vmem:[#allocation3 - $0x3] sm:$0x40] %v5186_v52  ;;  %v5696_v11 = vld [vmem:[#allocation11 + $0xb0] sm:$0xff]  ;;  %v5723_v40 = vld [vmem:[#allocation11 + $0x188] sm:$0xff]  ;;  %v7030_v59 = vpack.c.bf16 %v5736_v19, %v5734_v8 }
 0x455   : > { %6975 = vmatpush1.bf16.msra.mxu0 %v6974_v63  ;;  %7103 = vmatpush1.bf16.msra.mxu1 %v6974_v63  ;;  %v6990_v4 = vpack.c.bf16 %v5696_v11, %v5694_v14  ;;  %v5718_v63 = vld [vmem:[#allocation11 + $0x160] sm:$0xff]  ;;  %v7016_v48 = vpack.c.bf16 %v5725_v43, %v5723_v40  ;;  %v5731_v52 = vld [vmem:[#allocation11 + $0x1c8] sm:$0xff]  ;;  %v5732_v14 = vld [vmem:[#allocation11 + $0x1d0] sm:$0xff] }
 0x456   : > { %6977 = vmatprep.subr.bf16.mxu0 %v6976_v26  ;;  %7105 = vmatprep.subr.bf16.mxu1 %v6976_v26  ;;  %v5720_v26 = vld [vmem:[#allocation11 + $0x170] sm:$0xff]  ;;  %v5735_v11 = vld [vmem:[#allocation11 + $0x1e8] sm:$0xff]  ;;  %v5745_v33 = vld [vmem:[#allocation11 + $0x238] sm:$0xff] }
 0x457   : > { %v7014_v51 = vpack.c.bf16 %v5720_v26, %v5718_v63  ;;  %v7028_v49 = vpack.c.bf16 %v5737_v56, %v5735_v11  ;;  %v5742_v40 = vld [vmem:[#allocation11 + $0x220] sm:$0xff]  ;;  %v12337_v1 = vpack.c.bf16 %v5745_v33, %v5743_v34  ;;  %v5757_v11 = vld [vmem:[#allocation11 + $0x298] sm:$0xff]  ;;  %v5763_v8 = vld [vmem:[#allocation11 + $0x2c8] sm:$0xff] }
 0x458   : > { %v5765_v19 = vld [vmem:[#allocation11 + $0x2d8] sm:$0xff]  ;;  %v5770_v34 = vld [vmem:[#allocation11 + $0x300] sm:$0xff]  ;;  %v5772_v33 = vld [vmem:[#allocation11 + $0x310] sm:$0xff] }
 0x459   : > { %6979 = vmatpush1.bf16.msra.mxu0 %v6978_v18  ;;  %7107 = vmatpush1.bf16.msra.mxu1 %v6978_v18 }
 0x45a   : > { %6981 = vmatprep.subr.bf16.mxu0 %v6980_v46  ;;  %7109 = vmatprep.subr.bf16.mxu1 %v6980_v46  ;;  %v7020_v46 = vpack.c.bf16 %v5729_v6, %v5727_v16  ;;  %v5744_v16 = vld [vmem:[#allocation11 + $0x230] sm:$0xff]  ;;  %v5747_v6 = vld [vmem:[#allocation11 + $0x248] sm:$0xff] }
 0x45d   : > { %6983 = vmatpush1.bf16.msra.mxu0 %v6982_v12  ;;  %7111 = vmatpush1.bf16.msra.mxu1 %v6982_v12  ;;  %v5733_v12 = vld [vmem:[#allocation11 + $0x1d8] sm:$0xff] }
 0x45e   : > { %6985 = vmatprep.subr.bf16.mxu0 %v6984_v30  ;;  %7113 = vmatprep.subr.bf16.mxu1 %v6984_v30 }
 0x461   : > { %6987 = vmatpush1.bf16.msra.mxu0 %v6986_v37  ;;  %7115 = vmatpush1.bf16.msra.mxu1 %v6986_v37  ;;  %v7024_v37 = vpack.c.bf16 %v5733_v12, %v5731_v52  ;;  %v5748_v52 = vld [vmem:[#allocation11 + $0x250] sm:$0xff]  ;;  %v5751_v12 = vld [vmem:[#allocation11 + $0x268] sm:$0xff] }
 0x462   : > { %6989 = vmatprep.subr.bf16.mxu0 %v6988_v41  ;;  %7117 = vmatprep.subr.bf16.mxu1 %v6988_v41  ;;  %v5730_v41 = vld [vmem:[#allocation11 + $0x1c0] sm:$0xff] }
 0x463   : > { %v7026_v13 = vpack.c.bf16 %v5732_v14, %v5730_v41  ;;  %v5752_v41 = vld [vmem:[#allocation11 + $0x270] sm:$0xff]  ;;  %v5755_v14 = vld [vmem:[#allocation11 + $0x288] sm:$0xff] }
 0x465   : > { %6991 = vmatpush1.bf16.msra.mxu0 %v6990_v4  ;;  %7119 = vmatpush1.bf16.msra.mxu1 %v6990_v4 }
 0x466   : > { %6993 = vmatprep.subr.bf16.mxu0 %v6992_v60  ;;  %7121 = vmatprep.subr.bf16.mxu1 %v6992_v60 }
 0x469   : > { %6995 = vmatpush1.bf16.msra.mxu0 %v6994_v50  ;;  %7123 = vmatpush1.bf16.msra.mxu1 %v6994_v50 }
 0x46a   : > { %6997 = vmatprep.subr.bf16.mxu0 %v6996_v38  ;;  %7125 = vmatprep.subr.bf16.mxu1 %v6996_v38 }
 0x46d   : > { %6999 = vmatpush1.bf16.msra.mxu0 %v6998_v36  ;;  %7127 = vmatpush1.bf16.msra.mxu1 %v6998_v36  ;;  %v5739_v36 = vld [vmem:[#allocation11 + $0x208] sm:$0xff] }
 0x46e   : > { %7001 = vmatprep.subr.bf16.mxu0 %v7000_v42  ;;  %7129 = vmatprep.subr.bf16.mxu1 %v7000_v42  ;;  %v5741_v42 = vld [vmem:[#allocation11 + $0x218] sm:$0xff] }
 0x46f   : > { %v7032_v7 = vpack.c.bf16 %v5741_v42, %v5739_v36  ;;  %v12369_v42 = vpack.c.bf16 %v5765_v19, %v5763_v8  ;;  %v5787_v8 = vld [vmem:[#allocation11 + $0x388] sm:$0xff]  ;;  %v5789_v19 = vld [vmem:[#allocation11 + $0x398] sm:$0xff] }
 0x471   : > { %7003 = vmatpush1.bf16.msra.mxu0 %v7002_v24  ;;  %7131 = vmatpush1.bf16.msra.mxu1 %v7002_v24 }
 0x472   : > { %7005 = vmatprep.subr.bf16.mxu0 %v7004_v31  ;;  %7133 = vmatprep.subr.bf16.mxu1 %v7004_v31 }
 0x475   : > { %7007 = vmatpush1.bf16.msra.mxu0 %v7006_v3  ;;  %7135 = vmatpush1.bf16.msra.mxu1 %v7006_v3  ;;  %v5738_v3 = vld [vmem:[#allocation11 + $0x200] sm:$0xff] }
 0x476   : > { %7009 = vmatprep.subr.bf16.mxu0 %v7008_v61  ;;  %7137 = vmatprep.subr.bf16.mxu1 %v7008_v61  ;;  %v5740_v61 = vld [vmem:[#allocation11 + $0x210] sm:$0xff] }
 0x477   : > { %v12335_v26 = vpack.c.bf16 %v5740_v61, %v5738_v3 }
 0x479   : > { %7011 = vmatpush1.bf16.msra.mxu0 %v7010_v57  ;;  %7139 = vmatpush1.bf16.msra.mxu1 %v7010_v57 }
 0x47a   : > { %7013 = vmatprep.subr.bf16.mxu0 %v7012_v17  ;;  %7141 = vmatprep.subr.bf16.mxu1 %v7012_v17 }
 0x47d   : > { %7015 = vmatpush1.bf16.msra.mxu0 %v7014_v51  ;;  %7143 = vmatpush1.bf16.msra.mxu1 %v7014_v51  ;;  %v6443_v18 = vpop.f32.mrb[2].mxu0  ;;  %v6481_v47 = vpop.f32.mrb[2].mxu1 }
 0x47e   : > { %7017 = vmatprep.subr.bf16.mxu0 %v7016_v48  ;;  %7145 = vmatprep.subr.bf16.mxu1 %v7016_v48  ;;  %v6444_v23 = vpop.f32.mrb[3].mxu0  ;;  %v6482_v25 = vpop.f32.mrb[3].mxu1 }
 0x47f   : > { %v6445_v30 = vadd.f32 %v6444_v23, %v6443_v18  ;;  %v6483_v28 = vadd.f32 %v6482_v25, %v6481_v47  ;;  %v5746_v25 = vld [vmem:[#allocation11 + $0x240] sm:$0xff] }
 0x481   : > { %7019 = vmatpush1.bf16.msra.mxu0 %v7018_v22  ;;  %7147 = vmatpush1.bf16.msra.mxu1 %v7018_v22  ;;  %v4900_v35 = vadd.f32 %v6445_v30, %v12323_v58  ;;  %v4992_v53 = vadd.f32 %v6483_v28, %v12323_v58  ;;  %v5749_v22 = vld [vmem:[#allocation11 + $0x258] sm:$0xff] }
 0x482   : > { %7021 = vmatprep.subr.bf16.mxu0 %v7020_v46  ;;  %7149 = vmatprep.subr.bf16.mxu1 %v7020_v46  ;;  %v12342_v46 = vpack.c.bf16 %v5744_v16, %v5742_v40  ;;  %v12345_v23 = vpack.c.bf16 %v5749_v22, %v5747_v6  ;;  %v5753_v30 = vld [vmem:[#allocation11 + $0x278] sm:$0xff]  ;;  %v5776_v40 = vld [vmem:[#allocation11 + $0x330] sm:$0xff] }
 0x483   : > { %v4904_v20 = vmax.f32 %v4900_v35, 0.0  ;;  %v4996_v4 = vmax.f32 %v4992_v53, 0.0  ;;  %v6554_v39 = vpop.f32.mrb[4].mxu1  ;;  %v12351_v53 = vpack.c.bf16 %v5753_v30, %v5751_v12  ;;  %v5785_v12 = vld [vmem:[#allocation11 + $0x378] sm:$0xff] }
 0x484   : > { %v6516_v60 = vpop.f32.mrb[4].mxu0  ;;  %v6555_v38 = vpop.f32.mrb[5].mxu1 }
 0x485   : > { %v6517_v5 = vpop.f32.mrb[5].mxu0  ;;  %7023 = vmatpush1.bf16.msra.mxu0 %v7022_v10  ;;  %7151 = vmatpush1.bf16.msra.mxu1 %v7022_v10  ;;  %v5182_v45 = vmax.f32 %v4904_v20, %v4996_v4  ;;  %v6556_v9 = vadd.f32 %v6555_v38, %v6554_v39  ;;  %v12348_v10 = vpack.c.bf16 %v5748_v52, %v5746_v25  ;;  %v5756_v39 = vld [vmem:[#allocation11 + $0x290] sm:$0xff]  ;;  %v5758_v38 = vld [vmem:[#allocation11 + $0x2a0] sm:$0xff]  ;;  %v5783_v52 = vld [vmem:[#allocation11 + $0x368] sm:$0xff] }
 0x486   : > { %v6518_v50 = vadd.f32 %v6517_v5, %v6516_v60  ;;  %7025 = vmatprep.subr.bf16.mxu0 %v7024_v37  ;;  %7153 = vmatprep.subr.bf16.mxu1 %v7024_v37  ;;  %v5750_v37 = vld [vmem:[#allocation11 + $0x260] sm:$0xff]  ;;  %v12357_v4 = vpack.c.bf16 %v5757_v11, %v5755_v14  ;;  %v5759_v5 = vld [vmem:[#allocation11 + $0x2a8] sm:$0xff] }
 0x487   : > { %v5192_v2 = vrot.slane %v5182_v45, 1  ;;  %v5171_v44 = vadd.f32 %v6556_v9, %v12323_v58  ;;  %v12354_v20 = vpack.c.bf16 %v5752_v41, %v5750_v37  ;;  %v5754_v60 = vld [vmem:[#allocation11 + $0x280] sm:$0xff] }
 0x488   : > { %v5079_v32 = vadd.f32 %v6518_v50, %v12323_v58 }
 0x489   : > { %7027 = vmatpush1.bf16.msra.mxu0 %v7026_v13  ;;  %7155 = vmatpush1.bf16.msra.mxu1 %v7026_v13  ;;  %v5194_v24 = vmax.f32 %v5182_v45, %v5192_v2  ;;  %v5179_v54 = vmax.f32 %v5171_v44, 0.0  ;;  %v5761_v13 = vld [vmem:[#allocation11 + $0x2b8] sm:$0xff]  ;;  %v12360_v45 = vpack.c.bf16 %v5756_v39, %v5754_v60  ;;  %v5762_v2 = vld [vmem:[#allocation11 + $0x2c0] sm:$0xff]  ;;  %v5767_v44 = vld [vmem:[#allocation11 + $0x2e8] sm:$0xff] }
 0x48a   : > { %v5087_v31 = vmax.f32 %v5079_v32, 0.0  ;;  %7029 = vmatprep.subr.bf16.mxu0 %v7028_v49  ;;  %7157 = vmatprep.subr.bf16.mxu1 %v7028_v49  ;;  %v12363_v50 = vpack.c.bf16 %v5761_v13, %v5759_v5  ;;  %v5760_v49 = vld [vmem:[#allocation11 + $0x2b0] sm:$0xff]  ;;  %v5782_v60 = vld [vmem:[#allocation11 + $0x360] sm:$0xff] }
 0x48b   : > { %5195 = vst [vmem:[#allocation3 + $0x4] sm:$0x1] %v5194_v24  ;;  %5196 = vst [vmem:[#allocation3 + $0x3] sm:$0x4] %v5194_v24  ;;  %v12366_v36 = vpack.c.bf16 %v5760_v49, %v5758_v38  ;;  %v5764_v32 = vld [vmem:[#allocation11 + $0x2d0] sm:$0xff] }
 0x48c   : > { %v5197_v0 = vmax.f32 %v5087_v31, %v5179_v54  ;;  %v12372_v24 = vpack.c.bf16 %v5764_v32, %v5762_v2  ;;  %v5768_v54 = vld [vmem:[#allocation11 + $0x2f0] sm:$0xff] }
 0x48d   : > { %7031 = vmatpush1.bf16.msra.mxu0 %v7030_v59  ;;  %7159 = vmatpush1.bf16.msra.mxu1 %v7030_v59  ;;  %v5769_v59 = vld [vmem:[#allocation11 + $0x2f8] sm:$0xff]  ;;  %v5784_v39 = vld [vmem:[#allocation11 + $0x370] sm:$0xff] }
 0x48e   : > { %7033 = vmatprep.subr.bf16.mxu0 %v7032_v7  ;;  %7161 = vmatprep.subr.bf16.mxu1 %v7032_v7  ;;  %v5200_v29 = vrot.slane %v5197_v0, 1  ;;  %v12375_v31 = vpack.c.bf16 %v5769_v59, %v5767_v44  ;;  %v5766_v7 = vld [vmem:[#allocation11 + $0x2e0] sm:$0xff]  ;;  %v12406_v44 = vpack.c.bf16 %v5784_v39, %v5782_v60  ;;  %v12409_v59 = vpack.c.bf16 %v5789_v19, %v5787_v8 }
 0x48f   : > { %v12378_v3 = vpack.c.bf16 %v5768_v54, %v5766_v7  ;;  %v5786_v7 = vld [vmem:[#allocation11 + $0x380] sm:$0xff]  ;;  %v5788_v54 = vld [vmem:[#allocation11 + $0x390] sm:$0xff] }
 0x490   : > { %v5202_v27 = vmax.f32 %v5197_v0, %v5200_v29  ;;  %v5771_v0 = vld [vmem:[#allocation11 + $0x308] sm:$0xff]  ;;  %v5773_v29 = vld [vmem:[#allocation11 + $0x318] sm:$0xff] }
 0x491   : > { %v6519_v21 = vpop.f32.mrb[6].mxu0  ;;  %v6557_v57 = vpop.f32.mrb[6].mxu1  ;;  %v12381_v61 = vpack.c.bf16 %v5773_v29, %v5771_v0 }
 0x492   : > { %v6520_v17 = vpop.f32.mrb[7].mxu0  ;;  %v6558_v63 = vpop.f32.mrb[7].mxu1  ;;  %5204 = vst [vmem:[#allocation3 + $0x8] sm:$0x1] %v5202_v27  ;;  %5205 = vst [vmem:[#allocation3 + $0x7] sm:$0x4] %v5202_v27 }
 0x493   : > { %5206 = vst [vmem:[#allocation3 + $0x6] sm:$0x10] %v5202_v27  ;;  %5207 = vst [vmem:[#allocation3 + $0x5] sm:$0x40] %v5202_v27  ;;  %v6521_v43 = vadd.f32 %v6520_v17, %v6519_v21  ;;  %v6559_v51 = vadd.f32 %v6558_v63, %v6557_v57  ;;  %v5671_v48 = vld [vmem:[#allocation3 + $0x1] sm:$0x1f]  ;;  %v12384_v57 = vpack.c.bf16 %v5772_v33, %v5770_v34 }
 0x494   : > { %v5670_v55 = vld [vmem:[#allocation3] sm:$0x1f]  ;;  %5878 = vmatprep.mubr.f32.mxu0 %v5671_v48  ;;  %v5775_v27 = vld [vmem:[#allocation11 + $0x328] sm:$0xff]  ;;  %v5777_v21 = vld [vmem:[#allocation11 + $0x338] sm:$0xff] }
 0x495   : > { %v5084_v18 = vadd.f32 %v6521_v43, %v12323_v58  ;;  %v5176_v47 = vadd.f32 %v6559_v51, %v12323_v58  ;;  %5879 = vmatmul.mubr.f32.vlgmr.msra.gmra.mrb[16].mxu0 %v5670_v55  ;;  %v12387_v17 = vpack.c.bf16 %v5777_v21, %v5775_v27  ;;  %v5774_v63 = vld [vmem:[#allocation11 + $0x320] sm:$0xff]  ;;  %v5779_v43 = vld [vmem:[#allocation11 + $0x348] sm:$0xff]  ;;  %v5781_v51 = vld [vmem:[#allocation11 + $0x358] sm:$0xff] }
 0x496   : > { %7035 = vmatpush1.bf16.msra.mxu0 %v12335_v26  ;;  %v12390_v16 = vpack.c.bf16 %v5776_v40, %v5774_v63  ;;  %v5791_v33 = vld [vmem:[#allocation11 + $0x3a8] sm:$0xff]  ;;  %v5793_v27 = vld [vmem:[#allocation11 + $0x3b8] sm:$0xff]  ;;  %v7082_v40 = vpack.c.bf16 %v5788_v54, %v5786_v7 }
 0x497   : > { %v5088_v62 = vmax.f32 %v5084_v18, 0.0  ;;  %v5180_v15 = vmax.f32 %v5176_v47, 0.0  ;;  %7037 = vmatprep.subr.bf16.mxu0 %v12337_v1  ;;  %v12393_v18 = vpack.c.bf16 %v5781_v51, %v5779_v43  ;;  %v5778_v47 = vld [vmem:[#allocation11 + $0x340] sm:$0xff]  ;;  %v7084_v43 = vpack.c.bf16 %v5793_v27, %v5791_v33 }
 0x498   : > { %v5790_v51 = vld [vmem:[#allocation11 + $0x3a0] sm:$0xff] }
 0x499   : > { %v5198_v28 = vmax.f32 %v5088_v62, %v5180_v15  ;;  %v5780_v62 = vld [vmem:[#allocation11 + $0x350] sm:$0xff] }
 0x49a   : > { %7039 = vmatpush1.bf16.msra.mxu0 %v12342_v46  ;;  %v12398_v41 = vpack.c.bf16 %v5780_v62, %v5778_v47 }
 0x49b   : > { %v5209_v35 = vrot.slane %v5198_v28, 1  ;;  %7041 = vmatprep.subr.bf16.mxu0 %v12345_v23 }
 0x49d   : > { %v5211_v56 = vmax.f32 %v5198_v28, %v5209_v35 }
 0x49e   : > { %7043 = vmatpush1.bf16.msra.mxu0 %v12348_v10 }
 0x49f   : > { %5212 = vst [vmem:[#allocation3 + $0xc] sm:$0x1] %v5211_v56  ;;  %5213 = vst [vmem:[#allocation3 + $0xb] sm:$0x4] %v5211_v56  ;;  %7045 = vmatprep.subr.bf16.mxu0 %v12351_v53  ;;  %v12401_v56 = vpack.c.bf16 %v5785_v12, %v5783_v52  ;;  %v5796_v52 = vld [vmem:[#allocation11 + $0x3d0] sm:$0xff]  ;;  %v5799_v12 = vld [vmem:[#allocation11 + $0x3e8] sm:$0xff] }
 0x4a2   : > { %7047 = vmatpush1.bf16.msra.mxu0 %v12354_v20 }
 0x4a3   : > { %7049 = vmatprep.subr.bf16.mxu0 %v12357_v4 }
 0x4a6   : > { %v5673_v9 = vld [vmem:[#allocation3 + $0x9] sm:$0x1f]  ;;  %7051 = vmatpush1.bf16.msra.mxu0 %v12360_v45 }
 0x4a7   : > { %5949 = vmatprep.mubr.f32.mxu0 %v5673_v9  ;;  %7053 = vmatprep.subr.bf16.mxu0 %v12363_v50 }
 0x4aa   : > { %7055 = vmatpush1.bf16.msra.mxu0 %v12366_v36 }
 0x4ab   : > { %7057 = vmatprep.subr.bf16.mxu0 %v12369_v42 }
 0x4ae   : > { %7059 = vmatpush1.bf16.msra.mxu0 %v12372_v24 }
 0x4af   : > { %7061 = vmatprep.subr.bf16.mxu0 %v12375_v31 }
 0x4b2   : > { %7063 = vmatpush1.bf16.msra.mxu0 %v12378_v3 }
 0x4b3   : > { %7065 = vmatprep.subr.bf16.mxu0 %v12381_v61  ;;  %v6592_v48 = vpop.f32.mrb[8].mxu0  ;;  %v6630_v55 = vpop.f32.mrb[8].mxu1 }
 0x4b4   : > { %v6593_v6 = vpop.f32.mrb[9].mxu0  ;;  %v6631_v22 = vpop.f32.mrb[9].mxu1 }
 0x4b5   : > { %v6594_v15 = vadd.f32 %v6593_v6, %v6592_v48  ;;  %v6632_v25 = vadd.f32 %v6631_v22, %v6630_v55  ;;  %v5792_v48 = vld [vmem:[#allocation11 + $0x3b0] sm:$0xff]  ;;  %v5795_v6 = vld [vmem:[#allocation11 + $0x3c8] sm:$0xff]  ;;  %v5797_v22 = vld [vmem:[#allocation11 + $0x3d8] sm:$0xff] }
 0x4b6   : > { %7067 = vmatpush1.bf16.msra.mxu0 %v12384_v57  ;;  %v7086_v62 = vpack.c.bf16 %v5792_v48, %v5790_v51 }
 0x4b7   : > { %7069 = vmatprep.subr.bf16.mxu0 %v12387_v17  ;;  %v5350_v30 = vadd.f32 %v6594_v15, %v12323_v58  ;;  %v5442_v28 = vadd.f32 %v6632_v25, %v12323_v58  ;;  %v6595_v35 = vpop.f32.mrb[10].mxu0  ;;  %v6633_v37 = vpop.f32.mrb[10].mxu1  ;;  %v7088_v15 = vpack.c.bf16 %v5797_v22, %v5795_v6  ;;  %v5794_v25 = vld [vmem:[#allocation11 + $0x3c0] sm:$0xff] }
 0x4b8   : > { %v6596_v14 = vpop.f32.mrb[11].mxu0  ;;  %v6634_v11 = vpop.f32.mrb[11].mxu1 }
 0x4b9   : > { %v5358_v5 = vmax.f32 %v5350_v30, 0.0  ;;  %v5450_v13 = vmax.f32 %v5442_v28, 0.0  ;;  %v6597_v38 = vadd.f32 %v6596_v14, %v6595_v35  ;;  %v6635_v49 = vadd.f32 %v6634_v11, %v6633_v37  ;;  %v5801_v30 = vld [vmem:[#allocation11 + $0x3f8] sm:$0xff]  ;;  %v5798_v37 = vld [vmem:[#allocation11 + $0x3e0] sm:$0xff]  ;;  %v5800_v14 = vld [vmem:[#allocation11 + $0x3f0] sm:$0xff] }
 0x4ba   : > { %7071 = vmatpush1.bf16.msra.mxu0 %v12390_v16  ;;  %v7090_v28 = vpack.c.bf16 %v5796_v52, %v5794_v25  ;;  %v7092_v35 = vpack.c.bf16 %v5801_v30, %v5799_v12  ;;  %v7094_v11 = vpack.c.bf16 %v5800_v14, %v5798_v37 }
 0x4bb   : > { %7073 = vmatprep.subr.bf16.mxu0 %v12393_v18  ;;  %v5636_v9 = vmax.f32 %v5358_v5, %v5450_v13  ;;  %v5355_v2 = vadd.f32 %v6597_v38, %v12323_v58  ;;  %v5447_v32 = vadd.f32 %v6635_v49, %v12323_v58  ;;  %v5672_v5 = vld [vmem:[#allocation3 + $0x8] sm:$0x1f] }
 0x4bd   : > { %v5639_v0 = vrot.slane %v5636_v9, 1  ;;  %v5359_v29 = vmax.f32 %v5355_v2, 0.0  ;;  %v5451_v34 = vmax.f32 %v5447_v32, 0.0  ;;  %v5804_v2 = vlaneseq }
 0x4be   : > { %7075 = vmatpush1.bf16.msra.mxu0 %v12398_v41 }
 0x4bf   : > { %7077 = vmatprep.subr.bf16.mxu0 %v12401_v56  ;;  %v5641_v21 = vmax.f32 %v5636_v9, %v5639_v0  ;;  %v5637_v63 = vmax.f32 %v5359_v29, %v5451_v34  ;;  %v5805_v32 = vshrl.u32 %v5804_v2, 7 }
 0x4c1   : > { %5643 = vst [vmem:[#allocation3 + $0x10] sm:$0x1] %v5641_v21  ;;  %5644 = vst [vmem:[#allocation3 + $0xf] sm:$0x4] %v5641_v21  ;;  %v5648_v55 = vrot.slane %v5637_v63, 1 }
 0x4c2   : > { %7079 = vmatpush1.bf16.msra.mxu0 %v12406_v44  ;;  %5645 = vst [vmem:[#allocation3 + $0xe] sm:$0x10] %v5641_v21  ;;  %5646 = vst [vmem:[#allocation3 + $0xd] sm:$0x40] %v5641_v21 }
 0x4c3   : > { %7081 = vmatprep.subr.bf16.mxu0 %v12409_v59  ;;  %v5650_v47 = vmax.f32 %v5637_v63, %v5648_v55  ;;  %v6092_v63 = vld [vmem:[#allocation12] sm:$0x3] }
 0x4c5   : > { %5651 = vst [vmem:[#allocation3 + $0x14] sm:$0x1] %v5650_v47  ;;  %5652 = vst [vmem:[#allocation3 + $0x13] sm:$0x4] %v5650_v47 }
 0x4c6   : > { %7083 = vmatpush1.bf16.msra.mxu0 %v7082_v40 }
 0x4c7   : > { %7085 = vmatprep.subr.bf16.mxu0 %v7084_v43 }
 0x4ca   : > { %7087 = vmatpush1.bf16.msra.mxu0 %v7086_v62 }
 0x4cb   : > { %7089 = vmatprep.subr.bf16.mxu0 %v7088_v15 }
 0x4cc   : > { %v5961_v60 = vld [vmem:[#allocation3 + $0x11] sm:$0x1f] }
 0x4cd   : > { %v5960_v39 = vld [vmem:[#allocation3 + $0x10] sm:$0x1f]  ;;  %6168 = vmatprep.mubr.f32.mxu1 %v5961_v60 }
 0x4ce   : > { %7091 = vmatpush1.bf16.msra.mxu0 %v7090_v28  ;;  %6169 = vmatmul.mubr.f32.vlgmr.msra.gmra.mrb[16].mxu1 %v5960_v39 }
 0x4cf   : > { %7093 = vmatprep.subr.bf16.mxu0 %v7092_v35  ;;  %7163 = vmatpush1.bf16.msra.mxu1 %v12335_v26 }
 0x4d0   : > { %7165 = vmatprep.subr.bf16.mxu1 %v12337_v1 }
 0x4d2   : > { %7095 = vmatpush1.bf16.msra.mxu0 %v7094_v11 }
 0x4d3   : > { %7167 = vmatpush1.bf16.msra.mxu1 %v12342_v46 }
 0x4d4   : > { %7169 = vmatprep.subr.bf16.mxu1 %v12345_v23 }
 0x4d5   : > { %5950 = vmatmul.mubr.f32.vlgmr.msra.gmra.mrb[16].mxu0 %v5672_v5 }
 0x4d7   : > { %7171 = vmatpush1.bf16.msra.mxu1 %v12348_v10 }
 0x4d8   : > { %7173 = vmatprep.subr.bf16.mxu1 %v12351_v53 }
 0x4db   : > { %7175 = vmatpush1.bf16.msra.mxu1 %v12354_v20 }
 0x4dc   : > { %7177 = vmatprep.subr.bf16.mxu1 %v12357_v4 }
 0x4df   : > { %7179 = vmatpush1.bf16.msra.mxu1 %v12360_v45 }
 0x4e0   : > { %7181 = vmatprep.subr.bf16.mxu1 %v12363_v50 }
 0x4e3   : > { %7183 = vmatpush1.bf16.msra.mxu1 %v12366_v36 }
 0x4e4   : > { %7185 = vmatprep.subr.bf16.mxu1 %v12369_v42 }
 0x4e7   : > { %7187 = vmatpush1.bf16.msra.mxu1 %v12372_v24 }
 0x4e8   : > { %7189 = vmatprep.subr.bf16.mxu1 %v12375_v31 }
 0x4eb   : > { %7191 = vmatpush1.bf16.msra.mxu1 %v12378_v3 }
 0x4ec   : > { %7193 = vmatprep.subr.bf16.mxu1 %v12381_v61 }
 0x4ef   : > { %7195 = vmatpush1.bf16.msra.mxu1 %v12384_v57 }
 0x4f0   : > { %7197 = vmatprep.subr.bf16.mxu1 %v12387_v17 }
 0x4f3   : > { %7199 = vmatpush1.bf16.msra.mxu1 %v12390_v16 }
 0x4f4   : > { %7201 = vmatprep.subr.bf16.mxu1 %v12393_v18 }
 0x4f7   : > { %7203 = vmatpush1.bf16.msra.mxu1 %v12398_v41 }
 0x4f8   : > { %7205 = vmatprep.subr.bf16.mxu1 %v12401_v56 }
 0x4fb   : > { %7207 = vmatpush1.bf16.msra.mxu1 %v12406_v44  ;;  %v5802_v44 = vld [vmem:[#allocation12] sm:$0x3] }
 0x4fc   : > { %7209 = vmatprep.subr.bf16.mxu1 %v12409_v59  ;;  %v5810_v59 = vsub.s32 1, %v5805_v32 }
 0x4fe   : > { %v5811_v54 = vrot.slane %v5802_v44, %v5810_v59 }
 0x4ff   : > { %7211 = vmatpush1.bf16.msra.mxu1 %v7082_v40 }
 0x500   : > { %7213 = vmatprep.subr.bf16.mxu1 %v7084_v43  ;;  %v6101_v43 = vrot.slane %v6092_v63, %v5810_v59 }
 0x503   : > { %7215 = vmatpush1.bf16.msra.mxu1 %v7086_v62 }
 0x504   : > { %7217 = vmatprep.subr.bf16.mxu1 %v7088_v15 }
 0x507   : > { %7219 = vmatpush1.bf16.msra.mxu1 %v7090_v28 }
 0x508   : > { %7221 = vmatprep.subr.bf16.mxu1 %v7092_v35 }
 0x50b   : > { %7223 = vmatpush1.bf16.msra.mxu1 %v7094_v11 }
 0x523   : > { %v6668_v26 = vpop.f32.mrb[12].mxu0  ;;  %v6706_v1 = vpop.f32.mrb[12].mxu1 }
 0x524   : > { %v6669_v46 = vpop.f32.mrb[13].mxu0  ;;  %v6707_v23 = vpop.f32.mrb[13].mxu1 }
 0x525   : > { %v6670_v10 = vadd.f32 %v6669_v46, %v6668_v26  ;;  %v6708_v53 = vadd.f32 %v6707_v23, %v6706_v1 }
 0x527   : > { %v5534_v20 = vadd.f32 %v6670_v10, %v12323_v58  ;;  %v5626_v4 = vadd.f32 %v6708_v53, %v12323_v58  ;;  %v6671_v36 = vpop.f32.mrb[14].mxu0  ;;  %v6709_v42 = vpop.f32.mrb[14].mxu1 }
 0x528   : > { %v6672_v24 = vpop.f32.mrb[15].mxu0  ;;  %v6710_v31 = vpop.f32.mrb[15].mxu1 }
 0x529   : > { %v5542_v45 = vmax.f32 %v5534_v20, 0.0  ;;  %v5634_v50 = vmax.f32 %v5626_v4, 0.0  ;;  %v6673_v61 = vadd.f32 %v6672_v24, %v6671_v36  ;;  %v6711_v57 = vadd.f32 %v6710_v31, %v6709_v42 }
 0x52b   : > { %v5653_v3 = vmax.f32 %v5542_v45, %v5634_v50  ;;  %v5539_v16 = vadd.f32 %v6673_v61, %v12323_v58  ;;  %v5631_v18 = vadd.f32 %v6711_v57, %v12323_v58  ;;  %v5806_v58 = vsub.s32 0, %v5805_v32 }
 0x52d   : > { %v5656_v17 = vrot.slane %v5653_v3, 1  ;;  %v5543_v56 = vmax.f32 %v5539_v16, 0.0  ;;  %v5635_v13 = vmax.f32 %v5631_v18, 0.0  ;;  %v5807_v7 = vrot.slane %v5802_v44, %v5806_v58 }
 0x52e   : > { %v6097_v40 = vrot.slane %v6092_v63, %v5806_v58 }
 0x52f   : > { %v5658_v41 = vmax.f32 %v5653_v3, %v5656_v17  ;;  %v5654_v38 = vmax.f32 %v5543_v56, %v5635_v13 }
 0x531   : > { %5660 = vst [vmem:[#allocation3 + $0x18] sm:$0x1] %v5658_v41  ;;  %5661 = vst [vmem:[#allocation3 + $0x17] sm:$0x4] %v5658_v41  ;;  %v5665_v49 = vrot.slane %v5654_v38, 1 }
 0x532   : > { %5662 = vst [vmem:[#allocation3 + $0x16] sm:$0x10] %v5658_v41  ;;  %5663 = vst [vmem:[#allocation3 + $0x15] sm:$0x40] %v5658_v41 }
 0x533   : > { %v5667_v8 = vmax.f32 %v5654_v38, %v5665_v49 }
 0x535   : > { %5668 = vst [vmem:[#allocation3 + $0x1c] sm:$0x1] %v5667_v8  ;;  %5669 = vst [vmem:[#allocation3 + $0x1b] sm:$0x4] %v5667_v8 }
 0x53c   : > { %v5963_v19 = vld [vmem:[#allocation3 + $0x19] sm:$0x1f] }
 0x53d   : > { %v5962_v9 = vld [vmem:[#allocation3 + $0x18] sm:$0x1f]  ;;  %6239 = vmatprep.mubr.f32.mxu1 %v5963_v19 }
 0x53e   : > { %6240 = vmatmul.mubr.f32.vlgmr.msra.gmra.mrb[16].mxu1 %v5962_v9 }
 0x5a8   : > { %v5951_v0 = vpop.f32.mrb[16].mxu0 }
 0x5a9   : > { %v7224_v29 = vadd.f32 %v5951_v0, %v5807_v7  ;;  %v5953_v34 = vpop.f32.mrb[17].mxu0 }
 0x5aa   : > { %v7225_v33 = vadd.f32 %v5953_v34, %v5811_v54 }
 0x5ab   : > { %v5956_v27 = vmax.f32 %v7224_v29, 0.0 }
 0x5ac   : > { %v5957_v21 = vmax.f32 %v7225_v33, 0.0 }
 0x5ad   : > { %5958 = vst [vmem:[%s367_s10] sm:$0x1f] %v5956_v27 }
 0x5ae   : > { %5959 = vst [vmem:[%s367_s10 + $0x8] sm:$0x1f] %v5957_v21 }
 0x611   : > { %v6241_v51 = vpop.f32.mrb[16].mxu1 }
 0x612   : > { %v7226_v48 = vadd.f32 %v6241_v51, %v6097_v40  ;;  %v6243_v55 = vpop.f32.mrb[17].mxu1 }
 0x613   : > { %v7227_v6 = vadd.f32 %v6243_v55, %v6101_v43 }
 0x614   : > { %v6246_v22 = vmax.f32 %v7226_v48, 0.0 }
 0x615   : > { %v6247_v47 = vmax.f32 %v7227_v6, 0.0 }
 0x616   : > { %6403 = vst [vmem:[%s367_s10 + $0x10] sm:$0x1f] %v6246_v22 }
 0x617   : > { %6404 = vst [vmem:[%s367_s10 + $0x18] sm:$0x1f] %v6247_v47 }
 0x618 PF: > { %s21_s24 = sadd.s32 1, %s7595_s24  }
 0x619   : > { %p18_p7 = scmp.ge.s32.totalorder %s21_s24, 4  }
 0x61b   :  { %20 = sbr.rel (!%p18_p7) target bundleno = 4 (0x4), region = 124 }
 0x622   :  { %6275 = vsyncpa [#allocation5], 1 }
 0x623   :  { %6277 = vsyncpa [#allocation5 + $0x1], 1 }
 0x624   :  { %6278 = vsyncpa [#allocation7], 1 }
 0x625   :  { %6279 = vsyncpa [#allocation10], 1 }
 0x626   :  { %6280 = vsyncpa [#allocation13], 1 }

</bundles_post_ra>
